<compile_context>
chip_gen: v7x
topology: tpu7x:2x2x1
jax: 0.10.0
libtpu: 0.0.40
codegen_flags: <defaults>
</compile_context>

<pallas_src>
import jax
import jax.numpy as jnp
from jax import lax
from jax.experimental import pallas as pl
from jax.experimental.pallas import tpu as pltpu

_LH = 8  # left/right halo width of the conv2 scratch (sublane-aligned interior)


def _round_up(x, m):
    return (x + m - 1) // m * m


def _pick_block_n(n, hw, target_rows=1024):
    """Images per grid step.

    Grow M = NB*H*W toward `target_rows` with a single maximal block (on
    single-TC chips extra steps only add ~0.35us overhead).  When several
    steps are unavoidable, prefer an even step count (v7x dual TensorCore
    under dimension_semantics=('parallel',)) and an M that is a multiple of
    the 8-row sublane tile.
    """
    cands = [d for d in range(1, n + 1) if n % d == 0 and d * hw <= target_rows]
    if not cands:
        return 1
    nb = max(cands)
    steps = n // nb
    if steps > 1 and steps % 2:
        even = [d for d in cands if (n // d) % 2 == 0 and 2 * d >= nb]
        if even:
            nb = max(even)
    if (nb * hw) % 8:
        aligned = [d for d in cands if (d * hw) % 8 == 0 and 2 * d >= nb]
        if aligned:
            nb = max(aligned)
    return nb


def bottleneck_kernel(x_ref, w1_ref, b1_ref, w2_ref, b2_ref, w3_ref, b3_ref,
                      out_ref, pad_ref):
    NB, H, W, cin_p = x_ref.shape
    wp = w1_ref.shape[1]
    cout_p = w3_ref.shape[1]
    M = NB * H * W
    LH = _LH
    WP = W + 2 * LH

    # ---- Conv1 (1x1, BN1 scale folded into w1) + bias + ReLU ---------------
    x_bf = x_ref[...].reshape(M, cin_p)                       # bf16 from HBM
    y1 = jnp.dot(x_bf, w1_ref[...], preferred_element_type=jnp.float32)
    y1 = jnp.maximum(y1 + b1_ref[...], 0.0)

    # ---- Conv2 (3x3, pad=1): 9 accumulated dots over a halo-padded scratch -
    # pad_ref: (NB, H+2, W+2*LH, wp) bf16.  Interior lives at rows [1:H+1],
    # cols [LH:LH+W] so the big interior store starts on a sublane-aligned W
    # offset.  Halo zero-stores are full rows / 8-wide column blocks
    # (lane-dense, sublane-aligned).  The halo is re-zeroed every step: the
    # scratch persists across grid steps and each TensorCore sees a different
    # first step under megacore sharding, so a "zero once" scheme is unsafe.
    pad_ref[:, 0:1, :, :] = jnp.zeros((NB, 1, WP, wp), jnp.bfloat16)
    pad_ref[:, H + 1:H + 2, :, :] = jnp.zeros((NB, 1, WP, wp), jnp.bfloat16)
    pad_ref[:, 1:H + 1, 0:LH, :] = jnp.zeros((NB, H, LH, wp), jnp.bfloat16)
    pad_ref[:, 1:H + 1, LH + W:WP, :] = jnp.zeros((NB, H, LH, wp), jnp.bfloat16)
    pad_ref[:, 1:H + 1, LH:LH + W, :] = (
        y1.astype(jnp.bfloat16).reshape(NB, H, W, wp))

    y2 = None
    for dh in range(3):
        for dw in range(3):
            k = dh * 3 + dw
            c0 = LH - 1 + dw
            tap = pad_ref[:, dh:dh + H, c0:c0 + W, :]
            part = jnp.dot(tap.reshape(M, wp), w2_ref[k],
                           preferred_element_type=jnp.float32)
            y2 = part if y2 is None else y2 + part
    y2 = jnp.maximum(y2 + b2_ref[...], 0.0)

    # ---- Conv3 (1x1, BN3 folded) + bias + identity residual + ReLU ---------
    y3 = jnp.dot(y2.astype(jnp.bfloat16), w3_ref[...],
                 preferred_element_type=jnp.float32)
    resid = x_ref[...].reshape(M, cin_p).astype(jnp.float32)  # re-read x here
    y3 = jnp.maximum(y3 + b3_ref[...] + resid, 0.0)
    out_ref[...] = y3.reshape(NB, H, W, cout_p).astype(out_ref.dtype)


def prepare_params(w1, w2, w3, s1, b1, s2, b2, s3, b3):
    """Offline weight prep: fold inference-mode BN scales into conv weights,
    zero-pad all channel dims to multiples of 128, cast matmul weights to bf16.

    Layouts (relative to PyTorch):
      w1: (Cin, width)            == Conv1.weight[:, :, 0, 0].T
      w2: (3, 3, width, width)    == Conv2.weight.transpose(2, 3, 1, 0)  (HWIO)
      w3: (width, Cout)           == Conv3.weight[:, :, 0, 0].T
      s*, b*: per-channel BN scale / bias
              (gamma/sqrt(var+eps), beta - mean*scale).
    """
    cin, width = w1.shape
    cout = w3.shape[1]
    cin_p = _round_up(cin, 128)
    wp = _round_up(width, 128)
    cout_p = _round_up(cout, 128)

    w1f = w1 * s1.reshape(1, width)
    w2f = w2 * s2.reshape(1, 1, 1, width)
    w3f = w3 * s3.reshape(1, cout)

    w1p = jnp.zeros((cin_p, wp), jnp.float32).at[:cin, :width].set(w1f)
    w2p = jnp.zeros((3, 3, wp, wp), jnp.float32).at[:, :, :width, :width].set(w2f)
    w3p = jnp.zeros((wp, cout_p), jnp.float32).at[:width, :cout].set(w3f)
    b1p = jnp.zeros((1, wp), jnp.float32).at[0, :width].set(b1.reshape(-1))
    b2p = jnp.zeros((1, wp), jnp.float32).at[0, :width].set(b2.reshape(-1))
    b3p = jnp.zeros((1, cout_p), jnp.float32).at[0, :cout].set(b3.reshape(-1))

    return dict(
        w1=w1p.astype(jnp.bfloat16),
        w2=w2p.reshape(9, wp, wp).astype(jnp.bfloat16),   # tap k = dh*3 + dw
        w3=w3p.astype(jnp.bfloat16),
        b1=b1p, b2=b2p, b3=b3p,
        cin=cin, width=width, cout=cout,
    )


def bottleneck_forward_nhwc(x_nhwc, prep):
    """NHWC-in / NHWC-out Bottleneck forward.  bf16 HBM I/O, bf16 output."""
    x = x_nhwc.astype(jnp.bfloat16)
    N, H, W, cin = x.shape
    w1, b1 = prep["w1"], prep["b1"]
    w2, b2 = prep["w2"], prep["b2"]
    w3, b3 = prep["w3"], prep["b3"]
    cin_p, wp = w1.shape
    cout_p = w3.shape[1]
    cout = prep["cout"]
    assert cin == prep["cin"] and cin == cout and cin_p == cout_p, (
        "identity residual path requires Cin == Cout (stride=1, no downsample)")

    if cin_p != cin:
        x = jnp.pad(x, ((0, 0), (0, 0), (0, 0), (0, cin_p - cin)))

    NB = _pick_block_n(N, H * W)
    grid = (N // NB,)

    # Per-step VMEM footprint (bf16 I/O blocks double-buffered, bf16 weights
    # double-buffered, bf16 halo scratch, f32 temporaries) + 1.5x margin,
    # capped below v7x's 64 MiB/TC physical VMEM.
    blk = NB * H * W
    est = (2 * blk * cin_p * 2
           + 2 * blk * cout_p * 2
           + 2 * 2 * (cin_p * wp + 9 * wp * wp + wp * cout_p)
           + NB * (H + 2) * (W + 2 * _LH) * wp * 2
           + 4 * blk * max(wp, cout_p) * 4)
    vmem_limit = int(min(max(int(est * 1.5), 16 * 2**20), 48 * 2**20))

    def const_spec(shape):
        nd = len(shape)
        return pl.BlockSpec(shape, lambda g, _n=nd: (0,) * _n)

    grid_spec = pltpu.PrefetchScalarGridSpec(
        num_scalar_prefetch=0,
        grid=grid,
        in_specs=[
            pl.BlockSpec((NB, H, W, cin_p), lambda g: (g, 0, 0, 0)),
            const_spec(w1.shape), const_spec(b1.shape),
            const_spec(w2.shape), const_spec(b2.shape),
            const_spec(w3.shape), const_spec(b3.shape),
        ],
        out_specs=pl.BlockSpec((NB, H, W, cout_p), lambda g: (g, 0, 0, 0)),
        scratch_shapes=[
            pltpu.VMEM((NB, H + 2, W + 2 * _LH, wp), jnp.bfloat16)],
    )
    out = pl.pallas_call(
        bottleneck_kernel,
        out_shape=jax.ShapeDtypeStruct((N, H, W, cout_p), jnp.bfloat16),
        grid_spec=grid_spec,
        compiler_params=pltpu.CompilerParams(
            dimension_semantics=("parallel",),
            vmem_limit_bytes=vmem_limit),
    )(x, w1, b1, w2, b2, w3, b3)
    if cout_p != cout:
        out = out[..., :cout]
    return out


def bottleneck_forward(x_nchw, prep):
    """PyTorch-layout (NCHW) wrapper around the NHWC kernel."""
    x = jnp.transpose(x_nchw, (0, 2, 3, 1))
    y = bottleneck_forward_nhwc(x, prep)
    return jnp.transpose(y, (0, 3, 1, 2))


def ref_forward(x_nchw, w1, w2, w3, s1, b1, s2, b2, s3, b3):
    """Pure-JAX reference (lax.conv) mirroring the kernel's mixed precision:
    BN folded into bf16 weights, bf16 conv inputs, f32 accumulation, f32
    bias/ReLU, residual added from the bf16-rounded input, bf16 output."""
    x_bf = jnp.transpose(x_nchw, (0, 2, 3, 1)).astype(jnp.bfloat16)
    x_f32 = x_bf.astype(jnp.float32)
    dn = ("NHWC", "HWIO", "NHWC")
    cin, width = w1.shape
    cout = w3.shape[1]
    w1f = (w1 * s1.reshape(1, -1)).astype(jnp.bfloat16).reshape(1, 1, cin, width)
    w2f = (w2 * s2.reshape(1, 1, 1, -1)).astype(jnp.bfloat16)
    w3f = (w3 * s3.reshape(1, -1)).astype(jnp.bfloat16).reshape(1, 1, width, cout)

    y = lax.conv_general_dilated(x_bf, w1f, (1, 1), "VALID",
                                 dimension_numbers=dn,
                                 preferred_element_type=jnp.float32)
    y = jnp.maximum(y + b1.reshape(1, 1, 1, -1), 0.0)
    y = lax.conv_general_dilated(y.astype(jnp.bfloat16), w2f, (1, 1),
                                 ((1, 1), (1, 1)), dimension_numbers=dn,
                                 preferred_element_type=jnp.float32)
    y = jnp.maximum(y + b2.reshape(1, 1, 1, -1), 0.0)
    y = lax.conv_general_dilated(y.astype(jnp.bfloat16), w3f, (1, 1), "VALID",
                                 dimension_numbers=dn,
                                 preferred_element_type=jnp.float32)
    y = jnp.maximum(y + b3.reshape(1, 1, 1, -1) + x_f32, 0.0)
    y = y.astype(jnp.bfloat16).astype(jnp.float32)
    return jnp.transpose(y, (0, 3, 1, 2))


if __name__ == "__main__":
    key = jax.random.PRNGKey(0)
    ks = jax.random.split(key, 16)

    # Small shapes consistent with the module:
    #   groups=1, width_per_group=64 -> width = out_channle
    #   expansion=4, downsample=None, stride=1 -> Cin == out_channle * 4
    N, H, W = 2, 16, 16
    out_ch = 16
    width = out_ch
    expansion = 4
    Cout = out_ch * expansion          # 64
    Cin = Cout                         # identity residual requires Cin == Cout

    x = jax.random.normal(ks[0], (N, Cin, H, W), jnp.float32)   # NCHW input

    def bn_fold(kg, kb, km, kv, c, eps=1e-5):
        gamma = jax.random.normal(kg, (c,)) * 0.1 + 1.0
        beta = jax.random.normal(kb, (c,)) * 0.1
        mean = jax.random.normal(km, (c,)) * 0.1
        var = jax.random.uniform(kv, (c,), minval=0.5, maxval=1.5)
        scale = gamma / jnp.sqrt(var + eps)
        bias = beta - mean * scale
        return scale.astype(jnp.float32), bias.astype(jnp.float32)

    w1 = (jax.random.normal(ks[1], (Cin, width)) * 0.1).astype(jnp.float32)
    w2 = (jax.random.normal(ks[2], (3, 3, width, width)) * 0.1).astype(jnp.float32)
    w3 = (jax.random.normal(ks[3], (width, Cout)) * 0.1).astype(jnp.float32)
    s1, b1 = bn_fold(ks[4], ks[5], ks[6], ks[7], width)
    s2, b2 = bn_fold(ks[8], ks[9], ks[10], ks[11], width)
    s3, b3 = bn_fold(ks[12], ks[13], ks[14], ks[15], Cout)

    prep = prepare_params(w1, w2, w3, s1, b1, s2, b2, s3, b3)
    out = jax.block_until_ready(bottleneck_forward(x, prep))
    assert out.shape == (N, Cout, H, W), out.shape

    ref = ref_forward(x, w1, w2, w3, s1, b1, s2, b2, s3, b3)
    out32 = out.astype(jnp.float32)
    max_err = float(jnp.max(jnp.abs(out32 - ref)))
    assert jnp.allclose(out32, ref, atol=2e-2, rtol=2e-2), max_err
    print("KERNEL_OK")
</pallas_src>

<mosaic_0001>
module attributes {stable_mosaic.version = 11 : i64} {
  func.func @bottleneck_kernel(%arg0: i32, %arg1: memref<2x16x16x128xbf16, #tpu.memory_space<vmem>>, %arg2: memref<128x128xbf16, #tpu.memory_space<vmem>>, %arg3: memref<1x128xf32, #tpu.memory_space<vmem>>, %arg4: memref<9x128x128xbf16, #tpu.memory_space<vmem>>, %arg5: memref<1x128xf32, #tpu.memory_space<vmem>>, %arg6: memref<128x128xbf16, #tpu.memory_space<vmem>>, %arg7: memref<1x128xf32, #tpu.memory_space<vmem>>, %arg8: memref<2x16x16x128xbf16, #tpu.memory_space<vmem>>, %arg9: memref<2x18x32x128xbf16, #tpu.memory_space<vmem>>) attributes {dimension_semantics = [#tpu.dimension_semantics<parallel>], iteration_bounds = array<i64: 1>, scalar_prefetch = 0 : i64, scratch_operands = 1 : i64, tpu.core_type = #tpu.core_type<tc>, window_params = [{transform_indices = @transform_0, window_bounds = array<i64: 2, 16, 16, 128>}, {pipeline_mode = #tpu.pipeline_mode<synchronous>, transform_indices = @transform_1, window_bounds = array<i64: 128, 128>}, {pipeline_mode = #tpu.pipeline_mode<synchronous>, transform_indices = @transform_2, window_bounds = array<i64: 1, 128>}, {pipeline_mode = #tpu.pipeline_mode<synchronous>, transform_indices = @transform_3, window_bounds = array<i64: 9, 128, 128>}, {pipeline_mode = #tpu.pipeline_mode<synchronous>, transform_indices = @transform_4, window_bounds = array<i64: 1, 128>}, {pipeline_mode = #tpu.pipeline_mode<synchronous>, transform_indices = @transform_5, window_bounds = array<i64: 128, 128>}, {pipeline_mode = #tpu.pipeline_mode<synchronous>, transform_indices = @transform_6, window_bounds = array<i64: 1, 128>}, {transform_indices = @transform_7, window_bounds = array<i64: 2, 16, 16, 128>}]} {
    %c0 = arith.constant 0 : index
    %c0_0 = arith.constant 0 : index
    %c0_1 = arith.constant 0 : index
    %c0_2 = arith.constant 0 : index
    %0 = vector.load %arg1[%c0, %c0_0, %c0_1, %c0_2] : memref<2x16x16x128xbf16, #tpu.memory_space<vmem>>, vector<2x16x16x128xbf16>
    %1 = vector.shape_cast %0 : vector<2x16x16x128xbf16> to vector<512x128xbf16>
    %c0_3 = arith.constant 0 : index
    %c0_4 = arith.constant 0 : index
    %2 = vector.load %arg2[%c0_3, %c0_4] : memref<128x128xbf16, #tpu.memory_space<vmem>>, vector<128x128xbf16>
    %cst = arith.constant dense<0.000000e+00> : vector<512x128xf32>
    %3 = tpu.matmul %1, %2, %cst {dimension_numbers = #tpu.dot_dimension_numbers<[1], [0], [0], [1], [0, 0, 1, 1], [], []>} : vector<512x128xbf16>, vector<128x128xbf16>, vector<512x128xf32> -> vector<512x128xf32>
    %c0_5 = arith.constant 0 : index
    %c0_6 = arith.constant 0 : index
    %4 = vector.load %arg3[%c0_5, %c0_6] : memref<1x128xf32, #tpu.memory_space<vmem>>, vector<1x128xf32>
    %5 = vector.broadcast %4 : vector<1x128xf32> to vector<512x128xf32>
    %6 = arith.addf %3, %5 : vector<512x128xf32>
    %cst_7 = arith.constant 0.000000e+00 : f32
    %7 = vector.broadcast %cst_7 : f32 to vector<512x128xf32>
    %8 = arith.maximumf %6, %7 : vector<512x128xf32>
    %cst_8 = arith.constant 0.000000e+00 : bf16
    %9 = vector.broadcast %cst_8 : bf16 to vector<2x1x32x128xbf16>
    %c0_9 = arith.constant 0 : index
    %c0_10 = arith.constant 0 : index
    %c0_11 = arith.constant 0 : index
    %c0_12 = arith.constant 0 : index
    %10 = vector.load %arg9[%c0_9, %c0_10, %c0_11, %c0_12] : memref<2x18x32x128xbf16, #tpu.memory_space<vmem>>, vector<2x1x32x128xbf16>
    tpu.vector_store %arg9[%c0_9, %c0_10, %c0_11, %c0_12], %9 {strides = array<i32>} : memref<2x18x32x128xbf16, #tpu.memory_space<vmem>>, vector<2x1x32x128xbf16>,
    %cst_13 = arith.constant 0.000000e+00 : bf16
    %11 = vector.broadcast %cst_13 : bf16 to vector<2x1x32x128xbf16>
    %c0_14 = arith.constant 0 : index
    %c17 = arith.constant 17 : index
    %c0_15 = arith.constant 0 : index
    %c0_16 = arith.constant 0 : index
    %12 = vector.load %arg9[%c0_14, %c17, %c0_15, %c0_16] : memref<2x18x32x128xbf16, #tpu.memory_space<vmem>>, vector<2x1x32x128xbf16>
    tpu.vector_store %arg9[%c0_14, %c17, %c0_15, %c0_16], %11 {strides = array<i32>} : memref<2x18x32x128xbf16, #tpu.memory_space<vmem>>, vector<2x1x32x128xbf16>,
    %cst_17 = arith.constant 0.000000e+00 : bf16
    %13 = vector.broadcast %cst_17 : bf16 to vector<2x16x8x128xbf16>
    %c0_18 = arith.constant 0 : index
    %c1 = arith.constant 1 : index
    %c0_19 = arith.constant 0 : index
    %c0_20 = arith.constant 0 : index
    %14 = vector.load %arg9[%c0_18, %c1, %c0_19, %c0_20] : memref<2x18x32x128xbf16, #tpu.memory_space<vmem>>, vector<2x16x8x128xbf16>
    tpu.vector_store %arg9[%c0_18, %c1, %c0_19, %c0_20], %13 {strides = array<i32>} : memref<2x18x32x128xbf16, #tpu.memory_space<vmem>>, vector<2x16x8x128xbf16>,
    %cst_21 = arith.constant 0.000000e+00 : bf16
    %15 = vector.broadcast %cst_21 : bf16 to vector<2x16x8x128xbf16>
    %c0_22 = arith.constant 0 : index
    %c1_23 = arith.constant 1 : index
    %c24 = arith.constant 24 : index
    %c0_24 = arith.constant 0 : index
    %16 = vector.load %arg9[%c0_22, %c1_23, %c24, %c0_24] : memref<2x18x32x128xbf16, #tpu.memory_space<vmem>>, vector<2x16x8x128xbf16>
    tpu.vector_store %arg9[%c0_22, %c1_23, %c24, %c0_24], %15 {strides = array<i32>} : memref<2x18x32x128xbf16, #tpu.memory_space<vmem>>, vector<2x16x8x128xbf16>,
    %17 = arith.truncf %8 : vector<512x128xf32> to vector<512x128xbf16>
    %18 = vector.shape_cast %17 : vector<512x128xbf16> to vector<2x16x16x128xbf16>
    %c0_25 = arith.constant 0 : index
    %c1_26 = arith.constant 1 : index
    %c8 = arith.constant 8 : index
    %c0_27 = arith.constant 0 : index
    %19 = vector.load %arg9[%c0_25, %c1_26, %c8, %c0_27] : memref<2x18x32x128xbf16, #tpu.memory_space<vmem>>, vector<2x16x16x128xbf16>
    tpu.vector_store %arg9[%c0_25, %c1_26, %c8, %c0_27], %18 {strides = array<i32>} : memref<2x18x32x128xbf16, #tpu.memory_space<vmem>>, vector<2x16x16x128xbf16>,
    %c0_28 = arith.constant 0 : index
    %c0_29 = arith.constant 0 : index
    %c7 = arith.constant 7 : index
    %c0_30 = arith.constant 0 : index
    %20 = vector.load %arg9[%c0_28, %c0_29, %c7, %c0_30] : memref<2x18x32x128xbf16, #tpu.memory_space<vmem>>, vector<2x16x16x128xbf16>
    %21 = vector.shape_cast %20 : vector<2x16x16x128xbf16> to vector<512x128xbf16>
    %c0_31 = arith.constant 0 : index
    %c0_32 = arith.constant 0 : index
    %c0_33 = arith.constant 0 : index
    %22 = vector.load %arg4[%c0_31, %c0_32, %c0_33] : memref<9x128x128xbf16, #tpu.memory_space<vmem>>, vector<1x128x128xbf16>
    %23 = vector.shape_cast %22 : vector<1x128x128xbf16> to vector<128x128xbf16>
    %cst_34 = arith.constant dense<0.000000e+00> : vector<512x128xf32>
    %24 = tpu.matmul %21, %23, %cst_34 {dimension_numbers = #tpu.dot_dimension_numbers<[1], [0], [0], [1], [0, 0, 1, 1], [], []>} : vector<512x128xbf16>, vector<128x128xbf16>, vector<512x128xf32> -> vector<512x128xf32>
    %c0_35 = arith.constant 0 : index
    %c0_36 = arith.constant 0 : index
    %c8_37 = arith.constant 8 : index
    %c0_38 = arith.constant 0 : index
    %25 = vector.load %arg9[%c0_35, %c0_36, %c8_37, %c0_38] : memref<2x18x32x128xbf16, #tpu.memory_space<vmem>>, vector<2x16x16x128xbf16>
    %26 = vector.shape_cast %25 : vector<2x16x16x128xbf16> to vector<512x128xbf16>
    %c1_39 = arith.constant 1 : index
    %c0_40 = arith.constant 0 : index
    %c0_41 = arith.constant 0 : index
    %27 = vector.load %arg4[%c1_39, %c0_40, %c0_41] : memref<9x128x128xbf16, #tpu.memory_space<vmem>>, vector<1x128x128xbf16>
    %28 = vector.shape_cast %27 : vector<1x128x128xbf16> to vector<128x128xbf16>
    %cst_42 = arith.constant dense<0.000000e+00> : vector<512x128xf32>
    %29 = tpu.matmul %26, %28, %cst_42 {dimension_numbers = #tpu.dot_dimension_numbers<[1], [0], [0], [1], [0, 0, 1, 1], [], []>} : vector<512x128xbf16>, vector<128x128xbf16>, vector<512x128xf32> -> vector<512x128xf32>
    %30 = arith.addf %24, %29 : vector<512x128xf32>
    %c0_43 = arith.constant 0 : index
    %c0_44 = arith.constant 0 : index
    %c9 = arith.constant 9 : index
    %c0_45 = arith.constant 0 : index
    %31 = vector.load %arg9[%c0_43, %c0_44, %c9, %c0_45] : memref<2x18x32x128xbf16, #tpu.memory_space<vmem>>, vector<2x16x16x128xbf16>
    %32 = vector.shape_cast %31 : vector<2x16x16x128xbf16> to vector<512x128xbf16>
    %c2 = arith.constant 2 : index
    %c0_46 = arith.constant 0 : index
    %c0_47 = arith.constant 0 : index
    %33 = vector.load %arg4[%c2, %c0_46, %c0_47] : memref<9x128x128xbf16, #tpu.memory_space<vmem>>, vector<1x128x128xbf16>
    %34 = vector.shape_cast %33 : vector<1x128x128xbf16> to vector<128x128xbf16>
    %cst_48 = arith.constant dense<0.000000e+00> : vector<512x128xf32>
    %35 = tpu.matmul %32, %34, %cst_48 {dimension_numbers = #tpu.dot_dimension_numbers<[1], [0], [0], [1], [0, 0, 1, 1], [], []>} : vector<512x128xbf16>, vector<128x128xbf16>, vector<512x128xf32> -> vector<512x128xf32>
    %36 = arith.addf %30, %35 : vector<512x128xf32>
    %c0_49 = arith.constant 0 : index
    %c1_50 = arith.constant 1 : index
    %c7_51 = arith.constant 7 : index
    %c0_52 = arith.constant 0 : index
    %37 = vector.load %arg9[%c0_49, %c1_50, %c7_51, %c0_52] : memref<2x18x32x128xbf16, #tpu.memory_space<vmem>>, vector<2x16x16x128xbf16>
    %38 = vector.shape_cast %37 : vector<2x16x16x128xbf16> to vector<512x128xbf16>
    %c3 = arith.constant 3 : index
    %c0_53 = arith.constant 0 : index
    %c0_54 = arith.constant 0 : index
    %39 = vector.load %arg4[%c3, %c0_53, %c0_54] : memref<9x128x128xbf16, #tpu.memory_space<vmem>>, vector<1x128x128xbf16>
    %40 = vector.shape_cast %39 : vector<1x128x128xbf16> to vector<128x128xbf16>
    %cst_55 = arith.constant dense<0.000000e+00> : vector<512x128xf32>
    %41 = tpu.matmul %38, %40, %cst_55 {dimension_numbers = #tpu.dot_dimension_numbers<[1], [0], [0], [1], [0, 0, 1, 1], [], []>} : vector<512x128xbf16>, vector<128x128xbf16>, vector<512x128xf32> -> vector<512x128xf32>
    %42 = arith.addf %36, %41 : vector<512x128xf32>
    %c0_56 = arith.constant 0 : index
    %c1_57 = arith.constant 1 : index
    %c8_58 = arith.constant 8 : index
    %c0_59 = arith.constant 0 : index
    %43 = vector.load %arg9[%c0_56, %c1_57, %c8_58, %c0_59] : memref<2x18x32x128xbf16, #tpu.memory_space<vmem>>, vector<2x16x16x128xbf16>
    %44 = vector.shape_cast %43 : vector<2x16x16x128xbf16> to vector<512x128xbf16>
    %c4 = arith.constant 4 : index
    %c0_60 = arith.constant 0 : index
    %c0_61 = arith.constant 0 : index
    %45 = vector.load %arg4[%c4, %c0_60, %c0_61] : memref<9x128x128xbf16, #tpu.memory_space<vmem>>, vector<1x128x128xbf16>
    %46 = vector.shape_cast %45 : vector<1x128x128xbf16> to vector<128x128xbf16>
    %cst_62 = arith.constant dense<0.000000e+00> : vector<512x128xf32>
    %47 = tpu.matmul %44, %46, %cst_62 {dimension_numbers = #tpu.dot_dimension_numbers<[1], [0], [0], [1], [0, 0, 1, 1], [], []>} : vector<512x128xbf16>, vector<128x128xbf16>, vector<512x128xf32> -> vector<512x128xf32>
    %48 = arith.addf %42, %47 : vector<512x128xf32>
    %c0_63 = arith.constant 0 : index
    %c1_64 = arith.constant 1 : index
    %c9_65 = arith.constant 9 : index
    %c0_66 = arith.constant 0 : index
    %49 = vector.load %arg9[%c0_63, %c1_64, %c9_65, %c0_66] : memref<2x18x32x128xbf16, #tpu.memory_space<vmem>>, vector<2x16x16x128xbf16>
    %50 = vector.shape_cast %49 : vector<2x16x16x128xbf16> to vector<512x128xbf16>
    %c5 = arith.constant 5 : index
    %c0_67 = arith.constant 0 : index
    %c0_68 = arith.constant 0 : index
    %51 = vector.load %arg4[%c5, %c0_67, %c0_68] : memref<9x128x128xbf16, #tpu.memory_space<vmem>>, vector<1x128x128xbf16>
    %52 = vector.shape_cast %51 : vector<1x128x128xbf16> to vector<128x128xbf16>
    %cst_69 = arith.constant dense<0.000000e+00> : vector<512x128xf32>
    %53 = tpu.matmul %50, %52, %cst_69 {dimension_numbers = #tpu.dot_dimension_numbers<[1], [0], [0], [1], [0, 0, 1, 1], [], []>} : vector<512x128xbf16>, vector<128x128xbf16>, vector<512x128xf32> -> vector<512x128xf32>
    %54 = arith.addf %48, %53 : vector<512x128xf32>
    %c0_70 = arith.constant 0 : index
    %c2_71 = arith.constant 2 : index
    %c7_72 = arith.constant 7 : index
    %c0_73 = arith.constant 0 : index
    %55 = vector.load %arg9[%c0_70, %c2_71, %c7_72, %c0_73] : memref<2x18x32x128xbf16, #tpu.memory_space<vmem>>, vector<2x16x16x128xbf16>
    %56 = vector.shape_cast %55 : vector<2x16x16x128xbf16> to vector<512x128xbf16>
    %c6 = arith.constant 6 : index
    %c0_74 = arith.constant 0 : index
    %c0_75 = arith.constant 0 : index
    %57 = vector.load %arg4[%c6, %c0_74, %c0_75] : memref<9x128x128xbf16, #tpu.memory_space<vmem>>, vector<1x128x128xbf16>
    %58 = vector.shape_cast %57 : vector<1x128x128xbf16> to vector<128x128xbf16>
    %cst_76 = arith.constant dense<0.000000e+00> : vector<512x128xf32>
    %59 = tpu.matmul %56, %58, %cst_76 {dimension_numbers = #tpu.dot_dimension_numbers<[1], [0], [0], [1], [0, 0, 1, 1], [], []>} : vector<512x128xbf16>, vector<128x128xbf16>, vector<512x128xf32> -> vector<512x128xf32>
    %60 = arith.addf %54, %59 : vector<512x128xf32>
    %c0_77 = arith.constant 0 : index
    %c2_78 = arith.constant 2 : index
    %c8_79 = arith.constant 8 : index
    %c0_80 = arith.constant 0 : index
    %61 = vector.load %arg9[%c0_77, %c2_78, %c8_79, %c0_80] : memref<2x18x32x128xbf16, #tpu.memory_space<vmem>>, vector<2x16x16x128xbf16>
    %62 = vector.shape_cast %61 : vector<2x16x16x128xbf16> to vector<512x128xbf16>
    %c7_81 = arith.constant 7 : index
    %c0_82 = arith.constant 0 : index
    %c0_83 = arith.constant 0 : index
    %63 = vector.load %arg4[%c7_81, %c0_82, %c0_83] : memref<9x128x128xbf16, #tpu.memory_space<vmem>>, vector<1x128x128xbf16>
    %64 = vector.shape_cast %63 : vector<1x128x128xbf16> to vector<128x128xbf16>
    %cst_84 = arith.constant dense<0.000000e+00> : vector<512x128xf32>
    %65 = tpu.matmul %62, %64, %cst_84 {dimension_numbers = #tpu.dot_dimension_numbers<[1], [0], [0], [1], [0, 0, 1, 1], [], []>} : vector<512x128xbf16>, vector<128x128xbf16>, vector<512x128xf32> -> vector<512x128xf32>
    %66 = arith.addf %60, %65 : vector<512x128xf32>
    %c0_85 = arith.constant 0 : index
    %c2_86 = arith.constant 2 : index
    %c9_87 = arith.constant 9 : index
    %c0_88 = arith.constant 0 : index
    %67 = vector.load %arg9[%c0_85, %c2_86, %c9_87, %c0_88] : memref<2x18x32x128xbf16, #tpu.memory_space<vmem>>, vector<2x16x16x128xbf16>
    %68 = vector.shape_cast %67 : vector<2x16x16x128xbf16> to vector<512x128xbf16>
    %c8_89 = arith.constant 8 : index
    %c0_90 = arith.constant 0 : index
    %c0_91 = arith.constant 0 : index
    %69 = vector.load %arg4[%c8_89, %c0_90, %c0_91] : memref<9x128x128xbf16, #tpu.memory_space<vmem>>, vector<1x128x128xbf16>
    %70 = vector.shape_cast %69 : vector<1x128x128xbf16> to vector<128x128xbf16>
    %cst_92 = arith.constant dense<0.000000e+00> : vector<512x128xf32>
    %71 = tpu.matmul %68, %70, %cst_92 {dimension_numbers = #tpu.dot_dimension_numbers<[1], [0], [0], [1], [0, 0, 1, 1], [], []>} : vector<512x128xbf16>, vector<128x128xbf16>, vector<512x128xf32> -> vector<512x128xf32>
    %72 = arith.addf %66, %71 : vector<512x128xf32>
    %c0_93 = arith.constant 0 : index
    %c0_94 = arith.constant 0 : index
    %73 = vector.load %arg5[%c0_93, %c0_94] : memref<1x128xf32, #tpu.memory_space<vmem>>, vector<1x128xf32>
    %74 = vector.broadcast %73 : vector<1x128xf32> to vector<512x128xf32>
    %75 = arith.addf %72, %74 : vector<512x128xf32>
    %cst_95 = arith.constant 0.000000e+00 : f32
    %76 = vector.broadcast %cst_95 : f32 to vector<512x128xf32>
    %77 = arith.maximumf %75, %76 : vector<512x128xf32>
    %78 = arith.truncf %77 : vector<512x128xf32> to vector<512x128xbf16>
    %c0_96 = arith.constant 0 : index
    %c0_97 = arith.constant 0 : index
    %79 = vector.load %arg6[%c0_96, %c0_97] : memref<128x128xbf16, #tpu.memory_space<vmem>>, vector<128x128xbf16>
    %cst_98 = arith.constant dense<0.000000e+00> : vector<512x128xf32>
    %80 = tpu.matmul %78, %79, %cst_98 {dimension_numbers = #tpu.dot_dimension_numbers<[1], [0], [0], [1], [0, 0, 1, 1], [], []>} : vector<512x128xbf16>, vector<128x128xbf16>, vector<512x128xf32> -> vector<512x128xf32>
    %c0_99 = arith.constant 0 : index
    %c0_100 = arith.constant 0 : index
    %c0_101 = arith.constant 0 : index
    %c0_102 = arith.constant 0 : index
    %81 = vector.load %arg1[%c0_99, %c0_100, %c0_101, %c0_102] : memref<2x16x16x128xbf16, #tpu.memory_space<vmem>>, vector<2x16x16x128xbf16>
    %82 = vector.shape_cast %81 : vector<2x16x16x128xbf16> to vector<512x128xbf16>
    %83 = arith.extf %82 : vector<512x128xbf16> to vector<512x128xf32>
    %c0_103 = arith.constant 0 : index
    %c0_104 = arith.constant 0 : index
    %84 = vector.load %arg7[%c0_103, %c0_104] : memref<1x128xf32, #tpu.memory_space<vmem>>, vector<1x128xf32>
    %85 = vector.broadcast %84 : vector<1x128xf32> to vector<512x128xf32>
    %86 = arith.addf %80, %85 : vector<512x128xf32>
    %87 = arith.addf %86, %83 : vector<512x128xf32>
    %cst_105 = arith.constant 0.000000e+00 : f32
    %88 = vector.broadcast %cst_105 : f32 to vector<512x128xf32>
    %89 = arith.maximumf %87, %88 : vector<512x128xf32>
    %90 = vector.shape_cast %89 : vector<512x128xf32> to vector<2x16x16x128xf32>
    %91 = arith.truncf %90 : vector<2x16x16x128xf32> to vector<2x16x16x128xbf16>
    %c0_106 = arith.constant 0 : index
    %c0_107 = arith.constant 0 : index
    %c0_108 = arith.constant 0 : index
    %c0_109 = arith.constant 0 : index
    %92 = vector.load %arg8[%c0_106, %c0_107, %c0_108, %c0_109] : memref<2x16x16x128xbf16, #tpu.memory_space<vmem>>, vector<2x16x16x128xbf16>
    tpu.vector_store %arg8[%c0_106, %c0_107, %c0_108, %c0_109], %91 {strides = array<i32>} : memref<2x16x16x128xbf16, #tpu.memory_space<vmem>>, vector<2x16x16x128xbf16>,
    return
  }
  func.func @transform_0(%arg0: i32) -> (i32, i32, i32, i32) {
    %c0_i32 = arith.constant 0 : i32
    %c0_i32_0 = arith.constant 0 : i32
    %c0_i32_1 = arith.constant 0 : i32
    %c0_i32_2 = arith.constant 0 : i32
    return %arg0, %c0_i32, %c0_i32_0, %c0_i32_1 : i32, i32, i32, i32
  }
  func.func @transform_1(%arg0: i32) -> (i32, i32) {
    %c0_i32 = arith.constant 0 : i32
    %c0_i32_0 = arith.constant 0 : i32
    %c0_i32_1 = arith.constant 0 : i32
    return %c0_i32, %c0_i32_0 : i32, i32
  }
  func.func @transform_2(%arg0: i32) -> (i32, i32) {
    %c0_i32 = arith.constant 0 : i32
    %c0_i32_0 = arith.constant 0 : i32
    %c0_i32_1 = arith.constant 0 : i32
    return %c0_i32, %c0_i32_0 : i32, i32
  }
  func.func @transform_3(%arg0: i32) -> (i32, i32, i32) {
    %c0_i32 = arith.constant 0 : i32
    %c0_i32_0 = arith.constant 0 : i32
    %c0_i32_1 = arith.constant 0 : i32
    %c0_i32_2 = arith.constant 0 : i32
    return %c0_i32, %c0_i32_0, %c0_i32_1 : i32, i32, i32
  }
  func.func @transform_4(%arg0: i32) -> (i32, i32) {
    %c0_i32 = arith.constant 0 : i32
    %c0_i32_0 = arith.constant 0 : i32
    %c0_i32_1 = arith.constant 0 : i32
    return %c0_i32, %c0_i32_0 : i32, i32
  }
  func.func @transform_5(%arg0: i32) -> (i32, i32) {
    %c0_i32 = arith.constant 0 : i32
    %c0_i32_0 = arith.constant 0 : i32
    %c0_i32_1 = arith.constant 0 : i32
    return %c0_i32, %c0_i32_0 : i32, i32
  }
  func.func @transform_6(%arg0: i32) -> (i32, i32) {
    %c0_i32 = arith.constant 0 : i32
    %c0_i32_0 = arith.constant 0 : i32
    %c0_i32_1 = arith.constant 0 : i32
    return %c0_i32, %c0_i32_0 : i32, i32
  }
  func.func @transform_7(%arg0: i32) -> (i32, i32, i32, i32) {
    %c0_i32 = arith.constant 0 : i32
    %c0_i32_0 = arith.constant 0 : i32
    %c0_i32_1 = arith.constant 0 : i32
    %c0_i32_2 = arith.constant 0 : i32
    return %arg0, %c0_i32, %c0_i32_0, %c0_i32_1 : i32, i32, i32, i32
  }
}

</mosaic_0001>

<bundles_post_ra>
// kernel: tpu_custom_call.1
= control target key start
LH: loop header
LB: loop body
LE: loop exit
PB: predicated region body
PF: predicated region fallthrough
CT: control target
= control target key end

     0   :  { %12 = vsyncpa [#allocation4], 0  ;;  %s14707_s0 = inlined_call_operand.hbm [shape: bf16[2,16,16,128], index: 0, kind: input, shape index: {}]   ;;  %s14708_s1 = inlined_call_operand.hbm [shape: bf16[128,128], index: 1, kind: input, shape index: {}]   ;;  %s14709_s2 = inlined_call_operand.vmem [shape: f32[1,128], index: 2, kind: input, shape index: {}]   ;;  %s14710_s3 = inlined_call_operand.hbm [shape: bf16[9,128,128], index: 3, kind: input, shape index: {}]   ;;  %s14711_s4 = inlined_call_operand.vmem [shape: f32[1,128], index: 4, kind: input, shape index: {}]   ;;  %s14712_s5 = inlined_call_operand.hbm [shape: bf16[128,128], index: 5, kind: input, shape index: {}]   ;;  %s14713_s6 = inlined_call_operand.vmem [shape: f32[1,128], index: 6, kind: input, shape index: {}]   ;;  %s14714_s7 = inlined_call_operand.hbm [shape: bf16[2,16,16,128], index: 7, kind: output, shape index: {}]  }
   0x1   :  { %13 = vsyncpa [#allocation7], 0 }
   0x2   :  { %14 = vsyncpa [#allocation10], 0 }
   0x3   :  { %15 = vsyncpa [#allocation5], 0  ;;  %s13041_s24 = smov [#allocation6]   ;;  %s13042_s26 = smov [#allocation3]  }
   0x4   :  { %s33_s25 = sshll.u32 %s13041_s24, 4  ;;  %s21_s27 = sshll.u32 %s13042_s26, 4  ;;  %s34_s25 = int_to_ptr.vmem [resolvable:$true] %s33_s25  ;;  %s13089_s27 = int_to_ptr.vmem [resolvable:$true] %s21_s27 }
   0x5   :  { %s12923_s30 = scalar_lea.hbm %s14708_s1, 1024 }
   0x6   :  { %p12924_p0 = scmp.ne.s32.totalorder %s14708_s1, %s12923_s30  ;;  %p12927_p1 = scmp.lt.u32.totalorder %s12923_s30, %s14708_s1 }
   0x8   :  { %p12929_p2 = pnand %p12927_p1, %p12924_p0 }
   0xa   :  { %12932 = shalt.err (!%p12929_p2)
}
   0xb   :  { %s12933_s12 = scalar_lea.vmem %s34_s25, 1024  ;;  %p12938_p4 = scmp.lt.s32.totalorder %s34_s25, %s34_s25 }
   0xc   :  { %p12934_p3 = scmp.ne.s32.totalorder %s34_s25, %s12933_s12  ;;  %p12939_p5 = scmp.lt.s32.totalorder %s12933_s12, %s12933_s12 }
   0xe   :  { %p12940_p6 = por %p12939_p5, %p12938_p4 }
  0x10   :  { %p12941_p7 = pnand %p12940_p6, %p12934_p3 }
  0x12   :  { %12944 = shalt.err (!%p12941_p7)
}
  0x13   :  { %s13043_s13 = smov 64   ;;  %s13044_s14 = smov 4  }
  0x14   :  { %39 = dma.hbm_to_vmem [thread:$0]  %s14708_s1, 1024, %s34_s25, [#allocation7], %s13043_s13, %s13043_s13, %s13044_s14  }
  0x15   :  { %s12945_s19 = scalar_lea.hbm %s14707_s0, 4096 }
  0x16   :  { %p12946_p8 = scmp.ne.s32.totalorder %s14707_s0, %s12945_s19  ;;  %p12949_p9 = scmp.lt.u32.totalorder %s12945_s19, %s14707_s0 }
  0x18   :  { %p12951_p10 = pnand %p12949_p9, %p12946_p8 }
  0x1a   :  { %12954 = shalt.err (!%p12951_p10)
}
  0x1b   :  { %s12955_s24 = scalar_lea.vmem %s13089_s27, 4096  ;;  %p12960_p12 = scmp.lt.s32.totalorder %s13089_s27, %s13089_s27 }
  0x1c   :  { %p12956_p11 = scmp.ne.s32.totalorder %s13089_s27, %s12955_s24  ;;  %p12961_p13 = scmp.lt.s32.totalorder %s12955_s24, %s12955_s24 }
  0x1e   :  { %p12962_p0 = por %p12961_p13, %p12960_p12 }
  0x20   :  { %p12963_p1 = pnand %p12962_p0, %p12956_p11 }
  0x22   :  { %12966 = shalt.err (!%p12963_p1)
}
  0x23   :  { %27 = dma.hbm_to_vmem [thread:$0]  %s14707_s0, 4096, %s13089_s27, [#allocation4], %s13043_s13, %s13043_s13, %s13044_s14  }
  0x24   :  { %s13045_s26 = smov [#allocation8]   ;;  %s13046_s29 = smov [#allocation9]  }
  0x25   :  { %s47_s28 = sshll.u32 %s13045_s26, 4  ;;  %s61_s30 = sshll.u32 %s13046_s29, 4  ;;  %s48_s28 = int_to_ptr.vmem [resolvable:$true] %s47_s28  ;;  %s13126_s30 = int_to_ptr.vmem [resolvable:$true] %s61_s30 }
  0x26   :  { %s12967_s10 = scalar_lea.hbm %s14710_s3, 9216 }
  0x27   :  { %p12968_p2 = scmp.ne.s32.totalorder %s14710_s3, %s12967_s10  ;;  %p12971_p3 = scmp.lt.u32.totalorder %s12967_s10, %s14710_s3 }
  0x29   :  { %p12973_p4 = pnand %p12971_p3, %p12968_p2 }
  0x2b   :  { %12976 = shalt.err (!%p12973_p4)
}
  0x2c   :  { %s12977_s0 = scalar_lea.vmem %s48_s28, 9216  ;;  %p12982_p6 = scmp.lt.s32.totalorder %s48_s28, %s48_s28 }
  0x2d   :  { %p12978_p5 = scmp.ne.s32.totalorder %s48_s28, %s12977_s0  ;;  %p12983_p7 = scmp.lt.s32.totalorder %s12977_s0, %s12977_s0 }
  0x2f   :  { %p12984_p8 = por %p12983_p7, %p12982_p6 }
  0x31   :  { %p12985_p9 = pnand %p12984_p8, %p12978_p5 }
  0x33   :  { %12988 = shalt.err (!%p12985_p9)
}
  0x34   :  { %53 = dma.hbm_to_vmem [thread:$0]  %s14710_s3, 9216, %s48_s28, [#allocation7], %s13043_s13, %s13043_s13, %s13044_s14  }
  0x35   :  { %s12989_s20 = scalar_lea.hbm %s14712_s5, 1024 }
  0x36   :  { %p12990_p10 = scmp.ne.s32.totalorder %s14712_s5, %s12989_s20  ;;  %p12993_p11 = scmp.lt.u32.totalorder %s12989_s20, %s14712_s5 }
  0x38   :  { %p12995_p12 = pnand %p12993_p11, %p12990_p10 }
  0x3a   :  { %12998 = shalt.err (!%p12995_p12)
}
  0x3b   :  { %s12999_s1 = scalar_lea.vmem %s13126_s30, 1024  ;;  %p13004_p0 = scmp.lt.s32.totalorder %s13126_s30, %s13126_s30 }
  0x3c   :  { %p13000_p13 = scmp.ne.s32.totalorder %s13126_s30, %s12999_s1  ;;  %p13005_p1 = scmp.lt.s32.totalorder %s12999_s1, %s12999_s1 }
  0x3e   :  { %p13006_p2 = por %p13005_p1, %p13004_p0 }
  0x40   :  { %p13007_p3 = pnand %p13006_p2, %p13000_p13 }
  0x42   :  { %13010 = shalt.err (!%p13007_p3)
}
  0x43   :  { %67 = dma.hbm_to_vmem [thread:$0]  %s14712_s5, 1024, %s13126_s30, [#allocation10], %s13043_s13, %s13043_s13, %s13044_s14  }
  0x44   :  { %13033 = dma.done.wait [#allocation4], 4096  }
  0x45   :  { %13034 = vsyncadd [#allocation4], 4294963200 }
  0x46   :  { %13035 = dma.done.wait [#allocation7], 10240  }
  0x47   :  { %13036 = vsyncadd [#allocation7], 4294957056 }
  0x48   :  { %13037 = dma.done.wait [#allocation10], 1024  }
  0x49   :  { %13038 = vsyncadd [#allocation10], 4294966272  ;;  %v12661_v0 = vld [vmem:[#allocation6] sm:$0xff]   ;;  %v12662_v1 = vld [vmem:[#allocation6 + $0x8] sm:$0xff]   ;;  %v13047_v41 = vmov 0   ;;  %vm1782_vm0 = vcmask 1043456  }
  0x4a   :  { %11245 = vmatprep.subr.bf16.mxu0 %v12661_v0  ;;  %v12663_v2 = vld [vmem:[#allocation6 + $0x10] sm:$0xff]   ;;  %v12664_v3 = vld [vmem:[#allocation6 + $0x18] sm:$0xff]   ;;  %v12669_v4 = vld [vmem:[#allocation3] sm:$0xff]   ;;  %763 = vst [vmem:[#allocation2] sm:$0xff] %v13047_v41  ;;  %vm1093_vm1 = vsmask.f32 4352 }
  0x4b   :  { %11246 = vmatpush3.bf16.msra.mxu0 %v12661_v0  ;;  %11261 = vmatprep.mubr.bf16.mxu0 %v12669_v4  ;;  %v12665_v5 = vld [vmem:[#allocation6 + $0x20] sm:$0xff]   ;;  %v12666_v6 = vld [vmem:[#allocation6 + $0x28] sm:$0xff]   ;;  %v12667_v7 = vld [vmem:[#allocation6 + $0x30] sm:$0xff]   ;;  %764 = vst [vmem:[#allocation2 + $0x8] sm:$0xff] %v13047_v41  ;;  %vm2634_vm2 = vsmask.f32 3328 }
  0x4c   :  { %11247 = vmatprep.subr.bf16.mxu0 %v12662_v1  ;;  %v12668_v8 = vld [vmem:[#allocation6 + $0x38] sm:$0xff]   ;;  %v12670_v9 = vld [vmem:[#allocation3 + $0x8] sm:$0xff]   ;;  %v12671_v10 = vld [vmem:[#allocation3 + $0x10] sm:$0xff]   ;;  %765 = vst [vmem:[#allocation2 + $0x120] sm:$0xff] %v13047_v41 }
  0x4d   :  { %v12672_v11 = vld [vmem:[#allocation3 + $0x18] sm:$0xff]   ;;  %v12673_v12 = vld [vmem:[#allocation3 + $0x20] sm:$0xff]   ;;  %v12702_v14 = vld [vmem:[#allocation8 + $0x48] sm:$0xff]   ;;  %766 = vst [vmem:[#allocation2 + $0x128] sm:$0xff] %v13047_v41 }
  0x4e   :  { %v12701_v13 = vld [vmem:[#allocation8 + $0x40] sm:$0xff]   ;;  %v12703_v15 = vld [vmem:[#allocation8 + $0x50] sm:$0xff]   ;;  %v12674_v16 = vld [vmem:[#allocation3 + $0x28] sm:$0xff]   ;;  %768 = vst [vmem:[#allocation2 + $0x110] sm:$0xff] %v13047_v41 }
  0x4f   :  { %11248 = vmatpush3.bf16.msra.mxu0 %v12662_v1  ;;  %v12675_v17 = vld [vmem:[#allocation3 + $0x30] sm:$0xff]   ;;  %v12676_v18 = vld [vmem:[#allocation3 + $0x38] sm:$0xff]   ;;  %v12677_v19 = vld [vmem:[#allocation3 + $0x40] sm:$0xff]   ;;  %769 = vst [vmem:[#allocation2 + $0x118] sm:$0xff] %v13047_v41 }
  0x50   :  { %11249 = vmatprep.subr.bf16.mxu0 %v12663_v2  ;;  %v12678_v20 = vld [vmem:[#allocation3 + $0x48] sm:$0xff]   ;;  %v12679_v21 = vld [vmem:[#allocation3 + $0x50] sm:$0xff]   ;;  %v12680_v22 = vld [vmem:[#allocation3 + $0x58] sm:$0xff]   ;;  %770 = vst [vmem:[#allocation2 + $0x230] sm:$0xff] %v13047_v41 }
  0x51   :  { %v12681_v23 = vld [vmem:[#allocation3 + $0x60] sm:$0xff]   ;;  %v12682_v24 = vld [vmem:[#allocation3 + $0x68] sm:$0xff]   ;;  %v12683_v25 = vld [vmem:[#allocation3 + $0x70] sm:$0xff]   ;;  %771 = vst [vmem:[#allocation2 + $0x238] sm:$0xff] %v13047_v41 }
  0x52   :  { %v12684_v26 = vld [vmem:[#allocation3 + $0x78] sm:$0xff]   ;;  %v12685_v27 = vld [vmem:[#allocation3 + $0x80] sm:$0xff]   ;;  %v12686_v28 = vld [vmem:[#allocation3 + $0x88] sm:$0xff]   ;;  %773 = vst [vmem:[#allocation2 + $0x10] sm:$0xf] %v13047_v41 }
  0x53   :  { %11250 = vmatpush3.bf16.msra.mxu0 %v12663_v2  ;;  %v12687_v29 = vld [vmem:[#allocation3 + $0x90] sm:$0xff]   ;;  %v12688_v30 = vld [vmem:[#allocation3 + $0x98] sm:$0xff]   ;;  %v12689_v31 = vld [vmem:[#allocation3 + $0xa0] sm:$0xff]   ;;  %774 = vst [vmem:[#allocation2 + $0x20] sm:$0xf] %v13047_v41 }
  0x54   :  { %11251 = vmatprep.subr.bf16.mxu0 %v12664_v3  ;;  %v12690_v32 = vld [vmem:[#allocation3 + $0xa8] sm:$0xff]   ;;  %v12691_v33 = vld [vmem:[#allocation3 + $0xb0] sm:$0xff]   ;;  %v12692_v34 = vld [vmem:[#allocation3 + $0xb8] sm:$0xff]   ;;  %775 = vst [vmem:[#allocation2 + $0x30] sm:$0xf] %v13047_v41 }
  0x55   :  { %v12704_v35 = vld [vmem:[#allocation8 + $0x58] sm:$0xff]   ;;  %v12693_v36 = vld [vmem:[#allocation3 + $0xc0] sm:$0xff]   ;;  %v13163_v38 = vld [vmem:[#allocation3 + $0xc8] sm:$0xff]   ;;  %776 = vst [vmem:[#allocation2 + $0x40] sm:$0xf] %v13047_v41 }
  0x56   :  { %v12705_v37 = vld [vmem:[#allocation8 + $0x60] sm:$0xff]   ;;  %v13165_v39 = vld [vmem:[#allocation8 + $0x68] sm:$0xff]   ;;  %v13167_v40 = vld [vmem:[#allocation3 + $0xd0] sm:$0xff]   ;;  %777 = vst [vmem:[#allocation2 + $0x50] sm:$0xf] %v13047_v41 }
  0x57   :  { %11252 = vmatpush3.bf16.msra.mxu0 %v12664_v3  ;;  %778 = vst [vmem:[#allocation2 + $0x60] sm:$0xf] %v13047_v41  ;;  %779 = vst [vmem:[#allocation2 + $0x70] sm:$0xf] %v13047_v41  ;;  %v12707_v42 = vld [vmem:[#allocation8 + $0x70] sm:$0xff]   ;;  %v12696_v43 = vld [vmem:[#allocation3 + $0xd8] sm:$0xff]  }
  0x58   :  { %11253 = vmatprep.subr.bf16.mxu0 %v12665_v5  ;;  %780 = vst [vmem:[#allocation2 + $0x80] sm:$0xf] %v13047_v41  ;;  %781 = vst [vmem:[#allocation2 + $0x90] sm:$0xf] %v13047_v41  ;;  %v12708_v44 = vld [vmem:[#allocation8 + $0x78] sm:$0xff]   ;;  %v12697_v45 = vld [vmem:[#allocation3 + $0xe0] sm:$0xff]  }
  0x59   :  { %782 = vst [vmem:[#allocation2 + $0xa0] sm:$0xf] %v13047_v41  ;;  %783 = vst [vmem:[#allocation2 + $0xb0] sm:$0xf] %v13047_v41  ;;  %v12698_v46 = vld [vmem:[#allocation3 + $0xe8] sm:$0xff]   ;;  %v12699_v47 = vld [vmem:[#allocation3 + $0xf0] sm:$0xff]  }
  0x5a   :  { %784 = vst [vmem:[#allocation2 + $0xc0] sm:$0xf] %v13047_v41  ;;  %785 = vst [vmem:[#allocation2 + $0xd0] sm:$0xf] %v13047_v41  ;;  %v13245_v48 = vld [vmem:[#allocation2 + $0x8] sm:$0xf] }
  0x5b   :  { %11254 = vmatpush3.bf16.msra.mxu0 %v12665_v5  ;;  %786 = vst [vmem:[#allocation2 + $0xe0] sm:$0xf] %v13047_v41  ;;  %787 = vst [vmem:[#allocation2 + $0xf0] sm:$0xf] %v13047_v41  ;;  %v1686_v49 = vld [vmem:[#allocation2] sm:$0xf0] }
  0x5c   :  { %11255 = vmatprep.subr.bf16.mxu0 %v12666_v6  ;;  %788 = vst [vmem:[#allocation2 + $0x100] sm:$0xf] %v13047_v41  ;;  %789 = vst [vmem:[#allocation2 + $0x130] sm:$0xf] %v13047_v41  ;;  %v1783_v50 = vrot.slane %v1686_v49, 4  ;;  %v1784_v51 = vrot.slane %v13245_v48, 4 }
  0x5d   :  { %790 = vst [vmem:[#allocation2 + $0x140] sm:$0xf] %v13047_v41  ;;  %791 = vst [vmem:[#allocation2 + $0x150] sm:$0xf] %v13047_v41  ;;  %v12700_v52 = vld [vmem:[#allocation3 + $0xf8] sm:$0xff]   ;;  %v12709_v54 = vld [vmem:[#allocation8 + $0xc0] sm:$0xff]  }
  0x5e   :  { %792 = vst [vmem:[#allocation2 + $0x160] sm:$0xf] %v13047_v41  ;;  %793 = vst [vmem:[#allocation2 + $0x170] sm:$0xf] %v13047_v41  ;;  %v1785_v53 = vsel %vm1782_vm0, %v1783_v50, %v1784_v51  ;;  %12125 = vmatprep.subr.bf16.mxu1 %v12709_v54  ;;  %v12710_v55 = vld [vmem:[#allocation8 + $0xc8] sm:$0xff]   ;;  %v12711_v56 = vld [vmem:[#allocation8 + $0xd0] sm:$0xff]  }
  0x5f   :  { %11256 = vmatpush3.bf16.msra.mxu0 %v12666_v6  ;;  %794 = vst [vmem:[#allocation2 + $0x180] sm:$0xf] %v13047_v41  ;;  %795 = vst [vmem:[#allocation2 + $0x190] sm:$0xf] %v13047_v41  ;;  %12133 = vmatpush3.bf16.msra.mxu1 %v12709_v54  ;;  %v12712_v57 = vld [vmem:[#allocation8 + $0xd8] sm:$0xff]   ;;  %v12713_v58 = vld [vmem:[#allocation8 + $0xe0] sm:$0xff]  }
  0x60   :  { %11257 = vmatprep.subr.bf16.mxu0 %v12667_v7  ;;  %796 = vst [vmem:[#allocation2 + $0x1a0] sm:$0xf] %v13047_v41  ;;  %797 = vst [vmem:[#allocation2 + $0x1b0] sm:$0xf] %v13047_v41  ;;  %12126 = vmatprep.subr.bf16.mxu1 %v12710_v55  ;;  %v12714_v59 = vld [vmem:[#allocation8 + $0xe8] sm:$0xff]   ;;  %v12715_v60 = vld [vmem:[#allocation8 + $0xf0] sm:$0xff]  }
  0x61   :  { %798 = vst [vmem:[#allocation2 + $0x1c0] sm:$0xf] %v13047_v41  ;;  %799 = vst [vmem:[#allocation2 + $0x1d0] sm:$0xf] %v13047_v41  ;;  %v12716_v61 = vld [vmem:[#allocation8 + $0xf8] sm:$0xff]   ;;  %v12717_v62 = vld [vmem:[#allocation8 + $0x100] sm:$0xff]  }
  0x62   :  { %800 = vst [vmem:[#allocation2 + $0x1e0] sm:$0xf] %v13047_v41  ;;  %801 = vst [vmem:[#allocation2 + $0x1f0] sm:$0xf] %v13047_v41  ;;  %v13252_v63 = vld [vmem:[%s14709_s2] ss:$0 sm:$0xff] }
  0x63   :  { %11258 = vmatpush3.bf16.msra.mxu0 %v12667_v7  ;;  %802 = vst [vmem:[#allocation2 + $0x200] sm:$0xf] %v13047_v41  ;;  %803 = vst [vmem:[#allocation2 + $0x210] sm:$0xf] %v13047_v41  ;;  %12134 = vmatpush3.bf16.msra.mxu1 %v12710_v55  ;;  %v12721_v5 = vld [vmem:[#allocation8] sm:$0xff]  }
  0x64   :  { %11259 = vmatprep.subr.bf16.mxu0 %v12668_v8  ;;  %804 = vst [vmem:[#allocation2 + $0x220] sm:$0xf] %v13047_v41  ;;  %805 = vst [vmem:[#allocation2 + $0x18] sm:$0xf0] %v13047_v41  ;;  %12127 = vmatprep.subr.bf16.mxu1 %v12711_v56 }
  0x65   :  { %806 = vst [vmem:[#allocation2 + $0x28] sm:$0xf0] %v13047_v41  ;;  %807 = vst [vmem:[#allocation2 + $0x38] sm:$0xf0] %v13047_v41 }
  0x66   :  { %808 = vst [vmem:[#allocation2 + $0x48] sm:$0xf0] %v13047_v41  ;;  %809 = vst [vmem:[#allocation2 + $0x58] sm:$0xf0] %v13047_v41 }
  0x67   :  { %11260 = vmatpush3.bf16.msra.mxu0 %v12668_v8  ;;  %810 = vst [vmem:[#allocation2 + $0x68] sm:$0xf0] %v13047_v41  ;;  %811 = vst [vmem:[#allocation2 + $0x78] sm:$0xf0] %v13047_v41  ;;  %12135 = vmatpush3.bf16.msra.mxu1 %v12711_v56  ;;  %v13273_v56 = vld [vmem:[#allocation2 + $0x120] sm:$0xf0] }
  0x68   :  { %11325 = vmatprep.subr.bf16.mxu0 %v12701_v13  ;;  %812 = vst [vmem:[#allocation2 + $0x88] sm:$0xf0] %v13047_v41  ;;  %813 = vst [vmem:[#allocation2 + $0x98] sm:$0xf0] %v13047_v41  ;;  %12128 = vmatprep.subr.bf16.mxu1 %v12712_v57 }
  0x69   :  { %814 = vst [vmem:[#allocation2 + $0xa8] sm:$0xf0] %v13047_v41  ;;  %815 = vst [vmem:[#allocation2 + $0xb8] sm:$0xf0] %v13047_v41 }
  0x6a   :  { %11262 = vmatmul.mubr.bf16.vlgmr.msra.gmra.mrb[0].mxu0 %v12670_v9  ;;  %816 = vst [vmem:[#allocation2 + $0xc8] sm:$0xf0] %v13047_v41  ;;  %817 = vst [vmem:[#allocation2 + $0xd8] sm:$0xf0] %v13047_v41 }
  0x6b   :  { %11265 = vmatprep.mubr.bf16.mxu0 %v12671_v10  ;;  %11326 = vmatpush3.bf16.msra.mxu0 %v12701_v13  ;;  %818 = vst [vmem:[#allocation2 + $0xe8] sm:$0xf0] %v13047_v41  ;;  %819 = vst [vmem:[#allocation2 + $0xf8] sm:$0xf0] %v13047_v41 }
  0x6c   :  { %11327 = vmatprep.subr.bf16.mxu0 %v12702_v14  ;;  %820 = vst [vmem:[#allocation2 + $0x108] sm:$0xf0] %v13047_v41  ;;  %821 = vst [vmem:[#allocation2 + $0x138] sm:$0xf0] %v13047_v41  ;;  %12136 = vmatpush3.bf16.msra.mxu1 %v12712_v57 }
  0x6d   :  { %822 = vst [vmem:[#allocation2 + $0x148] sm:$0xf0] %v13047_v41  ;;  %823 = vst [vmem:[#allocation2 + $0x158] sm:$0xf0] %v13047_v41  ;;  %12129 = vmatprep.subr.bf16.mxu1 %v12713_v58 }
  0x6e   :  { %824 = vst [vmem:[#allocation2 + $0x168] sm:$0xf0] %v13047_v41  ;;  %825 = vst [vmem:[#allocation2 + $0x178] sm:$0xf0] %v13047_v41 }
  0x6f   :  { %11328 = vmatpush3.bf16.msra.mxu0 %v12702_v14  ;;  %826 = vst [vmem:[#allocation2 + $0x188] sm:$0xf0] %v13047_v41  ;;  %827 = vst [vmem:[#allocation2 + $0x198] sm:$0xf0] %v13047_v41 }
  0x70   :  { %11329 = vmatprep.subr.bf16.mxu0 %v12703_v15  ;;  %828 = vst [vmem:[#allocation2 + $0x1a8] sm:$0xf0] %v13047_v41  ;;  %829 = vst [vmem:[#allocation2 + $0x1b8] sm:$0xf0] %v13047_v41  ;;  %12137 = vmatpush3.bf16.msra.mxu1 %v12713_v58 }
  0x71   :  { %830 = vst [vmem:[#allocation2 + $0x1c8] sm:$0xf0] %v13047_v41  ;;  %831 = vst [vmem:[#allocation2 + $0x1d8] sm:$0xf0] %v13047_v41  ;;  %12130 = vmatprep.subr.bf16.mxu1 %v12714_v59 }
  0x72   :  { %11266 = vmatmul.mubr.bf16.gmra.mrb[4].mxu0 %v12672_v11  ;;  %832 = vst [vmem:[#allocation2 + $0x1e8] sm:$0xf0] %v13047_v41  ;;  %833 = vst [vmem:[#allocation2 + $0x1f8] sm:$0xf0] %v13047_v41 }
  0x73   :  { %11269 = vmatprep.mubr.bf16.mxu0 %v12673_v12  ;;  %11330 = vmatpush3.bf16.msra.mxu0 %v12703_v15  ;;  %834 = vst [vmem:[#allocation2 + $0x208] sm:$0xf0] %v13047_v41  ;;  %835 = vst [vmem:[#allocation2 + $0x218] sm:$0xf0] %v13047_v41 }
  0x74   :  { %11331 = vmatprep.subr.bf16.mxu0 %v12704_v35  ;;  %836 = vst [vmem:[#allocation2 + $0x228] sm:$0xf0] %v13047_v41  ;;  %12138 = vmatpush3.bf16.msra.mxu1 %v12714_v59 }
  0x75   :  { %12131 = vmatprep.subr.bf16.mxu1 %v12715_v60 }
  0x77   :  { %11332 = vmatpush3.bf16.msra.mxu0 %v12704_v35 }
  0x78   :  { %11333 = vmatprep.subr.bf16.mxu0 %v12705_v37  ;;  %12139 = vmatpush3.bf16.msra.mxu1 %v12715_v60 }
  0x79   :  { %12132 = vmatprep.subr.bf16.mxu1 %v12716_v61 }
  0x7a   :  { %11270 = vmatmul.mubr.bf16.gmra.mrb[8].mxu0 %v12674_v16 }
  0x7b   :  { %11273 = vmatprep.mubr.bf16.mxu0 %v12675_v17  ;;  %11334 = vmatpush3.bf16.msra.mxu0 %v12705_v37 }
  0x7c   :  { %11335 = vmatprep.subr.bf16.mxu0 %v13165_v39  ;;  %12140 = vmatpush3.bf16.msra.mxu1 %v12716_v61 }
  0x7d   :  { %11645 = vmatprep.subr.bf16.mxu1 %v12717_v62 }
  0x7f   :  { %11336 = vmatpush3.bf16.msra.mxu0 %v13165_v39 }
  0x80   :  { %11337 = vmatprep.subr.bf16.mxu0 %v12707_v42 }
  0x82   :  { %11274 = vmatmul.mubr.bf16.gmra.mrb[12].mxu0 %v12676_v18 }
  0x83   :  { %11277 = vmatprep.mubr.bf16.mxu0 %v12677_v19  ;;  %11338 = vmatpush3.bf16.msra.mxu0 %v12707_v42 }
  0x84   :  { %11339 = vmatprep.subr.bf16.mxu0 %v12708_v44 }
  0x87   :  { %11340 = vmatpush3.bf16.msra.mxu0 %v12708_v44 }
  0x88   :  { %11405 = vmatprep.subr.bf16.mxu0 %v12721_v5 }
  0x8a   :  { %11278 = vmatmul.mubr.bf16.gmra.mrb[16].mxu0 %v12678_v20 }
  0x8b   :  { %11281 = vmatprep.mubr.bf16.mxu0 %v12679_v21 }
  0x92   :  { %11282 = vmatmul.mubr.bf16.gmra.mrb[20].mxu0 %v12680_v22 }
  0x93   :  { %11285 = vmatprep.mubr.bf16.mxu0 %v12681_v23 }
  0x9a   :  { %11286 = vmatmul.mubr.bf16.gmra.mrb[24].mxu0 %v12682_v24 }
  0x9b   :  { %11289 = vmatprep.mubr.bf16.mxu0 %v12683_v25 }
  0xa2   :  { %11290 = vmatmul.mubr.bf16.gmra.mrb[28].mxu0 %v12684_v26 }
  0xa3   :  { %11293 = vmatprep.mubr.bf16.mxu0 %v12685_v27 }
  0xaa   :  { %11294 = vmatmul.mubr.bf16.gmra.mrb[32].mxu0 %v12686_v28 }
  0xab   :  { %11297 = vmatprep.mubr.bf16.mxu0 %v12687_v29 }
  0xb2   :  { %11298 = vmatmul.mubr.bf16.gmra.mrb[36].mxu0 %v12688_v30 }
  0xb3   :  { %11301 = vmatprep.mubr.bf16.mxu0 %v12689_v31 }
  0xba   :  { %11302 = vmatmul.mubr.bf16.gmra.mrb[40].mxu0 %v12690_v32 }
  0xbb   :  { %11305 = vmatprep.mubr.bf16.mxu0 %v12691_v33 }
  0xc2   :  { %11306 = vmatmul.mubr.bf16.gmra.mrb[44].mxu0 %v12692_v34 }
  0xc3   :  { %11309 = vmatprep.mubr.bf16.mxu0 %v12693_v36 }
  0xca   :  { %11310 = vmatmul.mubr.bf16.gmra.mrb[48].mxu0 %v13163_v38 }
  0xcb   :  { %11313 = vmatprep.mubr.bf16.mxu0 %v13167_v40 }
  0xd2   :  { %11314 = vmatmul.mubr.bf16.gmra.mrb[52].mxu0 %v12696_v43 }
  0xd3   :  { %11317 = vmatprep.mubr.bf16.mxu0 %v12697_v45 }
  0xda   :  { %11318 = vmatmul.mubr.bf16.gmra.mrb[56].mxu0 %v12698_v46 }
  0xdb   :  { %11321 = vmatprep.mubr.bf16.mxu0 %v12699_v47 }
  0xe2   :  { %11322 = vmatmul.mubr.bf16.gmra.mrb[60].mxu0 %v12700_v52  ;;  %v12722_v52 = vld [vmem:[#allocation8 + $0x8] sm:$0xff]  }
  0xe3   :  { %11341 = vmatprep.mubr.bf16.mxu0 %v1785_v53 }
 0x13d   :  { %v11263_v0 = vpop.f32.mrb[0].mxu0 }
 0x13e   :  { %v453_v1 = vadd.f32 %v11263_v0, %v13252_v63  ;;  %v444_v2 = vpop.f32.mrb[1].mxu0 }
 0x13f   :  { %v445_v3 = vadd.f32 %v13252_v63, %v444_v2  ;;  %v11264_v4 = vpop.f32.mrb[2].mxu0  ;;  %v13277_v2 = vld [vmem:[#allocation2 + $0x128] sm:$0xf] }
 0x140   :  { %v456_v6 = vadd.f32 %v11264_v4, %v13252_v63  ;;  %v447_v7 = vpop.f32.mrb[3].mxu0  ;;  %v701_v9 = vmax.f32 %v453_v1, 0.0  ;;  %v12724_v4 = vld [vmem:[#allocation8 + $0x10] sm:$0xff]  }
 0x141   :  { %v448_v8 = vadd.f32 %v13252_v63, %v447_v7  ;;  %v699_v11 = vmax.f32 %v445_v3, 0.0  ;;  %v1831_v3 = vrot.slane %v13273_v56, 4 }
 0x142   :  { %v702_v10 = vmax.f32 %v456_v6, 0.0 }
 0x143   :  { %v700_v12 = vmax.f32 %v448_v8, 0.0 }
 0x144   :  { %v838_v13 = vpack.c.bf16 %v702_v10, %v701_v9 }
 0x145   :  { %v837_v14 = vpack.c.bf16 %v700_v12, %v699_v11  ;;  %v11267_v15 = vpop.f32.mrb[4].mxu0 }
 0x146   :  { %v902_v16 = vrot.slane %v838_v13, 4  ;;  %v469_v17 = vadd.f32 %v11267_v15, %v13252_v63  ;;  %v460_v18 = vpop.f32.mrb[5].mxu0 }
 0x147   :  { %v901_v19 = vrot.slane %v837_v14, 4  ;;  %v461_v20 = vadd.f32 %v13252_v63, %v460_v18  ;;  %v11268_v21 = vpop.f32.mrb[6].mxu0 }
 0x148   :  { %967 = vst [vmem:[#allocation2 + $0x28] ss:$-4 sps:$4 sm:$0xff] %v902_v16   ;;  %v472_v22 = vadd.f32 %v11268_v21, %v13252_v63  ;;  %v463_v23 = vpop.f32.mrb[7].mxu0  ;;  %v705_v25 = vmax.f32 %v469_v17, 0.0 }
 0x149   :  { %965 = vst [vmem:[#allocation2 + $0x18] ss:$-4 sps:$4 sm:$0xff] %v901_v19   ;;  %v464_v24 = vadd.f32 %v13252_v63, %v463_v23  ;;  %v703_v27 = vmax.f32 %v461_v20, 0.0 }
 0x14a   :  { %v706_v26 = vmax.f32 %v472_v22, 0.0 }
 0x14b   :  { %v704_v28 = vmax.f32 %v464_v24, 0.0 }
 0x14c   :  { %v840_v29 = vpack.c.bf16 %v706_v26, %v705_v25  ;;  %v12725_v26 = vld [vmem:[#allocation8 + $0x18] sm:$0xff]  }
 0x14d   :  { %v839_v30 = vpack.c.bf16 %v704_v28, %v703_v27  ;;  %v11271_v31 = vpop.f32.mrb[8].mxu0 }
 0x14e   :  { %v904_v32 = vrot.slane %v840_v29, 4  ;;  %v485_v33 = vadd.f32 %v11271_v31, %v13252_v63  ;;  %v476_v34 = vpop.f32.mrb[9].mxu0 }
 0x14f   :  { %v903_v35 = vrot.slane %v839_v30, 4  ;;  %v477_v36 = vadd.f32 %v13252_v63, %v476_v34  ;;  %v11272_v37 = vpop.f32.mrb[10].mxu0  ;;  %v13264_v38 = vld [vmem:[#allocation2 + $0x28] sm:$0xf]  ;;  %v1688_v39 = vld [vmem:[#allocation2 + $0x20] sm:$0xf0] }
 0x150   :  { %971 = vst [vmem:[#allocation2 + $0x48] ss:$-4 sps:$4 sm:$0xff] %v904_v32   ;;  %v488_v40 = vadd.f32 %v11272_v37, %v13252_v63  ;;  %v479_v41 = vpop.f32.mrb[11].mxu0  ;;  %v13267_v42 = vld [vmem:[#allocation2 + $0x18] sm:$0xf]  ;;  %v709_v47 = vmax.f32 %v485_v33, 0.0 }
 0x151   :  { %v1687_v43 = vld [vmem:[#allocation2 + $0x10] sm:$0xf0]  ;;  %969 = vst [vmem:[#allocation2 + $0x38] ss:$-4 sps:$4 sm:$0xff] %v903_v35   ;;  %v480_v44 = vadd.f32 %v13252_v63, %v479_v41  ;;  %v1787_v46 = vrot.slane %v13267_v42, 4  ;;  %v1789_v50 = vrot.slane %v1688_v39, 4 }
 0x152   :  { %v1786_v45 = vrot.slane %v1687_v43, 4  ;;  %v710_v49 = vmax.f32 %v488_v40, 0.0  ;;  %v1790_v51 = vrot.slane %v13264_v38, 4  ;;  %v707_v53 = vmax.f32 %v477_v36, 0.0  ;;  %v1031_v61 = vld [vmem:[#allocation2 + $0x10] sm:$0xf8] }
 0x153   :  { %v708_v54 = vmax.f32 %v480_v44, 0.0  ;;  %v1120_v6 = vshrl.u32 %v13267_v42, 16  ;;  %v13284_v11 = vld [vmem:[#allocation2 + $0x18] sm:$0xf]  ;;  %v1112_v16 = vshrl.u32 %v1031_v61, 16  ;;  %v1115_v21 = vshll.u32 %v1031_v61, 16 }
 0x154   :  { %v1788_v55 = vsel %vm1782_vm0, %v1786_v45, %v1787_v46  ;;  %v842_v57 = vpack.c.bf16 %v710_v49, %v709_v47  ;;  %v1791_v58 = vsel %vm1782_vm0, %v1789_v50, %v1790_v51  ;;  %v13291_v20 = vld [vmem:[#allocation2 + $0x10] sm:$0xf0]  ;;  %v1832_v30 = vrot.slane %v13277_v2, 4  ;;  %v13296_v31 = vld [vmem:[#allocation2 + $0x20] sm:$0xf8] }
 0x155   :  { %11342 = vmatmul.mubr.bf16.vlgmr.msra.gmra.mrb[64].mxu0 %v1788_v55  ;;  %v841_v59 = vpack.c.bf16 %v708_v54, %v707_v53  ;;  %v11275_v60 = vpop.f32.mrb[12].mxu0  ;;  %v4783_v34 = vrot.slane %v13291_v20, 4  ;;  %v4784_v35 = vrot.slane %v13284_v11, 4  ;;  %v1029_v39 = vld [vmem:[#allocation2] sm:$0xf8]  ;;  %v13301_v40 = vrot.slane %v1112_v16, 3 }
 0x156   :  { %11345 = vmatprep.mubr.bf16.mxu0 %v1791_v58  ;;  %11406 = vmatpush3.bf16.msra.mxu0 %v12721_v5  ;;  %v906_v62 = vrot.slane %v842_v57, 4  ;;  %v501_v0 = vadd.f32 %v11275_v60, %v13252_v63  ;;  %v492_v1 = vpop.f32.mrb[13].mxu0  ;;  %v13303_v41 = vrot.slane %v1120_v6, 3  ;;  %v1123_v43 = vshll.u32 %v13267_v42, 16  ;;  %v12727_v47 = vld [vmem:[#allocation8 + $0x20] sm:$0xff]  }
 0x157   :  { %11407 = vmatprep.subr.bf16.mxu0 %v12722_v52  ;;  %v905_v7 = vrot.slane %v841_v59, 4  ;;  %v493_v8 = vadd.f32 %v13252_v63, %v492_v1  ;;  %v11276_v9 = vpop.f32.mrb[14].mxu0  ;;  %v13282_v10 = vld [vmem:[#allocation2 + $0x48] sm:$0xf]  ;;  %v1690_v5 = vld [vmem:[#allocation2 + $0x40] sm:$0xf0] }
 0x158   :  { %975 = vst [vmem:[#allocation2 + $0x68] ss:$-4 sps:$4 sm:$0xff] %v906_v62   ;;  %v504_v12 = vadd.f32 %v11276_v9, %v13252_v63  ;;  %v495_v13 = vpop.f32.mrb[15].mxu0  ;;  %v13287_v14 = vld [vmem:[#allocation2 + $0x38] sm:$0xf]  ;;  %v713_v22 = vmax.f32 %v501_v0, 0.0 }
 0x159   :  { %v1689_v15 = vld [vmem:[#allocation2 + $0x30] sm:$0xf0]  ;;  %973 = vst [vmem:[#allocation2 + $0x58] ss:$-4 sps:$4 sm:$0xff] %v905_v7   ;;  %v496_v17 = vadd.f32 %v13252_v63, %v495_v13  ;;  %v1793_v19 = vrot.slane %v13287_v14, 4  ;;  %v1795_v24 = vrot.slane %v1690_v5, 4 }
 0x15a   :  { %v1792_v18 = vrot.slane %v1689_v15, 4  ;;  %11408 = vmatpush3.bf16.msra.mxu0 %v12722_v52  ;;  %v714_v23 = vmax.f32 %v504_v12, 0.0  ;;  %v1796_v25 = vrot.slane %v13282_v10, 4  ;;  %v711_v27 = vmax.f32 %v493_v8, 0.0  ;;  %v12728_v9 = vld [vmem:[#allocation8 + $0x28] sm:$0xff]  }
 0x15b   :  { %11409 = vmatprep.subr.bf16.mxu0 %v12724_v4  ;;  %v712_v28 = vmax.f32 %v496_v17, 0.0  ;;  %v13307_v49 = vrot.slane %v1115_v21, 4  ;;  %v1129_v50 = vshrl.u32 %v13296_v31, 16  ;;  %v1095_v60 = vshrl.u32 %v1029_v39, 16 }
 0x15c   :  { %v1794_v29 = vsel %vm1782_vm0, %v1792_v18, %v1793_v19  ;;  %v844_v32 = vpack.c.bf16 %v714_v23, %v713_v22  ;;  %v1797_v33 = vsel %vm1782_vm0, %v1795_v24, %v1796_v25  ;;  %v1098_v1 = vshll.u32 %v1029_v39, 16 }
 0x15d   :  { %11346 = vmatmul.mubr.bf16.gmra.mrb[68].mxu0 %v1794_v29  ;;  %v843_v36 = vpack.c.bf16 %v712_v28, %v711_v27  ;;  %v11279_v37 = vpop.f32.mrb[16].mxu0  ;;  %v13320_v15 = vrot.slane %v1123_v43, 4  ;;  %v13323_v18 = vrot.slane %v1129_v50, 3  ;;  %v1132_v19 = vshll.u32 %v13296_v31, 16  ;;  %v12730_v29 = vld [vmem:[#allocation8 + $0x30] sm:$0xff]  }
 0x15e   :  { %11349 = vmatprep.mubr.bf16.mxu0 %v1797_v33  ;;  %11410 = vmatpush3.bf16.msra.mxu0 %v12724_v4  ;;  %v908_v44 = vrot.slane %v844_v32, 4  ;;  %v517_v45 = vadd.f32 %v11279_v37, %v13252_v63  ;;  %v508_v46 = vpop.f32.mrb[17].mxu0  ;;  %v13326_v23 = vrot.slane %v1095_v60, 3  ;;  %v1103_v24 = vshrl.u32 %v13245_v48, 16  ;;  %v13347_v60 = vld [vmem:[#allocation2 + $0x20] sm:$0xf0] }
 0x15f   :  { %11411 = vmatprep.subr.bf16.mxu0 %v12725_v26  ;;  %v907_v51 = vrot.slane %v843_v36, 4  ;;  %v509_v52 = vadd.f32 %v13252_v63, %v508_v46  ;;  %v11280_v53 = vpop.f32.mrb[18].mxu0  ;;  %v13311_v54 = vld [vmem:[#allocation2 + $0x68] sm:$0xf]  ;;  %v1692_v55 = vld [vmem:[#allocation2 + $0x60] sm:$0xf0]  ;;  %v1118_v50 = vor.u32 %v13307_v49, %v13301_v40 }
 0x160   :  { %979 = vst [vmem:[#allocation2 + $0x88] ss:$-4 sps:$4 sm:$0xff] %v908_v44   ;;  %v520_v42 = vadd.f32 %v11280_v53, %v13252_v63  ;;  %v511_v57 = vpop.f32.mrb[19].mxu0  ;;  %v13314_v58 = vld [vmem:[#allocation2 + $0x58] sm:$0xf]  ;;  %v717_v4 = vmax.f32 %v517_v45, 0.0 }
 0x161   :  { %v1691_v59 = vld [vmem:[#allocation2 + $0x50] sm:$0xf0]  ;;  %977 = vst [vmem:[#allocation2 + $0x78] ss:$-4 sps:$4 sm:$0xff] %v907_v51   ;;  %v512_v61 = vadd.f32 %v13252_v63, %v511_v57  ;;  %v1799_v0 = vrot.slane %v13314_v58, 4  ;;  %v1801_v7 = vrot.slane %v1692_v55, 4  ;;  %v1126_v51 = vor.u32 %v13320_v15, %v13303_v41 }
 0x162   :  { %v1798_v62 = vrot.slane %v1691_v59, 4  ;;  %11412 = vmatpush3.bf16.msra.mxu0 %v12725_v26  ;;  %v718_v6 = vmax.f32 %v520_v42, 0.0  ;;  %v1802_v8 = vrot.slane %v13311_v54, 4  ;;  %v715_v5 = vmax.f32 %v509_v52, 0.0  ;;  %v12731_v57 = vld [vmem:[#allocation8 + $0x38] sm:$0xff]  }
 0x163   :  { %11413 = vmatprep.subr.bf16.mxu0 %v12727_v47  ;;  %v716_v12 = vmax.f32 %v512_v61, 0.0  ;;  %v1137_v25 = vshrl.u32 %v13264_v38, 16  ;;  %v13331_v32 = vrot.slane %v1098_v1, 4  ;;  %v1106_v31 = vshll.u32 %v13245_v48, 16  ;;  %v13342_v48 = vld [vmem:[#allocation2 + $0x28] sm:$0xf] }
 0x164   :  { %v1800_v13 = vsel %vm1782_vm0, %v1798_v62, %v1799_v0  ;;  %v846_v16 = vpack.c.bf16 %v718_v6, %v717_v4  ;;  %v1803_v17 = vsel %vm1782_vm0, %v1801_v7, %v1802_v8  ;;  %v13340_v52 = vrot.slane %v1132_v19, 4  ;;  %v13349_v41 = vld [vmem:[#allocation2 + $0x30] sm:$0xf0] }
 0x165   :  { %11350 = vmatmul.mubr.bf16.gmra.mrb[72].mxu0 %v1800_v13  ;;  %v845_v21 = vpack.c.bf16 %v716_v12, %v715_v5  ;;  %v11283_v22 = vpop.f32.mrb[20].mxu0  ;;  %v13345_v59 = vrot.slane %v1103_v24, 3  ;;  %v13352_v6 = vrot.slane %v1137_v25, 3  ;;  %v1035_v7 = vld [vmem:[#allocation2 + $0x30] sm:$0xf8]  ;;  %v13355_v5 = vrot.slane %v1106_v31, 4 }
 0x166   :  { %11353 = vmatprep.mubr.bf16.mxu0 %v1803_v17  ;;  %11414 = vmatpush3.bf16.msra.mxu0 %v12727_v47  ;;  %v910_v26 = vrot.slane %v846_v16, 4  ;;  %v533_v27 = vadd.f32 %v11283_v22, %v13252_v63  ;;  %v524_v28 = vpop.f32.mrb[21].mxu0  ;;  %v1140_v12 = vshll.u32 %v13264_v38, 16  ;;  %v4786_v16 = vrot.slane %v13347_v60, 4 }
 0x167   :  { %11415 = vmatprep.subr.bf16.mxu0 %v12728_v9  ;;  %v909_v33 = vrot.slane %v845_v21, 4  ;;  %v525_v36 = vadd.f32 %v13252_v63, %v524_v28  ;;  %v11284_v37 = vpop.f32.mrb[22].mxu0  ;;  %v1046_v39 = vld [vmem:[#allocation2 + $0x88] sm:$0xf]  ;;  %v1694_v43 = vld [vmem:[#allocation2 + $0x80] sm:$0xf0]  ;;  %v1101_v2 = vor.u32 %v13331_v32, %v13326_v23  ;;  %v13381_v56 = vsel %vm1093_vm1, %v1118_v50, %v1126_v51 }
 0x168   :  { %983 = vst [vmem:[#allocation2 + $0xa8] ss:$-4 sps:$4 sm:$0xff] %v910_v26   ;;  %v536_v44 = vadd.f32 %v11284_v37, %v13252_v63  ;;  %v527_v45 = vpop.f32.mrb[23].mxu0  ;;  %v1044_v46 = vld [vmem:[#allocation2 + $0x78] sm:$0xf]  ;;  %v721_v61 = vmax.f32 %v533_v27, 0.0 }
 0x169   :  { %v1693_v47 = vld [vmem:[#allocation2 + $0x70] sm:$0xf0]  ;;  %981 = vst [vmem:[#allocation2 + $0x98] ss:$-4 sps:$4 sm:$0xff] %v909_v33   ;;  %v528_v53 = vadd.f32 %v13252_v63, %v527_v45  ;;  %v1805_v42 = vrot.slane %v1044_v46, 4  ;;  %v1807_v49 = vrot.slane %v1694_v43, 4 }
 0x16a   :  { %v1804_v55 = vrot.slane %v1693_v47, 4  ;;  %11416 = vmatpush3.bf16.msra.mxu0 %v12728_v9  ;;  %v722_v40 = vmax.f32 %v536_v44, 0.0  ;;  %v1808_v62 = vrot.slane %v1046_v39, 4  ;;  %v719_v0 = vmax.f32 %v525_v36, 0.0 }
 0x16b   :  { %11417 = vmatprep.subr.bf16.mxu0 %v12730_v29  ;;  %v720_v1 = vmax.f32 %v528_v53, 0.0  ;;  %v4787_v17 = vrot.slane %v13342_v48, 4  ;;  %v4789_v19 = vrot.slane %v13349_v41, 4  ;;  %v1146_v25 = vshrl.u32 %v1035_v7, 16 }
 0x16c   :  { %v1806_v4 = vsel %vm1782_vm0, %v1804_v55, %v1805_v42  ;;  %v848_v8 = vpack.c.bf16 %v722_v40, %v721_v61  ;;  %v1809_v9 = vsel %vm1782_vm0, %v1807_v49, %v1808_v62  ;;  %v1149_v26 = vshll.u32 %v1035_v7, 16  ;;  %v1037_v55 = vld [vmem:[#allocation2 + $0x40] sm:$0xf8] }
 0x16d   :  { %11354 = vmatmul.mubr.bf16.gmra.mrb[76].mxu0 %v1806_v4  ;;  %v847_v13 = vpack.c.bf16 %v720_v1, %v719_v0  ;;  %v11287_v15 = vpop.f32.mrb[24].mxu0  ;;  %v13375_v36 = vsel %vm1782_vm0, %v4783_v34, %v4784_v35  ;;  %v13386_v35 = vld [vmem:[#allocation2 + $0x38] sm:$0xf]  ;;  %v13389_v51 = vrot.slane %v1146_v25, 3  ;;  %v1157_v62 = vshll.u32 %v13287_v14, 16 }
 0x16e   :  { %11357 = vmatprep.mubr.bf16.mxu0 %v1809_v9  ;;  %11418 = vmatpush3.bf16.msra.mxu0 %v12730_v29  ;;  %v912_v21 = vrot.slane %v848_v8, 4  ;;  %v549_v22 = vadd.f32 %v11287_v15, %v13252_v63  ;;  %v540_v24 = vpop.f32.mrb[25].mxu0  ;;  %v13368_v29 = vsel %vm1782_vm0, %v1831_v3, %v1832_v30  ;;  %v13383_v3 = vrot.slane %v1140_v12, 4 }
 0x16f   :  { %11419 = vmatprep.subr.bf16.mxu0 %v12731_v57  ;;  %v911_v27 = vrot.slane %v847_v13, 4  ;;  %v541_v38 = vadd.f32 %v13252_v63, %v540_v24  ;;  %v11288_v28 = vpop.f32.mrb[26].mxu0  ;;  %v1050_v31 = vld [vmem:[#allocation2 + $0xa8] sm:$0xf]  ;;  %v1696_v33 = vld [vmem:[#allocation2 + $0xa0] sm:$0xf0] }
 0x170   :  { %987 = vst [vmem:[#allocation2 + $0xc8] ss:$-4 sps:$4 sm:$0xff] %v912_v21   ;;  %v552_v37 = vadd.f32 %v11288_v28, %v13252_v63  ;;  %v543_v39 = vpop.f32.mrb[27].mxu0  ;;  %v1048_v43 = vld [vmem:[#allocation2 + $0x98] sm:$0xf]  ;;  %v725_v11 = vmax.f32 %v549_v22, 0.0 }
 0x171   :  { %v1695_v44 = vld [vmem:[#allocation2 + $0x90] sm:$0xf0]  ;;  %985 = vst [vmem:[#allocation2 + $0xb8] ss:$-4 sps:$4 sm:$0xff] %v911_v27   ;;  %v544_v20 = vadd.f32 %v13252_v63, %v543_v39  ;;  %v1811_v34 = vrot.slane %v1048_v43, 4  ;;  %v723_v45 = vmax.f32 %v541_v38, 0.0  ;;  %v1109_v27 = vor.u32 %v13355_v5, %v13345_v59 }
 0x172   :  { %v1810_v30 = vrot.slane %v1695_v44, 4  ;;  %11420 = vmatpush3.bf16.msra.mxu0 %v12731_v57  ;;  %v726_v46 = vmax.f32 %v552_v37, 0.0  ;;  %v1813_v47 = vrot.slane %v1696_v33, 4  ;;  %v1814_v53 = vrot.slane %v1050_v31, 4 }
 0x173   :  { %v724_v42 = vmax.f32 %v544_v20, 0.0  ;;  %v13391_v61 = vrot.slane %v1149_v26, 4  ;;  %v1154_v57 = vshrl.u32 %v13287_v14, 16  ;;  %v4790_v4 = vrot.slane %v13386_v35, 4 }
 0x174   :  { %v1812_v50 = vsel %vm1782_vm0, %v1810_v30, %v1811_v34  ;;  %v850_v40 = vpack.c.bf16 %v726_v46, %v725_v11  ;;  %v1815_v49 = vsel %vm1782_vm0, %v1813_v47, %v1814_v53  ;;  %v1163_v7 = vshrl.u32 %v1037_v55, 16 }
 0x175   :  { %11358 = vmatmul.mubr.bf16.gmra.mrb[80].mxu0 %v1812_v50  ;;  %v849_v0 = vpack.c.bf16 %v724_v42, %v723_v45  ;;  %v11291_v1 = vpop.f32.mrb[28].mxu0  ;;  %v1166_v8 = vshll.u32 %v1037_v55, 16  ;;  %v13398_v15 = vrot.slane %v1154_v57, 3  ;;  %v1159_v21 = vrot.slane %v1157_v62, 4  ;;  %v4690_v45 = vld [vmem:[#allocation2 + $0x40] sm:$0xf0] }
 0x176   :  { %11361 = vmatprep.mubr.bf16.mxu0 %v1815_v49  ;;  %v914_v9 = vrot.slane %v850_v40, 4  ;;  %v565_v12 = vadd.f32 %v11291_v1, %v13252_v63  ;;  %v556_v13 = vpop.f32.mrb[29].mxu0  ;;  %v1135_v38 = vor.u32 %v13340_v52, %v13323_v18  ;;  %v1143_v43 = vor.u32 %v13383_v3, %v13352_v6  ;;  %v3636_v52 = vld [vmem:[#allocation2 + $0x48] sm:$0xf] }
 0x177   :  { %v913_v22 = vrot.slane %v849_v0, 4  ;;  %v557_v24 = vadd.f32 %v13252_v63, %v556_v13  ;;  %v11292_v25 = vpop.f32.mrb[30].mxu0  ;;  %v1054_v26 = vld [vmem:[#allocation2 + $0xc8] sm:$0xf]  ;;  %v1698_v14 = vld [vmem:[#allocation2 + $0xc0] sm:$0xf0]  ;;  %v1152_v44 = vor.u32 %v13391_v61, %v13389_v51  ;;  %v1160_v18 = vor.u32 %v1159_v21, %v13398_v15 }
 0x178   :  { %991 = vst [vmem:[#allocation2 + $0xe8] ss:$-4 sps:$4 sm:$0xff] %v914_v9   ;;  %v729_v28 = vmax.f32 %v565_v12, 0.0  ;;  %v568_v31 = vadd.f32 %v11292_v25, %v13252_v63  ;;  %v559_v33 = vpop.f32.mrb[31].mxu0  ;;  %v1052_v37 = vld [vmem:[#allocation2 + $0xb8] sm:$0xf]  ;;  %v13424_v40 = vsel %vm1093_vm1, %v1101_v2, %v1109_v27  ;;  %v13440_v13 = vsel %vm1093_vm1, %v1135_v38, %v1143_v43 }
 0x179   :  { %v1697_v39 = vld [vmem:[#allocation2 + $0xb0] sm:$0xf0]  ;;  %989 = vst [vmem:[#allocation2 + $0xd8] ss:$-4 sps:$4 sm:$0xff] %v913_v22   ;;  %v560_v11 = vadd.f32 %v13252_v63, %v559_v33  ;;  %v1817_v5 = vrot.slane %v1052_v37, 4  ;;  %v727_v20 = vmax.f32 %v557_v24, 0.0  ;;  %v13445_v48 = vsel %vm1782_vm0, %v4789_v19, %v4790_v4 }
 0x17a   :  { %v1816_v59 = vrot.slane %v1697_v39, 4  ;;  %v730_v30 = vmax.f32 %v568_v31, 0.0  ;;  %v1819_v34 = vrot.slane %v1698_v14, 4  ;;  %v1820_v35 = vrot.slane %v1054_v26, 4  ;;  %v1039_v26 = vld [vmem:[#allocation2 + $0x50] sm:$0xf8] }
 0x17b   :  { %v728_v46 = vmax.f32 %v560_v11, 0.0  ;;  %v13413_v6 = vrot.slane %v1163_v7, 3  ;;  %v13415_v3 = vrot.slane %v1166_v8, 4  ;;  %v1171_v42 = vshrl.u32 %v13282_v10, 16  ;;  %v13436_v8 = vld [vmem:[#allocation2 + $0x50] sm:$0xf0] }
 0x17c   :  { %v1818_v47 = vsel %vm1782_vm0, %v1816_v59, %v1817_v5  ;;  %v852_v53 = vpack.c.bf16 %v730_v30, %v729_v28  ;;  %v1821_v55 = vsel %vm1782_vm0, %v1819_v34, %v1820_v35  ;;  %v1174_v50 = vshll.u32 %v13282_v10, 16  ;;  %v13459_v31 = vld [vmem:[#allocation2 + $0x58] sm:$0xf] }
 0x17d   :  { %11362 = vmatmul.mubr.bf16.gmra.mrb[84].mxu0 %v1818_v47  ;;  %v851_v51 = vpack.c.bf16 %v728_v46, %v727_v20  ;;  %v11295_v61 = vpop.f32.mrb[32].mxu0  ;;  %v4792_v49 = vrot.slane %v4690_v45, 4  ;;  %v4793_v57 = vrot.slane %v3636_v52, 4  ;;  %v13432_v10 = vsel %vm1782_vm0, %v4786_v16, %v4787_v17 }
 0x17e   :  { %11365 = vmatprep.mubr.bf16.mxu0 %v1821_v55  ;;  %v916_v62 = vrot.slane %v852_v53, 4  ;;  %v581_v0 = vadd.f32 %v11295_v61, %v13252_v63  ;;  %v572_v1 = vpop.f32.mrb[33].mxu0  ;;  %v13434_v7 = vrot.slane %v1171_v42, 3  ;;  %v13449_v21 = vsel %vm1093_vm1, %v1152_v44, %v1160_v18 }
 0x17f   :  { %v915_v23 = vrot.slane %v851_v51, 4  ;;  %v573_v32 = vadd.f32 %v13252_v63, %v572_v1  ;;  %v11296_v2 = vpop.f32.mrb[34].mxu0  ;;  %v1058_v9 = vld [vmem:[#allocation2 + $0xe8] sm:$0xf]  ;;  %v1700_v12 = vld [vmem:[#allocation2 + $0xe0] sm:$0xf0]  ;;  %v1169_v22 = vor.u32 %v13415_v3, %v13413_v6  ;;  %v13457_v4 = vsel %vm1782_vm0, %v4792_v49, %v4793_v57 }
 0x180   :  { %995 = vst [vmem:[#allocation2 + $0x108] ss:$-4 sps:$4 sm:$0xff] %v916_v62   ;;  %v584_v60 = vadd.f32 %v11296_v2, %v13252_v63  ;;  %v575_v16 = vpop.f32.mrb[35].mxu0  ;;  %v1056_v17 = vld [vmem:[#allocation2 + $0xd8] sm:$0xf]  ;;  %v13453_v24 = vrot.slane %v1174_v50, 4 }
 0x181   :  { %v1699_v15 = vld [vmem:[#allocation2 + $0xd0] sm:$0xf0]  ;;  %993 = vst [vmem:[#allocation2 + $0xf8] ss:$-4 sps:$4 sm:$0xff] %v915_v23   ;;  %v576_v41 = vadd.f32 %v13252_v63, %v575_v16  ;;  %v1823_v19 = vrot.slane %v1056_v17, 4  ;;  %v733_v14 = vmax.f32 %v581_v0, 0.0 }
 0x182   :  { %v1822_v25 = vrot.slane %v1699_v15, 4  ;;  %v734_v27 = vmax.f32 %v584_v60, 0.0  ;;  %v1825_v38 = vrot.slane %v1700_v12, 4  ;;  %v1826_v28 = vrot.slane %v1058_v9, 4  ;;  %v1041_v49 = vld [vmem:[#allocation2 + $0x60] sm:$0xf8] }
 0x183   :  { %v731_v33 = vmax.f32 %v573_v32, 0.0  ;;  %v732_v37 = vmax.f32 %v576_v41, 0.0  ;;  %v4795_v43 = vrot.slane %v13436_v8, 4  ;;  %v1180_v59 = vshrl.u32 %v1039_v26, 16  ;;  %v4692_v41 = vld [vmem:[#allocation2 + $0x60] sm:$0xf0] }
 0x184   :  { %v1824_v39 = vsel %vm1782_vm0, %v1822_v25, %v1823_v19  ;;  %v854_v44 = vpack.c.bf16 %v734_v27, %v733_v14  ;;  %v1827_v11 = vsel %vm1782_vm0, %v1825_v38, %v1826_v28  ;;  %v1183_v5 = vshll.u32 %v1039_v26, 16 }
 0x185   :  { %11366 = vmatmul.mubr.bf16.gmra.mrb[88].mxu0 %v1824_v39  ;;  %v853_v18 = vpack.c.bf16 %v732_v37, %v731_v33  ;;  %v11299_v52 = vpop.f32.mrb[36].mxu0  ;;  %v4796_v20 = vrot.slane %v13459_v31, 4  ;;  %v1188_v30 = vshrl.u32 %v13314_v58, 16  ;;  %v1191_v34 = vshll.u32 %v13314_v58, 16 }
 0x186   :  { %11369 = vmatprep.mubr.bf16.mxu0 %v1827_v11  ;;  %v918_v35 = vrot.slane %v854_v44, 4  ;;  %v597_v45 = vadd.f32 %v11299_v52, %v13252_v63  ;;  %v588_v46 = vpop.f32.mrb[37].mxu0  ;;  %v1182_v47 = vrot.slane %v1180_v59, 3  ;;  %v1185_v53 = vrot.slane %v1183_v5, 4 }
 0x187   :  { %v917_v55 = vrot.slane %v853_v18, 4  ;;  %v589_v42 = vadd.f32 %v13252_v63, %v588_v46  ;;  %v11300_v50 = vpop.f32.mrb[38].mxu0  ;;  %v1190_v51 = vrot.slane %v1188_v30, 3  ;;  %v1193_v61 = vrot.slane %v1191_v34, 4 }
 0x188   :  { %999 = vst [vmem:[#allocation2 + $0x148] ss:$-4 sps:$4 sm:$0xff] %v918_v35   ;;  %v737_v57 = vmax.f32 %v597_v45, 0.0  ;;  %v600_v62 = vadd.f32 %v11300_v50, %v13252_v63  ;;  %v591_v0 = vpop.f32.mrb[39].mxu0  ;;  %v1060_v1 = vld [vmem:[#allocation2 + $0xf8] sm:$0xf]  ;;  %v1177_v8 = vor.u32 %v13453_v24, %v13434_v7  ;;  %v1186_v23 = vor.u32 %v1185_v53, %v1182_v47 }
 0x189   :  { %v1701_v58 = vld [vmem:[#allocation2 + $0xf0] sm:$0xf0]  ;;  %997 = vst [vmem:[#allocation2 + $0x138] ss:$-4 sps:$4 sm:$0xff] %v917_v55   ;;  %v735_v32 = vmax.f32 %v589_v42, 0.0  ;;  %v592_v2 = vadd.f32 %v13252_v63, %v591_v0  ;;  %v1829_v12 = vrot.slane %v1060_v1, 4  ;;  %v1194_v16 = vor.u32 %v1193_v61, %v1190_v51 }
 0x18a   :  { %v1828_v9 = vrot.slane %v1701_v58, 4  ;;  %v738_v60 = vmax.f32 %v600_v62, 0.0  ;;  %v1197_v17 = vshrl.u32 %v1041_v49, 16  ;;  %v1200_v15 = vshll.u32 %v1041_v49, 16  ;;  %v3640_v7 = vld [vmem:[#allocation2 + $0x68] sm:$0xf] }
 0x18b   :  { %v736_v25 = vmax.f32 %v592_v2, 0.0  ;;  %v1205_v26 = vshrl.u32 %v13311_v54, 16  ;;  %v1208_v14 = vshll.u32 %v13311_v54, 16  ;;  %v13480_v27 = vsel %vm1093_vm1, %v1169_v22, %v1177_v8 }
 0x18c   :  { %v1830_v19 = vsel %vm1782_vm0, %v1828_v9, %v1829_v12  ;;  %v856_v24 = vpack.c.bf16 %v738_v60, %v737_v57  ;;  %v13482_v38 = vrot.slane %v1197_v17, 3  ;;  %v13484_v28 = vrot.slane %v1200_v15, 4 }
 0x18d   :  { %11370 = vmatmul.mubr.bf16.gmra.mrb[92].mxu0 %v1830_v19  ;;  %v855_v31 = vpack.c.bf16 %v736_v25, %v735_v32  ;;  %v11303_v33 = vpop.f32.mrb[40].mxu0  ;;  %v13487_v37 = vrot.slane %v1205_v26, 3  ;;  %v13489_v54 = vrot.slane %v1208_v14, 4  ;;  %v4798_v39 = vrot.slane %v4692_v41, 4 }
 0x18e   :  { %11373 = vmatprep.mubr.bf16.mxu0 %v13368_v29  ;;  %v920_v44 = vrot.slane %v856_v24, 4  ;;  %v613_v11 = vadd.f32 %v11303_v33, %v13252_v63  ;;  %v604_v6 = vpop.f32.mrb[41].mxu0  ;;  %v13493_v3 = vsel %vm1782_vm0, %v4795_v43, %v4796_v20  ;;  %v4799_v22 = vrot.slane %v3640_v7, 4 }
 0x18f   :  { %v919_v59 = vrot.slane %v855_v31, 4  ;;  %v605_v5 = vadd.f32 %v13252_v63, %v604_v6  ;;  %v11304_v18 = vpop.f32.mrb[42].mxu0  ;;  %v1066_v52 = vld [vmem:[#allocation2 + $0x148] sm:$0xf]  ;;  %v1704_v30 = vld [vmem:[#allocation2 + $0x140] sm:$0xf0]  ;;  %v13497_v29 = vsel %vm1093_vm1, %v1186_v23, %v1194_v16  ;;  %v1203_v34 = vor.u32 %v13484_v28, %v13482_v38 }
 0x190   :  { %1003 = vst [vmem:[#allocation2 + $0x168] ss:$-4 sps:$4 sm:$0xff] %v920_v44   ;;  %v741_v35 = vmax.f32 %v613_v11, 0.0  ;;  %v616_v45 = vadd.f32 %v11304_v18, %v13252_v63  ;;  %v607_v46 = vpop.f32.mrb[43].mxu0  ;;  %v1064_v43 = vld [vmem:[#allocation2 + $0x138] sm:$0xf]  ;;  %v1211_v47 = vor.u32 %v13489_v54, %v13487_v37  ;;  %v13505_v53 = vsel %vm1782_vm0, %v4798_v39, %v4799_v22 }
 0x191   :  { %v1703_v20 = vld [vmem:[#allocation2 + $0x130] sm:$0xf0]  ;;  %1001 = vst [vmem:[#allocation2 + $0x158] ss:$-4 sps:$4 sm:$0xff] %v919_v59   ;;  %v739_v55 = vmax.f32 %v605_v5, 0.0  ;;  %v608_v42 = vadd.f32 %v13252_v63, %v607_v46  ;;  %v1835_v51 = vrot.slane %v1064_v43, 4 }
 0x192   :  { %v1834_v50 = vrot.slane %v1703_v20, 4  ;;  %v3661_v61 = vld [vmem:[#allocation2 + $0x130] sm:$0xf8]  ;;  %v742_v49 = vmax.f32 %v616_v45, 0.0  ;;  %v1837_v57 = vrot.slane %v1704_v30, 4  ;;  %v1838_v62 = vrot.slane %v1066_v52, 4 }
 0x193   :  { %v3662_v0 = vld [vmem:[#allocation2 + $0x138] sm:$0xf]  ;;  %v3966_v1 = vshrl.u32 %v3661_v61, 16  ;;  %v740_v58 = vmax.f32 %v608_v42, 0.0  ;;  %v3969_v23 = vshll.u32 %v3661_v61, 16 }
 0x194   :  { %v1836_v8 = vsel %vm1782_vm0, %v1834_v50, %v1835_v51  ;;  %v3974_v32 = vshrl.u32 %v3662_v0, 16  ;;  %v3663_v2 = vld [vmem:[#allocation2 + $0x140] sm:$0xf8]  ;;  %v858_v9 = vpack.c.bf16 %v742_v49, %v741_v35  ;;  %v1839_v12 = vsel %vm1782_vm0, %v1837_v57, %v1838_v62  ;;  %v3664_v31 = vld [vmem:[#allocation2 + $0x148] sm:$0xf] }
 0x195   :  { %11374 = vmatmul.mubr.bf16.gmra.mrb[96].mxu0 %v1836_v8  ;;  %v3968_v60 = vrot.slane %v3966_v1, 3  ;;  %v3977_v16 = vshll.u32 %v3662_v0, 16  ;;  %v857_v17 = vpack.c.bf16 %v740_v58, %v739_v55  ;;  %v11307_v15 = vpop.f32.mrb[44].mxu0  ;;  %v3971_v41 = vrot.slane %v3969_v23, 4  ;;  %v12783_v28 = vld [vmem:[#allocation2 + $0x78] sm:$0xf] }
 0x196   :  { %11377 = vmatprep.mubr.bf16.mxu0 %v1839_v12  ;;  %v3976_v25 = vrot.slane %v3974_v32, 3  ;;  %v3983_v19 = vshrl.u32 %v3663_v2, 16  ;;  %v922_v26 = vrot.slane %v858_v9, 4  ;;  %v629_v14 = vadd.f32 %v11307_v15, %v13252_v63  ;;  %v620_v7 = vpop.f32.mrb[45].mxu0 }
 0x197   :  { %v3979_v24 = vrot.slane %v3977_v16, 4  ;;  %v3986_v33 = vshll.u32 %v3663_v2, 16  ;;  %v921_v39 = vrot.slane %v857_v17, 4  ;;  %v621_v44 = vadd.f32 %v13252_v63, %v620_v7  ;;  %v11308_v11 = vpop.f32.mrb[46].mxu0  ;;  %v1070_v59 = vld [vmem:[#allocation2 + $0x168] sm:$0xf] }
 0x198   :  { %v3972_v6 = vor.u32 %v3971_v41, %v3968_v60  ;;  %v3985_v22 = vrot.slane %v3983_v19, 3  ;;  %1007 = vst [vmem:[#allocation2 + $0x188] ss:$-4 sps:$4 sm:$0xff] %v922_v26   ;;  %v745_v5 = vmax.f32 %v629_v14, 0.0  ;;  %v632_v18 = vadd.f32 %v11308_v11, %v13252_v63  ;;  %v623_v52 = vpop.f32.mrb[47].mxu0 }
 0x199   :  { %v3980_v30 = vor.u32 %v3979_v24, %v3976_v25  ;;  %v3988_v35 = vrot.slane %v3986_v33, 4  ;;  %v1068_v45 = vld [vmem:[#allocation2 + $0x158] sm:$0xf]  ;;  %1005 = vst [vmem:[#allocation2 + $0x178] ss:$-4 sps:$4 sm:$0xff] %v921_v39   ;;  %v743_v46 = vmax.f32 %v621_v44, 0.0  ;;  %v624_v43 = vadd.f32 %v13252_v63, %v623_v52 }
 0x19a   :  { %v3991_v20 = vshrl.u32 %v3664_v31, 16  ;;  %v3994_v55 = vshll.u32 %v3664_v31, 16  ;;  %v1705_v42 = vld [vmem:[#allocation2 + $0x150] sm:$0xf0]  ;;  %v746_v50 = vmax.f32 %v632_v18, 0.0  ;;  %v1841_v8 = vrot.slane %v1068_v45, 4 }
 0x19b   :  { %v3981_v51 = vsel %vm1093_vm1, %v3972_v6, %v3980_v30  ;;  %v3989_v61 = vor.u32 %v3988_v35, %v3985_v22  ;;  %v1840_v49 = vrot.slane %v1705_v42, 4  ;;  %v1706_v57 = vld [vmem:[#allocation2 + $0x160] sm:$0xf0]  ;;  %v3665_v62 = vld [vmem:[#allocation2 + $0x150] sm:$0xf8]  ;;  %v744_v0 = vmax.f32 %v624_v43, 0.0 }
 0x19c   :  { %11613 = vmatprep.mubr.bf16.mxu1 %v3981_v51  ;;  %v3993_v1 = vrot.slane %v3991_v20, 3  ;;  %v3996_v58 = vrot.slane %v3994_v55, 4  ;;  %v860_v23 = vpack.c.bf16 %v746_v50, %v745_v5  ;;  %v1843_v32 = vrot.slane %v1706_v57, 4  ;;  %v3666_v15 = vld [vmem:[#allocation2 + $0x158] sm:$0xf]  ;;  %v12718_v24 = vld [vmem:[#allocation8 + $0x108] sm:$0xff]  }
 0x19d   :  { %v1844_v2 = vrot.slane %v1070_v59, 4  ;;  %v4000_v9 = vshrl.u32 %v3665_v62, 16  ;;  %v859_v12 = vpack.c.bf16 %v744_v0, %v743_v46  ;;  %v1842_v16 = vsel %vm1782_vm0, %v1840_v49, %v1841_v8  ;;  %v11311_v17 = vpop.f32.mrb[48].mxu0  ;;  %v3667_v31 = vld [vmem:[#allocation2 + $0x160] sm:$0xf8]  ;;  %v12719_v42 = vld [vmem:[#allocation8 + $0x110] sm:$0xff]  }
 0x19e   :  { %v3997_v60 = vor.u32 %v3996_v58, %v3993_v1  ;;  %v4003_v41 = vshll.u32 %v3665_v62, 16  ;;  %v924_v25 = vrot.slane %v860_v23, 4  ;;  %11378 = vmatmul.mubr.bf16.gmra.mrb[100].mxu0 %v1842_v16  ;;  %v645_v19 = vadd.f32 %v11311_v17, %v13252_v63  ;;  %v636_v14 = vpop.f32.mrb[49].mxu0  ;;  %v13523_v59 = vld [vmem:[%s14709_s2] ss:$0 sm:$0xff] }
 0x19f   :  { %v1845_v26 = vsel %vm1782_vm0, %v1843_v32, %v1844_v2  ;;  %v4002_v7 = vrot.slane %v4000_v9, 3  ;;  %v923_v33 = vrot.slane %v859_v12, 4  ;;  %v637_v44 = vadd.f32 %v13252_v63, %v636_v14  ;;  %v11312_v11 = vpop.f32.mrb[50].mxu0  ;;  %v3668_v35 = vld [vmem:[#allocation2 + $0x168] sm:$0xf]  ;;  %v12782_v45 = vld [vmem:[#allocation8 + $0x100] sm:$0xff]  }
 0x1a0   :  { %v3998_v39 = vsel %vm1093_vm1, %v3989_v61, %v3997_v60  ;;  %11381 = vmatprep.mubr.bf16.mxu0 %v1845_v26  ;;  %v4005_v6 = vrot.slane %v4003_v41, 4  ;;  %1011 = vst [vmem:[#allocation2 + $0x1a8] ss:$-4 sps:$4 sm:$0xff] %v924_v25   ;;  %v749_v22 = vmax.f32 %v645_v19, 0.0  ;;  %v648_v5 = vadd.f32 %v13523_v59, %v11312_v11  ;;  %v639_v18 = vpop.f32.mrb[51].mxu0 }
 0x1a1   :  { %11614 = vmatmul.mubr.bf16.vlgmr.msra.gmra.mrb[0].mxu1 %v3998_v39  ;;  %v4008_v52 = vshrl.u32 %v3666_v15, 16  ;;  %v4011_v30 = vshll.u32 %v3666_v15, 16  ;;  %1009 = vst [vmem:[#allocation2 + $0x198] ss:$-4 sps:$4 sm:$0xff] %v923_v33   ;;  %v747_v63 = vmax.f32 %v637_v44, 0.0  ;;  %v640_v46 = vadd.f32 %v13523_v59, %v639_v18  ;;  %v12720_v33 = vld [vmem:[#allocation8 + $0x118] sm:$0xff]  }
 0x1a2   :  { %11646 = vmatpush3.bf16.msra.mxu1 %v12782_v45  ;;  %v4006_v43 = vor.u32 %v4005_v6, %v4002_v7  ;;  %v4017_v20 = vshrl.u32 %v3667_v31, 16  ;;  %v1707_v55 = vld [vmem:[#allocation2 + $0x170] sm:$0xf0]  ;;  %v750_v50 = vmax.f32 %v648_v5, 0.0  ;;  %v4020_v49 = vshll.u32 %v3667_v31, 16 }
 0x1a3   :  { %v4010_v51 = vrot.slane %v4008_v52, 3  ;;  %v4013_v61 = vrot.slane %v4011_v30, 4  ;;  %11647 = vmatprep.subr.bf16.mxu1 %v12718_v24  ;;  %v1072_v57 = vld [vmem:[#allocation2 + $0x178] sm:$0xf]  ;;  %v748_v62 = vmax.f32 %v640_v46, 0.0  ;;  %v4025_v1 = vshrl.u32 %v3668_v35, 16 }
 0x1a4   :  { %v4019_v0 = vrot.slane %v4017_v20, 3  ;;  %v4028_v58 = vshll.u32 %v3668_v35, 16  ;;  %v862_v8 = vpack.c.bf16 %v750_v50, %v749_v22  ;;  %v4022_v32 = vrot.slane %v4020_v49, 4  ;;  %v1708_v9 = vld [vmem:[#allocation2 + $0x180] sm:$0xf0] }
 0x1a5   :  { %v4014_v23 = vor.u32 %v4013_v61, %v4010_v51  ;;  %v1846_v2 = vrot.slane %v1707_v55, 4  ;;  %v861_v12 = vpack.c.bf16 %v748_v62, %v747_v63  ;;  %v4027_v60 = vrot.slane %v4025_v1, 3  ;;  %v11315_v15 = vpop.f32.mrb[52].mxu0  ;;  %v1074_v41 = vld [vmem:[#allocation2 + $0x188] sm:$0xf] }
 0x1a6   :  { %v4030_v16 = vrot.slane %v4028_v58, 4  ;;  %11648 = vmatpush3.bf16.msra.mxu1 %v12718_v24  ;;  %v1847_v17 = vrot.slane %v1072_v57, 4  ;;  %v926_v25 = vrot.slane %v862_v8, 4  ;;  %v4023_v26 = vor.u32 %v4022_v32, %v4019_v0  ;;  %v652_v7 = vpop.f32.mrb[53].mxu0  ;;  %v3669_v31 = vld [vmem:[#allocation2 + $0x170] sm:$0xf8] }
 0x1a7   :  { %v4015_v19 = vsel %vm1093_vm1, %v4006_v43, %v4014_v23  ;;  %v661_v14 = vadd.f32 %v13523_v59, %v11315_v15  ;;  %11649 = vmatprep.subr.bf16.mxu1 %v12719_v42  ;;  %v925_v39 = vrot.slane %v861_v12, 4  ;;  %v1849_v6 = vrot.slane %v1708_v9, 4  ;;  %v11316_v24 = vpop.f32.mrb[54].mxu0  ;;  %v3670_v22 = vld [vmem:[#allocation2 + $0x178] sm:$0xf]  ;;  %v12723_v57 = vld [vmem:[#allocation8 + $0x120] sm:$0xff]  }
 0x1a8   :  { %11617 = vmatprep.mubr.bf16.mxu1 %v4015_v19  ;;  %v4031_v44 = vor.u32 %v4030_v16, %v4027_v60  ;;  %v1848_v11 = vsel %vm1782_vm0, %v1846_v2, %v1847_v17  ;;  %1015 = vst [vmem:[#allocation2 + $0x1c8] ss:$-4 sps:$4 sm:$0xff] %v926_v25   ;;  %v1850_v18 = vrot.slane %v1074_v41, 4  ;;  %v653_v52 = vadd.f32 %v13523_v59, %v652_v7  ;;  %v655_v35 = vpop.f32.mrb[55].mxu0  ;;  %v3671_v20 = vld [vmem:[#allocation2 + $0x180] sm:$0xf8] }
 0x1a9   :  { %11382 = vmatmul.mubr.bf16.gmra.mrb[104].mxu0 %v1848_v11  ;;  %v753_v5 = vmax.f32 %v661_v14, 0.0  ;;  %v664_v30 = vadd.f32 %v13523_v59, %v11316_v24  ;;  %1013 = vst [vmem:[#allocation2 + $0x1b8] ss:$-4 sps:$4 sm:$0xff] %v925_v39   ;;  %v656_v63 = vadd.f32 %v13523_v59, %v655_v35  ;;  %v4034_v46 = vshrl.u32 %v3669_v31, 16  ;;  %v3672_v49 = vld [vmem:[#allocation2 + $0x188] sm:$0xf] }
 0x1aa   :  { %v4032_v45 = vsel %vm1093_vm1, %v4023_v26, %v4031_v44  ;;  %v4037_v43 = vshll.u32 %v3669_v31, 16  ;;  %11650 = vmatpush3.bf16.msra.mxu1 %v12719_v42  ;;  %v1851_v55 = vsel %vm1782_vm0, %v1849_v6, %v1850_v18  ;;  %v751_v50 = vmax.f32 %v653_v52, 0.0  ;;  %v1076_v8 = vld [vmem:[#allocation2 + $0x198] sm:$0xf]  ;;  %v1709_v42 = vld [vmem:[#allocation2 + $0x190] sm:$0xf0] }
 0x1ab   :  { %11618 = vmatmul.mubr.bf16.gmra.mrb[4].mxu1 %v4032_v45  ;;  %v754_v51 = vmax.f32 %v664_v30, 0.0  ;;  %v4042_v61 = vshrl.u32 %v3670_v22, 16  ;;  %11651 = vmatprep.subr.bf16.mxu1 %v12720_v33  ;;  %v752_v62 = vmax.f32 %v656_v63, 0.0  ;;  %v4036_v0 = vrot.slane %v4034_v46, 3  ;;  %v1078_v12 = vld [vmem:[#allocation2 + $0x1a8] sm:$0xf] }
 0x1ac   :  { %11385 = vmatprep.mubr.bf16.mxu0 %v1851_v55  ;;  %v4039_v1 = vrot.slane %v4037_v43, 4  ;;  %v4045_v58 = vshll.u32 %v3670_v22, 16  ;;  %v4051_v2 = vshrl.u32 %v3671_v20, 16  ;;  %v4054_v9 = vshll.u32 %v3671_v20, 16  ;;  %v1710_v25 = vld [vmem:[#allocation2 + $0x1a0] sm:$0xf0] }
 0x1ad   :  { %v864_v23 = vpack.c.bf16 %v754_v51, %v753_v5  ;;  %v4044_v32 = vrot.slane %v4042_v61, 3  ;;  %v863_v60 = vpack.c.bf16 %v752_v62, %v751_v50  ;;  %v4059_v15 = vshrl.u32 %v3672_v49, 16  ;;  %v11319_v41 = vpop.f32.mrb[56].mxu0  ;;  %v12726_v39 = vld [vmem:[#allocation8 + $0x128] sm:$0xff]   ;;  %v3674_v20 = vld [vmem:[#allocation2 + $0x198] sm:$0xf] }
 0x1ae   :  { %v4040_v16 = vor.u32 %v4039_v1, %v4036_v0  ;;  %v4047_v17 = vrot.slane %v4045_v58, 4  ;;  %11652 = vmatpush3.bf16.msra.mxu1 %v12720_v33  ;;  %v4053_v26 = vrot.slane %v4051_v2, 3  ;;  %v4056_v14 = vrot.slane %v4054_v9, 4  ;;  %v668_v31 = vpop.f32.mrb[57].mxu0  ;;  %v3673_v33 = vld [vmem:[#allocation2 + $0x190] sm:$0xf8] }
 0x1af   :  { %v928_v19 = vrot.slane %v864_v23, 4  ;;  %v4062_v7 = vshll.u32 %v3672_v49, 16  ;;  %11653 = vmatprep.subr.bf16.mxu1 %v12723_v57  ;;  %v927_v44 = vrot.slane %v863_v60, 4  ;;  %v4061_v6 = vrot.slane %v4059_v15, 3  ;;  %v11320_v22 = vpop.f32.mrb[58].mxu0  ;;  %v12732_v15 = vld [vmem:[#allocation8 + $0x138] sm:$0xff]  }
 0x1b0   :  { %v4048_v11 = vor.u32 %v4047_v17, %v4044_v32  ;;  %v1852_v24 = vrot.slane %v1709_v42, 4  ;;  %v4057_v5 = vor.u32 %v4056_v14, %v4053_v26  ;;  %v1853_v52 = vrot.slane %v1076_v8, 4  ;;  %v671_v35 = vpop.f32.mrb[59].mxu0  ;;  %v3675_v49 = vld [vmem:[#allocation2 + $0x1a0] sm:$0xf8]  ;;  %v12729_v8 = vld [vmem:[#allocation8 + $0x130] sm:$0xff]  }
 0x1b1   :  { %1019 = vst [vmem:[#allocation2 + $0x1e8] ss:$-4 sps:$4 sm:$0xff] %v928_v19   ;;  %v4064_v18 = vrot.slane %v4062_v7, 4  ;;  %v677_v30 = vadd.f32 %v13523_v59, %v11319_v41  ;;  %1017 = vst [vmem:[#allocation2 + $0x1d8] ss:$-4 sps:$4 sm:$0xff] %v927_v44   ;;  %v1855_v63 = vrot.slane %v1710_v25, 4  ;;  %v669_v43 = vadd.f32 %v13523_v59, %v668_v31 }
 0x1b2   :  { %v4049_v45 = vsel %vm1093_vm1, %v4040_v16, %v4048_v11  ;;  %v1856_v46 = vrot.slane %v1078_v12, 4  ;;  %11654 = vmatpush3.bf16.msra.mxu1 %v12723_v57  ;;  %v1854_v50 = vsel %vm1782_vm0, %v1852_v24, %v1853_v52  ;;  %v680_v61 = vadd.f32 %v13523_v59, %v11320_v22  ;;  %v3676_v9 = vld [vmem:[#allocation2 + $0x1a8] sm:$0xf]  ;;  %v1711_v14 = vld [vmem:[#allocation2 + $0x1b0] sm:$0xf0] }
 0x1b3   :  { %11621 = vmatprep.mubr.bf16.mxu1 %v4049_v45  ;;  %v4065_v55 = vor.u32 %v4064_v18, %v4061_v6  ;;  %v757_v51 = vmax.f32 %v677_v30, 0.0  ;;  %11655 = vmatprep.subr.bf16.mxu1 %v12726_v39  ;;  %v755_v0 = vmax.f32 %v669_v43, 0.0  ;;  %v672_v1 = vadd.f32 %v13523_v59, %v671_v35  ;;  %v1082_v7 = vld [vmem:[#allocation2 + $0x1c8] sm:$0xf]  ;;  %v1080_v22 = vld [vmem:[#allocation2 + $0x1b8] sm:$0xf] }
 0x1b4   :  { %11386 = vmatmul.mubr.bf16.gmra.mrb[108].mxu0 %v1854_v50  ;;  %v1857_v62 = vsel %vm1782_vm0, %v1855_v63, %v1856_v46  ;;  %v4068_v58 = vshrl.u32 %v3673_v33, 16  ;;  %v758_v57 = vmax.f32 %v680_v61, 0.0  ;;  %v4071_v32 = vshll.u32 %v3673_v33, 16  ;;  %v1712_v33 = vld [vmem:[#allocation2 + $0x1c0] sm:$0xf0] }
 0x1b5   :  { %v4066_v23 = vsel %vm1093_vm1, %v4057_v5, %v4065_v55  ;;  %11389 = vmatprep.mubr.bf16.mxu0 %v1857_v62  ;;  %v4076_v2 = vshrl.u32 %v3674_v20, 16  ;;  %v756_v42 = vmax.f32 %v672_v1, 0.0  ;;  %v4079_v60 = vshll.u32 %v3674_v20, 16  ;;  %v11323_v17 = vpop.f32.mrb[60].mxu0  ;;  %v3677_v61 = vld [vmem:[#allocation2 + $0x1b0] sm:$0xf8] }
 0x1b6   :  { %11622 = vmatmul.mubr.bf16.gmra.mrb[8].mxu1 %v4066_v23  ;;  %v4070_v12 = vrot.slane %v4068_v58, 3  ;;  %v4085_v16 = vshrl.u32 %v3675_v49, 16  ;;  %v866_v41 = vpack.c.bf16 %v758_v57, %v757_v51  ;;  %v4073_v25 = vrot.slane %v4071_v32, 4  ;;  %v684_v31 = vpop.f32.mrb[61].mxu0  ;;  %v3678_v58 = vld [vmem:[#allocation2 + $0x1b8] sm:$0xf] }
 0x1b7   :  { %v4078_v19 = vrot.slane %v4076_v2, 3  ;;  %v4088_v26 = vshll.u32 %v3675_v49, 16  ;;  %11656 = vmatpush3.bf16.msra.mxu1 %v12726_v39  ;;  %v865_v44 = vpack.c.bf16 %v756_v42, %v755_v0  ;;  %v4081_v11 = vrot.slane %v4079_v60, 4  ;;  %v11324_v5 = vpop.f32.mrb[62].mxu0  ;;  %v13546_v23 = vld [vmem:[#allocation8 + $0x140] sm:$0xff]  }
 0x1b8   :  { %v4087_v6 = vrot.slane %v4085_v16, 3  ;;  %v4093_v24 = vshrl.u32 %v3676_v9, 16  ;;  %11657 = vmatprep.subr.bf16.mxu1 %v12729_v8  ;;  %v930_v18 = vrot.slane %v866_v41, 4  ;;  %v4074_v52 = vor.u32 %v4073_v25, %v4070_v12  ;;  %v687_v45 = vpop.f32.mrb[63].mxu0  ;;  %v3679_v42 = vld [vmem:[#allocation2 + $0x1c0] sm:$0xf8] }
 0x1b9   :  { %v4090_v30 = vrot.slane %v4088_v26, 4  ;;  %v4096_v35 = vshll.u32 %v3676_v9, 16  ;;  %v929_v63 = vrot.slane %v865_v44, 4  ;;  %v4082_v46 = vor.u32 %v4081_v11, %v4078_v19  ;;  %v3680_v26 = vld [vmem:[#allocation2 + $0x1c8] sm:$0xf] }
 0x1ba   :  { %v4095_v43 = vrot.slane %v4093_v24, 3  ;;  %v1858_v20 = vrot.slane %v1711_v14, 4  ;;  %1023 = vst [vmem:[#allocation2 + $0x208] ss:$-4 sps:$4 sm:$0xff] %v930_v18   ;;  %v1859_v50 = vrot.slane %v1080_v22, 4  ;;  %v693_v51 = vadd.f32 %v13523_v59, %v11323_v17 }
 0x1bb   :  { %v4091_v55 = vor.u32 %v4090_v30, %v4087_v6  ;;  %v4098_v39 = vrot.slane %v4096_v35, 4  ;;  %11658 = vmatpush3.bf16.msra.mxu1 %v12729_v8  ;;  %1021 = vst [vmem:[#allocation2 + $0x1f8] ss:$-4 sps:$4 sm:$0xff] %v929_v63   ;;  %v4083_v49 = vsel %vm1093_vm1, %v4074_v52, %v4082_v46  ;;  %v1861_v62 = vrot.slane %v1712_v33, 4  ;;  %v1084_v11 = vld [vmem:[#allocation2 + $0x1d8] sm:$0xf] }
 0x1bc   :  { %v1862_v0 = vrot.slane %v1082_v7, 4  ;;  %v685_v1 = vadd.f32 %v13523_v59, %v684_v31  ;;  %11659 = vmatprep.subr.bf16.mxu1 %v12732_v15  ;;  %11625 = vmatprep.mubr.bf16.mxu1 %v4083_v49  ;;  %v1860_v32 = vsel %vm1782_vm0, %v1858_v20, %v1859_v50  ;;  %v761_v2 = vmax.f32 %v693_v51, 0.0  ;;  %v1086_v18 = vld [vmem:[#allocation2 + $0x1e8] sm:$0xf]  ;;  %v3681_v20 = vld [vmem:[#allocation2 + $0x1d0] sm:$0xf8] }
 0x1bd   :  { %v4099_v57 = vor.u32 %v4098_v39, %v4095_v43  ;;  %v696_v9 = vadd.f32 %v13523_v59, %v11324_v5  ;;  %11390 = vmatmul.mubr.bf16.gmra.mrb[112].mxu0 %v1860_v32  ;;  %v688_v60 = vadd.f32 %v13523_v59, %v687_v45  ;;  %v4102_v16 = vshrl.u32 %v3677_v61, 16  ;;  %v1713_v5 = vld [vmem:[#allocation2 + $0x1d0] sm:$0xf0]  ;;  %v1714_v45 = vld [vmem:[#allocation2 + $0x1e0] sm:$0xf0] }
 0x1be   :  { %v1863_v8 = vsel %vm1782_vm0, %v1861_v62, %v1862_v0  ;;  %v759_v12 = vmax.f32 %v685_v1, 0.0  ;;  %v4105_v25 = vshll.u32 %v3677_v61, 16  ;;  %v4110_v19 = vshrl.u32 %v3678_v58, 16  ;;  %v3682_v49 = vld [vmem:[#allocation2 + $0x1d8] sm:$0xf] }
 0x1bf   :  { %v4100_v17 = vsel %vm1093_vm1, %v4091_v55, %v4099_v57  ;;  %11393 = vmatprep.mubr.bf16.mxu0 %v1863_v8  ;;  %v762_v41 = vmax.f32 %v696_v9, 0.0  ;;  %11660 = vmatpush3.bf16.msra.mxu1 %v12732_v15  ;;  %v760_v14 = vmax.f32 %v688_v60, 0.0  ;;  %v4104_v7 = vrot.slane %v4102_v16, 3  ;;  %v13554_v55 = vld [vmem:[#allocation8 + $0x80] sm:$0xff]   ;;  %v3684_v8 = vld [vmem:[#allocation2 + $0x1e8] sm:$0xf] }
 0x1c0   :  { %11626 = vmatmul.mubr.bf16.gmra.mrb[12].mxu1 %v4100_v17  ;;  %v4113_v31 = vshll.u32 %v3678_v58, 16  ;;  %v4119_v44 = vshrl.u32 %v3679_v42, 16  ;;  %11725 = vmatprep.subr.bf16.mxu1 %v13546_v23  ;;  %v4107_v24 = vrot.slane %v4105_v25, 4  ;;  %v4112_v59 = vrot.slane %v4110_v19, 3  ;;  %v3683_v57 = vld [vmem:[#allocation2 + $0x1e0] sm:$0xf8] }
 0x1c1   :  { %v868_v6 = vpack.c.bf16 %v762_v41, %v761_v2  ;;  %v4122_v22 = vshll.u32 %v3679_v42, 16  ;;  %v867_v52 = vpack.c.bf16 %v760_v14, %v759_v12  ;;  %v4127_v33 = vshrl.u32 %v3680_v26, 16  ;;  %11485 = vmatprep.subr.bf16.mxu0 %v13554_v55  ;;  %v1090_v25 = vld [vmem:[#allocation2 + $0x208] sm:$0xf] }
 0x1c2   :  { %v4115_v30 = vrot.slane %v4113_v31, 4  ;;  %v4121_v35 = vrot.slane %v4119_v44, 3  ;;  %v4108_v63 = vor.u32 %v4107_v24, %v4104_v7  ;;  %v4130_v43 = vshll.u32 %v3680_v26, 16  ;;  %v1088_v41 = vld [vmem:[#allocation2 + $0x1f8] sm:$0xf] }
 0x1c3   :  { %v932_v15 = vrot.slane %v868_v6, 4  ;;  %v4124_v46 = vrot.slane %v4122_v22, 4  ;;  %v931_v39 = vrot.slane %v867_v52, 4  ;;  %v4129_v51 = vrot.slane %v4127_v33, 3  ;;  %v1715_v31 = vld [vmem:[#allocation2 + $0x1f0] sm:$0xf0] }
 0x1c4   :  { %v4116_v50 = vor.u32 %v4115_v30, %v4112_v59  ;;  %v1864_v61 = vrot.slane %v1713_v5, 4  ;;  %v4132_v0 = vrot.slane %v4130_v43, 4  ;;  %v1865_v1 = vrot.slane %v1084_v11, 4  ;;  %v1716_v59 = vld [vmem:[#allocation2 + $0x200] sm:$0xf0] }
 0x1c5   :  { %1027 = vst [vmem:[#allocation2 + $0x228] ss:$-4 sps:$4 sm:$0xff] %v932_v15   ;;  %v4125_v62 = vor.u32 %v4124_v46, %v4121_v35  ;;  %v1867_v58 = vrot.slane %v1714_v45, 4  ;;  %1025 = vst [vmem:[#allocation2 + $0x218] ss:$-4 sps:$4 sm:$0xff] %v931_v39   ;;  %v1868_v2 = vrot.slane %v1086_v18, 4 }
 0x1c6   :  { %v4117_v32 = vsel %vm1093_vm1, %v4108_v63, %v4116_v50  ;;  %v4136_v9 = vshrl.u32 %v3681_v20, 16  ;;  %v4139_v42 = vshll.u32 %v3681_v20, 16  ;;  %v4133_v12 = vor.u32 %v4132_v0, %v4129_v51  ;;  %v3685_v30 = vld [vmem:[#allocation2 + $0x1f0] sm:$0xf8]  ;;  %v3686_v63 = vld [vmem:[#allocation2 + $0x1f8] sm:$0xf] }
 0x1c7   :  { %11629 = vmatprep.mubr.bf16.mxu1 %v4117_v32  ;;  %v1866_v60 = vsel %vm1782_vm0, %v1864_v61, %v1865_v1  ;;  %v4144_v16 = vshrl.u32 %v3682_v49, 16  ;;  %v4147_v17 = vshll.u32 %v3682_v49, 16  ;;  %v1869_v19 = vsel %vm1782_vm0, %v1867_v58, %v1868_v2  ;;  %v3687_v50 = vld [vmem:[#allocation2 + $0x200] sm:$0xf8]  ;;  %v3688_v0 = vld [vmem:[#allocation2 + $0x208] sm:$0xf] }
 0x1c8   :  { %11394 = vmatmul.mubr.bf16.gmra.mrb[116].mxu0 %v1866_v60  ;;  %v4138_v26 = vrot.slane %v4136_v9, 3  ;;  %v4141_v14 = vrot.slane %v4139_v42, 4  ;;  %v4153_v7 = vshrl.u32 %v3683_v57, 16  ;;  %v4134_v44 = vsel %vm1093_vm1, %v4125_v62, %v4133_v12 }
 0x1c9   :  { %11397 = vmatprep.mubr.bf16.mxu0 %v1869_v19  ;;  %v4146_v11 = vrot.slane %v4144_v16, 3  ;;  %v4149_v6 = vrot.slane %v4147_v17, 4  ;;  %v4156_v24 = vshll.u32 %v3683_v57, 16  ;;  %11630 = vmatmul.mubr.bf16.gmra.mrb[16].mxu1 %v4134_v44  ;;  %v4161_v18 = vshrl.u32 %v3684_v8, 16 }
 0x1ca   :  { %v4142_v22 = vor.u32 %v4141_v14, %v4138_v26  ;;  %v4155_v5 = vrot.slane %v4153_v7, 3  ;;  %v4164_v52 = vshll.u32 %v3684_v8, 16  ;;  %v1870_v45 = vrot.slane %v1715_v31, 4 }
 0x1cb   :  { %v4150_v35 = vor.u32 %v4149_v6, %v4146_v11  ;;  %v4158_v33 = vrot.slane %v4156_v24, 4  ;;  %v1871_v15 = vrot.slane %v1088_v41, 4  ;;  %v4163_v46 = vrot.slane %v4161_v18, 3 }
 0x1cc   :  { %v4166_v43 = vrot.slane %v4164_v52, 4  ;;  %v1873_v20 = vrot.slane %v1716_v59, 4  ;;  %v1874_v39 = vrot.slane %v1090_v25, 4  ;;  %v4170_v62 = vshrl.u32 %v3685_v30, 16  ;;  %v1092_v2 = vld [vmem:[#allocation2 + $0x218] sm:$0xf] }
 0x1cd   :  { %v4151_v51 = vsel %vm1093_vm1, %v4142_v22, %v4150_v35  ;;  %v4159_v61 = vor.u32 %v4158_v33, %v4155_v5  ;;  %v1872_v49 = vsel %vm1782_vm0, %v1870_v45, %v1871_v15  ;;  %v4173_v57 = vshll.u32 %v3685_v30, 16  ;;  %v1717_v60 = vld [vmem:[#allocation2 + $0x210] sm:$0xf0]  ;;  %v3690_v44 = vld [vmem:[#allocation2 + $0x218] sm:$0xf] }
 0x1ce   :  { %11633 = vmatprep.mubr.bf16.mxu1 %v4151_v51  ;;  %v4167_v1 = vor.u32 %v4166_v43, %v4163_v46  ;;  %v1875_v58 = vsel %vm1782_vm0, %v1873_v20, %v1874_v39  ;;  %v4178_v32 = vshrl.u32 %v3686_v63, 16  ;;  %v4172_v9 = vrot.slane %v4170_v62, 3  ;;  %v3689_v19 = vld [vmem:[#allocation2 + $0x210] sm:$0xf8]  ;;  %v3691_v22 = vld [vmem:[#allocation2 + $0x220] sm:$0xf8] }
 0x1cf   :  { %v4181_v42 = vshll.u32 %v3686_v63, 16  ;;  %v4187_v8 = vshrl.u32 %v3687_v50, 16  ;;  %v4190_v12 = vshll.u32 %v3687_v50, 16  ;;  %v4175_v17 = vrot.slane %v4173_v57, 4  ;;  %v3692_v63 = vld [vmem:[#allocation2 + $0x228] sm:$0xf] }
 0x1d0   :  { %v4168_v16 = vsel %vm1093_vm1, %v4159_v61, %v4167_v1  ;;  %11398 = vmatmul.mubr.bf16.gmra.mrb[120].mxu0 %v1872_v49  ;;  %v4180_v41 = vrot.slane %v4178_v32, 3  ;;  %v4195_v25 = vshrl.u32 %v3688_v0, 16  ;;  %v4198_v31 = vshll.u32 %v3688_v0, 16  ;;  %v3642_v50 = vld [vmem:[#allocation2 + $0x78] sm:$0xf] }
 0x1d1   :  { %11401 = vmatprep.mubr.bf16.mxu0 %v1875_v58  ;;  %v4183_v26 = vrot.slane %v4181_v42, 4  ;;  %v4189_v14 = vrot.slane %v4187_v8, 3  ;;  %v4192_v7 = vrot.slane %v4190_v12, 4  ;;  %11634 = vmatmul.mubr.bf16.gmra.mrb[20].mxu1 %v4168_v16  ;;  %v4176_v11 = vor.u32 %v4175_v17, %v4172_v9  ;;  %v4693_v0 = vld [vmem:[#allocation2 + $0x70] sm:$0xf0] }
 0x1d2   :  { %v4197_v6 = vrot.slane %v4195_v25, 3  ;;  %v1876_v24 = vrot.slane %v1717_v60, 4  ;;  %v1877_v59 = vrot.slane %v1092_v2, 4  ;;  %v4200_v52 = vrot.slane %v4198_v31, 4  ;;  %v1043_v2 = vld [vmem:[#allocation2 + $0x70] sm:$0xf8] }
 0x1d3   :  { %v4184_v5 = vor.u32 %v4183_v26, %v4180_v41  ;;  %v4193_v18 = vor.u32 %v4192_v7, %v4189_v14  ;;  %v4204_v30 = vshrl.u32 %v3689_v19, 16  ;;  %v4207_v33 = vshll.u32 %v3689_v19, 16  ;;  %v1045_v25 = vld [vmem:[#allocation2 + $0x80] sm:$0xf8] }
 0x1d4   :  { %v1878_v35 = vsel %vm1782_vm0, %v1876_v24, %v1877_v59  ;;  %v4212_v45 = vshrl.u32 %v3690_v44, 16  ;;  %v4215_v15 = vshll.u32 %v3690_v44, 16  ;;  %v4201_v43 = vor.u32 %v4200_v52, %v4197_v6  ;;  %v4694_v31 = vld [vmem:[#allocation2 + $0x80] sm:$0xf0]  ;;  %v3646_v24 = vld [vmem:[#allocation2 + $0x98] sm:$0xf] }
 0x1d5   :  { %v4185_v46 = vsel %vm1093_vm1, %v4176_v11, %v4184_v5  ;;  %v4206_v20 = vrot.slane %v4204_v30, 3  ;;  %v4221_v39 = vshrl.u32 %v3691_v22, 16  ;;  %v4209_v51 = vrot.slane %v4207_v33, 4  ;;  %v4695_v30 = vld [vmem:[#allocation2 + $0x90] sm:$0xf0] }
 0x1d6   :  { %11637 = vmatprep.mubr.bf16.mxu1 %v4185_v46  ;;  %v4214_v61 = vrot.slane %v4212_v45, 3  ;;  %v4217_v49 = vrot.slane %v4215_v15, 4  ;;  %v4224_v62 = vshll.u32 %v3691_v22, 16  ;;  %v4202_v1 = vsel %vm1093_vm1, %v4193_v18, %v4201_v43  ;;  %v12784_v18 = vld [vmem:[#allocation2 + $0x88] sm:$0xf] }
 0x1d7   :  { %v4223_v58 = vrot.slane %v4221_v39, 3  ;;  %v4229_v57 = vshrl.u32 %v3692_v63, 16  ;;  %v4232_v32 = vshll.u32 %v3692_v63, 16  ;;  %v4210_v9 = vor.u32 %v4209_v51, %v4206_v20  ;;  %v1047_v63 = vld [vmem:[#allocation2 + $0x90] sm:$0xf8]  ;;  %v12740_v46 = vld [vmem:[#allocation8 + $0x88] sm:$0xff]  }
 0x1d8   :  { %11402 = vmatmul.mubr.bf16.gmra.mrb[124].mxu0 %v1878_v35  ;;  %v4218_v42 = vor.u32 %v4217_v49, %v4214_v61  ;;  %v4226_v8 = vrot.slane %v4224_v62, 4  ;;  %v13575_v12 = vsel %vm1093_vm1, %v1203_v34, %v1211_v47  ;;  %v4801_v17 = vrot.slane %v4693_v0, 4  ;;  %v3644_v47 = vld [vmem:[#allocation2 + $0x88] sm:$0xf]  ;;  %v1049_v0 = vld [vmem:[#allocation2 + $0xa0] sm:$0xf8] }
 0x1d9   :  { %v4231_v60 = vrot.slane %v4229_v57, 3  ;;  %v4234_v16 = vrot.slane %v4232_v32, 4  ;;  %11421 = vmatprep.mubr.bf16.mxu0 %v13424_v40  ;;  %v4802_v41 = vrot.slane %v3642_v50, 4  ;;  %11638 = vmatmul.mubr.bf16.gmra.mrb[24].mxu1 %v4202_v1  ;;  %v1214_v14 = vshrl.u32 %v1043_v2, 16 }
 0x1da   :  { %v4219_v19 = vsel %vm1093_vm1, %v4210_v9, %v4218_v42  ;;  %v4227_v26 = vor.u32 %v4226_v8, %v4223_v58  ;;  %v1217_v7 = vshll.u32 %v1043_v2, 16  ;;  %v1222_v54 = vshrl.u32 %v12783_v28, 16  ;;  %v3648_v2 = vld [vmem:[#allocation2 + $0xa8] sm:$0xf]  ;;  %v12785_v42 = vld [vmem:[#allocation2 + $0x98] sm:$0xf] }
 0x1db   :  { %11641 = vmatprep.mubr.bf16.mxu1 %v4219_v19  ;;  %v4235_v37 = vor.u32 %v4234_v16, %v4231_v60  ;;  %v13580_v38 = vsel %vm1782_vm0, %v4801_v17, %v4802_v41  ;;  %v1225_v34 = vshll.u32 %v12783_v28, 16  ;;  %v1216_v40 = vrot.slane %v1214_v14, 3  ;;  %v12742_v16 = vld [vmem:[#allocation8 + $0x90] sm:$0xff]  }
 0x1dc   :  { %v1219_v44 = vrot.slane %v1217_v7, 4  ;;  %v1231_v11 = vshrl.u32 %v1045_v25, 16  ;;  %v1234_v6 = vshll.u32 %v1045_v25, 16  ;;  %v1224_v22 = vrot.slane %v1222_v54, 3  ;;  %v4697_v54 = vld [vmem:[#allocation2 + $0xb0] sm:$0xf0] }
 0x1dd   :  { %v4236_v59 = vsel %vm1093_vm1, %v4227_v26, %v4235_v37  ;;  %v1227_v5 = vrot.slane %v1225_v34, 4  ;;  %v1239_v52 = vshrl.u32 %v12784_v18, 16  ;;  %v1242_v15 = vshll.u32 %v12784_v18, 16  ;;  %v3650_v26 = vld [vmem:[#allocation2 + $0xb8] sm:$0xf] }
 0x1de   :  { %v1220_v35 = vor.u32 %v1219_v44, %v1216_v40  ;;  %v1233_v33 = vrot.slane %v1231_v11, 3  ;;  %v1236_v45 = vrot.slane %v1234_v6, 4  ;;  %v4804_v39 = vrot.slane %v4694_v31, 4  ;;  %v12786_v37 = vld [vmem:[#allocation2 + $0xa8] sm:$0xf] }
 0x1df   :  { %v1228_v43 = vor.u32 %v1227_v5, %v1224_v22  ;;  %v1241_v20 = vrot.slane %v1239_v52, 3  ;;  %v4805_v50 = vrot.slane %v3644_v47, 4  ;;  %v1244_v61 = vrot.slane %v1242_v15, 4  ;;  %v1051_v44 = vld [vmem:[#allocation2 + $0xb0] sm:$0xf8] }
 0x1e0   :  { %11422 = vmatmul.mubr.bf16.vlgmr.msra.gmra.mrb[64].mxu0 %v13381_v56  ;;  %v1237_v51 = vor.u32 %v1236_v45, %v1233_v33  ;;  %v4807_v49 = vrot.slane %v4695_v30, 4  ;;  %v4808_v62 = vrot.slane %v3646_v24, 4  ;;  %v1248_v57 = vshrl.u32 %v1047_v63, 16  ;;  %v1053_v30 = vld [vmem:[#allocation2 + $0xc0] sm:$0xf8] }
 0x1e1   :  { %11425 = vmatprep.mubr.bf16.mxu0 %v13440_v13  ;;  %v13586_v1 = vsel %vm1093_vm1, %v1220_v35, %v1228_v43  ;;  %v13589_v58 = vsel %vm1782_vm0, %v4804_v39, %v4805_v50  ;;  %v1251_v32 = vshll.u32 %v1047_v63, 16  ;;  %11486 = vmatpush3.bf16.msra.mxu0 %v13554_v55  ;;  %v1245_v56 = vor.u32 %v1244_v61, %v1241_v20  ;;  %v4696_v13 = vld [vmem:[#allocation2 + $0xa0] sm:$0xf0]  ;;  %v12734_v35 = vld [vmem:[#allocation8 + $0x148] sm:$0xff]   ;;  %v12787_v39 = vld [vmem:[#allocation2 + $0xb8] sm:$0xf] }
 0x1e2   :  { %11642 = vmatmul.mubr.bf16.gmra.mrb[28].mxu1 %v4236_v59  ;;  %v13593_v9 = vsel %vm1782_vm0, %v4807_v49, %v4808_v62  ;;  %v1256_v8 = vshrl.u32 %v12785_v42, 16  ;;  %v1259_v60 = vshll.u32 %v12785_v42, 16  ;;  %11487 = vmatprep.subr.bf16.mxu0 %v12740_v46  ;;  %v1250_v17 = vrot.slane %v1248_v57, 3  ;;  %v12743_v59 = vld [vmem:[#allocation8 + $0x98] sm:$0xff]   ;;  %v12788_v42 = vld [vmem:[#allocation2 + $0xc8] sm:$0xf] }
 0x1e3   :  { %11661 = vmatprep.mubr.bf16.mxu1 %v13375_v36  ;;  %v1253_v41 = vrot.slane %v1251_v32, 4  ;;  %v1265_v25 = vshrl.u32 %v1049_v0, 16  ;;  %v1268_v19 = vshll.u32 %v1049_v0, 16  ;;  %v13597_v55 = vsel %vm1093_vm1, %v1237_v51, %v1245_v56  ;;  %v3654_v61 = vld [vmem:[#allocation2 + $0xd8] sm:$0xf]  ;;  %v12744_v32 = vld [vmem:[#allocation8 + $0xa0] sm:$0xff]  }
 0x1e4   :  { %v1258_v14 = vrot.slane %v1256_v8, 3  ;;  %v1261_v7 = vrot.slane %v1259_v60, 4  ;;  %v1273_v28 = vshrl.u32 %v12786_v37, 16  ;;  %v1276_v40 = vshll.u32 %v12786_v37, 16  ;;  %v4699_v60 = vld [vmem:[#allocation2 + $0xd0] sm:$0xf0] }
 0x1e5   :  { %v1254_v34 = vor.u32 %v1253_v41, %v1250_v17  ;;  %v1267_v47 = vrot.slane %v1265_v25, 3  ;;  %v1270_v31 = vrot.slane %v1268_v19, 4  ;;  %11488 = vmatpush3.bf16.msra.mxu0 %v12740_v46  ;;  %v4810_v6 = vrot.slane %v4696_v13, 4  ;;  %v3652_v46 = vld [vmem:[#allocation2 + $0xc8] sm:$0xf] }
 0x1e6   :  { %v1262_v36 = vor.u32 %v1261_v7, %v1258_v14  ;;  %v1275_v11 = vrot.slane %v1273_v28, 3  ;;  %v4811_v24 = vrot.slane %v3648_v2, 4  ;;  %11489 = vmatprep.subr.bf16.mxu0 %v12742_v16  ;;  %v1278_v5 = vrot.slane %v1276_v40, 4  ;;  %v1055_v25 = vld [vmem:[#allocation2 + $0xd0] sm:$0xf8] }
 0x1e7   :  { %v1271_v22 = vor.u32 %v1270_v31, %v1267_v47  ;;  %v4813_v18 = vrot.slane %v4697_v54, 4  ;;  %v4814_v52 = vrot.slane %v3650_v26, 4  ;;  %v1282_v15 = vshrl.u32 %v1051_v44, 16  ;;  %v1057_v54 = vld [vmem:[#allocation2 + $0xe0] sm:$0xf8] }
 0x1e8   :  { %11426 = vmatmul.mubr.bf16.gmra.mrb[68].mxu0 %v13449_v21  ;;  %v13601_v33 = vsel %vm1093_vm1, %v1254_v34, %v1262_v36  ;;  %v13604_v45 = vsel %vm1782_vm0, %v4810_v6, %v4811_v24  ;;  %v1285_v63 = vshll.u32 %v1051_v44, 16  ;;  %v1279_v43 = vor.u32 %v1278_v5, %v1275_v11  ;;  %v4698_v21 = vld [vmem:[#allocation2 + $0xc0] sm:$0xf0]  ;;  %v12745_v34 = vld [vmem:[#allocation8 + $0xa8] sm:$0xff]   ;;  %v12789_v24 = vld [vmem:[#allocation2 + $0xd8] sm:$0xf] }
 0x1e9   :  { %11429 = vmatprep.mubr.bf16.mxu0 %v13480_v27  ;;  %v13608_v20 = vsel %vm1782_vm0, %v4813_v18, %v4814_v52  ;;  %v1290_v50 = vshrl.u32 %v12787_v39, 16  ;;  %v1293_v51 = vshll.u32 %v12787_v39, 16  ;;  %11490 = vmatpush3.bf16.msra.mxu0 %v12742_v16  ;;  %v1284_v49 = vrot.slane %v1282_v15, 3  ;;  %v3656_v36 = vld [vmem:[#allocation2 + $0xe8] sm:$0xf]  ;;  %v12736_v5 = vld [vmem:[#allocation8 + $0x158] sm:$0xff]  }
 0x1ea   :  { %11662 = vmatmul.mubr.bf16.vlgmr.msra.gmra.mrb[32].mxu1 %v13432_v10  ;;  %v1287_v62 = vrot.slane %v1285_v63, 4  ;;  %v1299_v0 = vshrl.u32 %v1053_v30, 16  ;;  %v1302_v57 = vshll.u32 %v1053_v30, 16  ;;  %11491 = vmatprep.subr.bf16.mxu0 %v12743_v59  ;;  %v13614_v27 = vsel %vm1093_vm1, %v1271_v22, %v1279_v43  ;;  %v12735_v10 = vld [vmem:[#allocation8 + $0x150] sm:$0xff]   ;;  %v4700_v18 = vld [vmem:[#allocation2 + $0xe0] sm:$0xf0] }
 0x1eb   :  { %11726 = vmatpush3.bf16.msra.mxu1 %v13546_v23  ;;  %11665 = vmatprep.mubr.bf16.mxu1 %v13445_v48  ;;  %v1292_v2 = vrot.slane %v1290_v50, 3  ;;  %v1295_v56 = vrot.slane %v1293_v51, 4  ;;  %v1307_v8 = vshrl.u32 %v12788_v42, 16  ;;  %v1310_v41 = vshll.u32 %v12788_v42, 16  ;;  %v3658_v63 = vld [vmem:[#allocation2 + $0xf8] sm:$0xf] }
 0x1ec   :  { %11727 = vmatprep.subr.bf16.mxu1 %v12734_v35  ;;  %v1288_v13 = vor.u32 %v1287_v62, %v1284_v49  ;;  %v1301_v16 = vrot.slane %v1299_v0, 3  ;;  %v1304_v17 = vrot.slane %v1302_v57, 4  ;;  %v4816_v23 = vrot.slane %v4698_v21, 4  ;;  %v12790_v39 = vld [vmem:[#allocation2 + $0xe8] sm:$0xf]  ;;  %v12747_v21 = vld [vmem:[#allocation8 + $0xb0] sm:$0xff]  }
 0x1ed   :  { %v1296_v19 = vor.u32 %v1295_v56, %v1292_v2  ;;  %v1309_v26 = vrot.slane %v1307_v8, 3  ;;  %v4817_v14 = vrot.slane %v3652_v46, 4  ;;  %11492 = vmatpush3.bf16.msra.mxu0 %v12743_v59  ;;  %v1312_v7 = vrot.slane %v1310_v41, 4  ;;  %v4701_v51 = vld [vmem:[#allocation2 + $0xf0] sm:$0xf0]  ;;  %v12737_v42 = vld [vmem:[#allocation8 + $0x160] sm:$0xff]  }
 0x1ee   :  { %v1305_v48 = vor.u32 %v1304_v17, %v1301_v16  ;;  %v4819_v37 = vrot.slane %v4699_v60, 4  ;;  %v4820_v28 = vrot.slane %v3654_v61, 4  ;;  %11493 = vmatprep.subr.bf16.mxu0 %v12744_v32  ;;  %v1316_v40 = vshrl.u32 %v1055_v25, 16  ;;  %v1059_v0 = vld [vmem:[#allocation2 + $0xf0] sm:$0xf8] }
 0x1ef   :  { %11728 = vmatpush3.bf16.msra.mxu1 %v12734_v35  ;;  %v13617_v47 = vsel %vm1093_vm1, %v1288_v13, %v1296_v19  ;;  %v13620_v31 = vsel %vm1782_vm0, %v4816_v23, %v4817_v14  ;;  %v1319_v44 = vshll.u32 %v1055_v25, 16  ;;  %v1313_v11 = vor.u32 %v1312_v7, %v1309_v26  ;;  %v3660_v56 = vld [vmem:[#allocation2 + $0x108] sm:$0xf]  ;;  %v4702_v17 = vld [vmem:[#allocation2 + $0x100] sm:$0xf0]  ;;  %v12748_v26 = vld [vmem:[#allocation8 + $0xb8] sm:$0xff]  }
 0x1f0   :  { %11430 = vmatmul.mubr.bf16.gmra.mrb[72].mxu0 %v13497_v29  ;;  %11729 = vmatprep.subr.bf16.mxu1 %v12735_v10  ;;  %v13624_v6 = vsel %vm1782_vm0, %v4819_v37, %v4820_v28  ;;  %v1324_v59 = vshrl.u32 %v12789_v24, 16  ;;  %v1327_v22 = vshll.u32 %v12789_v24, 16  ;;  %v1318_v52 = vrot.slane %v1316_v40, 3  ;;  %v4703_v19 = vld [vmem:[#allocation2 + $0x130] sm:$0xf0] }
 0x1f1   :  { %11433 = vmatprep.mubr.bf16.mxu0 %v13575_v12  ;;  %v1321_v30 = vrot.slane %v1319_v44, 4  ;;  %v1333_v35 = vshrl.u32 %v1057_v54, 16  ;;  %v1336_v15 = vshll.u32 %v1057_v54, 16  ;;  %11494 = vmatpush3.bf16.msra.mxu0 %v12744_v32  ;;  %v13629_v29 = vsel %vm1093_vm1, %v1305_v48, %v1313_v11  ;;  %v12791_v48 = vld [vmem:[#allocation2 + $0xf8] sm:$0xf] }
 0x1f2   :  { %11666 = vmatmul.mubr.bf16.gmra.mrb[36].mxu1 %v13457_v4  ;;  %v1326_v46 = vrot.slane %v1324_v59, 3  ;;  %v1329_v43 = vrot.slane %v1327_v22, 4  ;;  %v1341_v50 = vshrl.u32 %v12790_v39, 16  ;;  %11495 = vmatprep.subr.bf16.mxu0 %v12745_v34  ;;  %v1344_v62 = vshll.u32 %v12790_v39, 16  ;;  %v1061_v28 = vld [vmem:[#allocation2 + $0x120] sm:$0xf8] }
 0x1f3   :  { %11669 = vmatprep.mubr.bf16.mxu1 %v13493_v3  ;;  %11730 = vmatpush3.bf16.msra.mxu1 %v12735_v10  ;;  %v1322_v12 = vor.u32 %v1321_v30, %v1318_v52  ;;  %v1335_v61 = vrot.slane %v1333_v35, 3  ;;  %v1338_v49 = vrot.slane %v1336_v15, 4  ;;  %v4822_v32 = vrot.slane %v4700_v18, 4  ;;  %v12792_v52 = vld [vmem:[#allocation2 + $0x138] sm:$0xf] }
 0x1f4   :  { %v1330_v57 = vor.u32 %v1329_v43, %v1326_v46  ;;  %v1343_v4 = vrot.slane %v1341_v50, 3  ;;  %11731 = vmatprep.subr.bf16.mxu1 %v12736_v5  ;;  %v4823_v2 = vrot.slane %v3656_v36, 4  ;;  %v1346_v60 = vrot.slane %v1344_v62, 4  ;;  %v12738_v36 = vld [vmem:[#allocation8 + $0x168] sm:$0xff]  }
 0x1f5   :  { %v1339_v8 = vor.u32 %v1338_v49, %v1335_v61  ;;  %v4825_v13 = vrot.slane %v4701_v51, 4  ;;  %v4826_v16 = vrot.slane %v3658_v63, 4  ;;  %11496 = vmatpush3.bf16.msra.mxu0 %v12745_v34  ;;  %v1350_v41 = vshrl.u32 %v1059_v0, 16  ;;  %v12793_v63 = vld [vmem:[#allocation2 + $0x128] sm:$0xf] }
 0x1f6   :  { %v13633_v3 = vsel %vm1093_vm1, %v1322_v12, %v1330_v57  ;;  %v13636_v10 = vsel %vm1782_vm0, %v4822_v32, %v4823_v2  ;;  %v1353_v25 = vshll.u32 %v1059_v0, 16  ;;  %11497 = vmatprep.subr.bf16.mxu0 %v12747_v21  ;;  %v1347_v23 = vor.u32 %v1346_v60, %v1343_v4  ;;  %v12741_v12 = vld [vmem:[#allocation8 + $0x170] sm:$0xff]   ;;  %v12794_v4 = vld [vmem:[#allocation2 + $0x138] sm:$0xf] }
 0x1f7   :  { %11732 = vmatpush3.bf16.msra.mxu1 %v12736_v5  ;;  %v13639_v14 = vsel %vm1782_vm0, %v4825_v13, %v4826_v16  ;;  %v1358_v7 = vshrl.u32 %v12791_v48, 16  ;;  %v1361_v37 = vshll.u32 %v12791_v48, 16  ;;  %v1352_v54 = vrot.slane %v1350_v41, 3  ;;  %v1063_v5 = vld [vmem:[#allocation2 + $0x130] sm:$0xf8]  ;;  %v12746_v48 = vld [vmem:[#allocation8 + $0x178] sm:$0xff]  }
 0x1f8   :  { %11434 = vmatmul.mubr.bf16.gmra.mrb[76].mxu0 %v13586_v1  ;;  %v1355_v34 = vrot.slane %v1353_v25, 4  ;;  %v4828_v40 = vrot.slane %v4702_v17, 4  ;;  %v4829_v44 = vrot.slane %v3660_v56, 4  ;;  %11733 = vmatprep.subr.bf16.mxu1 %v12737_v42  ;;  %v13644_v11 = vsel %vm1093_vm1, %v1339_v8, %v1347_v23  ;;  %v13657_v56 = vld [vmem:[#allocation8 + $0xc0] sm:$0xff]   ;;  %v4705_v23 = vld [vmem:[#allocation2 + $0x150] sm:$0xf0] }
 0x1f9   :  { %11437 = vmatprep.mubr.bf16.mxu0 %v13597_v55  ;;  %v1360_v24 = vrot.slane %v1358_v7, 3  ;;  %v1363_v59 = vrot.slane %v1361_v37, 4  ;;  %v4831_v22 = vrot.slane %v4703_v19, 4  ;;  %11498 = vmatpush3.bf16.msra.mxu0 %v12747_v21  ;;  %v4832_v30 = vrot.slane %v12792_v52, 4  ;;  %v1065_v21 = vld [vmem:[#allocation2 + $0x140] sm:$0xf8] }
 0x1fa   :  { %11670 = vmatmul.mubr.bf16.gmra.mrb[40].mxu1 %v13505_v53  ;;  %v1356_v18 = vor.u32 %v1355_v34, %v1352_v54  ;;  %v13648_v1 = vsel %vm1782_vm0, %v4828_v40, %v4829_v44  ;;  %v1367_v35 = vshrl.u32 %v1061_v28, 16  ;;  %11499 = vmatprep.subr.bf16.mxu0 %v12748_v26  ;;  %v1370_v15 = vshll.u32 %v1061_v28, 16  ;;  %v4704_v16 = vld [vmem:[#allocation2 + $0x140] sm:$0xf0]  ;;  %v12796_v19 = vld [vmem:[#allocation2 + $0x148] sm:$0xf] }
 0x1fb   :  { %11673 = vmatprep.mubr.bf16.mxu1 %v13580_v38  ;;  %v1364_v55 = vor.u32 %v1363_v59, %v1360_v24  ;;  %v1375_v46 = vshrl.u32 %v12793_v63, 16  ;;  %v1378_v43 = vshll.u32 %v12793_v63, 16  ;;  %11734 = vmatpush3.bf16.msra.mxu1 %v12737_v42  ;;  %v13652_v39 = vsel %vm1782_vm0, %v4831_v22, %v4832_v30  ;;  %v1067_v34 = vld [vmem:[#allocation2 + $0x150] sm:$0xf8]  ;;  %v1069_v52 = vld [vmem:[#allocation2 + $0x160] sm:$0xf8] }
 0x1fc   :  { %v1369_v53 = vrot.slane %v1367_v35, 3  ;;  %v1384_v50 = vshrl.u32 %v1063_v5, 16  ;;  %v1387_v51 = vshll.u32 %v1063_v5, 16  ;;  %11735 = vmatprep.subr.bf16.mxu1 %v12738_v36  ;;  %v1372_v49 = vrot.slane %v1370_v15, 4  ;;  %v12749_v15 = vld [vmem:[#allocation8 + $0x180] sm:$0xff]  }
 0x1fd   :  { %v13655_v61 = vsel %vm1093_vm1, %v1356_v18, %v1364_v55  ;;  %v1377_v38 = vrot.slane %v1375_v46, 3  ;;  %v1380_v62 = vrot.slane %v1378_v43, 4  ;;  %11500 = vmatpush3.bf16.msra.mxu0 %v12748_v26  ;;  %v1392_v32 = vshrl.u32 %v12794_v4, 16  ;;  %v12799_v46 = vld [vmem:[#allocation2 + $0x158] sm:$0xf] }
 0x1fe   :  { %v1386_v0 = vrot.slane %v1384_v50, 3  ;;  %v1389_v57 = vrot.slane %v1387_v51, 4  ;;  %v1395_v2 = vshll.u32 %v12794_v4, 16  ;;  %11565 = vmatprep.subr.bf16.mxu0 %v13657_v56  ;;  %v1373_v42 = vor.u32 %v1372_v49, %v1369_v53  ;;  %v4706_v49 = vld [vmem:[#allocation2 + $0x160] sm:$0xf0] }
 0x1ff   :  { %v1381_v8 = vor.u32 %v1380_v62, %v1377_v38  ;;  %v1401_v60 = vshrl.u32 %v1065_v21, 16  ;;  %v1404_v13 = vshll.u32 %v1065_v21, 16  ;;  %11736 = vmatpush3.bf16.msra.mxu1 %v12738_v36  ;;  %v1394_v41 = vrot.slane %v1392_v32, 3  ;;  %v12797_v36 = vld [vmem:[#allocation2 + $0x148] sm:$0xf] }
 0x200   :  { %11438 = vmatmul.mubr.bf16.gmra.mrb[80].mxu0 %v13601_v33  ;;  %v1390_v17 = vor.u32 %v1389_v57, %v1386_v0  ;;  %v1397_v25 = vrot.slane %v1395_v2, 4  ;;  %v1409_v26 = vshrl.u32 %v12796_v19, 16  ;;  %11737 = vmatprep.subr.bf16.mxu1 %v12741_v12  ;;  %v1412_v54 = vshll.u32 %v12796_v19, 16  ;;  %v12800_v57 = vld [vmem:[#allocation2 + $0x168] sm:$0xf] }
 0x201   :  { %11441 = vmatprep.mubr.bf16.mxu0 %v13614_v27  ;;  %v13663_v7 = vsel %vm1093_vm1, %v1373_v42, %v1381_v8  ;;  %v1403_v37 = vrot.slane %v1401_v60, 3  ;;  %v1406_v28 = vrot.slane %v1404_v13, 4  ;;  %v4834_v44 = vrot.slane %v4704_v16, 4  ;;  %v12798_v27 = vld [vmem:[#allocation2 + $0x158] sm:$0xf] }
 0x202   :  { %11674 = vmatmul.mubr.bf16.gmra.mrb[44].mxu1 %v13589_v58  ;;  %v1398_v33 = vor.u32 %v1397_v25, %v1394_v41  ;;  %v1411_v40 = vrot.slane %v1409_v26, 3  ;;  %v4835_v24 = vrot.slane %v12797_v36, 4  ;;  %v1414_v22 = vrot.slane %v1412_v54, 4  ;;  %v4707_v32 = vld [vmem:[#allocation2 + $0x170] sm:$0xf0] }
 0x203   :  { %11677 = vmatprep.mubr.bf16.mxu1 %v13593_v9  ;;  %v1407_v59 = vor.u32 %v1406_v28, %v1403_v37  ;;  %v4837_v5 = vrot.slane %v4705_v23, 4  ;;  %v4838_v18 = vrot.slane %v12798_v27, 4  ;;  %11738 = vmatpush3.bf16.msra.mxu1 %v12741_v12  ;;  %v1418_v58 = vshrl.u32 %v1067_v34, 16  ;;  %v1071_v13 = vld [vmem:[#allocation2 + $0x170] sm:$0xf8] }
 0x204   :  { %v13668_v30 = vsel %vm1093_vm1, %v1390_v17, %v1398_v33  ;;  %v13671_v35 = vsel %vm1782_vm0, %v4834_v44, %v4835_v24  ;;  %v1421_v55 = vshll.u32 %v1067_v34, 16  ;;  %11739 = vmatprep.subr.bf16.mxu1 %v12746_v48  ;;  %v1415_v63 = vor.u32 %v1414_v22, %v1411_v40  ;;  %v12801_v25 = vld [vmem:[#allocation2 + $0x168] sm:$0xf]  ;;  %v12802_v37 = vld [vmem:[#allocation2 + $0x178] sm:$0xf] }
 0x205   :  { %v13674_v9 = vsel %vm1782_vm0, %v4837_v5, %v4838_v18  ;;  %v1426_v43 = vshrl.u32 %v12799_v46, 16  ;;  %v1429_v53 = vshll.u32 %v12799_v46, 16  ;;  %v1420_v50 = vrot.slane %v1418_v58, 3  ;;  %v1073_v28 = vld [vmem:[#allocation2 + $0x180] sm:$0xf8] }
 0x206   :  { %v1423_v51 = vrot.slane %v1421_v55, 4  ;;  %v1435_v21 = vshrl.u32 %v1069_v52, 16  ;;  %v1438_v12 = vshll.u32 %v1069_v52, 16  ;;  %v13677_v38 = vsel %vm1093_vm1, %v1407_v59, %v1415_v63  ;;  %v12804_v55 = vld [vmem:[#allocation2 + $0x188] sm:$0xf] }
 0x207   :  { %v1428_v62 = vrot.slane %v1426_v43, 3  ;;  %v1431_v0 = vrot.slane %v1429_v53, 4  ;;  %v1443_v4 = vshrl.u32 %v12800_v57, 16  ;;  %11740 = vmatpush3.bf16.msra.mxu1 %v12746_v48  ;;  %v1446_v60 = vshll.u32 %v12800_v57, 16  ;;  %v4709_v63 = vld [vmem:[#allocation2 + $0x190] sm:$0xf0] }
 0x208   :  { %11442 = vmatmul.mubr.bf16.gmra.mrb[84].mxu0 %v13617_v47  ;;  %v1424_v2 = vor.u32 %v1423_v51, %v1420_v50  ;;  %v1437_v42 = vrot.slane %v1435_v21, 3  ;;  %v1440_v8 = vrot.slane %v1438_v12, 4  ;;  %11805 = vmatprep.subr.bf16.mxu1 %v12749_v15  ;;  %v4840_v41 = vrot.slane %v4706_v49, 4  ;;  %v1075_v51 = vld [vmem:[#allocation2 + $0x190] sm:$0xf8] }
 0x209   :  { %11445 = vmatprep.mubr.bf16.mxu0 %v13629_v29  ;;  %v1432_v16 = vor.u32 %v1431_v0, %v1428_v62  ;;  %v1445_v17 = vrot.slane %v1443_v4, 3  ;;  %v4841_v19 = vrot.slane %v12801_v25, 4  ;;  %v1448_v23 = vrot.slane %v1446_v60, 4  ;;  %v12805_v62 = vld [vmem:[#allocation2 + $0x188] sm:$0xf] }
 0x20a   :  { %11678 = vmatmul.mubr.bf16.gmra.mrb[48].mxu1 %v13604_v45  ;;  %v1441_v26 = vor.u32 %v1440_v8, %v1437_v42  ;;  %v4843_v48 = vrot.slane %v4707_v32, 4  ;;  %v4844_v47 = vrot.slane %v12802_v37, 4  ;;  %v1452_v34 = vshrl.u32 %v1071_v13, 16  ;;  %v12803_v45 = vld [vmem:[#allocation2 + $0x178] sm:$0xf] }
 0x20b   :  { %11681 = vmatprep.mubr.bf16.mxu1 %v13608_v20  ;;  %v13684_v54 = vsel %vm1093_vm1, %v1424_v2, %v1432_v16  ;;  %v13687_v29 = vsel %vm1782_vm0, %v4840_v41, %v4841_v19  ;;  %v1455_v33 = vshll.u32 %v1071_v13, 16  ;;  %v1449_v40 = vor.u32 %v1448_v23, %v1445_v17  ;;  %v4708_v20 = vld [vmem:[#allocation2 + $0x180] sm:$0xf0]  ;;  %v12806_v2 = vld [vmem:[#allocation2 + $0x198] sm:$0xf] }
 0x20c   :  { %v13690_v44 = vsel %vm1782_vm0, %v4843_v48, %v4844_v47  ;;  %v1460_v36 = vshrl.u32 %v12803_v45, 16  ;;  %v1463_v24 = vshll.u32 %v12803_v45, 16  ;;  %v1454_v59 = vrot.slane %v1452_v34, 3  ;;  %v1077_v8 = vld [vmem:[#allocation2 + $0x1a0] sm:$0xf8] }
 0x20d   :  { %v1457_v22 = vrot.slane %v1455_v33, 4  ;;  %v1469_v5 = vshrl.u32 %v1073_v28, 16  ;;  %v1472_v27 = vshll.u32 %v1073_v28, 16  ;;  %v13693_v18 = vsel %vm1093_vm1, %v1441_v26, %v1449_v40  ;;  %v12807_v41 = vld [vmem:[#allocation2 + $0x198] sm:$0xf] }
 0x20e   :  { %v1462_v52 = vrot.slane %v1460_v36, 3  ;;  %v1465_v58 = vrot.slane %v1463_v24, 4  ;;  %v1477_v15 = vshrl.u32 %v12804_v55, 16  ;;  %v1480_v50 = vshll.u32 %v12804_v55, 16  ;;  %v4710_v37 = vld [vmem:[#allocation2 + $0x1a0] sm:$0xf0] }
 0x20f   :  { %v1458_v46 = vor.u32 %v1457_v22, %v1454_v59  ;;  %v1471_v43 = vrot.slane %v1469_v5, 3  ;;  %v1474_v53 = vrot.slane %v1472_v27, 4  ;;  %v4846_v49 = vrot.slane %v4708_v20, 4  ;;  %v12808_v33 = vld [vmem:[#allocation2 + $0x1a8] sm:$0xf] }
 0x210   :  { %11446 = vmatmul.mubr.bf16.gmra.mrb[88].mxu0 %v13633_v3  ;;  %v1466_v21 = vor.u32 %v1465_v58, %v1462_v52  ;;  %v1479_v12 = vrot.slane %v1477_v15, 3  ;;  %v4847_v0 = vrot.slane %v12805_v62, 4  ;;  %v1482_v4 = vrot.slane %v1480_v50, 4  ;;  %v1079_v22 = vld [vmem:[#allocation2 + $0x1b0] sm:$0xf8] }
 0x211   :  { %11449 = vmatprep.mubr.bf16.mxu0 %v13644_v11  ;;  %v1475_v57 = vor.u32 %v1474_v53, %v1471_v43  ;;  %v4849_v32 = vrot.slane %v4709_v63, 4  ;;  %v4850_v42 = vrot.slane %v12806_v2, 4  ;;  %v1486_v13 = vshrl.u32 %v1075_v51, 16  ;;  %v12809_v52 = vld [vmem:[#allocation2 + $0x1a8] sm:$0xf] }
 0x212   :  { %11682 = vmatmul.mubr.bf16.gmra.mrb[52].mxu1 %v13620_v31  ;;  %v13699_v60 = vsel %vm1093_vm1, %v1458_v46, %v1466_v21  ;;  %v13702_v3 = vsel %vm1782_vm0, %v4846_v49, %v4847_v0  ;;  %v1489_v16 = vshll.u32 %v1075_v51, 16  ;;  %v1483_v17 = vor.u32 %v1482_v4, %v1479_v12  ;;  %v12810_v46 = vld [vmem:[#allocation2 + $0x1b8] sm:$0xf]  ;;  %v1081_v53 = vld [vmem:[#allocation2 + $0x1c0] sm:$0xf8] }
 0x213   :  { %11685 = vmatprep.mubr.bf16.mxu1 %v13624_v6  ;;  %v13706_v11 = vsel %vm1782_vm0, %v4849_v32, %v4850_v42  ;;  %v1494_v25 = vshrl.u32 %v12807_v41, 16  ;;  %v1497_v19 = vshll.u32 %v12807_v41, 16  ;;  %v1488_v26 = vrot.slane %v1486_v13, 3  ;;  %v4711_v6 = vld [vmem:[#allocation2 + $0x1b0] sm:$0xf0] }
 0x214   :  { %v1491_v23 = vrot.slane %v1489_v16, 4  ;;  %v1503_v31 = vshrl.u32 %v1077_v8, 16  ;;  %v1506_v48 = vshll.u32 %v1077_v8, 16  ;;  %v13709_v47 = vsel %vm1093_vm1, %v1475_v57, %v1483_v17  ;;  %v12811_v62 = vld [vmem:[#allocation2 + $0x1b8] sm:$0xf] }
 0x215   :  { %v1496_v28 = vrot.slane %v1494_v25, 3  ;;  %v1499_v34 = vrot.slane %v1497_v19, 4  ;;  %v1511_v40 = vshrl.u32 %v12808_v33, 16  ;;  %v1514_v59 = vshll.u32 %v12808_v33, 16  ;;  %v4712_v42 = vld [vmem:[#allocation2 + $0x1c0] sm:$0xf0] }
 0x216   :  { %v1492_v45 = vor.u32 %v1491_v23, %v1488_v26  ;;  %v1505_v36 = vrot.slane %v1503_v31, 3  ;;  %v1508_v24 = vrot.slane %v1506_v48, 4  ;;  %v4852_v20 = vrot.slane %v4710_v37, 4  ;;  %v4713_v41 = vld [vmem:[#allocation2 + $0x1d0] sm:$0xf0] }
 0x217   :  { %v1500_v5 = vor.u32 %v1499_v34, %v1496_v28  ;;  %v1513_v27 = vrot.slane %v1511_v40, 3  ;;  %v4853_v58 = vrot.slane %v12809_v52, 4  ;;  %v1516_v15 = vrot.slane %v1514_v59, 4  ;;  %v1083_v31 = vld [vmem:[#allocation2 + $0x1d0] sm:$0xf8] }
 0x218   :  { %11450 = vmatmul.mubr.bf16.gmra.mrb[92].mxu0 %v13655_v61  ;;  %v1509_v55 = vor.u32 %v1508_v24, %v1505_v36  ;;  %v4855_v63 = vrot.slane %v4711_v6, 4  ;;  %v4856_v43 = vrot.slane %v12810_v46, 4  ;;  %v1520_v21 = vshrl.u32 %v1079_v22, 16  ;;  %v12813_v28 = vld [vmem:[#allocation2 + $0x1c8] sm:$0xf] }
 0x219   :  { %11453 = vmatprep.mubr.bf16.mxu0 %v13663_v7  ;;  %v13714_v50 = vsel %vm1093_vm1, %v1492_v45, %v1500_v5  ;;  %v13717_v51 = vsel %vm1782_vm0, %v4852_v20, %v4853_v58  ;;  %v1523_v12 = vshll.u32 %v1079_v22, 16  ;;  %v1517_v49 = vor.u32 %v1516_v15, %v1513_v27  ;;  %v12814_v45 = vld [vmem:[#allocation2 + $0x1d8] sm:$0xf]  ;;  %v1085_v24 = vld [vmem:[#allocation2 + $0x1e0] sm:$0xf8] }
 0x21a   :  { %11686 = vmatmul.mubr.bf16.gmra.mrb[56].mxu1 %v13636_v10  ;;  %v13721_v61 = vsel %vm1782_vm0, %v4855_v63, %v4856_v43  ;;  %v1528_v0 = vshrl.u32 %v12811_v62, 16  ;;  %v1531_v57 = vshll.u32 %v12811_v62, 16  ;;  %v1522_v7 = vrot.slane %v1520_v21, 3  ;;  %v12812_v10 = vld [vmem:[#allocation2 + $0x1c8] sm:$0xf] }
 0x21b   :  { %11689 = vmatprep.mubr.bf16.mxu1 %v13639_v14  ;;  %v1525_v4 = vrot.slane %v1523_v12, 4  ;;  %v1537_v32 = vshrl.u32 %v1081_v53, 16  ;;  %v1540_v2 = vshll.u32 %v1081_v53, 16  ;;  %v13725_v8 = vsel %vm1093_vm1, %v1509_v55, %v1517_v49  ;;  %v12815_v58 = vld [vmem:[#allocation2 + $0x1d8] sm:$0xf] }
 0x21c   :  { %v1530_v13 = vrot.slane %v1528_v0, 3  ;;  %v1533_v16 = vrot.slane %v1531_v57, 4  ;;  %v1545_v17 = vshrl.u32 %v12812_v10, 16  ;;  %v1548_v23 = vshll.u32 %v12812_v10, 16  ;;  %v4714_v53 = vld [vmem:[#allocation2 + $0x1e0] sm:$0xf0] }
 0x21d   :  { %v1526_v25 = vor.u32 %v1525_v4, %v1522_v7  ;;  %v1539_v19 = vrot.slane %v1537_v32, 3  ;;  %v1542_v26 = vrot.slane %v1540_v2, 4  ;;  %v4858_v37 = vrot.slane %v4712_v42, 4  ;;  %v12816_v49 = vld [vmem:[#allocation2 + $0x1e8] sm:$0xf] }
 0x21e   :  { %v1534_v48 = vor.u32 %v1533_v16, %v1530_v13  ;;  %v1547_v14 = vrot.slane %v1545_v17, 3  ;;  %v4859_v34 = vrot.slane %v12813_v28, 4  ;;  %v1550_v40 = vrot.slane %v1548_v23, 4  ;;  %v4715_v0 = vld [vmem:[#allocation2 + $0x1f0] sm:$0xf0] }
 0x21f   :  { %v1543_v33 = vor.u32 %v1542_v26, %v1539_v19  ;;  %v4861_v6 = vrot.slane %v4713_v41, 4  ;;  %v4862_v36 = vrot.slane %v12814_v45, 4  ;;  %v1554_v5 = vshrl.u32 %v1083_v31, 16  ;;  %v12817_v16 = vld [vmem:[#allocation2 + $0x1e8] sm:$0xf] }
 0x220   :  { %11454 = vmatmul.mubr.bf16.gmra.mrb[96].mxu0 %v13668_v30  ;;  %v13729_v59 = vsel %vm1093_vm1, %v1526_v25, %v1534_v48  ;;  %v13732_v22 = vsel %vm1782_vm0, %v4858_v37, %v4859_v34  ;;  %v1557_v27 = vshll.u32 %v1083_v31, 16  ;;  %v1551_v20 = vor.u32 %v1550_v40, %v1547_v14  ;;  %v12818_v25 = vld [vmem:[#allocation2 + $0x1f8] sm:$0xf]  ;;  %v1089_v26 = vld [vmem:[#allocation2 + $0x200] sm:$0xf8] }
 0x221   :  { %11457 = vmatprep.mubr.bf16.mxu0 %v13677_v38  ;;  %v13736_v52 = vsel %vm1782_vm0, %v4861_v6, %v4862_v36  ;;  %v1562_v55 = vshrl.u32 %v12815_v58, 16  ;;  %v1565_v15 = vshll.u32 %v12815_v58, 16  ;;  %v1556_v30 = vrot.slane %v1554_v5, 3  ;;  %v12819_v34 = vld [vmem:[#allocation2 + $0x1f8] sm:$0xf] }
 0x222   :  { %11690 = vmatmul.mubr.bf16.gmra.mrb[60].mxu1 %v13648_v1  ;;  %v1559_v63 = vrot.slane %v1557_v27, 4  ;;  %v1571_v46 = vshrl.u32 %v1085_v24, 16  ;;  %v1574_v43 = vshll.u32 %v1085_v24, 16  ;;  %v13741_v21 = vsel %vm1093_vm1, %v1543_v33, %v1551_v20  ;;  %v1087_v1 = vld [vmem:[#allocation2 + $0x1f0] sm:$0xf8] }
 0x223   :  { %11693 = vmatprep.mubr.bf16.mxu1 %v13652_v39  ;;  %v1564_v38 = vrot.slane %v1562_v55, 3  ;;  %v1567_v12 = vrot.slane %v1565_v15, 4  ;;  %v1579_v62 = vshrl.u32 %v12816_v49, 16  ;;  %v1582_v32 = vshll.u32 %v12816_v49, 16  ;;  %v4716_v5 = vld [vmem:[#allocation2 + $0x200] sm:$0xf0] }
 0x224   :  { %v1560_v57 = vor.u32 %v1559_v63, %v1556_v30  ;;  %v1573_v7 = vrot.slane %v1571_v46, 3  ;;  %v1576_v4 = vrot.slane %v1574_v43, 4  ;;  %v4864_v13 = vrot.slane %v4714_v53, 4  ;;  %v12820_v58 = vld [vmem:[#allocation2 + $0x208] sm:$0xf] }
 0x225   :  { %v1568_v2 = vor.u32 %v1567_v12, %v1564_v38  ;;  %v1581_v42 = vrot.slane %v1579_v62, 3  ;;  %v4865_v10 = vrot.slane %v12817_v16, 4  ;;  %v1584_v39 = vrot.slane %v1582_v32, 4  ;;  %v4717_v15 = vld [vmem:[#allocation2 + $0x210] sm:$0xf0] }
 0x226   :  { %v1577_v17 = vor.u32 %v1576_v4, %v1573_v7  ;;  %v4867_v41 = vrot.slane %v4715_v0, 4  ;;  %v4868_v19 = vrot.slane %v12818_v25, 4  ;;  %v1588_v48 = vshrl.u32 %v1087_v1, 16  ;;  %v1091_v43 = vld [vmem:[#allocation2 + $0x210] sm:$0xf8] }
 0x227   :  { %v13744_v23 = vsel %vm1093_vm1, %v1560_v57, %v1568_v2  ;;  %v13747_v31 = vsel %vm1782_vm0, %v4864_v13, %v4865_v10  ;;  %v1591_v14 = vshll.u32 %v1087_v1, 16  ;;  %v1585_v37 = vor.u32 %v1584_v39, %v1581_v42  ;;  %v12821_v49 = vld [vmem:[#allocation2 + $0x208] sm:$0xf]  ;;  %v12822_v7 = vld [vmem:[#allocation2 + $0x218] sm:$0xf] }
 0x228   :  { %11458 = vmatmul.mubr.bf16.gmra.mrb[100].mxu0 %v13684_v54  ;;  %v13751_v28 = vsel %vm1782_vm0, %v4867_v41, %v4868_v19  ;;  %v1596_v33 = vshrl.u32 %v12819_v34, 16  ;;  %v1599_v40 = vshll.u32 %v12819_v34, 16  ;;  %v1590_v6 = vrot.slane %v1588_v48, 3  ;;  %v4718_v32 = vld [vmem:[#allocation2 + $0x220] sm:$0xf0] }
 0x229   :  { %11461 = vmatprep.mubr.bf16.mxu0 %v13693_v18  ;;  %v1593_v45 = vrot.slane %v1591_v14, 4  ;;  %v1605_v36 = vshrl.u32 %v1089_v26, 16  ;;  %v1608_v24 = vshll.u32 %v1089_v26, 16  ;;  %v13756_v27 = vsel %vm1093_vm1, %v1577_v17, %v1585_v37  ;;  %v12823_v10 = vld [vmem:[#allocation2 + $0x218] sm:$0xf] }
 0x22a   :  { %11694 = vmatmul.mubr.bf16.gmra.mrb[0].mxu1 %v13671_v35  ;;  %v1598_v54 = vrot.slane %v1596_v33, 3  ;;  %v1601_v20 = vrot.slane %v1599_v40, 4  ;;  %v1613_v55 = vshrl.u32 %v12820_v58, 16  ;;  %v1616_v46 = vshll.u32 %v12820_v58, 16  ;;  %v5329_v41 = vld [vmem:[#allocation2 + $0x18] sm:$0x1f] }
 0x22b   :  { %11697 = vmatprep.mubr.bf16.mxu1 %v13674_v9  ;;  %v1594_v30 = vor.u32 %v1593_v45, %v1590_v6  ;;  %v1607_v63 = vrot.slane %v1605_v36, 3  ;;  %v1610_v18 = vrot.slane %v1608_v24, 4  ;;  %v4870_v12 = vrot.slane %v4716_v5, 4  ;;  %v12824_v48 = vld [vmem:[#allocation2 + $0x228] sm:$0xf] }
 0x22c   :  { %v1602_v53 = vor.u32 %v1601_v20, %v1598_v54  ;;  %v1615_v38 = vrot.slane %v1613_v55, 3  ;;  %v4871_v35 = vrot.slane %v12821_v49, 4  ;;  %v1618_v0 = vrot.slane %v1616_v46, 4  ;;  %v12825_v40 = vld [vmem:[#allocation2 + $0x10] sm:$0xf0] }
 0x22d   :  { %v1611_v62 = vor.u32 %v1610_v18, %v1607_v63  ;;  %v4873_v57 = vrot.slane %v4717_v15, 4  ;;  %v4874_v4 = vrot.slane %v12822_v7, 4  ;;  %v1622_v2 = vshrl.u32 %v1091_v43, 16  ;;  %v2602_v45 = vld [vmem:[#allocation2 + $0x8] sm:$0x1f] }
 0x22e   :  { %v13760_v1 = vsel %vm1093_vm1, %v1594_v30, %v1602_v53  ;;  %v13763_v9 = vsel %vm1782_vm0, %v4870_v12, %v4871_v35  ;;  %v1625_v42 = vshll.u32 %v1091_v43, 16  ;;  %v1619_v13 = vor.u32 %v1618_v0, %v1615_v38  ;;  %v12826_v58 = vld [vmem:[#allocation2] sm:$0xf0]  ;;  %v2603_v46 = vld [vmem:[#allocation2 + $0x18] sm:$0x1f] }
 0x22f   :  { %v13766_v16 = vsel %vm1782_vm0, %v4873_v57, %v4874_v4  ;;  %v1630_v17 = vshrl.u32 %v12823_v10, 16  ;;  %v1633_v39 = vshll.u32 %v12823_v10, 16  ;;  %v1624_v25 = vrot.slane %v1622_v2, 3  ;;  %v12828_v10 = vld [vmem:[#allocation2 + $0x20] sm:$0xf0] }
 0x230   :  { %11462 = vmatmul.mubr.bf16.gmra.mrb[104].mxu0 %v13699_v60  ;;  %v1627_v19 = vrot.slane %v1625_v42, 4  ;;  %v4876_v26 = vrot.slane %v4718_v32, 4  ;;  %v4877_v14 = vrot.slane %v12824_v48, 4  ;;  %v13771_v37 = vsel %vm1093_vm1, %v1611_v62, %v1619_v13  ;;  %v2604_v32 = vld [vmem:[#allocation2 + $0x28] sm:$0x1f] }
 0x231   :  { %11465 = vmatprep.mubr.bf16.mxu0 %v13709_v47  ;;  %v1632_v34 = vrot.slane %v1630_v17, 3  ;;  %v1635_v33 = vrot.slane %v1633_v39, 4  ;;  %v5362_v6 = vshrl.u32 %v12825_v40, 16  ;;  %v5365_v24 = vshll.u32 %v12825_v40, 16 }
 0x232   :  { %11698 = vmatmul.mubr.bf16.gmra.mrb[4].mxu1 %v13687_v29  ;;  %v1628_v36 = vor.u32 %v1627_v19, %v1624_v25  ;;  %v13775_v60 = vsel %vm1782_vm0, %v4876_v26, %v4877_v14  ;;  %v5370_v5 = vshrl.u32 %v5329_v41, 16  ;;  %v5373_v20 = vshll.u32 %v5329_v41, 16 }
 0x233   :  { %11701 = vmatprep.mubr.bf16.mxu1 %v13690_v44  ;;  %v1636_v54 = vor.u32 %v1635_v33, %v1632_v34  ;;  %v5364_v47 = vrot.slane %v5362_v6, 4  ;;  %v2636_v55 = vshrl.u32 %v12826_v58, 16  ;;  %v5367_v15 = vrot.slane %v5365_v24, 5  ;;  %v12827_v44 = vld [vmem:[#allocation2 + $0x10] sm:$0xf0] }
 0x234   :  { %v5372_v30 = vrot.slane %v5370_v5, 4  ;;  %v2639_v63 = vshll.u32 %v12826_v58, 16  ;;  %v2644_v18 = vshrl.u32 %v2602_v45, 16  ;;  %v5375_v43 = vrot.slane %v5373_v20, 5  ;;  %v12829_v6 = vld [vmem:[#allocation2 + $0x20] sm:$0xf0] }
 0x235   :  { %v13779_v29 = vsel %vm1093_vm1, %v1628_v36, %v1636_v54  ;;  %v2638_v53 = vrot.slane %v2636_v55, 4  ;;  %v2647_v38 = vshll.u32 %v2602_v45, 16  ;;  %v5368_v12 = vor.u32 %v5367_v15, %v5364_v47  ;;  %v5331_v55 = vld [vmem:[#allocation2 + $0x38] sm:$0x1f] }
 0x236   :  { %v2641_v49 = vrot.slane %v2639_v63, 5  ;;  %v2646_v35 = vrot.slane %v2644_v18, 4  ;;  %v2653_v62 = vshrl.u32 %v12827_v44, 16  ;;  %v5376_v0 = vor.u32 %v5375_v43, %v5372_v30  ;;  %v12830_v63 = vld [vmem:[#allocation2 + $0x30] sm:$0xf0] }
 0x237   :  { %v2649_v57 = vrot.slane %v2647_v38, 5  ;;  %v2656_v7 = vshll.u32 %v12827_v44, 16  ;;  %v2661_v4 = vshrl.u32 %v2603_v46, 16  ;;  %v2664_v13 = vshll.u32 %v2603_v46, 16 }
 0x238   :  { %11466 = vmatmul.mubr.bf16.gmra.mrb[108].mxu0 %v13714_v50  ;;  %v2642_v2 = vor.u32 %v2641_v49, %v2638_v53  ;;  %v2655_v42 = vrot.slane %v2653_v62, 4  ;;  %v2670_v17 = vshrl.u32 %v12828_v10, 16  ;;  %v13784_v39 = vsel %vm2634_vm2, %v5368_v12, %v5376_v0  ;;  %v5330_v50 = vld [vmem:[#allocation2 + $0x28] sm:$0x1f]  ;;  %v2605_v12 = vld [vmem:[#allocation2 + $0x38] sm:$0x1f] }
 0x239   :  { %11469 = vmatprep.mubr.bf16.mxu0 %v13725_v8  ;;  %v2650_v41 = vor.u32 %v2649_v57, %v2646_v35  ;;  %v2658_v25 = vrot.slane %v2656_v7, 5  ;;  %v2663_v19 = vrot.slane %v2661_v4, 4  ;;  %v2666_v26 = vrot.slane %v2664_v13, 5  ;;  %v12831_v4 = vld [vmem:[#allocation2 + $0x30] sm:$0xf0] }
 0x23a   :  { %11702 = vmatmul.mubr.bf16.gmra.mrb[8].mxu1 %v13702_v3  ;;  %v2672_v48 = vrot.slane %v2670_v17, 4  ;;  %v2673_v14 = vshll.u32 %v12828_v10, 16  ;;  %v2678_v34 = vshrl.u32 %v2604_v32, 16  ;;  %v2681_v8 = vshll.u32 %v2604_v32, 16 }
 0x23b   :  { %11705 = vmatprep.mubr.bf16.mxu1 %v13706_v11  ;;  %v13789_v33 = vsel %vm2634_vm2, %v2642_v2, %v2650_v41  ;;  %v2659_v40 = vor.u32 %v2658_v25, %v2655_v42  ;;  %v5379_v45 = vshrl.u32 %v12829_v6, 16  ;;  %v2667_v36 = vor.u32 %v2666_v26, %v2663_v19 }
 0x23c   :  { %v2675_v24 = vrot.slane %v2673_v14, 5  ;;  %v2680_v5 = vrot.slane %v2678_v34, 4  ;;  %v5382_v54 = vshll.u32 %v12829_v6, 16  ;;  %v2683_v47 = vrot.slane %v2681_v8, 5  ;;  %v12832_v14 = vld [vmem:[#allocation2 + $0x40] sm:$0xf0] }
 0x23d   :  { %v5381_v3 = vrot.slane %v5379_v45, 4  ;;  %v5387_v20 = vshrl.u32 %v5330_v50, 16  ;;  %v5390_v58 = vshll.u32 %v5330_v50, 16  ;;  %v13792_v15 = vsel %vm2634_vm2, %v2659_v40, %v2667_v36  ;;  %v5332_v6 = vld [vmem:[#allocation2 + $0x48] sm:$0x1f] }
 0x23e   :  { %v2676_v11 = vor.u32 %v2675_v24, %v2672_v48  ;;  %v5384_v30 = vrot.slane %v5382_v54, 5  ;;  %v5396_v18 = vshrl.u32 %v12830_v63, 16  ;;  %v2684_v46 = vor.u32 %v2683_v47, %v2680_v5  ;;  %v12833_v24 = vld [vmem:[#allocation2 + $0x40] sm:$0xf0] }
 0x23f   :  { %v5389_v43 = vrot.slane %v5387_v20, 4  ;;  %v5392_v53 = vrot.slane %v5390_v58, 5  ;;  %v5399_v38 = vshll.u32 %v12830_v63, 16  ;;  %v5404_v44 = vshrl.u32 %v5331_v55, 16  ;;  %v5333_v63 = vld [vmem:[#allocation2 + $0x58] sm:$0x1f] }
 0x240   :  { %11470 = vmatmul.mubr.bf16.gmra.mrb[112].mxu0 %v13729_v59  ;;  %v5385_v49 = vor.u32 %v5384_v30, %v5381_v3  ;;  %v5398_v35 = vrot.slane %v5396_v18, 4  ;;  %v5407_v62 = vshll.u32 %v5331_v55, 16  ;;  %v13797_v0 = vsel %vm2634_vm2, %v2676_v11, %v2684_v46  ;;  %v2606_v59 = vld [vmem:[#allocation2 + $0x48] sm:$0x1f] }
 0x241   :  { %11473 = vmatprep.mubr.bf16.mxu0 %v13741_v21  ;;  %v5393_v57 = vor.u32 %v5392_v53, %v5389_v43  ;;  %v5401_v7 = vrot.slane %v5399_v38, 5  ;;  %v2687_v32 = vshrl.u32 %v12831_v4, 16  ;;  %v5406_v2 = vrot.slane %v5404_v44, 4  ;;  %v12834_v53 = vld [vmem:[#allocation2 + $0x50] sm:$0xf0] }
 0x242   :  { %11706 = vmatmul.mubr.bf16.gmra.mrb[12].mxu1 %v13717_v51  ;;  %v5409_v42 = vrot.slane %v5407_v62, 5  ;;  %v2690_v13 = vshll.u32 %v12831_v4, 16  ;;  %v2695_v10 = vshrl.u32 %v2605_v12, 16  ;;  %v2698_v25 = vshll.u32 %v2605_v12, 16  ;;  %v2607_v44 = vld [vmem:[#allocation2 + $0x58] sm:$0x1f] }
 0x243   :  { %11709 = vmatprep.mubr.bf16.mxu1 %v13721_v61  ;;  %v13802_v17 = vsel %vm2634_vm2, %v5385_v49, %v5393_v57  ;;  %v5402_v21 = vor.u32 %v5401_v7, %v5398_v35  ;;  %v2689_v41 = vrot.slane %v2687_v32, 4  ;;  %v2704_v34 = vshrl.u32 %v12832_v14, 16 }
 0x244   :  { %v5410_v19 = vor.u32 %v5409_v42, %v5406_v2  ;;  %v2692_v26 = vrot.slane %v2690_v13, 5  ;;  %v2697_v48 = vrot.slane %v2695_v10, 4  ;;  %v2700_v50 = vrot.slane %v2698_v25, 5  ;;  %v12835_v42 = vld [vmem:[#allocation2 + $0x50] sm:$0xf0] }
 0x245   :  { %v2707_v51 = vshll.u32 %v12832_v14, 16  ;;  %v2712_v40 = vshrl.u32 %v2606_v59, 16  ;;  %v2715_v8 = vshll.u32 %v2606_v59, 16  ;;  %v2706_v36 = vrot.slane %v2704_v34, 4 }
 0x246   :  { %v13805_v45 = vsel %vm2634_vm2, %v5402_v21, %v5410_v19  ;;  %v2693_v61 = vor.u32 %v2692_v26, %v2689_v41  ;;  %v5413_v5 = vshrl.u32 %v12833_v24, 16  ;;  %v2701_v54 = vor.u32 %v2700_v50, %v2697_v48  ;;  %v2608_v41 = vld [vmem:[#allocation2 + $0x68] sm:$0x1f]  ;;  %v12836_v50 = vld [vmem:[#allocation2 + $0x60] sm:$0xf0] }
 0x247   :  { %v2709_v47 = vrot.slane %v2707_v51, 5  ;;  %v2714_v3 = vrot.slane %v2712_v40, 4  ;;  %v2717_v20 = vrot.slane %v2715_v8, 5  ;;  %v5416_v55 = vshll.u32 %v12833_v24, 16 }
 0x248   :  { %11474 = vmatmul.mubr.bf16.gmra.mrb[116].mxu0 %v13744_v23  ;;  %v5415_v58 = vrot.slane %v5413_v5, 4  ;;  %v5421_v11 = vshrl.u32 %v5332_v6, 16  ;;  %v5424_v30 = vshll.u32 %v5332_v6, 16  ;;  %v13810_v18 = vsel %vm2634_vm2, %v2693_v61, %v2701_v54 }
 0x249   :  { %11477 = vmatprep.mubr.bf16.mxu0 %v13756_v27  ;;  %v2710_v46 = vor.u32 %v2709_v47, %v2706_v36  ;;  %v2718_v43 = vor.u32 %v2717_v20, %v2714_v3  ;;  %v5430_v38 = vshrl.u32 %v12834_v53, 16  ;;  %v5418_v12 = vrot.slane %v5416_v55, 5  ;;  %v5334_v36 = vld [vmem:[#allocation2 + $0x68] sm:$0x1f]  ;;  %v12837_v47 = vld [vmem:[#allocation2 + $0x60] sm:$0xf0] }
 0x24a   :  { %11710 = vmatmul.mubr.bf16.gmra.mrb[16].mxu1 %v13732_v22  ;;  %v5423_v49 = vrot.slane %v5421_v11, 4  ;;  %v5426_v35 = vrot.slane %v5424_v30, 5  ;;  %v5433_v23 = vshll.u32 %v12834_v53, 16  ;;  %v5438_v57 = vshrl.u32 %v5333_v63, 16 }
 0x24b   :  { %11713 = vmatprep.mubr.bf16.mxu1 %v13736_v52  ;;  %v13815_v62 = vsel %vm2634_vm2, %v2710_v46, %v2718_v43  ;;  %v5432_v27 = vrot.slane %v5430_v38, 4  ;;  %v5441_v7 = vshll.u32 %v5333_v63, 16  ;;  %v5419_v4 = vor.u32 %v5418_v12, %v5415_v58  ;;  %v12838_v12 = vld [vmem:[#allocation2 + $0x70] sm:$0xf0] }
 0x24c   :  { %v5427_v32 = vor.u32 %v5426_v35, %v5423_v49  ;;  %v5435_v2 = vrot.slane %v5433_v23, 5  ;;  %v2721_v13 = vshrl.u32 %v12835_v42, 16  ;;  %v5440_v10 = vrot.slane %v5438_v57, 4 }
 0x24d   :  { %v5443_v22 = vrot.slane %v5441_v7, 5  ;;  %v2724_v59 = vshll.u32 %v12835_v42, 16  ;;  %v2729_v21 = vshrl.u32 %v2607_v44, 16  ;;  %v2732_v26 = vshll.u32 %v2607_v44, 16 }
 0x24e   :  { %v13818_v25 = vsel %vm2634_vm2, %v5419_v4, %v5427_v32  ;;  %v5436_v52 = vor.u32 %v5435_v2, %v5432_v27  ;;  %v2723_v19 = vrot.slane %v2721_v13, 4  ;;  %v2738_v51 = vshrl.u32 %v12836_v50, 16  ;;  %v2609_v27 = vld [vmem:[#allocation2 + $0x78] sm:$0x1f]  ;;  %v12839_v13 = vld [vmem:[#allocation2 + $0x70] sm:$0xf0] }
 0x24f   :  { %v5444_v48 = vor.u32 %v5443_v22, %v5440_v10  ;;  %v2726_v14 = vrot.slane %v2724_v59, 5  ;;  %v2731_v34 = vrot.slane %v2729_v21, 4  ;;  %v2734_v40 = vrot.slane %v2732_v26, 5 }
 0x250   :  { %11478 = vmatmul.mubr.bf16.gmra.mrb[120].mxu0 %v13760_v1  ;;  %v2741_v8 = vshll.u32 %v12836_v50, 16  ;;  %v2746_v6 = vshrl.u32 %v2608_v41, 16  ;;  %v2749_v61 = vshll.u32 %v2608_v41, 16  ;;  %v2740_v54 = vrot.slane %v2738_v51, 4 }
 0x251   :  { %11481 = vmatprep.mubr.bf16.mxu0 %v13771_v37  ;;  %v13823_v24 = vsel %vm2634_vm2, %v5436_v52, %v5444_v48  ;;  %v2727_v5 = vor.u32 %v2726_v14, %v2723_v19  ;;  %v5447_v3 = vshrl.u32 %v12837_v47, 16  ;;  %v2735_v20 = vor.u32 %v2734_v40, %v2731_v34  ;;  %v5335_v37 = vld [vmem:[#allocation2 + $0x78] sm:$0x1f]  ;;  %v2610_v52 = vld [vmem:[#allocation2 + $0x88] sm:$0x1f] }
 0x252   :  { %11714 = vmatmul.mubr.bf16.gmra.mrb[20].mxu1 %v13747_v31  ;;  %v2743_v58 = vrot.slane %v2741_v8, 5  ;;  %v2748_v55 = vrot.slane %v2746_v6, 4  ;;  %v2751_v1 = vrot.slane %v2749_v61, 5  ;;  %v5450_v30 = vshll.u32 %v12837_v47, 16  ;;  %v12840_v40 = vld [vmem:[#allocation2 + $0x80] sm:$0xf0] }
 0x253   :  { %11717 = vmatprep.mubr.bf16.mxu1 %v13751_v28  ;;  %v5449_v11 = vrot.slane %v5447_v3, 4  ;;  %v5455_v63 = vshrl.u32 %v5334_v36, 16  ;;  %v5458_v46 = vshll.u32 %v5334_v36, 16  ;;  %v13828_v43 = vsel %vm2634_vm2, %v2727_v5, %v2735_v20  ;;  %v12841_v3 = vld [vmem:[#allocation2 + $0x80] sm:$0xf0] }
 0x254   :  { %v2744_v53 = vor.u32 %v2743_v58, %v2740_v54  ;;  %v2752_v38 = vor.u32 %v2751_v1, %v2748_v55  ;;  %v5464_v49 = vshrl.u32 %v12838_v12, 16  ;;  %v5452_v35 = vrot.slane %v5450_v30, 5 }
 0x255   :  { %v5457_v31 = vrot.slane %v5455_v63, 4  ;;  %v5460_v23 = vrot.slane %v5458_v46, 5  ;;  %v5467_v44 = vshll.u32 %v12838_v12, 16  ;;  %v5472_v7 = vshrl.u32 %v5335_v37, 16  ;;  %v5337_v46 = vld [vmem:[#allocation2 + $0x98] sm:$0x1f] }
 0x256   :  { %v13831_v57 = vsel %vm2634_vm2, %v2744_v53, %v2752_v38  ;;  %v5466_v28 = vrot.slane %v5464_v49, 4  ;;  %v5475_v4 = vshll.u32 %v5335_v37, 16  ;;  %v5453_v32 = vor.u32 %v5452_v35, %v5449_v11  ;;  %v12842_v12 = vld [vmem:[#allocation2 + $0x90] sm:$0xf0] }
 0x257   :  { %v5461_v2 = vor.u32 %v5460_v23, %v5457_v31  ;;  %v5469_v42 = vrot.slane %v5467_v44, 5  ;;  %v2755_v10 = vshrl.u32 %v12839_v13, 16  ;;  %v5474_v22 = vrot.slane %v5472_v7, 4 }
 0x258   :  { %11482 = vmatmul.mubr.bf16.gmra.mrb[124].mxu0 %v13779_v29  ;;  %v5477_v59 = vrot.slane %v5475_v4, 5  ;;  %v2758_v21 = vshll.u32 %v12839_v13, 16  ;;  %v2763_v41 = vshrl.u32 %v2609_v27, 16  ;;  %v2766_v14 = vshll.u32 %v2609_v27, 16  ;;  %v2611_v27 = vld [vmem:[#allocation2 + $0x98] sm:$0x1f] }
 0x259   :  { %11501 = vmatprep.mubr.bf16.mxu0 %v13789_v33  ;;  %v13836_v19 = vsel %vm2634_vm2, %v5453_v32, %v5461_v2  ;;  %v5470_v26 = vor.u32 %v5469_v42, %v5466_v28  ;;  %v2757_v48 = vrot.slane %v2755_v10, 4  ;;  %v2772_v29 = vshrl.u32 %v12840_v40, 16  ;;  %v5336_v33 = vld [vmem:[#allocation2 + $0x88] sm:$0x1f]  ;;  %v12843_v13 = vld [vmem:[#allocation2 + $0x90] sm:$0xf0] }
 0x25a   :  { %11718 = vmatmul.mubr.bf16.gmra.mrb[24].mxu1 %v13763_v9  ;;  %v5478_v34 = vor.u32 %v5477_v59, %v5474_v22  ;;  %v2760_v50 = vrot.slane %v2758_v21, 5  ;;  %v2765_v51 = vrot.slane %v2763_v41, 4  ;;  %v2768_v8 = vrot.slane %v2766_v14, 5  ;;  %v12844_v22 = vld [vmem:[#allocation8 + $0xc8] sm:$0xff]  }
 0x25b   :  { %11721 = vmatprep.mubr.bf16.mxu1 %v13766_v16  ;;  %v2775_v6 = vshll.u32 %v12840_v40, 16  ;;  %v2780_v61 = vshrl.u32 %v2610_v52, 16  ;;  %v2783_v36 = vshll.u32 %v2610_v52, 16  ;;  %v2774_v47 = vrot.slane %v2772_v29, 4  ;;  %v2612_v52 = vld [vmem:[#allocation2 + $0xa8] sm:$0x1f] }
 0x25c   :  { %v13841_v5 = vsel %vm2634_vm2, %v5470_v26, %v5478_v34  ;;  %v2761_v54 = vor.u32 %v2760_v50, %v2757_v48  ;;  %v5481_v20 = vshrl.u32 %v12841_v3, 16  ;;  %v2769_v9 = vor.u32 %v2768_v8, %v2765_v51  ;;  %v12845_v51 = vld [vmem:[#allocation2 + $0xa0] sm:$0xf0] }
 0x25d   :  { %v2777_v58 = vrot.slane %v2775_v6, 5  ;;  %v2782_v55 = vrot.slane %v2780_v61, 4  ;;  %v2785_v1 = vrot.slane %v2783_v36, 5  ;;  %v5484_v30 = vshll.u32 %v12841_v3, 16  ;;  %v5338_v61 = vld [vmem:[#allocation2 + $0xa8] sm:$0x1f] }
 0x25e   :  { %v5483_v11 = vrot.slane %v5481_v20, 4  ;;  %v5489_v63 = vshrl.u32 %v5336_v33, 16  ;;  %v5492_v16 = vshll.u32 %v5336_v33, 16  ;;  %v13844_v37 = vsel %vm2634_vm2, %v2761_v54, %v2769_v9  ;;  %v12846_v36 = vld [vmem:[#allocation8 + $0xd0] sm:$0xff]   ;;  %v12847_v3 = vld [vmem:[#allocation2 + $0xa0] sm:$0xf0] }
 0x25f   :  { %v2778_v53 = vor.u32 %v2777_v58, %v2774_v47  ;;  %v2786_v38 = vor.u32 %v2785_v1, %v2782_v55  ;;  %v5498_v49 = vshrl.u32 %v12842_v12, 16  ;;  %v5486_v35 = vrot.slane %v5484_v30, 5  ;;  %v12750_v9 = vld [vmem:[#allocation8 + $0x188] sm:$0xff]  }
 0x260   :  { %11502 = vmatmul.mubr.bf16.vlgmr.msra.gmra.mrb[64].mxu0 %v13792_v15  ;;  %v5491_v31 = vrot.slane %v5489_v63, 4  ;;  %v5494_v23 = vrot.slane %v5492_v16, 5  ;;  %v5501_v44 = vshll.u32 %v12842_v12, 16  ;;  %v5506_v4 = vshrl.u32 %v5337_v46, 16 }
 0x261   :  { %11505 = vmatprep.mubr.bf16.mxu0 %v13797_v0  ;;  %v13849_v28 = vsel %vm2634_vm2, %v2778_v53, %v2786_v38  ;;  %v5500_v7 = vrot.slane %v5498_v49, 4  ;;  %v5509_v32 = vshll.u32 %v5337_v46, 16  ;;  %11566 = vmatpush3.bf16.msra.mxu0 %v13657_v56  ;;  %v5487_v2 = vor.u32 %v5486_v35, %v5483_v11  ;;  %v5339_v53 = vld [vmem:[#allocation2 + $0xb8] sm:$0x1f]  ;;  %v12848_v49 = vld [vmem:[#allocation2 + $0xb0] sm:$0xf0] }
 0x262   :  { %11722 = vmatmul.mubr.bf16.gmra.mrb[28].mxu1 %v13775_v60  ;;  %v5495_v42 = vor.u32 %v5494_v23, %v5491_v31  ;;  %v5503_v15 = vrot.slane %v5501_v44, 5  ;;  %v2789_v10 = vshrl.u32 %v12843_v13, 16  ;;  %11567 = vmatprep.subr.bf16.mxu0 %v12844_v22  ;;  %v5508_v0 = vrot.slane %v5506_v4, 4  ;;  %v12849_v31 = vld [vmem:[#allocation8 + $0xd8] sm:$0xff]   ;;  %v12850_v23 = vld [vmem:[#allocation8 + $0x180] sm:$0xff]  }
 0x263   :  { %11741 = vmatprep.mubr.bf16.mxu1 %v13784_v39  ;;  %v5511_v59 = vrot.slane %v5509_v32, 5  ;;  %v2792_v21 = vshll.u32 %v12843_v13, 16  ;;  %v2797_v41 = vshrl.u32 %v2611_v27, 16  ;;  %v2800_v60 = vshll.u32 %v2611_v27, 16  ;;  %v2613_v4 = vld [vmem:[#allocation2 + $0xb8] sm:$0x1f] }
 0x264   :  { %v13855_v26 = vsel %vm2634_vm2, %v5487_v2, %v5495_v42  ;;  %v5504_v56 = vor.u32 %v5503_v15, %v5500_v7  ;;  %v2791_v48 = vrot.slane %v2789_v10, 4  ;;  %v2806_v40 = vshrl.u32 %v12845_v51, 16  ;;  %v12751_v32 = vld [vmem:[#allocation8 + $0x190] sm:$0xff]  }
 0x265   :  { %v5512_v14 = vor.u32 %v5511_v59, %v5508_v0  ;;  %v2794_v34 = vrot.slane %v2792_v21, 5  ;;  %v2799_v50 = vrot.slane %v2797_v41, 4  ;;  %11568 = vmatpush3.bf16.msra.mxu0 %v12844_v22  ;;  %v2802_v29 = vrot.slane %v2800_v60, 5  ;;  %v12851_v0 = vld [vmem:[#allocation2 + $0xb0] sm:$0xf0] }
 0x266   :  { %v2809_v8 = vshll.u32 %v12845_v51, 16  ;;  %v2814_v39 = vshrl.u32 %v2612_v52, 16  ;;  %v2817_v6 = vshll.u32 %v2612_v52, 16  ;;  %11569 = vmatprep.subr.bf16.mxu0 %v12846_v36  ;;  %v2808_v47 = vrot.slane %v2806_v40, 4 }
 0x267   :  { %v13858_v33 = vsel %vm2634_vm2, %v5504_v56, %v5512_v14  ;;  %v2795_v54 = vor.u32 %v2794_v34, %v2791_v48  ;;  %v5515_v20 = vshrl.u32 %v12847_v3, 16  ;;  %v2803_v58 = vor.u32 %v2802_v29, %v2799_v50  ;;  %v2614_v56 = vld [vmem:[#allocation2 + $0xc8] sm:$0x1f]  ;;  %v12852_v48 = vld [vmem:[#allocation8 + $0xe0] sm:$0xff]  }
 0x268   :  { %11506 = vmatmul.mubr.bf16.gmra.mrb[68].mxu0 %v13810_v18  ;;  %v2811_v55 = vrot.slane %v2809_v8, 5  ;;  %v2816_v1 = vrot.slane %v2814_v39, 4  ;;  %v2819_v11 = vrot.slane %v2817_v6, 5  ;;  %v5518_v63 = vshll.u32 %v12847_v3, 16  ;;  %v12853_v8 = vld [vmem:[#allocation2 + $0xc0] sm:$0xf0] }
 0x269   :  { %11509 = vmatprep.mubr.bf16.mxu0 %v13815_v62  ;;  %v5517_v30 = vrot.slane %v5515_v20, 4  ;;  %v5523_v16 = vshrl.u32 %v5338_v61, 16  ;;  %v5526_v46 = vshll.u32 %v5338_v61, 16  ;;  %11570 = vmatpush3.bf16.msra.mxu0 %v12846_v36  ;;  %v13864_v38 = vsel %vm2634_vm2, %v2795_v54, %v2803_v58  ;;  %v12752_v6 = vld [vmem:[#allocation8 + $0x198] sm:$0xff]   ;;  %v5340_v3 = vld [vmem:[#allocation2 + $0xc8] sm:$0x1f] }
 0x26a   :  { %11742 = vmatmul.mubr.bf16.vlgmr.msra.gmra.mrb[32].mxu1 %v13802_v17  ;;  %v2812_v12 = vor.u32 %v2811_v55, %v2808_v47  ;;  %v2820_v18 = vor.u32 %v2819_v11, %v2816_v1  ;;  %v5532_v35 = vshrl.u32 %v12848_v49, 16  ;;  %11571 = vmatprep.subr.bf16.mxu0 %v12849_v31  ;;  %v5520_v62 = vrot.slane %v5518_v63, 5  ;;  %v12854_v58 = vld [vmem:[#allocation2 + $0xc0] sm:$0xf0]  ;;  %v12855_v1 = vld [vmem:[#allocation8 + $0xe8] sm:$0xff]  }
 0x26b   :  { %11806 = vmatpush3.bf16.msra.mxu1 %v12850_v23  ;;  %11745 = vmatprep.mubr.bf16.mxu1 %v13805_v45  ;;  %v5525_v44 = vrot.slane %v5523_v16, 4  ;;  %v5528_v27 = vrot.slane %v5526_v46, 5  ;;  %v5535_v7 = vshll.u32 %v12848_v49, 16  ;;  %v5540_v42 = vshrl.u32 %v5339_v53, 16  ;;  %v5341_v16 = vld [vmem:[#allocation2 + $0xd8] sm:$0x1f] }
 0x26c   :  { %11807 = vmatprep.subr.bf16.mxu1 %v12750_v9  ;;  %v13868_v17 = vsel %vm2634_vm2, %v2812_v12, %v2820_v18  ;;  %v5534_v2 = vrot.slane %v5532_v35, 4  ;;  %v5543_v15 = vshll.u32 %v5339_v53, 16  ;;  %v5521_v13 = vor.u32 %v5520_v62, %v5517_v30  ;;  %v12753_v18 = vld [vmem:[#allocation8 + $0x1a0] sm:$0xff]   ;;  %v12856_v23 = vld [vmem:[#allocation2 + $0xd0] sm:$0xf0] }
 0x26d   :  { %v5529_v10 = vor.u32 %v5528_v27, %v5525_v44  ;;  %v5537_v22 = vrot.slane %v5535_v7, 5  ;;  %v2823_v59 = vshrl.u32 %v12851_v0, 16  ;;  %11572 = vmatpush3.bf16.msra.mxu0 %v12849_v31  ;;  %v5542_v45 = vrot.slane %v5540_v42, 4 }
 0x26e   :  { %v5545_v21 = vrot.slane %v5543_v15, 5  ;;  %v2826_v41 = vshll.u32 %v12851_v0, 16  ;;  %v2831_v52 = vshrl.u32 %v2613_v4, 16  ;;  %11573 = vmatprep.subr.bf16.mxu0 %v12852_v48  ;;  %v2834_v50 = vshll.u32 %v2613_v4, 16  ;;  %v2615_v4 = vld [vmem:[#allocation2 + $0xd8] sm:$0x1f] }
 0x26f   :  { %11808 = vmatpush3.bf16.msra.mxu1 %v12750_v9  ;;  %v13871_v60 = vsel %vm2634_vm2, %v5521_v13, %v5529_v10  ;;  %v5538_v14 = vor.u32 %v5537_v22, %v5534_v2  ;;  %v2825_v34 = vrot.slane %v2823_v59, 4  ;;  %v2840_v39 = vshrl.u32 %v12853_v8, 16  ;;  %v12858_v59 = vld [vmem:[#allocation2 + $0xd0] sm:$0xf0] }
 0x270   :  { %11510 = vmatmul.mubr.bf16.gmra.mrb[72].mxu0 %v13828_v43  ;;  %11809 = vmatprep.subr.bf16.mxu1 %v12751_v32  ;;  %v5546_v51 = vor.u32 %v5545_v21, %v5542_v45  ;;  %v2828_v40 = vrot.slane %v2826_v41, 5  ;;  %v2833_v29 = vrot.slane %v2831_v52, 4  ;;  %v2836_v61 = vrot.slane %v2834_v50, 5  ;;  %v12754_v21 = vld [vmem:[#allocation8 + $0x1a8] sm:$0xff]  }
 0x271   :  { %11513 = vmatprep.mubr.bf16.mxu0 %v13831_v57  ;;  %v2843_v36 = vshll.u32 %v12853_v8, 16  ;;  %v2848_v54 = vshrl.u32 %v2614_v56, 16  ;;  %v2851_v47 = vshll.u32 %v2614_v56, 16  ;;  %11574 = vmatpush3.bf16.msra.mxu0 %v12852_v48  ;;  %v2842_v9 = vrot.slane %v2840_v39, 4  ;;  %v12860_v39 = vld [vmem:[#allocation2 + $0xe0] sm:$0xf0] }
 0x272   :  { %11746 = vmatmul.mubr.bf16.gmra.mrb[36].mxu1 %v13818_v25  ;;  %v13877_v20 = vsel %vm2634_vm2, %v5538_v14, %v5546_v51  ;;  %v2829_v43 = vor.u32 %v2828_v40, %v2825_v34  ;;  %v5549_v55 = vshrl.u32 %v12854_v58, 16  ;;  %11575 = vmatprep.subr.bf16.mxu0 %v12855_v1  ;;  %v2837_v57 = vor.u32 %v2836_v61, %v2833_v29  ;;  %v2616_v14 = vld [vmem:[#allocation2 + $0xe8] sm:$0x1f]  ;;  %v12859_v40 = vld [vmem:[#allocation8 + $0xf8] sm:$0xff]  }
 0x273   :  { %11749 = vmatprep.mubr.bf16.mxu1 %v13823_v24  ;;  %11810 = vmatpush3.bf16.msra.mxu1 %v12751_v32  ;;  %v2845_v11 = vrot.slane %v2843_v36, 5  ;;  %v2850_v30 = vrot.slane %v2848_v54, 4  ;;  %v2853_v63 = vrot.slane %v2851_v47, 5  ;;  %v5552_v53 = vshll.u32 %v12854_v58, 16  ;;  %v12857_v32 = vld [vmem:[#allocation8 + $0xf0] sm:$0xff]  }
 0x274   :  { %v5551_v46 = vrot.slane %v5549_v55, 4  ;;  %v5557_v25 = vshrl.u32 %v5340_v3, 16  ;;  %v5560_v12 = vshll.u32 %v5340_v3, 16  ;;  %11811 = vmatprep.subr.bf16.mxu1 %v12752_v6  ;;  %v13881_v49 = vsel %vm2634_vm2, %v2829_v43, %v2837_v57  ;;  %v5342_v61 = vld [vmem:[#allocation2 + $0xe8] sm:$0x1f]  ;;  %v12755_v3 = vld [vmem:[#allocation8 + $0x1b0] sm:$0xff]  }
 0x275   :  { %v2846_v35 = vor.u32 %v2845_v11, %v2842_v9  ;;  %v2854_v31 = vor.u32 %v2853_v63, %v2850_v30  ;;  %v5566_v62 = vshrl.u32 %v12856_v23, 16  ;;  %11576 = vmatpush3.bf16.msra.mxu0 %v12855_v1  ;;  %v5554_v24 = vrot.slane %v5552_v53, 5  ;;  %v12861_v55 = vld [vmem:[#allocation2 + $0xe0] sm:$0xf0] }
 0x276   :  { %v5559_v44 = vrot.slane %v5557_v25, 4  ;;  %v5562_v27 = vrot.slane %v5560_v12, 5  ;;  %v5569_v7 = vshll.u32 %v12856_v23, 16  ;;  %11577 = vmatprep.subr.bf16.mxu0 %v12857_v32  ;;  %v5574_v15 = vshrl.u32 %v5341_v16, 16  ;;  %v5343_v25 = vld [vmem:[#allocation2 + $0xf8] sm:$0x1f] }
 0x277   :  { %v13884_v2 = vsel %vm2634_vm2, %v2846_v35, %v2854_v31  ;;  %v5568_v42 = vrot.slane %v5566_v62, 4  ;;  %v5577_v13 = vshll.u32 %v5341_v16, 16  ;;  %11812 = vmatpush3.bf16.msra.mxu1 %v12752_v6  ;;  %v5555_v10 = vor.u32 %v5554_v24, %v5551_v46  ;;  %v12862_v31 = vld [vmem:[#allocation2 + $0xf0] sm:$0xf0]  ;;  %v12756_v62 = vld [vmem:[#allocation8 + $0x1b8] sm:$0xff]  }
 0x278   :  { %11514 = vmatmul.mubr.bf16.gmra.mrb[76].mxu0 %v13844_v37  ;;  %v5563_v22 = vor.u32 %v5562_v27, %v5559_v44  ;;  %v5571_v0 = vrot.slane %v5569_v7, 5  ;;  %v2857_v45 = vshrl.u32 %v12858_v59, 16  ;;  %11813 = vmatprep.subr.bf16.mxu1 %v12753_v18  ;;  %v5576_v41 = vrot.slane %v5574_v15, 4 }
 0x279   :  { %11517 = vmatprep.mubr.bf16.mxu0 %v13849_v28  ;;  %v5579_v52 = vrot.slane %v5577_v13, 5  ;;  %v2860_v56 = vshll.u32 %v12858_v59, 16  ;;  %v2865_v48 = vshrl.u32 %v2615_v4, 16  ;;  %11578 = vmatpush3.bf16.msra.mxu0 %v12857_v32  ;;  %v2868_v51 = vshll.u32 %v2615_v4, 16  ;;  %v2617_v4 = vld [vmem:[#allocation2 + $0xf8] sm:$0x1f] }
 0x27a   :  { %11750 = vmatmul.mubr.bf16.gmra.mrb[40].mxu1 %v13836_v19  ;;  %v13890_v34 = vsel %vm2634_vm2, %v5555_v10, %v5563_v22  ;;  %v5572_v37 = vor.u32 %v5571_v0, %v5568_v42  ;;  %v2859_v50 = vrot.slane %v2857_v45, 4  ;;  %11579 = vmatprep.subr.bf16.mxu0 %v12859_v40  ;;  %v2874_v6 = vshrl.u32 %v12860_v39, 16  ;;  %v12863_v0 = vld [vmem:[#allocation2 + $0xf0] sm:$0xf0]  ;;  %v5344_v59 = vld [vmem:[#allocation2 + $0x108] sm:$0x1f] }
 0x27b   :  { %11753 = vmatprep.mubr.bf16.mxu1 %v13841_v5  ;;  %v5580_v29 = vor.u32 %v5579_v52, %v5576_v41  ;;  %v2862_v28 = vrot.slane %v2860_v56, 5  ;;  %v2867_v8 = vrot.slane %v2865_v48, 4  ;;  %11814 = vmatpush3.bf16.msra.mxu1 %v12753_v18  ;;  %v2870_v36 = vrot.slane %v2868_v51, 5 }
 0x27c   :  { %v2877_v54 = vshll.u32 %v12860_v39, 16  ;;  %v2882_v19 = vshrl.u32 %v2616_v14, 16  ;;  %v2885_v47 = vshll.u32 %v2616_v14, 16  ;;  %11815 = vmatprep.subr.bf16.mxu1 %v12754_v21  ;;  %v2876_v58 = vrot.slane %v2874_v6, 4 }
 0x27d   :  { %v13894_v43 = vsel %vm2634_vm2, %v5572_v37, %v5580_v29  ;;  %v2863_v9 = vor.u32 %v2862_v28, %v2859_v50  ;;  %v5583_v5 = vshrl.u32 %v12861_v55, 16  ;;  %11580 = vmatpush3.bf16.msra.mxu0 %v12859_v40  ;;  %v2871_v1 = vor.u32 %v2870_v36, %v2867_v8  ;;  %v12864_v40 = vld [vmem:[#allocation2 + $0x100] sm:$0xf0] }
 0x27e   :  { %v2879_v57 = vrot.slane %v2877_v54, 5  ;;  %v2884_v11 = vrot.slane %v2882_v19, 4  ;;  %v2887_v30 = vrot.slane %v2885_v47, 5  ;;  %v5586_v16 = vshll.u32 %v12861_v55, 16  ;;  %v12865_v47 = vld [vmem:[#allocation2 + $0x130] sm:$0xf0] }
 0x27f   :  { %v5585_v63 = vrot.slane %v5583_v5, 4  ;;  %v5591_v46 = vshrl.u32 %v5342_v61, 16  ;;  %v5594_v53 = vshll.u32 %v5342_v61, 16  ;;  %11816 = vmatpush3.bf16.msra.mxu1 %v12754_v21  ;;  %v13898_v12 = vsel %vm2634_vm2, %v2863_v9, %v2871_v1  ;;  %v5345_v61 = vld [vmem:[#allocation2 + $0x138] sm:$0x1f] }
 0x280   :  { %11518 = vmatmul.mubr.bf16.gmra.mrb[80].mxu0 %v13864_v38  ;;  %v2880_v18 = vor.u32 %v2879_v57, %v2876_v58  ;;  %v2888_v35 = vor.u32 %v2887_v30, %v2884_v11  ;;  %v5600_v23 = vshrl.u32 %v12862_v31, 16  ;;  %11817 = vmatprep.subr.bf16.mxu1 %v12755_v3  ;;  %v5588_v24 = vrot.slane %v5586_v16, 5  ;;  %v2618_v30 = vld [vmem:[#allocation2 + $0x128] sm:$0x1f] }
 0x281   :  { %11521 = vmatprep.mubr.bf16.mxu0 %v13868_v17  ;;  %v5593_v44 = vrot.slane %v5591_v46, 4  ;;  %v5596_v27 = vrot.slane %v5594_v53, 5  ;;  %v5603_v7 = vshll.u32 %v12862_v31, 16  ;;  %v5608_v42 = vshrl.u32 %v5343_v25, 16  ;;  %v12866_v53 = vld [vmem:[#allocation2 + $0x120] sm:$0xf0] }
 0x282   :  { %11754 = vmatmul.mubr.bf16.gmra.mrb[44].mxu1 %v13855_v26  ;;  %v13903_v38 = vsel %vm2634_vm2, %v2880_v18, %v2888_v35  ;;  %v5602_v32 = vrot.slane %v5600_v23, 4  ;;  %v5611_v15 = vshll.u32 %v5343_v25, 16  ;;  %v5589_v13 = vor.u32 %v5588_v24, %v5585_v63  ;;  %v12757_v26 = vld [vmem:[#allocation8 + $0x1c0] sm:$0xff]   ;;  %v2619_v23 = vld [vmem:[#allocation2 + $0x138] sm:$0x1f] }
 0x283   :  { %11757 = vmatprep.mubr.bf16.mxu1 %v13858_v33  ;;  %v5597_v10 = vor.u32 %v5596_v27, %v5593_v44  ;;  %v5605_v22 = vrot.slane %v5603_v7, 5  ;;  %v2891_v17 = vshrl.u32 %v12863_v0, 16  ;;  %11818 = vmatpush3.bf16.msra.mxu1 %v12755_v3  ;;  %v5610_v45 = vrot.slane %v5608_v42, 4 }
 0x284   :  { %v5613_v21 = vrot.slane %v5611_v15, 5  ;;  %v2894_v41 = vshll.u32 %v12863_v0, 16  ;;  %v2899_v52 = vshrl.u32 %v2617_v4, 16  ;;  %11819 = vmatprep.subr.bf16.mxu1 %v12756_v62  ;;  %v2902_v37 = vshll.u32 %v2617_v4, 16  ;;  %v12867_v4 = vld [vmem:[#allocation2 + $0x130] sm:$0xf0] }
 0x285   :  { %v13907_v56 = vsel %vm2634_vm2, %v5589_v13, %v5597_v10  ;;  %v5606_v48 = vor.u32 %v5605_v22, %v5602_v32  ;;  %v2893_v14 = vrot.slane %v2891_v17, 4  ;;  %v5617_v29 = vshrl.u32 %v12864_v40, 16  ;;  %v2620_v22 = vld [vmem:[#allocation2 + $0x148] sm:$0x1f] }
 0x286   :  { %v5614_v33 = vor.u32 %v5613_v21, %v5610_v45  ;;  %v2896_v50 = vrot.slane %v2894_v41, 5  ;;  %v2901_v51 = vrot.slane %v2899_v52, 4  ;;  %v2904_v28 = vrot.slane %v2902_v37, 5 }
 0x287   :  { %v5620_v8 = vshll.u32 %v12864_v40, 16  ;;  %v5625_v39 = vshrl.u32 %v5344_v59, 16  ;;  %v5628_v6 = vshll.u32 %v5344_v59, 16  ;;  %11820 = vmatpush3.bf16.msra.mxu1 %v12756_v62  ;;  %v5619_v19 = vrot.slane %v5617_v29, 4 }
 0x288   :  { %11522 = vmatmul.mubr.bf16.gmra.mrb[84].mxu0 %v13881_v49  ;;  %v13911_v36 = vsel %vm2634_vm2, %v5606_v48, %v5614_v33  ;;  %v2897_v54 = vor.u32 %v2896_v50, %v2893_v14  ;;  %v5634_v3 = vshrl.u32 %v12865_v47, 16  ;;  %11885 = vmatprep.subr.bf16.mxu1 %v12757_v26  ;;  %v2905_v9 = vor.u32 %v2904_v28, %v2901_v51  ;;  %v12868_v26 = vld [vmem:[#allocation2 + $0x140] sm:$0xf0] }
 0x289   :  { %11525 = vmatprep.mubr.bf16.mxu0 %v13884_v2  ;;  %v5622_v58 = vrot.slane %v5620_v8, 5  ;;  %v5627_v55 = vrot.slane %v5625_v39, 4  ;;  %v5630_v5 = vrot.slane %v5628_v6, 5  ;;  %v5637_v57 = vshll.u32 %v12865_v47, 16  ;;  %v12869_v28 = vld [vmem:[#allocation2 + $0x140] sm:$0xf0] }
 0x28a   :  { %11758 = vmatmul.mubr.bf16.gmra.mrb[48].mxu1 %v13871_v60  ;;  %v5636_v1 = vrot.slane %v5634_v3, 4  ;;  %v5642_v11 = vshrl.u32 %v5345_v61, 16  ;;  %v5645_v49 = vshll.u32 %v5345_v61, 16  ;;  %v13917_v63 = vsel %vm2634_vm2, %v2897_v54, %v2905_v9  ;;  %v5347_v3 = vld [vmem:[#allocation2 + $0x158] sm:$0x1f] }
 0x28b   :  { %11761 = vmatprep.mubr.bf16.mxu1 %v13877_v20  ;;  %v5623_v16 = vor.u32 %v5622_v58, %v5619_v19  ;;  %v5631_v46 = vor.u32 %v5630_v5, %v5627_v55  ;;  %v2908_v2 = vshrl.u32 %v12866_v53, 16  ;;  %v5639_v25 = vrot.slane %v5637_v57, 5 }
 0x28c   :  { %v5644_v18 = vrot.slane %v5642_v11, 4  ;;  %v5647_v35 = vrot.slane %v5645_v49, 5  ;;  %v2911_v31 = vshll.u32 %v12866_v53, 16  ;;  %v2916_v24 = vshrl.u32 %v2618_v30, 16 }
 0x28d   :  { %v13920_v60 = vsel %vm2634_vm2, %v5623_v16, %v5631_v46  ;;  %v2910_v62 = vrot.slane %v2908_v2, 4  ;;  %v2919_v44 = vshll.u32 %v2618_v30, 16  ;;  %v5640_v27 = vor.u32 %v5639_v25, %v5636_v1  ;;  %v2621_v30 = vld [vmem:[#allocation2 + $0x158] sm:$0x1f] }
 0x28e   :  { %v5648_v20 = vor.u32 %v5647_v35, %v5644_v18  ;;  %v2913_v7 = vrot.slane %v2911_v31, 5  ;;  %v2925_v32 = vshrl.u32 %v12867_v4, 16  ;;  %v2918_v42 = vrot.slane %v2916_v24, 4  ;;  %v12871_v31 = vld [vmem:[#allocation2 + $0x150] sm:$0xf0] }
 0x28f   :  { %v2921_v15 = vrot.slane %v2919_v44, 5  ;;  %v2928_v13 = vshll.u32 %v12867_v4, 16  ;;  %v2933_v10 = vshrl.u32 %v2619_v23, 16  ;;  %v2936_v45 = vshll.u32 %v2619_v23, 16 }
 0x290   :  { %11526 = vmatmul.mubr.bf16.gmra.mrb[88].mxu0 %v13898_v12  ;;  %v13924_v0 = vsel %vm2634_vm2, %v5640_v27, %v5648_v20  ;;  %v2914_v17 = vor.u32 %v2913_v7, %v2910_v62  ;;  %v2927_v59 = vrot.slane %v2925_v32, 4  ;;  %v2942_v48 = vshrl.u32 %v12868_v26, 16  ;;  %v5346_v12 = vld [vmem:[#allocation2 + $0x148] sm:$0x1f] }
 0x291   :  { %11529 = vmatprep.mubr.bf16.mxu0 %v13903_v38  ;;  %v2922_v21 = vor.u32 %v2921_v15, %v2918_v42  ;;  %v2930_v41 = vrot.slane %v2928_v13, 5  ;;  %v2935_v52 = vrot.slane %v2933_v10, 4  ;;  %v2938_v14 = vrot.slane %v2936_v45, 5  ;;  %v2622_v20 = vld [vmem:[#allocation2 + $0x168] sm:$0x1f] }
 0x292   :  { %11762 = vmatmul.mubr.bf16.gmra.mrb[52].mxu1 %v13890_v34  ;;  %v2945_v37 = vshll.u32 %v12868_v26, 16  ;;  %v2950_v33 = vshrl.u32 %v2620_v22, 16  ;;  %v2953_v50 = vshll.u32 %v2620_v22, 16  ;;  %v2944_v29 = vrot.slane %v2942_v48, 4  ;;  %v12872_v10 = vld [vmem:[#allocation2 + $0x160] sm:$0xf0] }
 0x293   :  { %11765 = vmatprep.mubr.bf16.mxu1 %v13894_v43  ;;  %v2923_v51 = vsel %vm2634_vm2, %v2914_v17, %v2922_v21  ;;  %v2931_v40 = vor.u32 %v2930_v41, %v2927_v59  ;;  %v5651_v38 = vshrl.u32 %v12869_v28, 16  ;;  %v2939_v8 = vor.u32 %v2938_v14, %v2935_v52  ;;  %v12870_v43 = vld [vmem:[#allocation2 + $0x150] sm:$0xf0]  ;;  %v5348_v21 = vld [vmem:[#allocation2 + $0x168] sm:$0x1f] }
 0x294   :  { %v2947_v39 = vrot.slane %v2945_v37, 5  ;;  %v2952_v6 = vrot.slane %v2950_v33, 4  ;;  %v2955_v61 = vrot.slane %v2953_v50, 5  ;;  %v5654_v19 = vshll.u32 %v12869_v28, 16  ;;  %v12873_v26 = vld [vmem:[#allocation2 + $0x160] sm:$0xf0] }
 0x295   :  { %v5653_v54 = vrot.slane %v5651_v38, 4  ;;  %v5659_v34 = vshrl.u32 %v5346_v12, 16  ;;  %v5662_v47 = vshll.u32 %v5346_v12, 16  ;;  %v2940_v9 = vsel %vm2634_vm2, %v2931_v40, %v2939_v8  ;;  %v5349_v28 = vld [vmem:[#allocation2 + $0x178] sm:$0x1f] }
 0x296   :  { %v2948_v58 = vor.u32 %v2947_v39, %v2944_v29  ;;  %v2956_v55 = vor.u32 %v2955_v61, %v2952_v6  ;;  %v5668_v5 = vshrl.u32 %v12870_v43, 16  ;;  %v5656_v1 = vrot.slane %v5654_v19, 5  ;;  %v12874_v6 = vld [vmem:[#allocation2 + $0x170] sm:$0xf0] }
 0x297   :  { %v5661_v57 = vrot.slane %v5659_v34, 4  ;;  %v5664_v11 = vrot.slane %v5662_v47, 5  ;;  %v5671_v49 = vshll.u32 %v12870_v43, 16  ;;  %v5676_v53 = vshrl.u32 %v5347_v3, 16 }
 0x298   :  { %11530 = vmatmul.mubr.bf16.gmra.mrb[92].mxu0 %v13917_v63  ;;  %v2957_v16 = vsel %vm2634_vm2, %v2948_v58, %v2956_v55  ;;  %v5670_v46 = vrot.slane %v5668_v5, 4  ;;  %v5679_v2 = vshll.u32 %v5347_v3, 16  ;;  %v5657_v25 = vor.u32 %v5656_v1, %v5653_v54  ;;  %v2623_v3 = vld [vmem:[#allocation2 + $0x178] sm:$0x1f] }
 0x299   :  { %11533 = vmatprep.mubr.bf16.mxu0 %v2923_v51  ;;  %v5665_v18 = vor.u32 %v5664_v11, %v5661_v57  ;;  %v5673_v35 = vrot.slane %v5671_v49, 5  ;;  %v2959_v23 = vshrl.u32 %v12871_v31, 16  ;;  %v5678_v62 = vrot.slane %v5676_v53, 4  ;;  %v12875_v11 = vld [vmem:[#allocation2 + $0x170] sm:$0xf0] }
 0x29a   :  { %11766 = vmatmul.mubr.bf16.gmra.mrb[56].mxu1 %v13907_v56  ;;  %v5681_v24 = vrot.slane %v5679_v2, 5  ;;  %v2962_v44 = vshll.u32 %v12871_v31, 16  ;;  %v2967_v27 = vshrl.u32 %v2621_v30, 16  ;;  %v2970_v32 = vshll.u32 %v2621_v30, 16  ;;  %v2624_v53 = vld [vmem:[#allocation2 + $0x188] sm:$0x1f] }
 0x29b   :  { %11769 = vmatprep.mubr.bf16.mxu1 %v13911_v36  ;;  %v13936_v63 = vsel %vm2634_vm2, %v5657_v25, %v5665_v18  ;;  %v5674_v7 = vor.u32 %v5673_v35, %v5670_v46  ;;  %v2961_v4 = vrot.slane %v2959_v23, 4  ;;  %v2976_v22 = vshrl.u32 %v12872_v10, 16 }
 0x29c   :  { %v5682_v42 = vor.u32 %v5681_v24, %v5678_v62  ;;  %v2964_v15 = vrot.slane %v2962_v44, 5  ;;  %v2969_v13 = vrot.slane %v2967_v27, 4  ;;  %v2972_v17 = vrot.slane %v2970_v32, 5  ;;  %v12876_v62 = vld [vmem:[#allocation2 + $0x180] sm:$0xf0] }
 0x29d   :  { %v2979_v56 = vshll.u32 %v12872_v10, 16  ;;  %v2984_v59 = vshrl.u32 %v2622_v20, 16  ;;  %v2987_v45 = vshll.u32 %v2622_v20, 16  ;;  %v2978_v52 = vrot.slane %v2976_v22, 4 }
 0x29e   :  { %v13939_v41 = vsel %vm2634_vm2, %v5674_v7, %v5682_v42  ;;  %v2965_v36 = vor.u32 %v2964_v15, %v2961_v4  ;;  %v5685_v48 = vshrl.u32 %v12873_v26, 16  ;;  %v2973_v14 = vor.u32 %v2972_v17, %v2969_v13  ;;  %v5350_v4 = vld [vmem:[#allocation2 + $0x188] sm:$0x1f]  ;;  %v12877_v13 = vld [vmem:[#allocation2 + $0x180] sm:$0xf0] }
 0x29f   :  { %v2981_v37 = vrot.slane %v2979_v56, 5  ;;  %v2986_v33 = vrot.slane %v2984_v59, 4  ;;  %v2989_v50 = vrot.slane %v2987_v45, 5  ;;  %v5688_v51 = vshll.u32 %v12873_v26, 16  ;;  %v5351_v26 = vld [vmem:[#allocation2 + $0x198] sm:$0x1f] }
 0x2a0   :  { %11534 = vmatmul.mubr.bf16.gmra.mrb[96].mxu0 %v2940_v9  ;;  %v5687_v12 = vrot.slane %v5685_v48, 4  ;;  %v5693_v40 = vshrl.u32 %v5348_v21, 16  ;;  %v5696_v29 = vshll.u32 %v5348_v21, 16  ;;  %v2974_v38 = vsel %vm2634_vm2, %v2965_v36, %v2973_v14 }
 0x2a1   :  { %11537 = vmatprep.mubr.bf16.mxu0 %v2957_v16  ;;  %v2982_v8 = vor.u32 %v2981_v37, %v2978_v52  ;;  %v2990_v39 = vor.u32 %v2989_v50, %v2986_v33  ;;  %v5702_v61 = vshrl.u32 %v12874_v6, 16  ;;  %v5690_v54 = vrot.slane %v5688_v51, 5  ;;  %v12878_v33 = vld [vmem:[#allocation2 + $0x190] sm:$0xf0] }
 0x2a2   :  { %11770 = vmatmul.mubr.bf16.gmra.mrb[60].mxu1 %v13920_v60  ;;  %v5695_v19 = vrot.slane %v5693_v40, 4  ;;  %v5698_v34 = vrot.slane %v5696_v29, 5  ;;  %v5705_v47 = vshll.u32 %v12874_v6, 16  ;;  %v5710_v55 = vshrl.u32 %v5349_v28, 16  ;;  %v2625_v29 = vld [vmem:[#allocation2 + $0x198] sm:$0x1f] }
 0x2a3   :  { %11773 = vmatprep.mubr.bf16.mxu1 %v13924_v0  ;;  %v2991_v9 = vsel %vm2634_vm2, %v2982_v8, %v2990_v39  ;;  %v5704_v58 = vrot.slane %v5702_v61, 4  ;;  %v5713_v43 = vshll.u32 %v5349_v28, 16  ;;  %v5691_v5 = vor.u32 %v5690_v54, %v5687_v12  ;;  %v12879_v54 = vld [vmem:[#allocation2 + $0x190] sm:$0xf0] }
 0x2a4   :  { %v5699_v1 = vor.u32 %v5698_v34, %v5695_v19  ;;  %v5707_v57 = vrot.slane %v5705_v47, 5  ;;  %v2993_v49 = vshrl.u32 %v12875_v11, 16  ;;  %v5712_v30 = vrot.slane %v5710_v55, 4 }
 0x2a5   :  { %v5715_v16 = vrot.slane %v5713_v43, 5  ;;  %v2996_v60 = vshll.u32 %v12875_v11, 16  ;;  %v3001_v46 = vshrl.u32 %v2623_v3, 16  ;;  %v3004_v0 = vshll.u32 %v2623_v3, 16 }
 0x2a6   :  { %v5700_v2 = vsel %vm2634_vm2, %v5691_v5, %v5699_v1  ;;  %v5708_v25 = vor.u32 %v5707_v57, %v5704_v58  ;;  %v2995_v18 = vrot.slane %v2993_v49, 4  ;;  %v3010_v24 = vshrl.u32 %v12876_v62, 16  ;;  %v2626_v58 = vld [vmem:[#allocation2 + $0x1a8] sm:$0x1f] }
 0x2a7   :  { %v5716_v35 = vor.u32 %v5715_v16, %v5712_v30  ;;  %v2998_v31 = vrot.slane %v2996_v60, 5  ;;  %v3003_v23 = vrot.slane %v3001_v46, 4  ;;  %v3006_v44 = vrot.slane %v3004_v0, 5  ;;  %v12880_v30 = vld [vmem:[#allocation2 + $0x1a0] sm:$0xf0] }
 0x2a8   :  { %11538 = vmatmul.mubr.bf16.gmra.mrb[100].mxu0 %v2974_v38  ;;  %v3013_v27 = vshll.u32 %v12876_v62, 16  ;;  %v3018_v20 = vshrl.u32 %v2624_v53, 16  ;;  %v3021_v7 = vshll.u32 %v2624_v53, 16  ;;  %v3012_v15 = vrot.slane %v3010_v24, 4 }
 0x2a9   :  { %11541 = vmatprep.mubr.bf16.mxu0 %v2991_v9  ;;  %v5717_v32 = vsel %vm2634_vm2, %v5708_v25, %v5716_v35  ;;  %v2999_v42 = vor.u32 %v2998_v31, %v2995_v18  ;;  %v5719_v10 = vshrl.u32 %v12877_v13, 16  ;;  %v3007_v22 = vor.u32 %v3006_v44, %v3003_v23  ;;  %v5352_v18 = vld [vmem:[#allocation2 + $0x1a8] sm:$0x1f]  ;;  %v12881_v23 = vld [vmem:[#allocation2 + $0x1a0] sm:$0xf0] }
 0x2aa   :  { %11774 = vmatmul.mubr.bf16.gmra.mrb[0].mxu1 %v13936_v63  ;;  %v3015_v17 = vrot.slane %v3013_v27, 5  ;;  %v3020_v56 = vrot.slane %v3018_v20, 4  ;;  %v3023_v59 = vrot.slane %v3021_v7, 5  ;;  %v5722_v21 = vshll.u32 %v12877_v13, 16 }
 0x2ab   :  { %11777 = vmatprep.mubr.bf16.mxu1 %v13939_v41  ;;  %v5721_v45 = vrot.slane %v5719_v10, 4  ;;  %v5727_v36 = vshrl.u32 %v5350_v4, 16  ;;  %v5730_v52 = vshll.u32 %v5350_v4, 16  ;;  %v3008_v48 = vsel %vm2634_vm2, %v2999_v42, %v3007_v22  ;;  %v12882_v22 = vld [vmem:[#allocation2 + $0x1b0] sm:$0xf0] }
 0x2ac   :  { %v3016_v14 = vor.u32 %v3015_v17, %v3012_v15  ;;  %v3024_v37 = vor.u32 %v3023_v59, %v3020_v56  ;;  %v5736_v50 = vshrl.u32 %v12878_v33, 16  ;;  %v5724_v12 = vrot.slane %v5722_v21, 5 }
 0x2ad   :  { %v5729_v51 = vrot.slane %v5727_v36, 4  ;;  %v5732_v63 = vrot.slane %v5730_v52, 5  ;;  %v5739_v40 = vshll.u32 %v12878_v33, 16  ;;  %v5744_v41 = vshrl.u32 %v5351_v26, 16  ;;  %v2627_v36 = vld [vmem:[#allocation2 + $0x1b8] sm:$0x1f] }
 0x2ae   :  { %v3025_v28 = vsel %vm2634_vm2, %v3016_v14, %v3024_v37  ;;  %v5738_v38 = vrot.slane %v5736_v50, 4  ;;  %v5747_v8 = vshll.u32 %v5351_v26, 16  ;;  %v5725_v39 = vor.u32 %v5724_v12, %v5721_v45  ;;  %v12883_v12 = vld [vmem:[#allocation2 + $0x1b0] sm:$0xf0] }
 0x2af   :  { %v5733_v6 = vor.u32 %v5732_v63, %v5729_v51  ;;  %v5741_v61 = vrot.slane %v5739_v40, 5  ;;  %v3027_v19 = vshrl.u32 %v12879_v54, 16  ;;  %v5746_v34 = vrot.slane %v5744_v41, 4 }
 0x2b0   :  { %11542 = vmatmul.mubr.bf16.gmra.mrb[104].mxu0 %v3008_v48  ;;  %v5749_v47 = vrot.slane %v5747_v8, 5  ;;  %v3030_v3 = vshll.u32 %v12879_v54, 16  ;;  %v3035_v9 = vshrl.u32 %v2625_v29, 16  ;;  %v3038_v1 = vshll.u32 %v2625_v29, 16 }
 0x2b1   :  { %11545 = vmatprep.mubr.bf16.mxu0 %v3025_v28  ;;  %v5734_v55 = vsel %vm2634_vm2, %v5725_v39, %v5733_v6  ;;  %v5742_v43 = vor.u32 %v5741_v61, %v5738_v38  ;;  %v3029_v5 = vrot.slane %v3027_v19, 4  ;;  %v3044_v16 = vshrl.u32 %v12880_v30, 16  ;;  %v2628_v38 = vld [vmem:[#allocation2 + $0x1c8] sm:$0x1f] }
 0x2b2   :  { %11778 = vmatmul.mubr.bf16.gmra.mrb[4].mxu1 %v5700_v2  ;;  %v5750_v57 = vor.u32 %v5749_v47, %v5746_v34  ;;  %v3032_v11 = vrot.slane %v3030_v3, 5  ;;  %v3037_v49 = vrot.slane %v3035_v9, 4  ;;  %v3040_v60 = vrot.slane %v3038_v1, 5  ;;  %v12884_v34 = vld [vmem:[#allocation2 + $0x1c0] sm:$0xf0] }
 0x2b3   :  { %11781 = vmatprep.mubr.bf16.mxu1 %v5717_v32  ;;  %v3047_v46 = vshll.u32 %v12880_v30, 16  ;;  %v3052_v53 = vshrl.u32 %v2626_v58, 16  ;;  %v3055_v25 = vshll.u32 %v2626_v58, 16  ;;  %v3046_v31 = vrot.slane %v3044_v16, 4  ;;  %v5353_v32 = vld [vmem:[#allocation2 + $0x1b8] sm:$0x1f] }
 0x2b4   :  { %v5751_v0 = vsel %vm2634_vm2, %v5742_v43, %v5750_v57  ;;  %v3033_v35 = vor.u32 %v3032_v11, %v3029_v5  ;;  %v5753_v62 = vshrl.u32 %v12881_v23, 16  ;;  %v3041_v24 = vor.u32 %v3040_v60, %v3037_v49  ;;  %v5354_v43 = vld [vmem:[#allocation2 + $0x1c8] sm:$0x1f]  ;;  %v12885_v11 = vld [vmem:[#allocation2 + $0x1c0] sm:$0xf0] }
 0x2b5   :  { %v3049_v44 = vrot.slane %v3047_v46, 5  ;;  %v3054_v2 = vrot.slane %v3052_v53, 4  ;;  %v3057_v27 = vrot.slane %v3055_v25, 5  ;;  %v5756_v7 = vshll.u32 %v12881_v23, 16 }
 0x2b6   :  { %v5755_v20 = vrot.slane %v5753_v62, 4  ;;  %v5761_v4 = vshrl.u32 %v5352_v18, 16  ;;  %v5764_v42 = vshll.u32 %v5352_v18, 16  ;;  %v3042_v15 = vsel %vm2634_vm2, %v3033_v35, %v3041_v24  ;;  %v5355_v35 = vld [vmem:[#allocation2 + $0x1d8] sm:$0x1f] }
 0x2b7   :  { %v3050_v13 = vor.u32 %v3049_v44, %v3046_v31  ;;  %v3058_v10 = vor.u32 %v3057_v27, %v3054_v2  ;;  %v5770_v17 = vshrl.u32 %v12882_v22, 16  ;;  %v5758_v56 = vrot.slane %v5756_v7, 5  ;;  %v12886_v24 = vld [vmem:[#allocation2 + $0x1d0] sm:$0xf0] }
 0x2b8   :  { %11546 = vmatmul.mubr.bf16.gmra.mrb[108].mxu0 %v3042_v15  ;;  %v5763_v59 = vrot.slane %v5761_v4, 4  ;;  %v5766_v45 = vrot.slane %v5764_v42, 5  ;;  %v5773_v21 = vshll.u32 %v12882_v22, 16  ;;  %v5778_v48 = vshrl.u32 %v5353_v32, 16  ;;  %v2629_v4 = vld [vmem:[#allocation2 + $0x1d8] sm:$0x1f] }
 0x2b9   :  { %v3059_v52 = vsel %vm2634_vm2, %v3050_v13, %v3058_v10  ;;  %v5772_v26 = vrot.slane %v5770_v17, 4  ;;  %v5781_v14 = vshll.u32 %v5353_v32, 16  ;;  %v5759_v37 = vor.u32 %v5758_v56, %v5755_v20  ;;  %v12887_v56 = vld [vmem:[#allocation2 + $0x1d0] sm:$0xf0] }
 0x2ba   :  { %11782 = vmatmul.mubr.bf16.gmra.mrb[8].mxu1 %v5734_v55  ;;  %11549 = vmatprep.mubr.bf16.mxu0 %v3059_v52  ;;  %v5767_v33 = vor.u32 %v5766_v45, %v5763_v59  ;;  %v5775_v50 = vrot.slane %v5773_v21, 5  ;;  %v3061_v51 = vshrl.u32 %v12883_v12, 16  ;;  %v5780_v63 = vrot.slane %v5778_v48, 4 }
 0x2bb   :  { %11785 = vmatprep.mubr.bf16.mxu1 %v5751_v0  ;;  %v5783_v40 = vrot.slane %v5781_v14, 5  ;;  %v3064_v29 = vshll.u32 %v12883_v12, 16  ;;  %v3069_v28 = vshrl.u32 %v2627_v36, 16  ;;  %v3072_v6 = vshll.u32 %v2627_v36, 16 }
 0x2bc   :  { %v5768_v41 = vsel %vm2634_vm2, %v5759_v37, %v5767_v33  ;;  %v5776_v8 = vor.u32 %v5775_v50, %v5772_v26  ;;  %v3063_v39 = vrot.slane %v3061_v51, 4  ;;  %v3078_v47 = vshrl.u32 %v12884_v34, 16  ;;  %v2630_v26 = vld [vmem:[#allocation2 + $0x1e8] sm:$0x1f] }
 0x2bd   :  { %v5784_v61 = vor.u32 %v5783_v40, %v5780_v63  ;;  %v3066_v54 = vrot.slane %v3064_v29, 5  ;;  %v3071_v19 = vrot.slane %v3069_v28, 4  ;;  %v3074_v3 = vrot.slane %v3072_v6, 5  ;;  %v12888_v63 = vld [vmem:[#allocation2 + $0x1e0] sm:$0xf0] }
 0x2be   :  { %v3081_v9 = vshll.u32 %v12884_v34, 16  ;;  %v3086_v58 = vshrl.u32 %v2628_v38, 16  ;;  %v3089_v55 = vshll.u32 %v2628_v38, 16  ;;  %v3080_v57 = vrot.slane %v3078_v47, 4 }
 0x2bf   :  { %v5785_v5 = vsel %vm2634_vm2, %v5776_v8, %v5784_v61  ;;  %v3067_v1 = vor.u32 %v3066_v54, %v3063_v39  ;;  %v5787_v49 = vshrl.u32 %v12885_v11, 16  ;;  %v3075_v30 = vor.u32 %v3074_v3, %v3071_v19  ;;  %v5356_v8 = vld [vmem:[#allocation2 + $0x1e8] sm:$0x1f]  ;;  %v12889_v54 = vld [vmem:[#allocation2 + $0x1e0] sm:$0xf0] }
 0x2c0   :  { %v3083_v16 = vrot.slane %v3081_v9, 5  ;;  %v3088_v60 = vrot.slane %v3086_v58, 4  ;;  %v3091_v46 = vrot.slane %v3089_v55, 5  ;;  %v5790_v25 = vshll.u32 %v12885_v11, 16 }
 0x2c1   :  { %v5789_v53 = vrot.slane %v5787_v49, 4  ;;  %v5795_v18 = vshrl.u32 %v5354_v43, 16  ;;  %v5798_v0 = vshll.u32 %v5354_v43, 16  ;;  %v3076_v31 = vsel %vm2634_vm2, %v3067_v1, %v3075_v30  ;;  %v5357_v1 = vld [vmem:[#allocation2 + $0x1f8] sm:$0x1f] }
 0x2c2   :  { %11786 = vmatmul.mubr.bf16.gmra.mrb[12].mxu1 %v5768_v41  ;;  %v3084_v23 = vor.u32 %v3083_v16, %v3080_v57  ;;  %v3092_v62 = vor.u32 %v3091_v46, %v3088_v60  ;;  %v5804_v44 = vshrl.u32 %v12886_v24, 16  ;;  %11550 = vmatmul.mubr.bf16.gmra.mrb[112].mxu0 %v3076_v31  ;;  %v5792_v2 = vrot.slane %v5790_v25, 5  ;;  %v12890_v30 = vld [vmem:[#allocation2 + $0x1f0] sm:$0xf0] }
 0x2c3   :  { %11789 = vmatprep.mubr.bf16.mxu1 %v5785_v5  ;;  %v5797_v27 = vrot.slane %v5795_v18, 4  ;;  %v5800_v20 = vrot.slane %v5798_v0, 5  ;;  %v5807_v7 = vshll.u32 %v12886_v24, 16  ;;  %v5812_v15 = vshrl.u32 %v5355_v35, 16  ;;  %v2631_v18 = vld [vmem:[#allocation2 + $0x1f8] sm:$0x1f] }
 0x2c4   :  { %v3093_v42 = vsel %vm2634_vm2, %v3084_v23, %v3092_v62  ;;  %v5806_v32 = vrot.slane %v5804_v44, 4  ;;  %v5815_v13 = vshll.u32 %v5355_v35, 16  ;;  %v5793_v10 = vor.u32 %v5792_v2, %v5789_v53  ;;  %v12891_v2 = vld [vmem:[#allocation2 + $0x1f0] sm:$0xf0] }
 0x2c5   :  { %11553 = vmatprep.mubr.bf16.mxu0 %v3093_v42  ;;  %v5801_v22 = vor.u32 %v5800_v20, %v5797_v27  ;;  %v5809_v17 = vrot.slane %v5807_v7, 5  ;;  %v3095_v59 = vshrl.u32 %v12887_v56, 16  ;;  %v5814_v45 = vrot.slane %v5812_v15, 4 }
 0x2c6   :  { %v5817_v21 = vrot.slane %v5815_v13, 5  ;;  %v3098_v36 = vshll.u32 %v12887_v56, 16  ;;  %v3103_v52 = vshrl.u32 %v2629_v4, 16  ;;  %v3106_v33 = vshll.u32 %v2629_v4, 16 }
 0x2c7   :  { %v5802_v48 = vsel %vm2634_vm2, %v5793_v10, %v5801_v22  ;;  %v5810_v14 = vor.u32 %v5809_v17, %v5806_v32  ;;  %v3097_v37 = vrot.slane %v3095_v59, 4  ;;  %v3112_v40 = vshrl.u32 %v12888_v63, 16  ;;  %v2632_v32 = vld [vmem:[#allocation2 + $0x208] sm:$0x1f] }
 0x2c8   :  { %v5818_v50 = vor.u32 %v5817_v21, %v5814_v45  ;;  %v3100_v12 = vrot.slane %v3098_v36, 5  ;;  %v3105_v51 = vrot.slane %v3103_v52, 4  ;;  %v3108_v29 = vrot.slane %v3106_v33, 5  ;;  %v12892_v45 = vld [vmem:[#allocation2 + $0x200] sm:$0xf0] }
 0x2c9   :  { %v3115_v28 = vshll.u32 %v12888_v63, 16  ;;  %v3120_v38 = vshrl.u32 %v2630_v26, 16  ;;  %v3123_v41 = vshll.u32 %v2630_v26, 16  ;;  %v3114_v61 = vrot.slane %v3112_v40, 4 }
 0x2ca   :  { %11790 = vmatmul.mubr.bf16.gmra.mrb[16].mxu1 %v5802_v48  ;;  %v5819_v39 = vsel %vm2634_vm2, %v5810_v14, %v5818_v50  ;;  %v3101_v6 = vor.u32 %v3100_v12, %v3097_v37  ;;  %v5821_v19 = vshrl.u32 %v12889_v54, 16  ;;  %v3109_v34 = vor.u32 %v3108_v29, %v3105_v51  ;;  %v5358_v14 = vld [vmem:[#allocation2 + $0x208] sm:$0x1f]  ;;  %v12893_v12 = vld [vmem:[#allocation2 + $0x200] sm:$0xf0] }
 0x2cb   :  { %11793 = vmatprep.mubr.bf16.mxu1 %v5819_v39  ;;  %v3117_v47 = vrot.slane %v3115_v28, 5  ;;  %v3122_v3 = vrot.slane %v3120_v38, 4  ;;  %v3125_v9 = vrot.slane %v3123_v41, 5  ;;  %v5824_v55 = vshll.u32 %v12889_v54, 16 }
 0x2cc   :  { %v5823_v58 = vrot.slane %v5821_v19, 4  ;;  %v5829_v43 = vshrl.u32 %v5356_v8, 16  ;;  %v5832_v5 = vshll.u32 %v5356_v8, 16  ;;  %v3110_v57 = vsel %vm2634_vm2, %v3101_v6, %v3109_v34  ;;  %v5359_v6 = vld [vmem:[#allocation2 + $0x218] sm:$0x1f] }
 0x2cd   :  { %v3118_v11 = vor.u32 %v3117_v47, %v3114_v61  ;;  %v3126_v49 = vor.u32 %v3125_v9, %v3122_v3  ;;  %v5838_v16 = vshrl.u32 %v12890_v30, 16  ;;  %11554 = vmatmul.mubr.bf16.gmra.mrb[116].mxu0 %v3110_v57  ;;  %v5826_v60 = vrot.slane %v5824_v55, 5  ;;  %v12894_v34 = vld [vmem:[#allocation2 + $0x210] sm:$0xf0] }
 0x2ce   :  { %v5831_v46 = vrot.slane %v5829_v43, 4  ;;  %v5834_v53 = vrot.slane %v5832_v5, 5  ;;  %v5841_v25 = vshll.u32 %v12890_v30, 16  ;;  %v5846_v31 = vshrl.u32 %v5357_v1, 16  ;;  %v2633_v43 = vld [vmem:[#allocation2 + $0x218] sm:$0x1f] }
 0x2cf   :  { %v3127_v0 = vsel %vm2634_vm2, %v3118_v11, %v3126_v49  ;;  %v5840_v35 = vrot.slane %v5838_v16, 4  ;;  %v5849_v23 = vshll.u32 %v5357_v1, 16  ;;  %v5827_v62 = vor.u32 %v5826_v60, %v5823_v58  ;;  %v12895_v60 = vld [vmem:[#allocation2 + $0x210] sm:$0xf0] }
 0x2d0   :  { %11557 = vmatprep.mubr.bf16.mxu0 %v3127_v0  ;;  %v5835_v24 = vor.u32 %v5834_v53, %v5831_v46  ;;  %v5843_v44 = vrot.slane %v5841_v25, 5  ;;  %v3129_v27 = vshrl.u32 %v12891_v2, 16  ;;  %v5848_v20 = vrot.slane %v5846_v31, 4  ;;  %v3629_v53 = vld [vmem:[#allocation2 + $0x10] sm:$0xf8] }
 0x2d1   :  { %v5851_v7 = vrot.slane %v5849_v23, 5  ;;  %v3132_v4 = vshll.u32 %v12891_v2, 16  ;;  %v3137_v42 = vshrl.u32 %v2631_v18, 16  ;;  %v3140_v22 = vshll.u32 %v2631_v18, 16 }
 0x2d2   :  { %v5836_v15 = vsel %vm2634_vm2, %v5827_v62, %v5835_v24  ;;  %v5844_v13 = vor.u32 %v5843_v44, %v5840_v35  ;;  %v3131_v10 = vrot.slane %v3129_v27, 4  ;;  %v3146_v21 = vshrl.u32 %v12892_v45, 16 }
 0x2d3   :  { %11794 = vmatmul.mubr.bf16.gmra.mrb[20].mxu1 %v5836_v15  ;;  %v5852_v17 = vor.u32 %v5851_v7, %v5848_v20  ;;  %v3134_v56 = vrot.slane %v3132_v4, 5  ;;  %v3139_v59 = vrot.slane %v3137_v42, 4  ;;  %v3142_v36 = vrot.slane %v3140_v22, 5  ;;  %v12896_v42 = vld [vmem:[#allocation2 + $0x18] sm:$0xf] }
 0x2d4   :  { %v3149_v52 = vshll.u32 %v12892_v45, 16  ;;  %v3154_v26 = vshrl.u32 %v2632_v32, 16  ;;  %v3157_v48 = vshll.u32 %v2632_v32, 16  ;;  %v3148_v50 = vrot.slane %v3146_v21, 4  ;;  %v6356_v45 = vld [vmem:[#allocation2 + $0x20] sm:$0xf8] }
 0x2d5   :  { %v5853_v37 = vsel %vm2634_vm2, %v5844_v13, %v5852_v17  ;;  %v3135_v33 = vor.u32 %v3134_v56, %v3131_v10  ;;  %v5855_v51 = vshrl.u32 %v12893_v12, 16  ;;  %v3143_v63 = vor.u32 %v3142_v36, %v3139_v59  ;;  %v5360_v13 = vld [vmem:[#allocation2 + $0x228] sm:$0x1f]  ;;  %v12897_v56 = vld [vmem:[#allocation2 + $0x220] sm:$0xf0] }
 0x2d6   :  { %11797 = vmatprep.mubr.bf16.mxu1 %v5853_v37  ;;  %v3151_v40 = vrot.slane %v3149_v52, 5  ;;  %v3156_v29 = vrot.slane %v3154_v26, 4  ;;  %v3159_v28 = vrot.slane %v3157_v48, 5  ;;  %v5858_v41 = vshll.u32 %v12893_v12, 16 }
 0x2d7   :  { %v5857_v38 = vrot.slane %v5855_v51, 4  ;;  %v5863_v8 = vshrl.u32 %v5358_v14, 16  ;;  %v5866_v39 = vshll.u32 %v5358_v14, 16  ;;  %v3144_v61 = vsel %vm2634_vm2, %v3135_v33, %v3143_v63 }
 0x2d8   :  { %v3152_v54 = vor.u32 %v3151_v40, %v3148_v50  ;;  %v3160_v19 = vor.u32 %v3159_v28, %v3156_v29  ;;  %v5872_v47 = vshrl.u32 %v12894_v34, 16  ;;  %11558 = vmatmul.mubr.bf16.gmra.mrb[120].mxu0 %v3144_v61  ;;  %v5860_v3 = vrot.slane %v5858_v41, 5  ;;  %v6357_v50 = vld [vmem:[#allocation2 + $0x28] sm:$0xf]  ;;  %v3631_v29 = vld [vmem:[#allocation2 + $0x20] sm:$0xf8] }
 0x2d9   :  { %v5865_v9 = vrot.slane %v5863_v8, 4  ;;  %v5868_v58 = vrot.slane %v5866_v39, 5  ;;  %v5875_v55 = vshll.u32 %v12894_v34, 16  ;;  %v5880_v57 = vshrl.u32 %v5359_v6, 16 }
 0x2da   :  { %v3161_v5 = vsel %vm2634_vm2, %v3152_v54, %v3160_v19  ;;  %v5874_v1 = vrot.slane %v5872_v47, 4  ;;  %v5883_v11 = vshll.u32 %v5359_v6, 16  ;;  %v5861_v49 = vor.u32 %v5860_v3, %v5857_v38 }
 0x2db   :  { %11561 = vmatprep.mubr.bf16.mxu0 %v3161_v5  ;;  %v5869_v30 = vor.u32 %v5868_v58, %v5865_v9  ;;  %v5877_v16 = vrot.slane %v5875_v55, 5  ;;  %v3163_v46 = vshrl.u32 %v12895_v60, 16  ;;  %v5882_v25 = vrot.slane %v5880_v57, 4  ;;  %v3633_v9 = vld [vmem:[#allocation2 + $0x30] sm:$0xf8] }
 0x2dc   :  { %v5885_v18 = vrot.slane %v5883_v11, 5  ;;  %v3166_v0 = vshll.u32 %v12895_v60, 16  ;;  %v3171_v35 = vshrl.u32 %v2633_v43, 16  ;;  %v3174_v24 = vshll.u32 %v2633_v43, 16  ;;  %v12898_v5 = vld [vmem:[#allocation2 + $0x28] sm:$0xf] }
 0x2dd   :  { %v5870_v31 = vsel %vm2634_vm2, %v5861_v49, %v5869_v30  ;;  %v5878_v23 = vor.u32 %v5877_v16, %v5874_v1  ;;  %v3165_v62 = vrot.slane %v3163_v46, 4  ;;  %v3694_v20 = vshrl.u32 %v3629_v53, 16  ;;  %v6358_v16 = vld [vmem:[#allocation2 + $0x30] sm:$0xf8] }
 0x2de   :  { %11798 = vmatmul.mubr.bf16.gmra.mrb[24].mxu1 %v5870_v31  ;;  %v5886_v44 = vor.u32 %v5885_v18, %v5882_v25  ;;  %v3168_v2 = vrot.slane %v3166_v0, 5  ;;  %v3173_v27 = vrot.slane %v3171_v35, 4  ;;  %v3176_v7 = vrot.slane %v3174_v24, 5  ;;  %v12899_v35 = vld [vmem:[#allocation2 + $0x38] sm:$0xf] }
 0x2df   :  { %v3697_v4 = vshll.u32 %v3629_v53, 16  ;;  %v3702_v32 = vshrl.u32 %v12896_v42, 16  ;;  %v3705_v15 = vshll.u32 %v12896_v42, 16  ;;  %v3696_v17 = vrot.slane %v3694_v20, 3  ;;  %v6360_v20 = vld [vmem:[#allocation2 + $0x40] sm:$0xf8] }
 0x2e0   :  { %v5887_v10 = vsel %vm2634_vm2, %v5878_v23, %v5886_v44  ;;  %v3169_v22 = vor.u32 %v3168_v2, %v3165_v62  ;;  %v5889_v59 = vshrl.u32 %v12897_v56, 16  ;;  %v3177_v21 = vor.u32 %v3176_v7, %v3173_v27  ;;  %v6359_v62 = vld [vmem:[#allocation2 + $0x38] sm:$0xf] }
 0x2e1   :  { %11801 = vmatprep.mubr.bf16.mxu1 %v5887_v10  ;;  %v3699_v36 = vrot.slane %v3697_v4, 4  ;;  %v3704_v52 = vrot.slane %v3702_v32, 3  ;;  %v3707_v26 = vrot.slane %v3705_v15, 4  ;;  %v5892_v14 = vshll.u32 %v12897_v56, 16 }
 0x2e2   :  { %v5891_v48 = vrot.slane %v5889_v59, 4  ;;  %v5897_v37 = vshrl.u32 %v5360_v13, 16  ;;  %v5900_v33 = vshll.u32 %v5360_v13, 16  ;;  %v3178_v12 = vsel %vm2634_vm2, %v3169_v22, %v3177_v21 }
 0x2e3   :  { %v3700_v51 = vor.u32 %v3699_v36, %v3696_v17  ;;  %v3708_v63 = vor.u32 %v3707_v26, %v3704_v52  ;;  %v6421_v40 = vshrl.u32 %v6356_v45, 16  ;;  %11562 = vmatmul.mubr.bf16.gmra.mrb[124].mxu0 %v3178_v12  ;;  %v5894_v28 = vrot.slane %v5892_v14, 5  ;;  %v6361_v17 = vld [vmem:[#allocation2 + $0x48] sm:$0xf]  ;;  %v3635_v36 = vld [vmem:[#allocation2 + $0x40] sm:$0xf8] }
 0x2e4   :  { %v5899_v38 = vrot.slane %v5897_v37, 4  ;;  %v5902_v41 = vrot.slane %v5900_v33, 5  ;;  %v6424_v8 = vshll.u32 %v6356_v45, 16  ;;  %v6429_v61 = vshrl.u32 %v6357_v50, 16 }
 0x2e5   :  { %v3709_v39 = vsel %vm1093_vm1, %v3700_v51, %v3708_v63  ;;  %v6423_v6 = vrot.slane %v6421_v40, 3  ;;  %v6432_v54 = vshll.u32 %v6357_v50, 16  ;;  %v5895_v19 = vor.u32 %v5894_v28, %v5891_v48  ;;  %v3637_v28 = vld [vmem:[#allocation2 + $0x50] sm:$0xf8] }
 0x2e6   :  { %11581 = vmatprep.mubr.bf16.mxu0 %v3709_v39  ;;  %v5903_v34 = vor.u32 %v5902_v41, %v5899_v38  ;;  %v6426_v47 = vrot.slane %v6424_v8, 4  ;;  %v3711_v3 = vshrl.u32 %v3631_v29, 16  ;;  %v6431_v58 = vrot.slane %v6429_v61, 3  ;;  %v12900_v39 = vld [vmem:[#allocation2 + $0x48] sm:$0xf] }
 0x2e7   :  { %v6434_v55 = vrot.slane %v6432_v54, 4  ;;  %v3714_v43 = vshll.u32 %v3631_v29, 16  ;;  %v3719_v1 = vshrl.u32 %v12898_v5, 16  ;;  %v3722_v30 = vshll.u32 %v12898_v5, 16  ;;  %v12758_v61 = vld [vmem:[#allocation8 + $0x1c8] sm:$0xff]   ;;  %v12901_v5 = vld [vmem:[#allocation8 + $0x1c0] sm:$0xff]  }
 0x2e8   :  { %v5904_v57 = vsel %vm2634_vm2, %v5895_v19, %v5903_v34  ;;  %v6427_v11 = vor.u32 %v6426_v47, %v6423_v6  ;;  %v3713_v49 = vrot.slane %v3711_v3, 3  ;;  %v3728_v25 = vshrl.u32 %v3633_v9, 16  ;;  %v6362_v3 = vld [vmem:[#allocation2 + $0x50] sm:$0xf8] }
 0x2e9   :  { %11802 = vmatmul.mubr.bf16.gmra.mrb[28].mxu1 %v5904_v57  ;;  %v6435_v60 = vor.u32 %v6434_v55, %v6431_v58  ;;  %v3716_v46 = vrot.slane %v3714_v43, 4  ;;  %v3721_v53 = vrot.slane %v3719_v1, 3  ;;  %v3724_v18 = vrot.slane %v3722_v30, 4 }
 0x2ea   :  { %v3731_v0 = vshll.u32 %v3633_v9, 16  ;;  %v3736_v31 = vshrl.u32 %v12899_v35, 16  ;;  %v3739_v23 = vshll.u32 %v12899_v35, 16  ;;  %v3730_v2 = vrot.slane %v3728_v25, 3 }
 0x2eb   :  { %v6436_v24 = vsel %vm1093_vm1, %v6427_v11, %v6435_v60  ;;  %v3717_v44 = vor.u32 %v3716_v46, %v3713_v49  ;;  %v6438_v27 = vshrl.u32 %v6358_v16, 16  ;;  %v3725_v7 = vor.u32 %v3724_v18, %v3721_v53  ;;  %v12902_v11 = vld [vmem:[#allocation2 + $0x58] sm:$0xf]  ;;  %v6364_v18 = vld [vmem:[#allocation2 + $0x60] sm:$0xf8] }
 0x2ec   :  { %11821 = vmatprep.mubr.bf16.mxu1 %v6436_v24  ;;  %v3733_v4 = vrot.slane %v3731_v0, 4  ;;  %v3738_v42 = vrot.slane %v3736_v31, 3  ;;  %v3741_v32 = vrot.slane %v3739_v23, 4  ;;  %v6441_v13 = vshll.u32 %v6358_v16, 16  ;;  %v6363_v16 = vld [vmem:[#allocation2 + $0x58] sm:$0xf] }
 0x2ed   :  { %v6440_v15 = vrot.slane %v6438_v27, 3  ;;  %v6446_v10 = vshrl.u32 %v6359_v62, 16  ;;  %v6449_v22 = vshll.u32 %v6359_v62, 16  ;;  %v3726_v56 = vsel %vm1093_vm1, %v3717_v44, %v3725_v7  ;;  %v12759_v0 = vld [vmem:[#allocation8 + $0x1d0] sm:$0xff]  }
 0x2ee   :  { %v3734_v59 = vor.u32 %v3733_v4, %v3730_v2  ;;  %v3742_v45 = vor.u32 %v3741_v32, %v3738_v42  ;;  %v6455_v21 = vshrl.u32 %v6360_v20, 16  ;;  %11582 = vmatmul.mubr.bf16.vlgmr.msra.gmra.mrb[64].mxu0 %v3726_v56  ;;  %v6443_v52 = vrot.slane %v6441_v13, 4  ;;  %v12760_v56 = vld [vmem:[#allocation8 + $0x1d8] sm:$0xff]  }
 0x2ef   :  { %v6448_v26 = vrot.slane %v6446_v10, 3  ;;  %v6451_v48 = vrot.slane %v6449_v22, 4  ;;  %v6458_v14 = vshll.u32 %v6360_v20, 16  ;;  %v6463_v50 = vshrl.u32 %v6361_v17, 16  ;;  %v6365_v20 = vld [vmem:[#allocation2 + $0x68] sm:$0xf] }
 0x2f0   :  { %v3743_v37 = vsel %vm1093_vm1, %v3734_v59, %v3742_v45  ;;  %v6457_v33 = vrot.slane %v6455_v21, 3  ;;  %v6466_v12 = vshll.u32 %v6361_v17, 16  ;;  %v6444_v51 = vor.u32 %v6443_v52, %v6440_v15  ;;  %v3639_v15 = vld [vmem:[#allocation2 + $0x60] sm:$0xf8] }
 0x2f1   :  { %11585 = vmatprep.mubr.bf16.mxu0 %v3743_v37  ;;  %v6452_v63 = vor.u32 %v6451_v48, %v6448_v26  ;;  %v6460_v40 = vrot.slane %v6458_v14, 4  ;;  %v3745_v29 = vshrl.u32 %v3635_v36, 16  ;;  %v6465_v38 = vrot.slane %v6463_v50, 3  ;;  %v3641_v37 = vld [vmem:[#allocation2 + $0x70] sm:$0xf8] }
 0x2f2   :  { %v6468_v41 = vrot.slane %v6466_v12, 4  ;;  %v3748_v8 = vshll.u32 %v3635_v36, 16  ;;  %v3753_v6 = vshrl.u32 %v12900_v39, 16  ;;  %v3756_v47 = vshll.u32 %v12900_v39, 16 }
 0x2f3   :  { %v6453_v54 = vsel %vm1093_vm1, %v6444_v51, %v6452_v63  ;;  %v6461_v19 = vor.u32 %v6460_v40, %v6457_v33  ;;  %v3747_v34 = vrot.slane %v3745_v29, 3  ;;  %v3762_v43 = vshrl.u32 %v3637_v28, 16  ;;  %v12903_v51 = vld [vmem:[#allocation2 + $0x68] sm:$0xf] }
 0x2f4   :  { %11822 = vmatmul.mubr.bf16.vlgmr.msra.gmra.mrb[32].mxu1 %v6453_v54  ;;  %v6469_v9 = vor.u32 %v6468_v41, %v6465_v38  ;;  %v3750_v58 = vrot.slane %v3748_v8, 4  ;;  %v3755_v55 = vrot.slane %v3753_v6, 3  ;;  %v3758_v1 = vrot.slane %v3756_v47, 4  ;;  %v6366_v41 = vld [vmem:[#allocation2 + $0x70] sm:$0xf8]  ;;  %v12761_v8 = vld [vmem:[#allocation8 + $0x1e0] sm:$0xff]  }
 0x2f5   :  { %11886 = vmatpush3.bf16.msra.mxu1 %v12901_v5  ;;  %v3765_v57 = vshll.u32 %v3637_v28, 16  ;;  %v3770_v49 = vshrl.u32 %v12902_v11, 16  ;;  %v3773_v30 = vshll.u32 %v12902_v11, 16  ;;  %v3764_v53 = vrot.slane %v3762_v43, 3  ;;  %v12904_v47 = vld [vmem:[#allocation2 + $0x78] sm:$0xf] }
 0x2f6   :  { %v6470_v60 = vsel %vm1093_vm1, %v6461_v19, %v6469_v9  ;;  %v3751_v46 = vor.u32 %v3750_v58, %v3747_v34  ;;  %v6472_v25 = vshrl.u32 %v6362_v3, 16  ;;  %11887 = vmatprep.subr.bf16.mxu1 %v12758_v61  ;;  %v3759_v35 = vor.u32 %v3758_v1, %v3755_v55  ;;  %v6367_v58 = vld [vmem:[#allocation2 + $0x78] sm:$0xf] }
 0x2f7   :  { %11825 = vmatprep.mubr.bf16.mxu1 %v6470_v60  ;;  %v3767_v31 = vrot.slane %v3765_v57, 4  ;;  %v3772_v23 = vrot.slane %v3770_v49, 3  ;;  %v3775_v62 = vrot.slane %v3773_v30, 4  ;;  %v6475_v44 = vshll.u32 %v6362_v3, 16  ;;  %v6368_v57 = vld [vmem:[#allocation2 + $0x80] sm:$0xf8] }
 0x2f8   :  { %v6474_v24 = vrot.slane %v6472_v25, 3  ;;  %v6480_v2 = vshrl.u32 %v6363_v16, 16  ;;  %v6483_v27 = vshll.u32 %v6363_v16, 16  ;;  %v3760_v7 = vsel %vm1093_vm1, %v3751_v46, %v3759_v35  ;;  %v12762_v60 = vld [vmem:[#allocation8 + $0x1e8] sm:$0xff]  }
 0x2f9   :  { %v3768_v4 = vor.u32 %v3767_v31, %v3764_v53  ;;  %v3776_v42 = vor.u32 %v3775_v62, %v3772_v23  ;;  %v6489_v32 = vshrl.u32 %v6364_v18, 16  ;;  %11888 = vmatpush3.bf16.msra.mxu1 %v12758_v61  ;;  %11586 = vmatmul.mubr.bf16.gmra.mrb[68].mxu0 %v3760_v7  ;;  %v6477_v13 = vrot.slane %v6475_v44, 4 }
 0x2fa   :  { %v6482_v10 = vrot.slane %v6480_v2, 3  ;;  %v6485_v22 = vrot.slane %v6483_v27, 4  ;;  %v6492_v17 = vshll.u32 %v6364_v18, 16  ;;  %11889 = vmatprep.subr.bf16.mxu1 %v12759_v0  ;;  %v6497_v21 = vshrl.u32 %v6365_v20, 16 }
 0x2fb   :  { %v3777_v59 = vsel %vm1093_vm1, %v3768_v4, %v3776_v42  ;;  %v6491_v45 = vrot.slane %v6489_v32, 3  ;;  %v6500_v36 = vshll.u32 %v6365_v20, 16  ;;  %v6478_v52 = vor.u32 %v6477_v13, %v6474_v24  ;;  %v3643_v24 = vld [vmem:[#allocation2 + $0x80] sm:$0xf8] }
 0x2fc   :  { %11589 = vmatprep.mubr.bf16.mxu0 %v3777_v59  ;;  %v6486_v26 = vor.u32 %v6485_v22, %v6482_v10  ;;  %v6494_v48 = vrot.slane %v6492_v17, 4  ;;  %v3779_v14 = vshrl.u32 %v3639_v15, 16  ;;  %v6499_v33 = vrot.slane %v6497_v21, 3 }
 0x2fd   :  { %v6502_v50 = vrot.slane %v6500_v36, 4  ;;  %v3782_v12 = vshll.u32 %v3639_v15, 16  ;;  %v3787_v63 = vshrl.u32 %v12903_v51, 16  ;;  %11890 = vmatpush3.bf16.msra.mxu1 %v12759_v0  ;;  %v3790_v38 = vshll.u32 %v12903_v51, 16  ;;  %v6369_v0 = vld [vmem:[#allocation2 + $0x88] sm:$0xf] }
 0x2fe   :  { %v6487_v40 = vsel %vm1093_vm1, %v6478_v52, %v6486_v26  ;;  %v6495_v29 = vor.u32 %v6494_v48, %v6491_v45  ;;  %v3781_v28 = vrot.slane %v3779_v14, 3  ;;  %11891 = vmatprep.subr.bf16.mxu1 %v12760_v56  ;;  %v3796_v54 = vshrl.u32 %v3641_v37, 16  ;;  %v12763_v15 = vld [vmem:[#allocation8 + $0x1f0] sm:$0xff]   ;;  %v12905_v36 = vld [vmem:[#allocation2 + $0x88] sm:$0xf] }
 0x2ff   :  { %11826 = vmatmul.mubr.bf16.gmra.mrb[36].mxu1 %v6487_v40  ;;  %v6503_v39 = vor.u32 %v6502_v50, %v6499_v33  ;;  %v3784_v6 = vrot.slane %v3782_v12, 4  ;;  %v3789_v61 = vrot.slane %v3787_v63, 3  ;;  %v3792_v19 = vrot.slane %v3790_v38, 4  ;;  %v6370_v33 = vld [vmem:[#allocation2 + $0x90] sm:$0xf8]  ;;  %v12764_v40 = vld [vmem:[#allocation8 + $0x1f8] sm:$0xff]  }
 0x300   :  { %v3799_v34 = vshll.u32 %v3641_v37, 16  ;;  %v3804_v3 = vshrl.u32 %v12904_v47, 16  ;;  %v3807_v9 = vshll.u32 %v12904_v47, 16  ;;  %v3798_v5 = vrot.slane %v3796_v54, 3  ;;  %v12906_v38 = vld [vmem:[#allocation2 + $0x98] sm:$0xf] }
 0x301   :  { %v6504_v55 = vsel %vm1093_vm1, %v6495_v29, %v6503_v39  ;;  %v3785_v43 = vor.u32 %v3784_v6, %v3781_v28  ;;  %v6506_v1 = vshrl.u32 %v6366_v41, 16  ;;  %11892 = vmatpush3.bf16.msra.mxu1 %v12760_v56  ;;  %v3793_v11 = vor.u32 %v3792_v19, %v3789_v61  ;;  %v3645_v56 = vld [vmem:[#allocation2 + $0x90] sm:$0xf8]  ;;  %v6371_v39 = vld [vmem:[#allocation2 + $0x98] sm:$0xf] }
 0x302   :  { %11829 = vmatprep.mubr.bf16.mxu1 %v6504_v55  ;;  %v3801_v49 = vrot.slane %v3799_v34, 4  ;;  %v3806_v30 = vrot.slane %v3804_v3, 3  ;;  %v3809_v16 = vrot.slane %v3807_v9, 4  ;;  %11893 = vmatprep.subr.bf16.mxu1 %v12761_v8  ;;  %v6509_v53 = vshll.u32 %v6366_v41, 16  ;;  %v6372_v34 = vld [vmem:[#allocation2 + $0xa0] sm:$0xf8] }
 0x303   :  { %v6508_v46 = vrot.slane %v6506_v1, 3  ;;  %v6514_v25 = vshrl.u32 %v6367_v58, 16  ;;  %v6517_v18 = vshll.u32 %v6367_v58, 16  ;;  %v3794_v35 = vsel %vm1093_vm1, %v3785_v43, %v3793_v11  ;;  %v6373_v55 = vld [vmem:[#allocation2 + $0xa8] sm:$0xf]  ;;  %v13985_v11 = vld [vmem:[#allocation8 + $0x200] sm:$0xff]  }
 0x304   :  { %v3802_v31 = vor.u32 %v3801_v49, %v3798_v5  ;;  %v3810_v23 = vor.u32 %v3809_v16, %v3806_v30  ;;  %v6523_v62 = vshrl.u32 %v6368_v57, 16  ;;  %11590 = vmatmul.mubr.bf16.gmra.mrb[72].mxu0 %v3794_v35  ;;  %v6511_v44 = vrot.slane %v6509_v53, 4 }
 0x305   :  { %v6516_v2 = vrot.slane %v6514_v25, 3  ;;  %v6519_v27 = vrot.slane %v6517_v18, 4  ;;  %v6526_v20 = vshll.u32 %v6368_v57, 16  ;;  %11894 = vmatpush3.bf16.msra.mxu1 %v12761_v8  ;;  %v6531_v42 = vshrl.u32 %v6369_v0, 16 }
 0x306   :  { %v3811_v7 = vsel %vm1093_vm1, %v3802_v31, %v3810_v23  ;;  %v6525_v4 = vrot.slane %v6523_v62, 3  ;;  %v6534_v32 = vshll.u32 %v6369_v0, 16  ;;  %11895 = vmatprep.subr.bf16.mxu1 %v12762_v60  ;;  %v6512_v13 = vor.u32 %v6511_v44, %v6508_v46  ;;  %v3647_v46 = vld [vmem:[#allocation2 + $0xa0] sm:$0xf8] }
 0x307   :  { %11593 = vmatprep.mubr.bf16.mxu0 %v3811_v7  ;;  %v6520_v10 = vor.u32 %v6519_v27, %v6516_v2  ;;  %v6528_v22 = vrot.slane %v6526_v20, 4  ;;  %v3813_v17 = vshrl.u32 %v3643_v24, 16  ;;  %v6533_v59 = vrot.slane %v6531_v42, 3  ;;  %v3649_v20 = vld [vmem:[#allocation2 + $0xb0] sm:$0xf8] }
 0x308   :  { %v6536_v45 = vrot.slane %v6534_v32, 4  ;;  %v3816_v21 = vshll.u32 %v3643_v24, 16  ;;  %v3821_v52 = vshrl.u32 %v12905_v36, 16  ;;  %v3824_v37 = vshll.u32 %v12905_v36, 16  ;;  %v12907_v32 = vld [vmem:[#allocation2 + $0xa8] sm:$0xf] }
 0x309   :  { %v6521_v26 = vsel %vm1093_vm1, %v6512_v13, %v6520_v10  ;;  %v6529_v48 = vor.u32 %v6528_v22, %v6525_v4  ;;  %v3815_v14 = vrot.slane %v3813_v17, 3  ;;  %11896 = vmatpush3.bf16.msra.mxu1 %v12762_v60  ;;  %v3830_v63 = vshrl.u32 %v3645_v56, 16 }
 0x30a   :  { %11830 = vmatmul.mubr.bf16.gmra.mrb[40].mxu1 %v6521_v26  ;;  %v6537_v50 = vor.u32 %v6536_v45, %v6533_v59  ;;  %v3818_v12 = vrot.slane %v3816_v21, 4  ;;  %v3823_v51 = vrot.slane %v3821_v52, 3  ;;  %11897 = vmatprep.subr.bf16.mxu1 %v12763_v15  ;;  %v3826_v29 = vrot.slane %v3824_v37, 4 }
 0x30b   :  { %v3833_v28 = vshll.u32 %v3645_v56, 16  ;;  %v3838_v41 = vshrl.u32 %v12906_v38, 16  ;;  %v3841_v8 = vshll.u32 %v12906_v38, 16  ;;  %v3832_v54 = vrot.slane %v3830_v63, 3  ;;  %v6374_v56 = vld [vmem:[#allocation2 + $0xb0] sm:$0xf8] }
 0x30c   :  { %v6538_v6 = vsel %vm1093_vm1, %v6529_v48, %v6537_v50  ;;  %v3819_v61 = vor.u32 %v3818_v12, %v3815_v14  ;;  %v6540_v19 = vshrl.u32 %v6370_v33, 16  ;;  %v3827_v47 = vor.u32 %v3826_v29, %v3823_v51  ;;  %v12908_v48 = vld [vmem:[#allocation2 + $0xb8] sm:$0xf] }
 0x30d   :  { %11833 = vmatprep.mubr.bf16.mxu1 %v6538_v6  ;;  %v3835_v3 = vrot.slane %v3833_v28, 4  ;;  %v3840_v9 = vrot.slane %v3838_v41, 3  ;;  %v3843_v58 = vrot.slane %v3841_v8, 4  ;;  %11898 = vmatpush3.bf16.msra.mxu1 %v12763_v15  ;;  %v6543_v5 = vshll.u32 %v6370_v33, 16  ;;  %v13991_v33 = vld [vmem:[#allocation2 + $0xb8] sm:$0xf] }
 0x30e   :  { %v6542_v43 = vrot.slane %v6540_v19, 3  ;;  %v6548_v1 = vshrl.u32 %v6371_v39, 16  ;;  %v6551_v57 = vshll.u32 %v6371_v39, 16  ;;  %11899 = vmatprep.subr.bf16.mxu1 %v12764_v40  ;;  %v3828_v49 = vsel %vm1093_vm1, %v3819_v61, %v3827_v47 }
 0x30f   :  { %v3836_v30 = vor.u32 %v3835_v3, %v3832_v54  ;;  %v3844_v16 = vor.u32 %v3843_v58, %v3840_v9  ;;  %v6557_v60 = vshrl.u32 %v6372_v34, 16  ;;  %11594 = vmatmul.mubr.bf16.gmra.mrb[76].mxu0 %v3828_v49  ;;  %v6545_v53 = vrot.slane %v6543_v5, 4  ;;  %v13996_v54 = vld [vmem:[#allocation2 + $0xc8] sm:$0xf]  ;;  %v3651_v9 = vld [vmem:[#allocation2 + $0xc0] sm:$0xf8] }
 0x310   :  { %v6550_v25 = vrot.slane %v6548_v1, 3  ;;  %v6553_v18 = vrot.slane %v6551_v57, 4  ;;  %v6560_v0 = vshll.u32 %v6372_v34, 16  ;;  %v6565_v23 = vshrl.u32 %v6373_v55, 16 }
 0x311   :  { %v3845_v35 = vsel %vm1093_vm1, %v3836_v30, %v3844_v16  ;;  %v6559_v31 = vrot.slane %v6557_v60, 3  ;;  %v6568_v62 = vshll.u32 %v6373_v55, 16  ;;  %11900 = vmatpush3.bf16.msra.mxu1 %v12764_v40  ;;  %v6546_v24 = vor.u32 %v6545_v53, %v6542_v43  ;;  %v6376_v40 = vld [vmem:[#allocation2 + $0xc0] sm:$0xf8] }
 0x312   :  { %11597 = vmatprep.mubr.bf16.mxu0 %v3845_v35  ;;  %v6554_v44 = vor.u32 %v6553_v18, %v6550_v25  ;;  %v6562_v2 = vrot.slane %v6560_v0, 4  ;;  %v3847_v27 = vshrl.u32 %v3647_v46, 16  ;;  %11965 = vmatprep.subr.bf16.mxu1 %v13985_v11  ;;  %v6567_v7 = vrot.slane %v6565_v23, 3  ;;  %v3653_v25 = vld [vmem:[#allocation2 + $0xd0] sm:$0xf8] }
 0x313   :  { %v6570_v4 = vrot.slane %v6568_v62, 4  ;;  %v3850_v42 = vshll.u32 %v3647_v46, 16  ;;  %v3855_v15 = vshrl.u32 %v12907_v32, 16  ;;  %v3858_v17 = vshll.u32 %v12907_v32, 16 }
 0x314   :  { %v6555_v13 = vsel %vm1093_vm1, %v6546_v24, %v6554_v44  ;;  %v6563_v10 = vor.u32 %v6562_v2, %v6559_v31  ;;  %v3849_v22 = vrot.slane %v3847_v27, 3  ;;  %v3864_v36 = vshrl.u32 %v3649_v20, 16  ;;  %v12909_v31 = vld [vmem:[#allocation2 + $0xc8] sm:$0xf]  ;;  %v6378_v27 = vld [vmem:[#allocation2 + $0xd0] sm:$0xf8] }
 0x315   :  { %11834 = vmatmul.mubr.bf16.gmra.mrb[44].mxu1 %v6555_v13  ;;  %v6571_v59 = vor.u32 %v6570_v4, %v6567_v7  ;;  %v3852_v45 = vrot.slane %v3850_v42, 4  ;;  %v3857_v21 = vrot.slane %v3855_v15, 3  ;;  %v3860_v52 = vrot.slane %v3858_v17, 4  ;;  %v12910_v13 = vld [vmem:[#allocation2 + $0xd8] sm:$0xf] }
 0x316   :  { %v3867_v26 = vshll.u32 %v3649_v20, 16  ;;  %v3872_v14 = vshrl.u32 %v12908_v48, 16  ;;  %v3875_v37 = vshll.u32 %v12908_v48, 16  ;;  %v3866_v51 = vrot.slane %v3864_v36, 3  ;;  %v14003_v17 = vld [vmem:[#allocation2 + $0xd8] sm:$0xf] }
 0x317   :  { %v6572_v50 = vsel %vm1093_vm1, %v6563_v10, %v6571_v59  ;;  %v3853_v12 = vor.u32 %v3852_v45, %v3849_v22  ;;  %v6574_v63 = vshrl.u32 %v6374_v56, 16  ;;  %v3861_v29 = vor.u32 %v3860_v52, %v3857_v21  ;;  %v6380_v36 = vld [vmem:[#allocation2 + $0xe0] sm:$0xf8] }
 0x318   :  { %11837 = vmatprep.mubr.bf16.mxu1 %v6572_v50  ;;  %v3869_v28 = vrot.slane %v3867_v26, 4  ;;  %v3874_v38 = vrot.slane %v3872_v14, 3  ;;  %v3877_v41 = vrot.slane %v3875_v37, 4  ;;  %v6577_v39 = vshll.u32 %v6374_v56, 16 }
 0x319   :  { %v6576_v8 = vrot.slane %v6574_v63, 3  ;;  %v6582_v6 = vshrl.u32 %v13991_v33, 16  ;;  %v6585_v61 = vshll.u32 %v13991_v33, 16  ;;  %v3862_v19 = vsel %vm1093_vm1, %v3853_v12, %v3861_v29  ;;  %v14008_v63 = vld [vmem:[#allocation2 + $0xe8] sm:$0xf] }
 0x31a   :  { %v3870_v34 = vor.u32 %v3869_v28, %v3866_v51  ;;  %v3878_v47 = vor.u32 %v3877_v41, %v3874_v38  ;;  %v6591_v3 = vshrl.u32 %v6376_v40, 16  ;;  %11598 = vmatmul.mubr.bf16.gmra.mrb[80].mxu0 %v3862_v19  ;;  %v6579_v58 = vrot.slane %v6577_v39, 4  ;;  %v3655_v41 = vld [vmem:[#allocation2 + $0xe0] sm:$0xf8] }
 0x31b   :  { %v6584_v55 = vrot.slane %v6582_v6, 3  ;;  %v6587_v43 = vrot.slane %v6585_v61, 4  ;;  %v6594_v5 = vshll.u32 %v6376_v40, 16  ;;  %v6599_v49 = vshrl.u32 %v13996_v54, 16 }
 0x31c   :  { %v3879_v1 = vsel %vm1093_vm1, %v3870_v34, %v3878_v47  ;;  %v6593_v57 = vrot.slane %v6591_v3, 3  ;;  %v6602_v30 = vshll.u32 %v13996_v54, 16  ;;  %v6580_v16 = vor.u32 %v6579_v58, %v6576_v8 }
 0x31d   :  { %11601 = vmatprep.mubr.bf16.mxu0 %v3879_v1  ;;  %v6588_v60 = vor.u32 %v6587_v43, %v6584_v55  ;;  %v6596_v46 = vrot.slane %v6594_v5, 4  ;;  %v3881_v53 = vshrl.u32 %v3651_v9, 16  ;;  %v6601_v18 = vrot.slane %v6599_v49, 3  ;;  %v3657_v5 = vld [vmem:[#allocation2 + $0xf0] sm:$0xf8] }
 0x31e   :  { %v6604_v0 = vrot.slane %v6602_v30, 4  ;;  %v3884_v35 = vshll.u32 %v3651_v9, 16  ;;  %v3889_v23 = vshrl.u32 %v12909_v31, 16  ;;  %v3892_v2 = vshll.u32 %v12909_v31, 16  ;;  %v12911_v30 = vld [vmem:[#allocation2 + $0xe8] sm:$0xf] }
 0x31f   :  { %v6589_v62 = vsel %vm1093_vm1, %v6580_v16, %v6588_v60  ;;  %v6597_v24 = vor.u32 %v6596_v46, %v6593_v57  ;;  %v3883_v44 = vrot.slane %v3881_v53, 3  ;;  %v3898_v42 = vshrl.u32 %v3653_v25, 16 }
 0x320   :  { %11838 = vmatmul.mubr.bf16.gmra.mrb[48].mxu1 %v6589_v62  ;;  %v6605_v20 = vor.u32 %v6604_v0, %v6601_v18  ;;  %v3886_v7 = vrot.slane %v3884_v35, 4  ;;  %v3891_v4 = vrot.slane %v3889_v23, 3  ;;  %v3894_v32 = vrot.slane %v3892_v2, 4  ;;  %v6382_v18 = vld [vmem:[#allocation2 + $0xf0] sm:$0xf8] }
 0x321   :  { %v3901_v15 = vshll.u32 %v3653_v25, 16  ;;  %v3906_v10 = vshrl.u32 %v12910_v13, 16  ;;  %v3909_v22 = vshll.u32 %v12910_v13, 16  ;;  %v3900_v45 = vrot.slane %v3898_v42, 3 }
 0x322   :  { %v6606_v56 = vsel %vm1093_vm1, %v6597_v24, %v6605_v20  ;;  %v3887_v59 = vor.u32 %v3886_v7, %v3883_v44  ;;  %v6608_v21 = vshrl.u32 %v6378_v27, 16  ;;  %v3895_v52 = vor.u32 %v3894_v32, %v3891_v4  ;;  %v12912_v44 = vld [vmem:[#allocation2 + $0xf8] sm:$0xf] }
 0x323   :  { %11841 = vmatprep.mubr.bf16.mxu1 %v6606_v56  ;;  %v3903_v26 = vrot.slane %v3901_v15, 4  ;;  %v3908_v48 = vrot.slane %v3906_v10, 3  ;;  %v3911_v14 = vrot.slane %v3909_v22, 4  ;;  %v6611_v50 = vshll.u32 %v6378_v27, 16  ;;  %v14015_v20 = vld [vmem:[#allocation2 + $0xf8] sm:$0xf] }
 0x324   :  { %v6610_v37 = vrot.slane %v6608_v21, 3  ;;  %v6616_v12 = vshrl.u32 %v14003_v17, 16  ;;  %v6619_v51 = vshll.u32 %v14003_v17, 16  ;;  %v3896_v40 = vsel %vm1093_vm1, %v3887_v59, %v3895_v52  ;;  %v6384_v15 = vld [vmem:[#allocation2 + $0x100] sm:$0xf8] }
 0x325   :  { %v3904_v29 = vor.u32 %v3903_v26, %v3900_v45  ;;  %v3912_v28 = vor.u32 %v3911_v14, %v3908_v48  ;;  %v6625_v38 = vshrl.u32 %v6380_v36, 16  ;;  %11602 = vmatmul.mubr.bf16.gmra.mrb[84].mxu0 %v3896_v40  ;;  %v6613_v8 = vrot.slane %v6611_v50, 4  ;;  %v14020_v52 = vld [vmem:[#allocation2 + $0x108] sm:$0xf]  ;;  %v3659_v50 = vld [vmem:[#allocation2 + $0x100] sm:$0xf8] }
 0x326   :  { %v6618_v39 = vrot.slane %v6616_v12, 3  ;;  %v6621_v6 = vrot.slane %v6619_v51, 4  ;;  %v6628_v61 = vshll.u32 %v6380_v36, 16  ;;  %v6633_v47 = vshrl.u32 %v14008_v63, 16 }
 0x327   :  { %v3913_v19 = vsel %vm1093_vm1, %v3904_v29, %v3912_v28  ;;  %v6627_v34 = vrot.slane %v6625_v38, 3  ;;  %v6636_v3 = vshll.u32 %v14008_v63, 16  ;;  %v6614_v9 = vor.u32 %v6613_v8, %v6610_v37 }
 0x328   :  { %11605 = vmatprep.mubr.bf16.mxu0 %v3913_v19  ;;  %v6622_v58 = vor.u32 %v6621_v6, %v6618_v39  ;;  %v6630_v55 = vrot.slane %v6628_v61, 4  ;;  %v3915_v43 = vshrl.u32 %v3655_v41, 16  ;;  %v6635_v1 = vrot.slane %v6633_v47, 3 }
 0x329   :  { %v6638_v57 = vrot.slane %v6636_v3, 4  ;;  %v3918_v49 = vshll.u32 %v3655_v41, 16  ;;  %v3923_v16 = vshrl.u32 %v12911_v30, 16  ;;  %v3926_v25 = vshll.u32 %v12911_v30, 16  ;;  %v6388_v30 = vld [vmem:[#allocation2 + $0x140] sm:$0xf8] }
 0x32a   :  { %v6623_v60 = vsel %vm1093_vm1, %v6614_v9, %v6622_v58  ;;  %v6631_v46 = vor.u32 %v6630_v55, %v6627_v34  ;;  %v3917_v53 = vrot.slane %v3915_v43, 3  ;;  %v3932_v23 = vshrl.u32 %v3657_v5, 16  ;;  %v6386_v34 = vld [vmem:[#allocation2 + $0x110] sm:$0xf8]  ;;  %v12913_v58 = vld [vmem:[#allocation2 + $0x108] sm:$0xf] }
 0x32b   :  { %11842 = vmatmul.mubr.bf16.gmra.mrb[52].mxu1 %v6623_v60  ;;  %v6639_v0 = vor.u32 %v6638_v57, %v6635_v1  ;;  %v3920_v35 = vrot.slane %v3918_v49, 4  ;;  %v3925_v31 = vrot.slane %v3923_v16, 3  ;;  %v3928_v62 = vrot.slane %v3926_v25, 4  ;;  %v14026_v43 = vld [vmem:[#allocation2 + $0x118] sm:$0xf] }
 0x32c   :  { %v3935_v24 = vshll.u32 %v3657_v5, 16  ;;  %v3940_v2 = vshrl.u32 %v12912_v44, 16  ;;  %v3943_v27 = vshll.u32 %v12912_v44, 16  ;;  %v3934_v42 = vrot.slane %v3932_v23, 3 }
 0x32d   :  { %v6640_v7 = vsel %vm1093_vm1, %v6631_v46, %v6639_v0  ;;  %v3921_v4 = vor.u32 %v3920_v35, %v3917_v53  ;;  %v6642_v32 = vshrl.u32 %v6382_v18, 16  ;;  %v3929_v13 = vor.u32 %v3928_v62, %v3925_v31  ;;  %v14031_v31 = vld [vmem:[#allocation2 + $0x148] sm:$0xf] }
 0x32e   :  { %11845 = vmatprep.mubr.bf16.mxu1 %v6640_v7  ;;  %v3937_v10 = vrot.slane %v3935_v24, 4  ;;  %v3942_v22 = vrot.slane %v3940_v2, 3  ;;  %v3945_v56 = vrot.slane %v3943_v27, 4  ;;  %v6645_v45 = vshll.u32 %v6382_v18, 16  ;;  %v6390_v2 = vld [vmem:[#allocation2 + $0x150] sm:$0xf8] }
 0x32f   :  { %v6644_v59 = vrot.slane %v6642_v32, 3  ;;  %v6650_v21 = vshrl.u32 %v14015_v20, 16  ;;  %v6653_v36 = vshll.u32 %v14015_v20, 16  ;;  %v3930_v26 = vsel %vm1093_vm1, %v3921_v4, %v3929_v13 }
 0x330   :  { %v3938_v48 = vor.u32 %v3937_v10, %v3934_v42  ;;  %v3946_v14 = vor.u32 %v3945_v56, %v3942_v22  ;;  %v6659_v37 = vshrl.u32 %v6384_v15, 16  ;;  %11606 = vmatmul.mubr.bf16.gmra.mrb[88].mxu0 %v3930_v26  ;;  %v6647_v12 = vrot.slane %v6645_v45, 4  ;;  %v14036_v22 = vld [vmem:[#allocation2 + $0x158] sm:$0xf] }
 0x331   :  { %v6652_v51 = vrot.slane %v6650_v21, 3  ;;  %v6655_v40 = vrot.slane %v6653_v36, 4  ;;  %v6662_v29 = vshll.u32 %v6384_v15, 16  ;;  %v6667_v41 = vshrl.u32 %v14020_v52, 16  ;;  %v6392_v36 = vld [vmem:[#allocation2 + $0x160] sm:$0xf8] }
 0x332   :  { %v3947_v28 = vsel %vm1093_vm1, %v3938_v48, %v3946_v14  ;;  %v6661_v38 = vrot.slane %v6659_v37, 3  ;;  %v6670_v8 = vshll.u32 %v14020_v52, 16  ;;  %v6648_v39 = vor.u32 %v6647_v12, %v6644_v59 }
 0x333   :  { %11609 = vmatprep.mubr.bf16.mxu0 %v3947_v28  ;;  %v6656_v6 = vor.u32 %v6655_v40, %v6652_v51  ;;  %v6664_v61 = vrot.slane %v6662_v29, 4  ;;  %v3949_v19 = vshrl.u32 %v3659_v50, 16  ;;  %v6669_v47 = vrot.slane %v6667_v41, 3 }
 0x334   :  { %v6672_v3 = vrot.slane %v6670_v8, 4  ;;  %v3952_v9 = vshll.u32 %v3659_v50, 16  ;;  %v3957_v55 = vshrl.u32 %v12913_v58, 16  ;;  %v3960_v49 = vshll.u32 %v12913_v58, 16  ;;  %v14039_v50 = vld [vmem:[#allocation2 + $0x168] sm:$0xf] }
 0x335   :  { %v6657_v5 = vsel %vm1093_vm1, %v6648_v39, %v6656_v6  ;;  %v6665_v1 = vor.u32 %v6664_v61, %v6661_v38  ;;  %v3951_v57 = vrot.slane %v3949_v19, 3  ;;  %v6676_v53 = vshrl.u32 %v6386_v34, 16  ;;  %v6394_v39 = vld [vmem:[#allocation2 + $0x170] sm:$0xf8] }
 0x336   :  { %11846 = vmatmul.mubr.bf16.gmra.mrb[56].mxu1 %v6657_v5  ;;  %v6673_v16 = vor.u32 %v6672_v3, %v6669_v47  ;;  %v3954_v60 = vrot.slane %v3952_v9, 4  ;;  %v3959_v46 = vrot.slane %v3957_v55, 3  ;;  %v3962_v25 = vrot.slane %v3960_v49, 4  ;;  %v14045_v47 = vld [vmem:[#allocation2 + $0x178] sm:$0xf] }
 0x337   :  { %v6679_v18 = vshll.u32 %v6386_v34, 16  ;;  %v6684_v0 = vshrl.u32 %v14026_v43, 16  ;;  %v6687_v35 = vshll.u32 %v14026_v43, 16  ;;  %v6678_v24 = vrot.slane %v6676_v53, 3  ;;  %v6396_v5 = vld [vmem:[#allocation2 + $0x180] sm:$0xf8] }
 0x338   :  { %v6674_v23 = vsel %vm1093_vm1, %v6665_v1, %v6673_v16  ;;  %v3955_v62 = vor.u32 %v3954_v60, %v3951_v57  ;;  %v6693_v44 = vshrl.u32 %v6388_v30, 16  ;;  %v3963_v27 = vor.u32 %v3962_v25, %v3959_v46  ;;  %v14051_v25 = vld [vmem:[#allocation2 + $0x188] sm:$0xf] }
 0x339   :  { %11849 = vmatprep.mubr.bf16.mxu1 %v6674_v23  ;;  %v6681_v7 = vrot.slane %v6679_v18, 4  ;;  %v6686_v4 = vrot.slane %v6684_v0, 3  ;;  %v6689_v42 = vrot.slane %v6687_v35, 4  ;;  %v6696_v15 = vshll.u32 %v6388_v30, 16 }
 0x33a   :  { %v6695_v32 = vrot.slane %v6693_v44, 3  ;;  %v6701_v13 = vshrl.u32 %v14031_v31, 16  ;;  %v6704_v10 = vshll.u32 %v14031_v31, 16  ;;  %v3964_v56 = vsel %vm1093_vm1, %v3955_v62, %v3963_v27  ;;  %v6398_v62 = vld [vmem:[#allocation2 + $0x190] sm:$0xf8] }
 0x33b   :  { %v6682_v59 = vor.u32 %v6681_v7, %v6678_v24  ;;  %v6690_v45 = vor.u32 %v6689_v42, %v6686_v4  ;;  %v6710_v21 = vshrl.u32 %v6390_v2, 16  ;;  %11610 = vmatmul.mubr.bf16.gmra.mrb[92].mxu0 %v3964_v56  ;;  %v6698_v26 = vrot.slane %v6696_v15, 4  ;;  %v14056_v15 = vld [vmem:[#allocation2 + $0x198] sm:$0xf]  ;;  %v6400_v56 = vld [vmem:[#allocation2 + $0x1a0] sm:$0xf8] }
 0x33c   :  { %v6703_v48 = vrot.slane %v6701_v13, 3  ;;  %v6706_v14 = vrot.slane %v6704_v10, 4  ;;  %v6713_v37 = vshll.u32 %v6390_v2, 16  ;;  %v6718_v40 = vshrl.u32 %v14036_v22, 16 }
 0x33d   :  { %v6691_v12 = vsel %vm1093_vm1, %v6682_v59, %v6690_v45  ;;  %v6712_v51 = vrot.slane %v6710_v21, 3  ;;  %v6721_v29 = vshll.u32 %v14036_v22, 16  ;;  %v6699_v28 = vor.u32 %v6698_v26, %v6695_v32  ;;  %v14059_v26 = vld [vmem:[#allocation2 + $0x1a8] sm:$0xf] }
 0x33e   :  { %11850 = vmatmul.mubr.bf16.gmra.mrb[60].mxu1 %v6691_v12  ;;  %v6707_v38 = vor.u32 %v6706_v14, %v6703_v48  ;;  %v6715_v41 = vrot.slane %v6713_v37, 4  ;;  %v6727_v8 = vshrl.u32 %v6392_v36, 16  ;;  %v6720_v6 = vrot.slane %v6718_v40, 3 }
 0x33f   :  { %v6723_v61 = vrot.slane %v6721_v29, 4  ;;  %v6730_v19 = vshll.u32 %v6392_v36, 16  ;;  %v6735_v34 = vshrl.u32 %v14039_v50, 16  ;;  %v6738_v55 = vshll.u32 %v14039_v50, 16 }
 0x340   :  { %v6708_v3 = vsel %vm1093_vm1, %v6699_v28, %v6707_v38  ;;  %v6716_v9 = vor.u32 %v6715_v41, %v6712_v51  ;;  %v6729_v58 = vrot.slane %v6727_v8, 3  ;;  %v6744_v30 = vshrl.u32 %v6394_v39, 16 }
 0x341   :  { %11853 = vmatprep.mubr.bf16.mxu1 %v6708_v3  ;;  %v6724_v1 = vor.u32 %v6723_v61, %v6720_v6  ;;  %v6732_v57 = vrot.slane %v6730_v19, 4  ;;  %v6737_v49 = vrot.slane %v6735_v34, 3  ;;  %v6740_v16 = vrot.slane %v6738_v55, 4  ;;  %v6402_v3 = vld [vmem:[#allocation2 + $0x1b0] sm:$0xf8] }
 0x342   :  { %v6747_v60 = vshll.u32 %v6394_v39, 16  ;;  %v6752_v46 = vshrl.u32 %v14045_v47, 16  ;;  %v6755_v53 = vshll.u32 %v14045_v47, 16  ;;  %v6746_v35 = vrot.slane %v6744_v30, 3 }
 0x343   :  { %v6725_v18 = vsel %vm1093_vm1, %v6716_v9, %v6724_v1  ;;  %v6733_v0 = vor.u32 %v6732_v57, %v6729_v58  ;;  %v6761_v23 = vshrl.u32 %v6396_v5, 16  ;;  %v6741_v24 = vor.u32 %v6740_v16, %v6737_v49  ;;  %v14067_v9 = vld [vmem:[#allocation2 + $0x1b8] sm:$0xf]  ;;  %v6404_v58 = vld [vmem:[#allocation2 + $0x1c0] sm:$0xf8] }
 0x344   :  { %v6749_v44 = vrot.slane %v6747_v60, 4  ;;  %v6754_v2 = vrot.slane %v6752_v46, 3  ;;  %v6757_v27 = vrot.slane %v6755_v53, 4  ;;  %v6764_v4 = vshll.u32 %v6396_v5, 16  ;;  %v14069_v49 = vld [vmem:[#allocation2 + $0x1c8] sm:$0xf] }
 0x345   :  { %v6763_v7 = vrot.slane %v6761_v23, 3  ;;  %v6769_v42 = vshrl.u32 %v14051_v25, 16  ;;  %v6772_v32 = vshll.u32 %v14051_v25, 16  ;;  %v6742_v13 = vsel %vm1093_vm1, %v6733_v0, %v6741_v24 }
 0x346   :  { %11854 = vmatmul.mubr.bf16.gmra.mrb[0].mxu1 %v6725_v18  ;;  %v6778_v10 = vshrl.u32 %v6398_v62, 16  ;;  %v6766_v59 = vrot.slane %v6764_v4, 4  ;;  %v6781_v36 = vshll.u32 %v6398_v62, 16  ;;  %v6786_v48 = vshrl.u32 %v14056_v15, 16 }
 0x347   :  { %11857 = vmatprep.mubr.bf16.mxu1 %v6742_v13  ;;  %v6771_v45 = vrot.slane %v6769_v42, 3  ;;  %v6774_v21 = vrot.slane %v6772_v32, 4  ;;  %v6789_v14 = vshll.u32 %v14056_v15, 16  ;;  %v6750_v37 = vor.u32 %v6749_v44, %v6746_v35  ;;  %v14076_v13 = vld [vmem:[#allocation2 + $0x1d8] sm:$0xf] }
 0x348   :  { %v6758_v12 = vor.u32 %v6757_v27, %v6754_v2  ;;  %v6767_v51 = vor.u32 %v6766_v59, %v6763_v7  ;;  %v6780_v29 = vrot.slane %v6778_v10, 3  ;;  %v6795_v28 = vshrl.u32 %v6400_v56, 16  ;;  %v6406_v27 = vld [vmem:[#allocation2 + $0x1d0] sm:$0xf8] }
 0x349   :  { %v6775_v40 = vor.u32 %v6774_v21, %v6771_v45  ;;  %v6798_v38 = vshll.u32 %v6400_v56, 16  ;;  %v6803_v41 = vshrl.u32 %v14059_v26, 16  ;;  %v6783_v8 = vrot.slane %v6781_v36, 4  ;;  %v6408_v36 = vld [vmem:[#allocation2 + $0x1e0] sm:$0xf8] }
 0x34a   :  { %v6788_v39 = vrot.slane %v6786_v48, 3  ;;  %v6791_v6 = vrot.slane %v6789_v14, 4  ;;  %v6806_v61 = vshll.u32 %v14059_v26, 16  ;;  %v6759_v19 = vsel %vm1093_vm1, %v6750_v37, %v6758_v12 }
 0x34b   :  { %v6776_v34 = vsel %vm1093_vm1, %v6767_v51, %v6775_v40  ;;  %v6797_v55 = vrot.slane %v6795_v28, 3  ;;  %v6800_v5 = vrot.slane %v6798_v38, 4  ;;  %v6805_v1 = vrot.slane %v6803_v41, 3  ;;  %v14081_v51 = vld [vmem:[#allocation2 + $0x1e8] sm:$0xf] }
 0x34c   :  { %v6808_v57 = vrot.slane %v6806_v61, 4  ;;  %v6784_v30 = vor.u32 %v6783_v8, %v6780_v29  ;;  %v6792_v16 = vor.u32 %v6791_v6, %v6788_v39  ;;  %v6812_v60 = vshrl.u32 %v6402_v3, 16 }
 0x34d   :  { %v6815_v46 = vshll.u32 %v6402_v3, 16  ;;  %v6820_v53 = vshrl.u32 %v14067_v9, 16  ;;  %v6823_v18 = vshll.u32 %v14067_v9, 16  ;;  %v6829_v0 = vshrl.u32 %v6404_v58, 16 }
 0x34e   :  { %11858 = vmatmul.mubr.bf16.gmra.mrb[4].mxu1 %v6759_v19  ;;  %v6832_v35 = vshll.u32 %v6404_v58, 16  ;;  %v6837_v23 = vshrl.u32 %v14069_v49, 16  ;;  %v6840_v62 = vshll.u32 %v14069_v49, 16  ;;  %v6801_v24 = vor.u32 %v6800_v5, %v6797_v55  ;;  %v6410_v5 = vld [vmem:[#allocation2 + $0x1f0] sm:$0xf8] }
 0x34f   :  { %11861 = vmatprep.mubr.bf16.mxu1 %v6776_v34  ;;  %v6809_v44 = vor.u32 %v6808_v57, %v6805_v1  ;;  %v6793_v2 = vsel %vm1093_vm1, %v6784_v30, %v6792_v16  ;;  %v6814_v7 = vrot.slane %v6812_v60, 3  ;;  %v6817_v4 = vrot.slane %v6815_v46, 4  ;;  %v14087_v1 = vld [vmem:[#allocation2 + $0x1f8] sm:$0xf]  ;;  %v6412_v57 = vld [vmem:[#allocation2 + $0x200] sm:$0xf8] }
 0x350   :  { %v6822_v42 = vrot.slane %v6820_v53, 3  ;;  %v6825_v32 = vrot.slane %v6823_v18, 4  ;;  %v6831_v10 = vrot.slane %v6829_v0, 3  ;;  %v6834_v56 = vrot.slane %v6832_v35, 4  ;;  %v14089_v53 = vld [vmem:[#allocation2 + $0x208] sm:$0xf] }
 0x351   :  { %v6839_v59 = vrot.slane %v6837_v23, 3  ;;  %v6842_v45 = vrot.slane %v6840_v62, 4  ;;  %v6810_v21 = vsel %vm1093_vm1, %v6801_v24, %v6809_v44  ;;  %v6846_v48 = vshrl.u32 %v6406_v27, 16 }
 0x352   :  { %v6849_v14 = vshll.u32 %v6406_v27, 16  ;;  %v6854_v37 = vshrl.u32 %v14076_v13, 16  ;;  %v6857_v12 = vshll.u32 %v14076_v13, 16  ;;  %v6818_v40 = vor.u32 %v6817_v4, %v6814_v7 }
 0x353   :  { %v6826_v29 = vor.u32 %v6825_v32, %v6822_v42  ;;  %v6835_v28 = vor.u32 %v6834_v56, %v6831_v10  ;;  %v6843_v38 = vor.u32 %v6842_v45, %v6839_v59  ;;  %v6863_v41 = vshrl.u32 %v6408_v36, 16 }
 0x354   :  { %v6866_v8 = vshll.u32 %v6408_v36, 16  ;;  %v6871_v39 = vshrl.u32 %v14081_v51, 16  ;;  %v6874_v6 = vshll.u32 %v14081_v51, 16  ;;  %v6848_v61 = vrot.slane %v6846_v48, 3 }
 0x355   :  { %v6851_v19 = vrot.slane %v6849_v14, 4  ;;  %v6856_v34 = vrot.slane %v6854_v37, 3  ;;  %v6859_v3 = vrot.slane %v6857_v12, 4  ;;  %v6827_v58 = vsel %vm1093_vm1, %v6818_v40, %v6826_v29  ;;  %v6414_v37 = vld [vmem:[#allocation2 + $0x210] sm:$0xf8] }
 0x356   :  { %11862 = vmatmul.mubr.bf16.gmra.mrb[8].mxu1 %v6793_v2  ;;  %v6844_v55 = vsel %vm1093_vm1, %v6835_v28, %v6843_v38  ;;  %v6865_v30 = vrot.slane %v6863_v41, 3  ;;  %v6868_v16 = vrot.slane %v6866_v8, 4  ;;  %v6873_v60 = vrot.slane %v6871_v39, 3  ;;  %v14097_v40 = vld [vmem:[#allocation2 + $0x218] sm:$0xf] }
 0x357   :  { %11865 = vmatprep.mubr.bf16.mxu1 %v6810_v21  ;;  %v6876_v46 = vrot.slane %v6874_v6, 4  ;;  %v6852_v18 = vor.u32 %v6851_v19, %v6848_v61  ;;  %v6860_v0 = vor.u32 %v6859_v3, %v6856_v34  ;;  %v6880_v35 = vshrl.u32 %v6410_v5, 16  ;;  %v6416_v29 = vld [vmem:[#allocation2 + $0x220] sm:$0xf8]  ;;  %v14099_v28 = vld [vmem:[#allocation2 + $0x228] sm:$0xf] }
 0x358   :  { %v6883_v23 = vshll.u32 %v6410_v5, 16  ;;  %v6888_v62 = vshrl.u32 %v14087_v1, 16  ;;  %v6891_v24 = vshll.u32 %v14087_v1, 16  ;;  %v6897_v44 = vshrl.u32 %v6412_v57, 16 }
 0x359   :  { %v6900_v2 = vshll.u32 %v6412_v57, 16  ;;  %v6905_v27 = vshrl.u32 %v14089_v53, 16  ;;  %v6908_v7 = vshll.u32 %v14089_v53, 16  ;;  %v6869_v4 = vor.u32 %v6868_v16, %v6865_v30  ;;  %v6418_v16 = vld [vmem:[#allocation2 + $0x230] sm:$0xf8] }
 0x35a   :  { %v6877_v42 = vor.u32 %v6876_v46, %v6873_v60  ;;  %v6861_v32 = vsel %vm1093_vm1, %v6852_v18, %v6860_v0  ;;  %v6882_v10 = vrot.slane %v6880_v35, 3  ;;  %v6885_v56 = vrot.slane %v6883_v23, 4  ;;  %v14106_v60 = vld [vmem:[#allocation2 + $0x238] sm:$0xf] }
 0x35b   :  { %v6890_v59 = vrot.slane %v6888_v62, 3  ;;  %v6893_v45 = vrot.slane %v6891_v24, 4  ;;  %v6899_v21 = vrot.slane %v6897_v44, 3  ;;  %v6902_v36 = vrot.slane %v6900_v2, 4 }
 0x35c   :  { %v6907_v48 = vrot.slane %v6905_v27, 3  ;;  %v6910_v14 = vrot.slane %v6908_v7, 4  ;;  %v6878_v12 = vsel %vm1093_vm1, %v6869_v4, %v6877_v42  ;;  %v6886_v38 = vor.u32 %v6885_v56, %v6882_v10 }
 0x35d   :  { %v6894_v41 = vor.u32 %v6893_v45, %v6890_v59  ;;  %v6914_v8 = vshrl.u32 %v6414_v37, 16  ;;  %v6917_v39 = vshll.u32 %v6414_v37, 16  ;;  %v6903_v6 = vor.u32 %v6902_v36, %v6899_v21 }
 0x35e   :  { %11866 = vmatmul.mubr.bf16.gmra.mrb[12].mxu1 %v6827_v58  ;;  %v6911_v61 = vor.u32 %v6910_v14, %v6907_v48  ;;  %v6922_v19 = vshrl.u32 %v14097_v40, 16  ;;  %v6925_v34 = vshll.u32 %v14097_v40, 16  ;;  %v6931_v3 = vshrl.u32 %v6416_v29, 16 }
 0x35f   :  { %11869 = vmatprep.mubr.bf16.mxu1 %v6844_v55  ;;  %v6934_v58 = vshll.u32 %v6416_v29, 16  ;;  %v6939_v55 = vshrl.u32 %v14099_v28, 16  ;;  %v6942_v5 = vshll.u32 %v14099_v28, 16  ;;  %v6895_v57 = vsel %vm1093_vm1, %v6886_v38, %v6894_v41 }
 0x360   :  { %v6916_v30 = vrot.slane %v6914_v8, 3  ;;  %v6912_v46 = vsel %vm1093_vm1, %v6903_v6, %v6911_v61  ;;  %v6919_v18 = vrot.slane %v6917_v39, 4  ;;  %v6924_v0 = vrot.slane %v6922_v19, 3  ;;  %v14121_v39 = vld [vmem:[#allocation2 + $0x20] sm:$0xf0] }
 0x361   :  { %v6927_v35 = vrot.slane %v6925_v34, 4  ;;  %v6933_v23 = vrot.slane %v6931_v3, 3  ;;  %v6936_v62 = vrot.slane %v6934_v58, 4  ;;  %v6941_v24 = vrot.slane %v6939_v55, 3  ;;  %v12914_v61 = vld [vmem:[#allocation2 + $0x28] sm:$0xf] }
 0x362   :  { %v6944_v44 = vrot.slane %v6942_v5, 4  ;;  %v6948_v2 = vshrl.u32 %v6418_v16, 16  ;;  %v6951_v27 = vshll.u32 %v6418_v16, 16  ;;  %v6956_v7 = vshrl.u32 %v14106_v60, 16  ;;  %v14136_v16 = vld [vmem:[#allocation2 + $0x40] sm:$0xf0] }
 0x363   :  { %v6959_v4 = vshll.u32 %v14106_v60, 16  ;;  %v6920_v42 = vor.u32 %v6919_v18, %v6916_v30  ;;  %v6937_v10 = vor.u32 %v6936_v62, %v6933_v23  ;;  %v7510_v6 = vrot.slane %v14121_v39, 4  ;;  %v12915_v18 = vld [vmem:[#allocation2 + $0x38] sm:$0xf]  ;;  %v12916_v23 = vld [vmem:[#allocation2 + $0x48] sm:$0xf] }
 0x364   :  { %v6945_v56 = vor.u32 %v6944_v44, %v6941_v24  ;;  %v6950_v59 = vrot.slane %v6948_v2, 3  ;;  %v6953_v45 = vrot.slane %v6951_v27, 4  ;;  %v6958_v21 = vrot.slane %v6956_v7, 3  ;;  %v12766_v44 = vld [vmem:[#allocation8 + $0x208] sm:$0xff]  }
 0x365   :  { %v6961_v36 = vrot.slane %v6959_v4, 4  ;;  %v7511_v19 = vrot.slane %v12914_v61, 4  ;;  %v7517_v62 = vrot.slane %v12916_v23, 4 }
 0x366   :  { %11870 = vmatmul.mubr.bf16.gmra.mrb[16].mxu1 %v6861_v32  ;;  %v6928_v32 = vor.u32 %v6927_v35, %v6924_v0  ;;  %v6946_v29 = vsel %vm1093_vm1, %v6937_v10, %v6945_v56  ;;  %v6954_v41 = vor.u32 %v6953_v45, %v6950_v59  ;;  %v7514_v0 = vrot.slane %v12915_v18, 4  ;;  %v14153_v10 = vld [vmem:[#allocation2 + $0x60] sm:$0xf0]  ;;  %v12767_v56 = vld [vmem:[#allocation8 + $0x210] sm:$0xff]   ;;  %v12917_v45 = vld [vmem:[#allocation2 + $0x58] sm:$0xf] }
 0x367   :  { %11873 = vmatprep.mubr.bf16.mxu1 %v6878_v12  ;;  %v6962_v8 = vor.u32 %v6961_v36, %v6958_v21  ;;  %v7512_v5 = vsel %vm1782_vm0, %v7510_v6, %v7511_v19  ;;  %v7516_v35 = vrot.slane %v14136_v16, 4  ;;  %v7520_v21 = vrot.slane %v12917_v45, 4  ;;  %v12769_v18 = vld [vmem:[#allocation8 + $0x220] sm:$0xff]  }
 0x368   :  { %v6929_v37 = vsel %vm1093_vm1, %v6920_v42, %v6928_v32  ;;  %v14148_v42 = vld [vmem:[#allocation2 + $0x50] sm:$0xf0]  ;;  %v7522_v36 = vrot.slane %v14153_v10, 4 }
 0x369   :  { %v6963_v34 = vsel %vm1093_vm1, %v6954_v41, %v6962_v8  ;;  %v7518_v4 = vsel %vm1782_vm0, %v7516_v35, %v7517_v62  ;;  %v7519_v59 = vrot.slane %v14148_v42, 4  ;;  %v12919_v35 = vld [vmem:[#allocation2 + $0x78] sm:$0xf] }
 0x36a   :  { %v7526_v23 = vrot.slane %v12919_v35, 4 }
 0x36b   :  { %v7521_v6 = vsel %vm1782_vm0, %v7519_v59, %v7520_v21  ;;  %v14175_v21 = vld [vmem:[#allocation2 + $0x90] sm:$0xf0] }
 0x36e   :  { %11874 = vmatmul.mubr.bf16.gmra.mrb[20].mxu1 %v6895_v57  ;;  %v14132_v57 = vld [vmem:[#allocation2 + $0x30] sm:$0xf0] }
 0x36f   :  { %11877 = vmatprep.mubr.bf16.mxu1 %v6912_v46  ;;  %v7513_v46 = vrot.slane %v14132_v57, 4 }
 0x371   :  { %v7515_v27 = vsel %vm1782_vm0, %v7513_v46, %v7514_v0  ;;  %v14169_v46 = vld [vmem:[#allocation2 + $0x80] sm:$0xf0] }
 0x372   :  { %v7528_v62 = vrot.slane %v14169_v46, 4 }
 0x373   :  { %v14111_v48 = vpop.f32.mrb[96].mxu0 }
 0x374   :  { %14715 = vst [vmem:[#allocation16_spill] sm:$0xff] %v14111_v48  ;;  %v14113_v14 = vpop.f32.mrb[97].mxu0 }
 0x375   :  { %14716 = vst [vmem:[#allocation17_spill] sm:$0xff] %v14113_v14  ;;  %v14116_v12 = vpop.f32.mrb[98].mxu0 }
 0x376   :  { %14717 = vst [vmem:[#allocation18_spill] sm:$0xff] %v14116_v12  ;;  %11878 = vmatmul.mubr.bf16.gmra.mrb[24].mxu1 %v6929_v37  ;;  %v14119_v38 = vpop.f32.mrb[99].mxu0  ;;  %v12918_v37 = vld [vmem:[#allocation2 + $0x68] sm:$0xf] }
 0x377   :  { %14718 = vst [vmem:[#allocation19_spill] sm:$0xff] %v14119_v38  ;;  %11881 = vmatprep.mubr.bf16.mxu1 %v6946_v29  ;;  %v7523_v29 = vrot.slane %v12918_v37, 4  ;;  %v8056_v38 = vld [vmem:[#allocation2 + $0x28] sm:$0x1f] }
 0x378   :  { %v8097_v14 = vshrl.u32 %v8056_v38, 16  ;;  %v8100_v48 = vshll.u32 %v8056_v38, 16 }
 0x379   :  { %v7524_v19 = vsel %vm1782_vm0, %v7522_v36, %v7523_v29  ;;  %v14179_v36 = vld [vmem:[#allocation2 + $0xa0] sm:$0xf0] }
 0x37b   :  { %v14125_v3 = vpop.f32.mrb[100].mxu0 }
 0x37c   :  { %14719 = vst [vmem:[#allocation20_spill] sm:$0xff] %v14125_v3  ;;  %v14127_v58 = vpop.f32.mrb[101].mxu0  ;;  %v14353_v3 = vld [vmem:[#allocation2 + $0x220] sm:$0xf0] }
 0x37d   :  { %14720 = vst [vmem:[#allocation21_spill] sm:$0xff] %v14127_v58  ;;  %v14129_v55 = vpop.f32.mrb[102].mxu0 }
 0x37e   :  { %14721 = vst [vmem:[#allocation22_spill] sm:$0xff] %v14129_v55  ;;  %11882 = vmatmul.mubr.bf16.gmra.mrb[28].mxu1 %v6963_v34  ;;  %v14134_v30 = vpop.f32.mrb[103].mxu0  ;;  %v14165_v34 = vld [vmem:[#allocation2 + $0x70] sm:$0xf0] }
 0x37f   :  { %14722 = vst [vmem:[#allocation23_spill] sm:$0xff] %v14134_v30  ;;  %11901 = vmatprep.mubr.bf16.mxu1 %v7512_v5  ;;  %v7525_v0 = vrot.slane %v14165_v34, 4 }
 0x381   :  { %v7527_v59 = vsel %vm1782_vm0, %v7525_v0, %v7526_v23  ;;  %v7534_v23 = vrot.slane %v14179_v36, 4 }
 0x383   :  { %v14140_v24 = vpop.f32.mrb[104].mxu0 }
 0x384   :  { %14723 = vst [vmem:[#allocation24_spill] sm:$0xff] %v14140_v24  ;;  %v14142_v2 = vpop.f32.mrb[105].mxu0  ;;  %v7589_v24 = vrot.slane %v14081_v51, 4 }
 0x385   :  { %14724 = vst [vmem:[#allocation25_spill] sm:$0xff] %v14142_v2  ;;  %v14145_v7 = vpop.f32.mrb[106].mxu0  ;;  %v7586_v2 = vrot.slane %v14076_v13, 4  ;;  %v14339_v13 = vld [vmem:[#allocation2 + $0x200] sm:$0xf0] }
 0x386   :  { %14725 = vst [vmem:[#allocation26_spill] sm:$0xff] %v14145_v7  ;;  %11902 = vmatmul.mubr.bf16.vlgmr.msra.gmra.mrb[32].mxu1 %v7515_v27  ;;  %v14150_v32 = vpop.f32.mrb[107].mxu0  ;;  %v14321_v7 = vld [vmem:[#allocation2 + $0x1e0] sm:$0xf0]  ;;  %v7594_v58 = vrot.slane %v14339_v13, 4 }
 0x387   :  { %14726 = vst [vmem:[#allocation27_spill] sm:$0xff] %v14150_v32  ;;  %11966 = vmatpush3.bf16.msra.mxu1 %v13985_v11  ;;  %11905 = vmatprep.mubr.bf16.mxu1 %v7518_v4  ;;  %v12768_v11 = vld [vmem:[#allocation8 + $0x218] sm:$0xff]   ;;  %v12770_v4 = vld [vmem:[#allocation8 + $0x228] sm:$0xff]  }
 0x388   :  { %11967 = vmatprep.subr.bf16.mxu1 %v12766_v44 }
 0x38b   :  { %11968 = vmatpush3.bf16.msra.mxu1 %v12766_v44  ;;  %v14157_v41 = vpop.f32.mrb[108].mxu0  ;;  %v12920_v44 = vld [vmem:[#allocation2 + $0x88] sm:$0xf] }
 0x38c   :  { %14727 = vst [vmem:[#allocation28_spill] sm:$0xff] %v14157_v41  ;;  %11969 = vmatprep.subr.bf16.mxu1 %v12767_v56  ;;  %v14159_v8 = vpop.f32.mrb[109].mxu0  ;;  %v7529_v27 = vrot.slane %v12920_v44, 4 }
 0x38d   :  { %14728 = vst [vmem:[#allocation29_spill] sm:$0xff] %v14159_v8  ;;  %v14162_v61 = vpop.f32.mrb[110].mxu0 }
 0x38e   :  { %14729 = vst [vmem:[#allocation30_spill] sm:$0xff] %v14162_v61  ;;  %11906 = vmatmul.mubr.bf16.gmra.mrb[36].mxu1 %v7521_v6  ;;  %v14167_v5 = vpop.f32.mrb[111].mxu0  ;;  %v7530_v45 = vsel %vm1782_vm0, %v7528_v62, %v7529_v27  ;;  %v7531_v6 = vrot.slane %v14175_v21, 4  ;;  %v12922_v62 = vld [vmem:[#allocation2 + $0xa8] sm:$0xf]  ;;  %v12772_v27 = vld [vmem:[#allocation8 + $0x238] sm:$0xff]  }
 0x38f   :  { %14730 = vst [vmem:[#allocation31_spill] sm:$0xff] %v14167_v5  ;;  %11909 = vmatprep.mubr.bf16.mxu1 %v7524_v19  ;;  %11970 = vmatpush3.bf16.msra.mxu1 %v12767_v56  ;;  %v12921_v19 = vld [vmem:[#allocation2 + $0x98] sm:$0xf]  ;;  %v7535_v44 = vrot.slane %v12922_v62, 4  ;;  %v14303_v61 = vld [vmem:[#allocation2 + $0x1c0] sm:$0xf0] }
 0x390   :  { %11971 = vmatprep.subr.bf16.mxu1 %v12768_v11  ;;  %v7532_v0 = vrot.slane %v12921_v19, 4 }
 0x393   :  { %11972 = vmatpush3.bf16.msra.mxu1 %v12768_v11  ;;  %v12771_v11 = vld [vmem:[#allocation8 + $0x230] sm:$0xff]  }
 0x394   :  { %11973 = vmatprep.subr.bf16.mxu1 %v12769_v18 }
 0x395   :  { %v14177_v56 = vpop.f32.mrb[112].mxu0 }
 0x396   :  { %11910 = vmatmul.mubr.bf16.gmra.mrb[40].mxu1 %v7527_v59  ;;  %14731 = vst [vmem:[#allocation32_spill] sm:$0xff] %v14177_v56  ;;  %v14181_v37 = vpop.f32.mrb[113].mxu0  ;;  %v7533_v59 = vsel %vm1782_vm0, %v7531_v6, %v7532_v0  ;;  %v7541_v6 = vrot.slane %v13996_v54, 4  ;;  %v7544_v54 = vrot.slane %v14003_v17, 4  ;;  %v7571_v56 = vrot.slane %v14051_v25, 4 }
 0x397   :  { %11913 = vmatprep.mubr.bf16.mxu1 %v7530_v45  ;;  %14732 = vst [vmem:[#allocation33_spill] sm:$0xff] %v14181_v37  ;;  %11974 = vmatpush3.bf16.msra.mxu1 %v12769_v18  ;;  %v14183_v29 = vpop.f32.mrb[114].mxu0  ;;  %v7536_v18 = vsel %vm1782_vm0, %v7534_v23, %v7535_v44  ;;  %v14191_v45 = vld [vmem:[#allocation2 + $0xb0] sm:$0xf0] }
 0x398   :  { %14733 = vst [vmem:[#allocation34_spill] sm:$0xff] %v14183_v29  ;;  %11975 = vmatprep.subr.bf16.mxu1 %v12770_v4  ;;  %v14186_v35 = vpop.f32.mrb[115].mxu0  ;;  %v14193_v29 = vld [vmem:[#allocation2 + $0xc0] sm:$0xf0]  ;;  %v7537_v19 = vrot.slane %v14191_v45, 4 }
 0x399   :  { %14734 = vst [vmem:[#allocation35_spill] sm:$0xff] %v14186_v35  ;;  %v7538_v35 = vrot.slane %v13991_v33, 4  ;;  %v14211_v33 = vld [vmem:[#allocation2 + $0xe0] sm:$0xf0] }
 0x39b   :  { %11976 = vmatpush3.bf16.msra.mxu1 %v12770_v4  ;;  %v7540_v4 = vrot.slane %v14193_v29, 4 }
 0x39c   :  { %11977 = vmatprep.subr.bf16.mxu1 %v12771_v11 }
 0x39e   :  { %11914 = vmatmul.mubr.bf16.gmra.mrb[44].mxu1 %v7533_v59  ;;  %v7542_v59 = vsel %vm1782_vm0, %v7540_v4, %v7541_v6  ;;  %v14223_v6 = vld [vmem:[#allocation2 + $0xf0] sm:$0xf0] }
 0x39f   :  { %11917 = vmatprep.mubr.bf16.mxu1 %v7536_v18  ;;  %11978 = vmatpush3.bf16.msra.mxu1 %v12771_v11  ;;  %v7539_v11 = vsel %vm1782_vm0, %v7537_v19, %v7538_v35  ;;  %v14209_v18 = vld [vmem:[#allocation2 + $0xd0] sm:$0xf0] }
 0x3a0   :  { %11979 = vmatprep.subr.bf16.mxu1 %v12772_v27  ;;  %v14197_v62 = vpop.f32.mrb[116].mxu0 }
 0x3a1   :  { %14735 = vst [vmem:[#allocation36_spill] sm:$0xff] %v14197_v62  ;;  %v14201_v0 = vpop.f32.mrb[117].mxu0  ;;  %v7543_v62 = vrot.slane %v14209_v18, 4 }
 0x3a2   :  { %14736 = vst [vmem:[#allocation37_spill] sm:$0xff] %v14201_v0  ;;  %v14203_v23 = vpop.f32.mrb[118].mxu0  ;;  %v7546_v0 = vrot.slane %v14211_v33, 4 }
 0x3a3   :  { %14737 = vst [vmem:[#allocation38_spill] sm:$0xff] %v14203_v23  ;;  %11980 = vmatpush3.bf16.msra.mxu1 %v12772_v27  ;;  %v14205_v44 = vpop.f32.mrb[119].mxu0  ;;  %v7547_v27 = vrot.slane %v14008_v63, 4  ;;  %v7545_v35 = vsel %vm1782_vm0, %v7543_v62, %v7544_v54  ;;  %v7549_v63 = vrot.slane %v14223_v6, 4  ;;  %v7553_v54 = vrot.slane %v14020_v52, 4 }
 0x3a4   :  { %14738 = vst [vmem:[#allocation39_spill] sm:$0xff] %v14205_v44 }
 0x3a5   :  { %v7548_v4 = vsel %vm1782_vm0, %v7546_v0, %v7547_v27 }
 0x3a6   :  { %11918 = vmatmul.mubr.bf16.gmra.mrb[48].mxu1 %v7539_v11 }
 0x3a7   :  { %11921 = vmatprep.mubr.bf16.mxu1 %v7542_v59  ;;  %v14227_v59 = vld [vmem:[#allocation2 + $0x100] sm:$0xf0] }
 0x3a8   :  { %v7552_v62 = vrot.slane %v14227_v59, 4 }
 0x3aa   :  { %v7554_v27 = vsel %vm1782_vm0, %v7552_v62, %v7553_v54 }
 0x3ab   :  { %v14217_v23 = vpop.f32.mrb[120].mxu0 }
 0x3ac   :  { %14739 = vst [vmem:[#allocation40_spill] sm:$0xff] %v14217_v23  ;;  %v14220_v19 = vpop.f32.mrb[121].mxu0  ;;  %v7550_v23 = vrot.slane %v14015_v20, 4 }
 0x3ad   :  { %14740 = vst [vmem:[#allocation41_spill] sm:$0xff] %v14220_v19  ;;  %v14225_v11 = vpop.f32.mrb[122].mxu0 }
 0x3ae   :  { %11922 = vmatmul.mubr.bf16.gmra.mrb[52].mxu1 %v7545_v35  ;;  %14741 = vst [vmem:[#allocation42_spill] sm:$0xff] %v14225_v11  ;;  %v14229_v17 = vpop.f32.mrb[123].mxu0  ;;  %v14235_v35 = vld [vmem:[#allocation2 + $0x110] sm:$0xf0]  ;;  %v7551_v0 = vsel %vm1782_vm0, %v7549_v63, %v7550_v23  ;;  %v14241_v11 = vld [vmem:[#allocation2 + $0x140] sm:$0xf0] }
 0x3af   :  { %11925 = vmatprep.mubr.bf16.mxu1 %v7548_v4  ;;  %14742 = vst [vmem:[#allocation43_spill] sm:$0xff] %v14229_v17  ;;  %v7555_v4 = vrot.slane %v14235_v35, 4  ;;  %v7556_v17 = vrot.slane %v14026_v43, 4  ;;  %v7558_v52 = vrot.slane %v14241_v11, 4  ;;  %v7559_v23 = vrot.slane %v14031_v31, 4 }
 0x3b0   :  { %v14255_v43 = vld [vmem:[#allocation2 + $0x150] sm:$0xf0]  ;;  %v7565_v31 = vrot.slane %v14039_v50, 4 }
 0x3b1   :  { %v7557_v62 = vsel %vm1782_vm0, %v7555_v4, %v7556_v17  ;;  %v7560_v54 = vsel %vm1782_vm0, %v7558_v52, %v7559_v23 }
 0x3b6   :  { %11926 = vmatmul.mubr.bf16.gmra.mrb[56].mxu1 %v7551_v0  ;;  %v14243_v19 = vpop.f32.mrb[124].mxu0  ;;  %v14257_v0 = vld [vmem:[#allocation2 + $0x160] sm:$0xf0] }
 0x3b7   :  { %11929 = vmatprep.mubr.bf16.mxu1 %v7554_v27  ;;  %14743 = vst [vmem:[#allocation44_spill] sm:$0xff] %v14243_v19  ;;  %v14245_v20 = vpop.f32.mrb[125].mxu0  ;;  %v7561_v27 = vrot.slane %v14255_v43, 4 }
 0x3b8   :  { %14744 = vst [vmem:[#allocation45_spill] sm:$0xff] %v14245_v20  ;;  %v14247_v44 = vpop.f32.mrb[126].mxu0  ;;  %v7564_v20 = vrot.slane %v14257_v0, 4 }
 0x3b9   :  { %14745 = vst [vmem:[#allocation46_spill] sm:$0xff] %v14247_v44  ;;  %v14251_v63 = vpop.f32.mrb[127].mxu0  ;;  %v7562_v44 = vrot.slane %v14036_v22, 4  ;;  %v14275_v22 = vld [vmem:[#allocation2 + $0x180] sm:$0xf0] }
 0x3ba   :  { %14746 = vst [vmem:[#allocation47_spill] sm:$0xff] %v14251_v63  ;;  %v7566_v23 = vsel %vm1782_vm0, %v7564_v20, %v7565_v31  ;;  %v7570_v37 = vrot.slane %v14275_v22, 4  ;;  %v14285_v31 = vld [vmem:[#allocation2 + $0x190] sm:$0xf0] }
 0x3bb   :  { %v7563_v4 = vsel %vm1782_vm0, %v7561_v27, %v7562_v44  ;;  %v7573_v25 = vrot.slane %v14285_v31, 4 }
 0x3bc   :  { %v7572_v20 = vsel %vm1782_vm0, %v7570_v37, %v7571_v56 }
 0x3be   :  { %11930 = vmatmul.mubr.bf16.gmra.mrb[60].mxu1 %v7557_v62  ;;  %v14273_v62 = vld [vmem:[#allocation2 + $0x170] sm:$0xf0] }
 0x3bf   :  { %11933 = vmatprep.mubr.bf16.mxu1 %v7560_v54  ;;  %v7567_v50 = vrot.slane %v14273_v62, 4  ;;  %v7568_v54 = vrot.slane %v14045_v47, 4 }
 0x3c1   :  { %v14263_v19 = vpop.f32.mrb[64].mxu0  ;;  %v7569_v44 = vsel %vm1782_vm0, %v7567_v50, %v7568_v54  ;;  %v7574_v50 = vrot.slane %v14056_v15, 4  ;;  %v7580_v15 = vrot.slane %v14067_v9, 4 }
 0x3c2   :  { %v14265_v63 = vpop.f32.mrb[65].mxu0 }
 0x3c3   :  { %v14267_v17 = vpop.f32.mrb[66].mxu0  ;;  %v7575_v56 = vsel %vm1782_vm0, %v7573_v25, %v7574_v50  ;;  %v7583_v25 = vrot.slane %v14069_v49, 4  ;;  %v7588_v49 = vrot.slane %v14321_v7, 4 }
 0x3c4   :  { %v14270_v52 = vpop.f32.mrb[67].mxu0 }
 0x3c6   :  { %11934 = vmatmul.mubr.bf16.gmra.mrb[0].mxu1 %v7563_v4 }
 0x3c7   :  { %11937 = vmatprep.mubr.bf16.mxu1 %v7566_v23  ;;  %v14289_v23 = vld [vmem:[#allocation2 + $0x1a0] sm:$0xf0] }
 0x3c8   :  { %v7576_v54 = vrot.slane %v14289_v23, 4 }
 0x3cc   :  { %v14282_v27 = vpop.f32.mrb[68].mxu0 }
 0x3cd   :  { %v14287_v4 = vpop.f32.mrb[69].mxu0 }
 0x3ce   :  { %11938 = vmatmul.mubr.bf16.gmra.mrb[4].mxu1 %v7569_v44  ;;  %v14291_v5 = vpop.f32.mrb[70].mxu0  ;;  %v7577_v44 = vrot.slane %v14059_v26, 4  ;;  %v7582_v26 = vrot.slane %v14303_v61, 4 }
 0x3cf   :  { %11941 = vmatprep.mubr.bf16.mxu1 %v7572_v20  ;;  %14747 = vst [vmem:[#allocation48_spill] sm:$0xff] %v14291_v5  ;;  %v14293_v47 = vpop.f32.mrb[71].mxu0  ;;  %v14301_v20 = vld [vmem:[#allocation2 + $0x1b0] sm:$0xf0] }
 0x3d0   :  { %14748 = vst [vmem:[#allocation49_spill] sm:$0xff] %v14293_v47  ;;  %v7578_v37 = vsel %vm1782_vm0, %v7576_v54, %v7577_v44  ;;  %v7579_v41 = vrot.slane %v14301_v20, 4 }
 0x3d2   :  { %v7581_v44 = vsel %vm1782_vm0, %v7579_v41, %v7580_v15 }
 0x3d6   :  { %11942 = vmatmul.mubr.bf16.gmra.mrb[8].mxu1 %v7575_v56  ;;  %v7584_v56 = vsel %vm1782_vm0, %v7582_v26, %v7583_v25  ;;  %v7590_v26 = vsel %vm1782_vm0, %v7588_v49, %v7589_v24  ;;  %v14335_v25 = vld [vmem:[#allocation2 + $0x1f0] sm:$0xf0] }
 0x3d7   :  { %11945 = vmatprep.mubr.bf16.mxu1 %v7578_v37  ;;  %v14305_v8 = vpop.f32.mrb[72].mxu0  ;;  %v14319_v37 = vld [vmem:[#allocation2 + $0x1d0] sm:$0xf0]  ;;  %v7591_v51 = vrot.slane %v14335_v25, 4 }
 0x3d8   :  { %14749 = vst [vmem:[#allocation50_spill] sm:$0xff] %v14305_v8  ;;  %v14309_v32 = vpop.f32.mrb[73].mxu0  ;;  %v7585_v9 = vrot.slane %v14319_v37, 4 }
 0x3d9   :  { %14750 = vst [vmem:[#allocation51_spill] sm:$0xff] %v14309_v32  ;;  %v14313_v50 = vpop.f32.mrb[74].mxu0 }
 0x3da   :  { %14751 = vst [vmem:[#allocation52_spill] sm:$0xff] %v14313_v50  ;;  %v14315_v54 = vpop.f32.mrb[75].mxu0  ;;  %v7587_v41 = vsel %vm1782_vm0, %v7585_v9, %v7586_v2  ;;  %v7595_v2 = vrot.slane %v14089_v53, 4  ;;  %v7598_v53 = vrot.slane %v14097_v40, 4  ;;  %v7604_v40 = vrot.slane %v14106_v60, 4 }
 0x3db   :  { %14752 = vst [vmem:[#allocation53_spill] sm:$0xff] %v14315_v54  ;;  %v8058_v50 = vld [vmem:[#allocation2 + $0x48] sm:$0x1f] }
 0x3dc   :  { %v7596_v24 = vsel %vm1782_vm0, %v7594_v58, %v7595_v2  ;;  %v8089_v58 = vshrl.u32 %v14121_v39, 16  ;;  %v8092_v2 = vshll.u32 %v14121_v39, 16  ;;  %v8102_v39 = vrot.slane %v8100_v48, 5 }
 0x3dd   :  { %v8126_v48 = vshll.u32 %v14136_v16, 16 }
 0x3de   :  { %11946 = vmatmul.mubr.bf16.gmra.mrb[12].mxu1 %v7581_v44 }
 0x3df   :  { %11949 = vmatprep.mubr.bf16.mxu1 %v7584_v56  ;;  %v7592_v56 = vrot.slane %v14087_v1, 4 }
 0x3e1   :  { %v7593_v9 = vsel %vm1782_vm0, %v7591_v51, %v7592_v56  ;;  %v14361_v56 = vld [vmem:[#allocation2 + $0x230] sm:$0xf0] }
 0x3e2   :  { %v14327_v30 = vpop.f32.mrb[76].mxu0 }
 0x3e3   :  { %14753 = vst [vmem:[#allocation54_spill] sm:$0xff] %v14327_v30  ;;  %v14329_v55 = vpop.f32.mrb[77].mxu0  ;;  %v8106_v30 = vshrl.u32 %v14132_v57, 16 }
 0x3e4   :  { %14754 = vst [vmem:[#allocation55_spill] sm:$0xff] %v14329_v55  ;;  %v14332_v15 = vpop.f32.mrb[78].mxu0  ;;  %v8099_v55 = vrot.slane %v8097_v14, 4  ;;  %v8131_v14 = vshrl.u32 %v8058_v50, 16 }
 0x3e5   :  { %14755 = vst [vmem:[#allocation56_spill] sm:$0xff] %v14332_v15  ;;  %v14337_v44 = vpop.f32.mrb[79].mxu0 }
 0x3e6   :  { %11950 = vmatmul.mubr.bf16.gmra.mrb[16].mxu1 %v7587_v41  ;;  %14756 = vst [vmem:[#allocation57_spill] sm:$0xff] %v14337_v44  ;;  %v14346_v41 = vld [vmem:[#allocation2 + $0x210] sm:$0xf0]  ;;  %v8094_v44 = vrot.slane %v8092_v2, 5 }
 0x3e7   :  { %11953 = vmatprep.mubr.bf16.mxu1 %v7590_v26  ;;  %v7597_v12 = vrot.slane %v14346_v41, 4 }
 0x3ed   :  { %v14349_v49 = vpop.f32.mrb[80].mxu0 }
 0x3ee   :  { %11954 = vmatmul.mubr.bf16.gmra.mrb[20].mxu1 %v7593_v9  ;;  %14757 = vst [vmem:[#allocation58_spill] sm:$0xff] %v14349_v49  ;;  %v14351_v26 = vpop.f32.mrb[81].mxu0  ;;  %v7600_v9 = vrot.slane %v14353_v3, 4  ;;  %v7599_v49 = vsel %vm1782_vm0, %v7597_v12, %v7598_v53  ;;  %v8123_v53 = vshrl.u32 %v14136_v16, 16  ;;  %v12773_v16 = vld [vmem:[#allocation9] sm:$0xff]  }
 0x3ef   :  { %11957 = vmatprep.mubr.bf16.mxu1 %v7596_v24  ;;  %14758 = vst [vmem:[#allocation59_spill] sm:$0xff] %v14351_v26  ;;  %v14355_v1 = vpop.f32.mrb[82].mxu0  ;;  %v7601_v24 = vrot.slane %v14099_v28, 4  ;;  %v8057_v26 = vld [vmem:[#allocation2 + $0x38] sm:$0x1f]  ;;  %v8109_v28 = vshll.u32 %v14132_v57, 16  ;;  %12045 = vmatprep.subr.bf16.mxu0 %v12773_v16 }
 0x3f0   :  { %14759 = vst [vmem:[#allocation60_spill] sm:$0xff] %v14355_v1  ;;  %v14359_v51 = vpop.f32.mrb[83].mxu0  ;;  %v7603_v1 = vrot.slane %v14361_v56, 4  ;;  %v8114_v38 = vshrl.u32 %v8057_v26, 16  ;;  %v8117_v54 = vshll.u32 %v8057_v26, 16  ;;  %v8108_v57 = vrot.slane %v8106_v30, 4  ;;  %12046 = vmatpush3.bf16.msra.mxu0 %v12773_v16 }
 0x3f1   :  { %14760 = vst [vmem:[#allocation61_spill] sm:$0xff] %v14359_v51  ;;  %v8091_v51 = vrot.slane %v8089_v58, 4  ;;  %v7602_v15 = vsel %vm1782_vm0, %v7600_v9, %v7601_v24  ;;  %v8103_v58 = vor.u32 %v8102_v39, %v8099_v55  ;;  %v8111_v9 = vrot.slane %v8109_v28, 5 }
 0x3f2   :  { %v7605_v12 = vsel %vm1782_vm0, %v7603_v1, %v7604_v40  ;;  %v8116_v26 = vrot.slane %v8114_v38, 4  ;;  %v8119_v24 = vrot.slane %v8117_v54, 5  ;;  %v8059_v1 = vld [vmem:[#allocation2 + $0x58] sm:$0x1f]  ;;  %v8128_v40 = vrot.slane %v8126_v48, 5 }
 0x3f3   :  { %v8095_v60 = vor.u32 %v8094_v44, %v8091_v51  ;;  %v8060_v44 = vld [vmem:[#allocation2 + $0x68] sm:$0x1f]  ;;  %v8133_v55 = vrot.slane %v8131_v14, 4  ;;  %v8140_v30 = vshrl.u32 %v14148_v42, 16  ;;  %v8143_v54 = vshll.u32 %v14148_v42, 16 }
 0x3f4   :  { %v8148_v28 = vshrl.u32 %v8059_v1, 16  ;;  %v8151_v38 = vshll.u32 %v8059_v1, 16  ;;  %v8174_v16 = vshrl.u32 %v14165_v34, 16 }
 0x3f5   :  { %v8104_v51 = vsel %vm2634_vm2, %v8095_v60, %v8103_v58  ;;  %v8165_v60 = vshrl.u32 %v8060_v44, 16  ;;  %v8168_v58 = vshll.u32 %v8060_v44, 16  ;;  %v8142_v42 = vrot.slane %v8140_v30, 4 }
 0x3f6   :  { %11958 = vmatmul.mubr.bf16.gmra.mrb[24].mxu1 %v7599_v49  ;;  %v8150_v1 = vrot.slane %v8148_v28, 4 }
 0x3f7   :  { %11961 = vmatprep.mubr.bf16.mxu1 %v7602_v15  ;;  %v8134_v15 = vshll.u32 %v8058_v50, 16  ;;  %v8112_v50 = vor.u32 %v8111_v9, %v8108_v57  ;;  %v8061_v9 = vld [vmem:[#allocation2 + $0x78] sm:$0x1f]  ;;  %v8167_v5 = vrot.slane %v8165_v60, 4  ;;  %v8170_v44 = vrot.slane %v8168_v58, 5 }
 0x3f8   :  { %v14373_v32 = vpop.f32.mrb[84].mxu0  ;;  %v8182_v30 = vshrl.u32 %v8061_v9, 16  ;;  %v8194_v60 = vshll.u32 %v14169_v46, 16 }
 0x3f9   :  { %14761 = vst [vmem:[#allocation62_spill] sm:$0xff] %v14373_v32  ;;  %v14377_v49 = vpop.f32.mrb[85].mxu0  ;;  %v8125_v32 = vrot.slane %v8123_v53, 4  ;;  %v8136_v39 = vrot.slane %v8134_v15, 5  ;;  %v8157_v53 = vshrl.u32 %v14153_v10, 16  ;;  %v12775_v15 = vld [vmem:[#allocation9 + $0x10] sm:$0xff]  }
 0x3fa   :  { %14762 = vst [vmem:[#allocation63_spill] sm:$0xff] %v14377_v49  ;;  %v14380_v2 = vpop.f32.mrb[86].mxu0  ;;  %v12774_v49 = vld [vmem:[#allocation9 + $0x8] sm:$0xff]  }
 0x3fb   :  { %14763 = vst [vmem:[#allocation64_spill] sm:$0xff] %v14380_v2  ;;  %v14382_v8 = vpop.f32.mrb[87].mxu0  ;;  %v8120_v2 = vor.u32 %v8119_v24, %v8116_v26  ;;  %v8129_v48 = vor.u32 %v8128_v40, %v8125_v32  ;;  %v8137_v14 = vor.u32 %v8136_v39, %v8133_v55  ;;  %12047 = vmatprep.subr.bf16.mxu0 %v12774_v49  ;;  %v8145_v24 = vrot.slane %v8143_v54, 5  ;;  %v12776_v55 = vld [vmem:[#allocation9 + $0x18] sm:$0xff]  }
 0x3fc   :  { %14764 = vst [vmem:[#allocation65_spill] sm:$0xff] %v14382_v8  ;;  %v8159_v47 = vrot.slane %v8157_v53, 4  ;;  %12048 = vmatpush3.bf16.msra.mxu0 %v12774_v49  ;;  %v8185_v54 = vshll.u32 %v8061_v9, 16  ;;  %v8171_v53 = vor.u32 %v8170_v44, %v8167_v5 }
 0x3fd   :  { %v8121_v57 = vsel %vm2634_vm2, %v8112_v50, %v8120_v2  ;;  %v8138_v40 = vsel %vm2634_vm2, %v8129_v48, %v8137_v14  ;;  %v8062_v2 = vld [vmem:[#allocation2 + $0x88] sm:$0x1f]  ;;  %12049 = vmatprep.subr.bf16.mxu0 %v12775_v15  ;;  %v8177_v50 = vshll.u32 %v14165_v34, 16  ;;  %v8146_v28 = vor.u32 %v8145_v24, %v8142_v42  ;;  %v12777_v14 = vld [vmem:[#allocation9 + $0x20] sm:$0xff]   ;;  %v8063_v42 = vld [vmem:[#allocation2 + $0x98] sm:$0x1f] }
 0x3fe   :  { %11962 = vmatmul.mubr.bf16.gmra.mrb[28].mxu1 %v7605_v12  ;;  %v8160_v12 = vshll.u32 %v14153_v10, 16  ;;  %v8199_v58 = vshrl.u32 %v8062_v2, 16  ;;  %v8202_v48 = vshll.u32 %v8062_v2, 16 }
 0x3ff   :  { %11981 = vmatprep.mubr.bf16.mxu1 %v8104_v51  ;;  %v8153_v51 = vrot.slane %v8151_v38, 5 }
 0x400   :  { %v8162_v10 = vrot.slane %v8160_v12, 5  ;;  %12050 = vmatpush3.bf16.msra.mxu0 %v12775_v15  ;;  %v8191_v12 = vshrl.u32 %v14169_v46, 16  ;;  %v8196_v15 = vrot.slane %v8194_v60, 5  ;;  %v8201_v24 = vrot.slane %v8199_v58, 4  ;;  %v12779_v60 = vld [vmem:[#allocation9 + $0x30] sm:$0xff]  }
 0x401   :  { %v8154_v38 = vor.u32 %v8153_v51, %v8150_v1  ;;  %12051 = vmatprep.subr.bf16.mxu0 %v12776_v55  ;;  %v8204_v46 = vrot.slane %v8202_v48, 5  ;;  %v12778_v1 = vld [vmem:[#allocation9 + $0x28] sm:$0xff]  }
 0x402   :  { %v8163_v49 = vor.u32 %v8162_v10, %v8159_v47  ;;  %v8064_v47 = vld [vmem:[#allocation2 + $0xa8] sm:$0x1f]  ;;  %v8193_v5 = vrot.slane %v8191_v12, 4 }
 0x403   :  { %v14390_v26 = vpop.f32.mrb[88].mxu0  ;;  %v8155_v34 = vsel %vm2634_vm2, %v8146_v28, %v8154_v38  ;;  %v8225_v28 = vshrl.u32 %v14179_v36, 16  ;;  %v8228_v38 = vshll.u32 %v14179_v36, 16 }
 0x404   :  { %v14392_v8 = vpop.f32.mrb[89].mxu0  ;;  %v8172_v9 = vsel %vm2634_vm2, %v8163_v49, %v8171_v53  ;;  %12052 = vmatpush3.bf16.msra.mxu0 %v12776_v55  ;;  %v8219_v55 = vshll.u32 %v8063_v42, 16  ;;  %v8233_v49 = vshrl.u32 %v8064_v47, 16  ;;  %v8236_v53 = vshll.u32 %v8064_v47, 16 }
 0x405   :  { %v14394_v32 = vpop.f32.mrb[90].mxu0  ;;  %12053 = vmatprep.subr.bf16.mxu0 %v12777_v14  ;;  %v8242_v47 = vshrl.u32 %v14191_v45, 16 }
 0x406   :  { %14765 = vst [vmem:[#allocation66_spill] sm:$0xff] %v14394_v32  ;;  %11982 = vmatmul.mubr.bf16.vlgmr.msra.gmra.mrb[32].mxu1 %v8121_v57  ;;  %v14397_v39 = vpop.f32.mrb[91].mxu0  ;;  %v8176_v57 = vrot.slane %v8174_v16, 4  ;;  %v8187_v32 = vrot.slane %v8185_v54, 5  ;;  %v8208_v16 = vshrl.u32 %v14175_v21, 16  ;;  %v8238_v36 = vrot.slane %v8236_v53, 5 }
 0x407   :  { %14766 = vst [vmem:[#allocation67_spill] sm:$0xff] %v14397_v39  ;;  %11985 = vmatprep.mubr.bf16.mxu1 %v8138_v40  ;;  %v8179_v40 = vrot.slane %v8177_v50, 5  ;;  %v8184_v39 = vrot.slane %v8182_v30, 4  ;;  %v8211_v50 = vshll.u32 %v14175_v21, 16  ;;  %v8216_v30 = vshrl.u32 %v8063_v42, 16 }
 0x408   :  { %12054 = vmatpush3.bf16.msra.mxu0 %v12777_v14  ;;  %v8210_v21 = vrot.slane %v8208_v16, 4  ;;  %v8230_v42 = vrot.slane %v8228_v38, 5  ;;  %v8244_v38 = vrot.slane %v8242_v47, 4  ;;  %v8296_v47 = vshll.u32 %v14211_v33, 16 }
 0x409   :  { %v8180_v10 = vor.u32 %v8179_v40, %v8176_v57  ;;  %v8188_v44 = vor.u32 %v8187_v32, %v8184_v39  ;;  %v8197_v32 = vor.u32 %v8196_v15, %v8193_v5  ;;  %v8205_v39 = vor.u32 %v8204_v46, %v8201_v24  ;;  %12055 = vmatprep.subr.bf16.mxu0 %v12778_v1  ;;  %v8066_v46 = vld [vmem:[#allocation2 + $0xc8] sm:$0x1f] }
 0x40a   :  { %v8213_v48 = vrot.slane %v8211_v50, 5  ;;  %v8218_v57 = vrot.slane %v8216_v30, 4  ;;  %v8221_v40 = vrot.slane %v8219_v55, 5  ;;  %v8245_v5 = vshll.u32 %v14191_v45, 16 }
 0x40b   :  { %v8189_v58 = vsel %vm2634_vm2, %v8180_v10, %v8188_v44  ;;  %v8206_v14 = vsel %vm2634_vm2, %v8197_v32, %v8205_v39  ;;  %v8259_v30 = vshrl.u32 %v14193_v29, 16  ;;  %v8267_v55 = vshrl.u32 %v8066_v46, 16 }
 0x40c   :  { %12056 = vmatpush3.bf16.msra.mxu0 %v12778_v1  ;;  %v8214_v10 = vor.u32 %v8213_v48, %v8210_v21  ;;  %v8222_v44 = vor.u32 %v8221_v40, %v8218_v57  ;;  %v8262_v1 = vshll.u32 %v14193_v29, 16  ;;  %v8068_v57 = vld [vmem:[#allocation2 + $0xe8] sm:$0x1f] }
 0x40d   :  { %12057 = vmatprep.subr.bf16.mxu0 %v12779_v60  ;;  %v8261_v21 = vrot.slane %v8259_v30, 4 }
 0x40e   :  { %11986 = vmatmul.mubr.bf16.gmra.mrb[36].mxu1 %v8155_v34  ;;  %v14405_v51 = vpop.f32.mrb[92].mxu0  ;;  %v8065_v34 = vld [vmem:[#allocation2 + $0xb8] sm:$0x1f]  ;;  %v8223_v45 = vsel %vm2634_vm2, %v8214_v10, %v8222_v44  ;;  %v8264_v48 = vrot.slane %v8262_v1, 5 }
 0x40f   :  { %11989 = vmatprep.mubr.bf16.mxu1 %v8172_v9  ;;  %v14407_v2 = vpop.f32.mrb[93].mxu0  ;;  %v8227_v9 = vrot.slane %v8225_v28, 4  ;;  %v8250_v15 = vshrl.u32 %v8065_v34, 16  ;;  %v8253_v24 = vshll.u32 %v8065_v34, 16  ;;  %v8270_v28 = vshll.u32 %v8066_v46, 16 }
 0x410   :  { %v14411_v54 = vpop.f32.mrb[94].mxu0  ;;  %12058 = vmatpush3.bf16.msra.mxu0 %v12779_v60  ;;  %v8276_v34 = vshrl.u32 %v14209_v18, 16 }
 0x411   :  { %14767 = vst [vmem:[#allocation68_spill] sm:$0xff] %v14411_v54  ;;  %v14415_v12 = vpop.f32.mrb[95].mxu0  ;;  %v8235_v54 = vrot.slane %v8233_v49, 4  ;;  %v8231_v16 = vor.u32 %v8230_v42, %v8227_v9  ;;  %v8247_v49 = vrot.slane %v8245_v5, 5  ;;  %v8252_v53 = vrot.slane %v8250_v15, 4 }
 0x412   :  { %v8255_v32 = vrot.slane %v8253_v24, 5  ;;  %v8272_v60 = vrot.slane %v8270_v28, 5  ;;  %v8279_v9 = vshll.u32 %v14209_v18, 16  ;;  %v8301_v5 = vshrl.u32 %v8068_v57, 16 }
 0x413   :  { %v8239_v50 = vor.u32 %v8238_v36, %v8235_v54  ;;  %v8269_v54 = vrot.slane %v8267_v55, 4  ;;  %v8248_v40 = vor.u32 %v8247_v49, %v8244_v38  ;;  %v8304_v15 = vshll.u32 %v8068_v57, 16  ;;  %v8069_v38 = vld [vmem:[#allocation2 + $0xf8] sm:$0x1f] }
 0x414   :  { %v8256_v29 = vor.u32 %v8255_v32, %v8252_v53  ;;  %v8265_v24 = vor.u32 %v8264_v48, %v8261_v21  ;;  %v8278_v44 = vrot.slane %v8276_v34, 4  ;;  %v8298_v55 = vrot.slane %v8296_v47, 5 }
 0x415   :  { %v8240_v39 = vsel %vm2634_vm2, %v8231_v16, %v8239_v50  ;;  %v8273_v46 = vor.u32 %v8272_v60, %v8269_v54  ;;  %v8281_v16 = vrot.slane %v8279_v9, 5  ;;  %v8303_v28 = vrot.slane %v8301_v5, 4 }
 0x416   :  { %11990 = vmatmul.mubr.bf16.gmra.mrb[40].mxu1 %v8189_v58  ;;  %v8067_v58 = vld [vmem:[#allocation2 + $0xd8] sm:$0x1f]  ;;  %v8257_v10 = vsel %vm2634_vm2, %v8248_v40, %v8256_v29  ;;  %v8306_v18 = vrot.slane %v8304_v15, 5  ;;  %v8310_v53 = vshrl.u32 %v14223_v6, 16  ;;  %v8313_v32 = vshll.u32 %v14223_v6, 16 }
 0x417   :  { %11993 = vmatprep.mubr.bf16.mxu1 %v8206_v14  ;;  %v8284_v42 = vshrl.u32 %v8067_v58, 16  ;;  %v8287_v36 = vshll.u32 %v8067_v58, 16  ;;  %v8293_v14 = vshrl.u32 %v14211_v33, 16  ;;  %v8274_v49 = vsel %vm2634_vm2, %v8265_v24, %v8273_v46  ;;  %v8070_v33 = vld [vmem:[#allocation2 + $0x108] sm:$0x1f] }
 0x418   :  { %v8282_v58 = vor.u32 %v8281_v16, %v8278_v44  ;;  %v8307_v54 = vor.u32 %v8306_v18, %v8303_v28  ;;  %v8327_v60 = vshrl.u32 %v14227_v59, 16  ;;  %v8330_v57 = vshll.u32 %v14227_v59, 16 }
 0x419   :  { %v8286_v50 = vrot.slane %v8284_v42, 4  ;;  %v8289_v30 = vrot.slane %v8287_v36, 5  ;;  %v8295_v1 = vrot.slane %v8293_v14, 4  ;;  %v8335_v40 = vshrl.u32 %v8070_v33, 16  ;;  %v8071_v14 = vld [vmem:[#allocation2 + $0x118] sm:$0x1f] }
 0x41a   :  { %v8338_v29 = vshll.u32 %v8070_v33, 16  ;;  %v8312_v34 = vrot.slane %v8310_v53, 4  ;;  %v8315_v9 = vrot.slane %v8313_v32, 5  ;;  %v8329_v5 = vrot.slane %v8327_v60, 4 }
 0x41b   :  { %v8290_v21 = vor.u32 %v8289_v30, %v8286_v50  ;;  %v8299_v48 = vor.u32 %v8298_v55, %v8295_v1  ;;  %v8332_v15 = vrot.slane %v8330_v57, 5  ;;  %v8337_v24 = vrot.slane %v8335_v40, 4 }
 0x41c   :  { %v8340_v46 = vrot.slane %v8338_v29, 5  ;;  %v8344_v59 = vshrl.u32 %v14235_v35, 16  ;;  %v8347_v44 = vshll.u32 %v14235_v35, 16  ;;  %v8352_v16 = vshrl.u32 %v8071_v14, 16  ;;  %v8073_v35 = vld [vmem:[#allocation2 + $0x158] sm:$0x1f] }
 0x41d   :  { %v8291_v47 = vsel %vm2634_vm2, %v8282_v58, %v8290_v21  ;;  %v8308_v6 = vsel %vm2634_vm2, %v8299_v48, %v8307_v54  ;;  %v8355_v50 = vshll.u32 %v8071_v14, 16  ;;  %v8316_v30 = vor.u32 %v8315_v9, %v8312_v34 }
 0x41e   :  { %11994 = vmatmul.mubr.bf16.gmra.mrb[44].mxu1 %v8223_v45  ;;  %v8318_v45 = vshrl.u32 %v8069_v38, 16  ;;  %v8361_v55 = vshrl.u32 %v14241_v11, 16  ;;  %v8364_v28 = vshll.u32 %v14241_v11, 16  ;;  %v8341_v33 = vor.u32 %v8340_v46, %v8337_v24 }
 0x41f   :  { %11997 = vmatprep.mubr.bf16.mxu1 %v8240_v39  ;;  %v8321_v39 = vshll.u32 %v8069_v38, 16  ;;  %v8346_v53 = vrot.slane %v8344_v59, 4  ;;  %v8349_v32 = vrot.slane %v8347_v44, 5  ;;  %v8378_v57 = vshrl.u32 %v14255_v43, 16 }
 0x420   :  { %v8320_v42 = vrot.slane %v8318_v45, 4  ;;  %v8354_v45 = vrot.slane %v8352_v16, 4  ;;  %v8363_v21 = vrot.slane %v8361_v55, 4  ;;  %v8366_v48 = vrot.slane %v8364_v28, 5 }
 0x421   :  { %v8323_v36 = vrot.slane %v8321_v39, 5  ;;  %v8357_v39 = vrot.slane %v8355_v50, 5  ;;  %v8381_v40 = vshll.u32 %v14255_v43, 16  ;;  %v8350_v29 = vor.u32 %v8349_v32, %v8346_v53  ;;  %v8075_v50 = vld [vmem:[#allocation2 + $0x178] sm:$0x1f] }
 0x422   :  { %v8386_v9 = vshrl.u32 %v8073_v35, 16  ;;  %v8367_v14 = vor.u32 %v8366_v48, %v8363_v21  ;;  %v8420_v53 = vshrl.u32 %v8075_v50, 16  ;;  %v8423_v32 = vshll.u32 %v8075_v50, 16 }
 0x423   :  { %v8324_v1 = vor.u32 %v8323_v36, %v8320_v42  ;;  %v8358_v34 = vor.u32 %v8357_v39, %v8354_v45  ;;  %v8389_v42 = vshll.u32 %v8073_v35, 16  ;;  %v8074_v36 = vld [vmem:[#allocation2 + $0x168] sm:$0x1f]  ;;  %v8383_v59 = vrot.slane %v8381_v40, 5 }
 0x424   :  { %v8403_v24 = vshrl.u32 %v8074_v36, 16  ;;  %v8406_v46 = vshll.u32 %v8074_v36, 16  ;;  %v8388_v44 = vrot.slane %v8386_v9, 4  ;;  %v8429_v45 = vshrl.u32 %v14275_v22, 16 }
 0x425   :  { %v8325_v58 = vsel %vm2634_vm2, %v8316_v30, %v8324_v1  ;;  %v8391_v43 = vrot.slane %v8389_v42, 5  ;;  %v8432_v39 = vshll.u32 %v14275_v22, 16  ;;  %v8425_v40 = vrot.slane %v8423_v32, 5 }
 0x426   :  { %11998 = vmatmul.mubr.bf16.gmra.mrb[48].mxu1 %v8257_v10  ;;  %v8072_v10 = vld [vmem:[#allocation2 + $0x148] sm:$0x1f]  ;;  %v8405_v55 = vrot.slane %v8403_v24, 4  ;;  %v8408_v28 = vrot.slane %v8406_v46, 5  ;;  %v8446_v22 = vshrl.u32 %v14285_v31, 16 }
 0x427   :  { %12001 = vmatprep.mubr.bf16.mxu1 %v8274_v49  ;;  %v8369_v18 = vshrl.u32 %v8072_v10, 16  ;;  %v8372_v38 = vshll.u32 %v8072_v10, 16  ;;  %v8333_v49 = vor.u32 %v8332_v15, %v8329_v5  ;;  %v8395_v5 = vshrl.u32 %v14257_v0, 16 }
 0x428   :  { %v8398_v15 = vshll.u32 %v14257_v0, 16  ;;  %v8359_v10 = vsel %vm2634_vm2, %v8350_v29, %v8358_v34  ;;  %v8412_v0 = vshrl.u32 %v14273_v62, 16  ;;  %v8409_v48 = vor.u32 %v8408_v28, %v8405_v55  ;;  %v8077_v29 = vld [vmem:[#allocation2 + $0x198] sm:$0x1f] }
 0x429   :  { %v8371_v54 = vrot.slane %v8369_v18, 4  ;;  %v8374_v60 = vrot.slane %v8372_v38, 5  ;;  %v8342_v11 = vsel %vm2634_vm2, %v8333_v49, %v8341_v33  ;;  %v8397_v30 = vrot.slane %v8395_v5, 4  ;;  %v8076_v18 = vld [vmem:[#allocation2 + $0x188] sm:$0x1f] }
 0x42a   :  { %v8400_v1 = vrot.slane %v8398_v15, 5  ;;  %v8392_v49 = vor.u32 %v8391_v43, %v8388_v44  ;;  %v8415_v33 = vshll.u32 %v14273_v62, 16  ;;  %v8440_v21 = vshll.u32 %v8076_v18, 16  ;;  %v8078_v5 = vld [vmem:[#allocation2 + $0x1a8] sm:$0x1f] }
 0x42b   :  { %v8431_v34 = vrot.slane %v8429_v45, 4  ;;  %v8434_v9 = vrot.slane %v8432_v39, 5  ;;  %v8466_v44 = vshll.u32 %v14289_v23, 16  ;;  %v8471_v43 = vshrl.u32 %v8078_v5, 16 }
 0x42c   :  { %v8401_v35 = vor.u32 %v8400_v1, %v8397_v30  ;;  %v8442_v42 = vrot.slane %v8440_v21, 5  ;;  %v8448_v50 = vrot.slane %v8446_v22, 4  ;;  %v8480_v45 = vshrl.u32 %v14301_v20, 16 }
 0x42d   :  { %v8435_v46 = vor.u32 %v8434_v9, %v8431_v34  ;;  %v8483_v39 = vshll.u32 %v14301_v20, 16 }
 0x42e   :  { %12002 = vmatmul.mubr.bf16.gmra.mrb[52].mxu1 %v8291_v47  ;;  %v8375_v47 = vor.u32 %v8374_v60, %v8371_v54  ;;  %v8414_v60 = vrot.slane %v8412_v0, 4  ;;  %v8410_v36 = vsel %vm2634_vm2, %v8401_v35, %v8409_v48  ;;  %v8473_v0 = vrot.slane %v8471_v43, 4 }
 0x42f   :  { %12005 = vmatprep.mubr.bf16.mxu1 %v8308_v6  ;;  %v8380_v6 = vrot.slane %v8378_v57, 4  ;;  %v8417_v57 = vrot.slane %v8415_v33, 5  ;;  %v8497_v35 = vshrl.u32 %v14303_v61, 16  ;;  %v8500_v48 = vshll.u32 %v14303_v61, 16 }
 0x430   :  { %v8376_v16 = vsel %vm2634_vm2, %v8367_v14, %v8375_v47  ;;  %v8449_v14 = vshll.u32 %v14285_v31, 16  ;;  %v8454_v47 = vshrl.u32 %v8077_v29, 16  ;;  %v8485_v34 = vrot.slane %v8483_v39, 5 }
 0x431   :  { %v8384_v38 = vor.u32 %v8383_v59, %v8380_v6  ;;  %v8457_v6 = vshll.u32 %v8077_v29, 16  ;;  %v8418_v15 = vor.u32 %v8417_v57, %v8414_v60  ;;  %v8463_v59 = vshrl.u32 %v14289_v23, 16 }
 0x432   :  { %v8451_v30 = vrot.slane %v8449_v14, 5  ;;  %v8456_v1 = vrot.slane %v8454_v47, 4  ;;  %v8482_v29 = vrot.slane %v8480_v45, 4  ;;  %v8502_v22 = vrot.slane %v8500_v48, 5 }
 0x433   :  { %v8393_v54 = vsel %vm2634_vm2, %v8384_v38, %v8392_v49  ;;  %v8459_v55 = vrot.slane %v8457_v6, 5  ;;  %v8465_v38 = vrot.slane %v8463_v59, 4  ;;  %v8468_v49 = vrot.slane %v8466_v44, 5 }
 0x434   :  { %v8452_v32 = vor.u32 %v8451_v30, %v8448_v50  ;;  %v8514_v61 = vshrl.u32 %v14319_v37, 16  ;;  %v8517_v6 = vshll.u32 %v14319_v37, 16  ;;  %v8531_v43 = vshrl.u32 %v14321_v7, 16 }
 0x435   :  { %v8460_v23 = vor.u32 %v8459_v55, %v8456_v1  ;;  %v8469_v57 = vor.u32 %v8468_v49, %v8465_v38  ;;  %v8083_v38 = vld [vmem:[#allocation2 + $0x1f8] sm:$0x1f]  ;;  %v8548_v45 = vshrl.u32 %v14335_v25, 16  ;;  %v8551_v39 = vshll.u32 %v14335_v25, 16 }
 0x436   :  { %12006 = vmatmul.mubr.bf16.gmra.mrb[56].mxu1 %v8325_v58  ;;  %v8437_v58 = vshrl.u32 %v8076_v18, 16  ;;  %v8079_v18 = vld [vmem:[#allocation2 + $0x1b8] sm:$0x1f]  ;;  %v8516_v1 = vrot.slane %v8514_v61, 4  ;;  %v8519_v55 = vrot.slane %v8517_v6, 5  ;;  %v8533_v49 = vrot.slane %v8531_v43, 4 }
 0x437   :  { %12009 = vmatprep.mubr.bf16.mxu1 %v8342_v11  ;;  %v8422_v11 = vrot.slane %v8420_v53, 4  ;;  %v8080_v53 = vld [vmem:[#allocation2 + $0x1c8] sm:$0x1f]  ;;  %v8491_v21 = vshll.u32 %v8079_v18, 16  ;;  %v8568_v48 = vshll.u32 %v14339_v13, 16  ;;  %v8602_v43 = vshll.u32 %v14353_v3, 16 }
 0x438   :  { %v8439_v62 = vrot.slane %v8437_v58, 4  ;;  %v8488_v58 = vshrl.u32 %v8079_v18, 16  ;;  %v8508_v60 = vshll.u32 %v8080_v53, 16 }
 0x439   :  { %v8426_v24 = vor.u32 %v8425_v40, %v8422_v11  ;;  %v8461_v40 = vsel %vm2634_vm2, %v8452_v32, %v8460_v23  ;;  %v8084_v32 = vld [vmem:[#allocation2 + $0x208] sm:$0x1f]  ;;  %v8520_v23 = vor.u32 %v8519_v55, %v8516_v1  ;;  %v8570_v25 = vrot.slane %v8568_v48, 5  ;;  %v8087_v55 = vld [vmem:[#allocation2 + $0x238] sm:$0x1f] }
 0x43a   :  { %v8490_v9 = vrot.slane %v8488_v58, 4  ;;  %v8510_v14 = vrot.slane %v8508_v60, 5  ;;  %v8556_v58 = vshrl.u32 %v8083_v38, 16  ;;  %v8576_v60 = vshll.u32 %v8084_v32, 16 }
 0x43b   :  { %v8427_v28 = vsel %vm2634_vm2, %v8418_v15, %v8426_v24  ;;  %v8082_v24 = vld [vmem:[#allocation2 + $0x1e8] sm:$0x1f] }
 0x43c   :  { %v8539_v50 = vshrl.u32 %v8082_v24, 16  ;;  %v8542_v30 = vshll.u32 %v8082_v24, 16 }
 0x43e   :  { %12010 = vmatmul.mubr.bf16.gmra.mrb[60].mxu1 %v8359_v10  ;;  %v8443_v10 = vor.u32 %v8442_v42, %v8439_v62  ;;  %v8493_v62 = vrot.slane %v8491_v21, 5  ;;  %v8081_v42 = vld [vmem:[#allocation2 + $0x1d8] sm:$0x1f]  ;;  %v8559_v21 = vshll.u32 %v8083_v38, 16  ;;  %v8604_v38 = vrot.slane %v8602_v43, 5 }
 0x43f   :  { %12013 = vmatprep.mubr.bf16.mxu1 %v8376_v16  ;;  %v8474_v16 = vshll.u32 %v8078_v5, 16  ;;  %v8522_v5 = vshrl.u32 %v8081_v42, 16  ;;  %v8525_v15 = vshll.u32 %v8081_v42, 16 }
 0x440   :  { %v8444_v31 = vsel %vm2634_vm2, %v8435_v46, %v8443_v10  ;;  %v8486_v46 = vor.u32 %v8485_v34, %v8482_v29  ;;  %v8494_v10 = vor.u32 %v8493_v62, %v8490_v9  ;;  %v8550_v34 = vrot.slane %v8548_v45, 4 }
 0x441   :  { %v8476_v33 = vrot.slane %v8474_v16, 5  ;;  %v8534_v16 = vshll.u32 %v14321_v7, 16  ;;  %v8553_v9 = vrot.slane %v8551_v39, 5  ;;  %v8558_v62 = vrot.slane %v8556_v58, 4 }
 0x442   :  { %v8495_v18 = vsel %vm2634_vm2, %v8486_v46, %v8494_v10  ;;  %v8561_v42 = vrot.slane %v8559_v21, 5 }
 0x443   :  { %v8477_v11 = vor.u32 %v8476_v33, %v8473_v0  ;;  %v8536_v0 = vrot.slane %v8534_v16, 5  ;;  %v8541_v33 = vrot.slane %v8539_v50, 4  ;;  %v8554_v61 = vor.u32 %v8553_v9, %v8550_v34 }
 0x444   :  { %v8562_v6 = vor.u32 %v8561_v42, %v8558_v62 }
 0x445   :  { %v8478_v47 = vsel %vm2634_vm2, %v8469_v57, %v8477_v11  ;;  %v8537_v57 = vor.u32 %v8536_v0, %v8533_v49 }
 0x446   :  { %12014 = vmatmul.mubr.bf16.gmra.mrb[0].mxu1 %v8393_v54  ;;  %v8505_v54 = vshrl.u32 %v8080_v53, 16  ;;  %v8544_v53 = vrot.slane %v8542_v30, 5  ;;  %v8563_v30 = vsel %vm2634_vm2, %v8554_v61, %v8562_v6 }
 0x447   :  { %12017 = vmatprep.mubr.bf16.mxu1 %v8410_v36  ;;  %v8499_v36 = vrot.slane %v8497_v35, 4  ;;  %v8565_v35 = vshrl.u32 %v14339_v13, 16 }
 0x448   :  { %v8507_v20 = vrot.slane %v8505_v54, 4  ;;  %v8573_v54 = vshrl.u32 %v8084_v32, 16  ;;  %v8545_v11 = vor.u32 %v8544_v53, %v8541_v33  ;;  %v8616_v33 = vshrl.u32 %v14361_v56, 16 }
 0x449   :  { %v8503_v59 = vor.u32 %v8502_v22, %v8499_v36  ;;  %v8567_v36 = vrot.slane %v8565_v35, 4  ;;  %v8624_v53 = vshrl.u32 %v8087_v55, 16  ;;  %v8627_v32 = vshll.u32 %v8087_v55, 16 }
 0x44a   :  { %v8511_v44 = vor.u32 %v8510_v14, %v8507_v20  ;;  %v8575_v22 = vrot.slane %v8573_v54, 4  ;;  %v8578_v20 = vrot.slane %v8576_v60, 5  ;;  %v8546_v13 = vsel %vm2634_vm2, %v8537_v57, %v8545_v11  ;;  %v8085_v14 = vld [vmem:[#allocation2 + $0x218] sm:$0x1f] }
 0x44b   :  { %v8571_v24 = vor.u32 %v8570_v25, %v8567_v36  ;;  %v8590_v10 = vshrl.u32 %v8085_v14, 16  ;;  %v8618_v58 = vrot.slane %v8616_v33, 4  ;;  %v8626_v35 = vrot.slane %v8624_v53, 4  ;;  %v14771_v33 = vld [vmem:[#allocation51_spill] sm:$0xff] }
 0x44c   :  { %v8512_v37 = vsel %vm2634_vm2, %v8503_v59, %v8511_v44  ;;  %v8579_v46 = vor.u32 %v8578_v20, %v8575_v22  ;;  %v8593_v59 = vshll.u32 %v8085_v14, 16  ;;  %v8599_v44 = vshrl.u32 %v14353_v3, 16 }
 0x44d   :  { %v8619_v3 = vshll.u32 %v14361_v56, 16  ;;  %v8629_v48 = vrot.slane %v8627_v32, 5 }
 0x44e   :  { %12018 = vmatmul.mubr.bf16.gmra.mrb[4].mxu1 %v8427_v28  ;;  %v8524_v28 = vrot.slane %v8522_v5, 4  ;;  %v8582_v5 = vshrl.u32 %v14346_v41, 16 }
 0x44f   :  { %12021 = vmatprep.mubr.bf16.mxu1 %v8444_v31  ;;  %v8527_v31 = vrot.slane %v8525_v15, 5  ;;  %v8585_v15 = vshll.u32 %v14346_v41, 16  ;;  %v8601_v41 = vrot.slane %v8599_v44, 4  ;;  %v8621_v21 = vrot.slane %v8619_v3, 5 }
 0x450   :  { %v8584_v1 = vrot.slane %v8582_v5, 4  ;;  %v8630_v11 = vor.u32 %v8629_v48, %v8626_v35 }
 0x451   :  { %v8528_v7 = vor.u32 %v8527_v31, %v8524_v28  ;;  %v8580_v28 = vsel %vm2634_vm2, %v8571_v24, %v8579_v46  ;;  %v8587_v31 = vrot.slane %v8585_v15, 5  ;;  %v8605_v45 = vor.u32 %v8604_v38, %v8601_v41  ;;  %v14770_v41 = vld [vmem:[#allocation50_spill] sm:$0xff] }
 0x452   :  { %v8622_v57 = vor.u32 %v8621_v21, %v8618_v58  ;;  %v14773_v21 = vld [vmem:[#allocation53_spill] sm:$0xff] }
 0x453   :  { %v8529_v29 = vsel %vm2634_vm2, %v8520_v23, %v8528_v7  ;;  %v8588_v23 = vor.u32 %v8587_v31, %v8584_v1 }
 0x454   :  { %v8631_v56 = vsel %vm2634_vm2, %v8622_v57, %v8630_v11 }
 0x456   :  { %12022 = vmatmul.mubr.bf16.gmra.mrb[8].mxu1 %v8461_v40  ;;  %v12780_v40 = vld [vmem:[#allocation9 + $0x38] sm:$0xff]  }
 0x457   :  { %12025 = vmatprep.mubr.bf16.mxu1 %v8478_v47  ;;  %12059 = vmatprep.subr.bf16.mxu0 %v12780_v40  ;;  %v8086_v47 = vld [vmem:[#allocation2 + $0x228] sm:$0x1f] }
 0x458   :  { %12060 = vmatpush3.bf16.msra.mxu0 %v12780_v40  ;;  %v8607_v16 = vshrl.u32 %v8086_v47, 16  ;;  %v8610_v50 = vshll.u32 %v8086_v47, 16 }
 0x45a   :  { %v8609_v49 = vrot.slane %v8607_v16, 4  ;;  %v8612_v0 = vrot.slane %v8610_v50, 5 }
 0x45c   :  { %v8613_v39 = vor.u32 %v8612_v0, %v8609_v49 }
 0x45e   :  { %12026 = vmatmul.mubr.bf16.gmra.mrb[12].mxu1 %v8495_v18  ;;  %v8592_v18 = vrot.slane %v8590_v10, 4  ;;  %v8614_v60 = vsel %vm2634_vm2, %v8605_v45, %v8613_v39 }
 0x45f   :  { %12029 = vmatprep.mubr.bf16.mxu1 %v8512_v37  ;;  %v8595_v37 = vrot.slane %v8593_v59, 5 }
 0x461   :  { %v8596_v7 = vor.u32 %v8595_v37, %v8592_v18 }
 0x463   :  { %v8597_v54 = vsel %vm2634_vm2, %v8588_v23, %v8596_v7  ;;  %v14772_v7 = vld [vmem:[#allocation52_spill] sm:$0xff] }
 0x466   :  { %12030 = vmatmul.mubr.bf16.gmra.mrb[16].mxu1 %v8529_v29  ;;  %v14493_v29 = vld [vmem:[%s14711_s4] ss:$0 sm:$0xff] }
 0x467   :  { %12033 = vmatprep.mubr.bf16.mxu1 %v8546_v13 }
 0x46e   :  { %12034 = vmatmul.mubr.bf16.gmra.mrb[20].mxu1 %v8563_v30  ;;  %v14769_v30 = vld [vmem:[#allocation49_spill] sm:$0xff] }
 0x46f   :  { %12037 = vmatprep.mubr.bf16.mxu1 %v8580_v28 }
 0x476   :  { %12038 = vmatmul.mubr.bf16.gmra.mrb[24].mxu1 %v8597_v54 }
 0x477   :  { %12041 = vmatprep.mubr.bf16.mxu1 %v8614_v60 }
 0x47e   :  { %12042 = vmatmul.mubr.bf16.gmra.mrb[28].mxu1 %v8631_v56 }
 0x4d9   :  { %v11983_v40 = vpop.f32.mrb[32].mxu1 }
 0x4da   :  { %v12141_v34 = vadd.f32 %v11983_v40, %v14263_v19  ;;  %v8763_v9 = vpop.f32.mrb[33].mxu1 }
 0x4db   :  { %v12142_v62 = vadd.f32 %v8763_v9, %v14265_v63  ;;  %v11984_v42 = vpop.f32.mrb[34].mxu1 }
 0x4dc   :  { %v9091_v36 = vadd.f32 %v12141_v34, %v14493_v29  ;;  %v12143_v25 = vadd.f32 %v11984_v42, %v14267_v17  ;;  %v8766_v22 = vpop.f32.mrb[35].mxu1  ;;  %v14774_v34 = vld [vmem:[#allocation54_spill] sm:$0xff] }
 0x4dd   :  { %v9089_v20 = vadd.f32 %v12142_v62, %v14493_v29  ;;  %v12144_v13 = vadd.f32 %v8766_v22, %v14270_v52  ;;  %v14768_v52 = vld [vmem:[#allocation48_spill] sm:$0xff] }
 0x4de   :  { %v9092_v14 = vadd.f32 %v12143_v25, %v14493_v29  ;;  %v9155_v61 = vmax.f32 %v9091_v36, 0.0  ;;  %v14775_v36 = vld [vmem:[#allocation55_spill] sm:$0xff] }
 0x4df   :  { %v9090_v47 = vadd.f32 %v12144_v13, %v14493_v29  ;;  %v9153_v19 = vmax.f32 %v9089_v20, 0.0 }
 0x4e0   :  { %v9156_v6 = vmax.f32 %v9092_v14, 0.0  ;;  %v14776_v14 = vld [vmem:[#allocation56_spill] sm:$0xff] }
 0x4e1   :  { %v9154_v5 = vmax.f32 %v9090_v47, 0.0  ;;  %v11987_v15 = vpop.f32.mrb[36].mxu1 }
 0x4e2   :  { %v9218_v63 = vpack.c.bf16 %v9156_v6, %v9155_v61  ;;  %v12145_v24 = vadd.f32 %v11987_v15, %v14282_v27  ;;  %v8779_v46 = vpop.f32.mrb[37].mxu1 }
 0x4e3   :  { %v12146_v17 = vadd.f32 %v8779_v46, %v14287_v4  ;;  %v11988_v10 = vpop.f32.mrb[38].mxu1  ;;  %v9217_v59 = vpack.c.bf16 %v9154_v5, %v9153_v19  ;;  %v14777_v19 = vld [vmem:[#allocation57_spill] sm:$0xff] }
 0x4e4   :  { %v9095_v44 = vadd.f32 %v12145_v24, %v14493_v29  ;;  %v12147_v43 = vadd.f32 %v11988_v10, %v14768_v52  ;;  %v8782_v16 = vpop.f32.mrb[39].mxu1 }
 0x4e5   :  { %v9093_v50 = vadd.f32 %v12146_v17, %v14493_v29  ;;  %v12148_v1 = vadd.f32 %v8782_v16, %v14769_v30  ;;  %12061 = vmatprep.mubr.bf16.mxu0 %v9217_v59 }
 0x4e6   :  { %v9096_v55 = vadd.f32 %v12147_v43, %v14493_v29  ;;  %12062 = vmatmul.mubr.bf16.vlgmr.msra.gmra.mrb[128].mxu0 %v9218_v63  ;;  %v9159_v28 = vmax.f32 %v9095_v44, 0.0  ;;  %v14778_v44 = vld [vmem:[#allocation58_spill] sm:$0xff] }
 0x4e7   :  { %v9094_v27 = vadd.f32 %v12148_v1, %v14493_v29  ;;  %v9157_v4 = vmax.f32 %v9093_v50, 0.0  ;;  %v14779_v50 = vld [vmem:[#allocation59_spill] sm:$0xff] }
 0x4e8   :  { %v9160_v31 = vmax.f32 %v9096_v55, 0.0 }
 0x4e9   :  { %v9158_v18 = vmax.f32 %v9094_v27, 0.0  ;;  %v11991_v37 = vpop.f32.mrb[40].mxu1 }
 0x4ea   :  { %v12149_v38 = vadd.f32 %v11991_v37, %v14770_v41  ;;  %v8795_v49 = vpop.f32.mrb[41].mxu1  ;;  %v9220_v0 = vpack.c.bf16 %v9160_v31, %v9159_v28  ;;  %v14780_v28 = vld [vmem:[#allocation60_spill] sm:$0xff]  ;;  %v14781_v37 = vld [vmem:[#allocation61_spill] sm:$0xff] }
 0x4eb   :  { %v12150_v3 = vadd.f32 %v8795_v49, %v14771_v33  ;;  %v11992_v53 = vpop.f32.mrb[42].mxu1  ;;  %v9219_v32 = vpack.c.bf16 %v9158_v18, %v9157_v4 }
 0x4ec   :  { %v9099_v23 = vadd.f32 %v12149_v38, %v14493_v29  ;;  %v12151_v45 = vadd.f32 %v11992_v53, %v14772_v7  ;;  %v8798_v39 = vpop.f32.mrb[43].mxu1 }
 0x4ed   :  { %v9097_v58 = vadd.f32 %v12150_v3, %v14493_v29  ;;  %v12152_v35 = vadd.f32 %v8798_v39, %v14773_v21  ;;  %12065 = vmatprep.mubr.bf16.mxu0 %v9219_v32 }
 0x4ee   :  { %v9100_v48 = vadd.f32 %v12151_v45, %v14493_v29  ;;  %12066 = vmatmul.mubr.bf16.gmra.mrb[132].mxu0 %v9220_v0  ;;  %v9163_v60 = vmax.f32 %v9099_v23, 0.0  ;;  %v14782_v23 = vld [vmem:[#allocation62_spill] sm:$0xff] }
 0x4ef   :  { %v9098_v54 = vadd.f32 %v12152_v35, %v14493_v29  ;;  %v9161_v11 = vmax.f32 %v9097_v58, 0.0  ;;  %v14783_v58 = vld [vmem:[#allocation63_spill] sm:$0xff] }
 0x4f0   :  { %v9164_v57 = vmax.f32 %v9100_v48, 0.0 }
 0x4f1   :  { %v9162_v56 = vmax.f32 %v9098_v54, 0.0  ;;  %v11995_v40 = vpop.f32.mrb[44].mxu1 }
 0x4f2   :  { %v12153_v9 = vadd.f32 %v11995_v40, %v14774_v34  ;;  %v8811_v62 = vpop.f32.mrb[45].mxu1  ;;  %v9222_v42 = vpack.c.bf16 %v9164_v57, %v9163_v60  ;;  %v14784_v60 = vld [vmem:[#allocation64_spill] sm:$0xff]  ;;  %v14785_v40 = vld [vmem:[#allocation65_spill] sm:$0xff] }
 0x4f3   :  { %v12154_v25 = vadd.f32 %v8811_v62, %v14775_v36  ;;  %v11996_v22 = vpop.f32.mrb[46].mxu1  ;;  %v9221_v20 = vpack.c.bf16 %v9162_v56, %v9161_v11 }
 0x4f4   :  { %v9103_v13 = vadd.f32 %v12153_v9, %v14493_v29  ;;  %v12155_v47 = vadd.f32 %v11996_v22, %v14776_v14  ;;  %v8814_v61 = vpop.f32.mrb[47].mxu1 }
 0x4f5   :  { %v9101_v6 = vadd.f32 %v12154_v25, %v14493_v29  ;;  %v12156_v5 = vadd.f32 %v8814_v61, %v14777_v19  ;;  %12069 = vmatprep.mubr.bf16.mxu0 %v9221_v20 }
 0x4f6   :  { %v9104_v15 = vadd.f32 %v12155_v47, %v14493_v29  ;;  %12070 = vmatmul.mubr.bf16.gmra.mrb[136].mxu0 %v9222_v42  ;;  %v9167_v24 = vmax.f32 %v9103_v13, 0.0 }
 0x4f7   :  { %v9102_v63 = vadd.f32 %v12156_v5, %v14493_v29  ;;  %v9165_v17 = vmax.f32 %v9101_v6, 0.0 }
 0x4f8   :  { %v9168_v46 = vmax.f32 %v9104_v15, 0.0  ;;  %v14786_v15 = vld [vmem:[#allocation66_spill] sm:$0xff] }
 0x4f9   :  { %v9166_v10 = vmax.f32 %v9102_v63, 0.0  ;;  %v11999_v59 = vpop.f32.mrb[48].mxu1 }
 0x4fa   :  { %v12157_v52 = vadd.f32 %v11999_v59, %v14778_v44  ;;  %v8827_v43 = vpop.f32.mrb[49].mxu1  ;;  %v9224_v16 = vpack.c.bf16 %v9168_v46, %v9167_v24 }
 0x4fb   :  { %v12158_v30 = vadd.f32 %v8827_v43, %v14779_v50  ;;  %v12000_v1 = vpop.f32.mrb[50].mxu1  ;;  %v9223_v55 = vpack.c.bf16 %v9166_v10, %v9165_v17  ;;  %v14787_v17 = vld [vmem:[#allocation67_spill] sm:$0xff] }
 0x4fc   :  { %v9107_v27 = vadd.f32 %v12157_v52, %v14493_v29  ;;  %v12159_v31 = vadd.f32 %v12000_v1, %v14780_v28  ;;  %v8830_v4 = vpop.f32.mrb[51].mxu1 }
 0x4fd   :  { %v9105_v18 = vadd.f32 %v12158_v30, %v14493_v29  ;;  %v12160_v41 = vadd.f32 %v8830_v4, %v14781_v37  ;;  %12073 = vmatprep.mubr.bf16.mxu0 %v9223_v55  ;;  %v14788_v4 = vld [vmem:[#allocation68_spill] sm:$0xff] }
 0x4fe   :  { %v9108_v38 = vadd.f32 %v12159_v31, %v14493_v29  ;;  %12074 = vmatmul.mubr.bf16.gmra.mrb[140].mxu0 %v9224_v16  ;;  %v9171_v0 = vmax.f32 %v9107_v27, 0.0 }
 0x4ff   :  { %v9106_v49 = vadd.f32 %v12160_v41, %v14493_v29  ;;  %v9169_v3 = vmax.f32 %v9105_v18, 0.0 }
 0x500   :  { %v9172_v33 = vmax.f32 %v9108_v38, 0.0 }
 0x501   :  { %v9170_v53 = vmax.f32 %v9106_v49, 0.0  ;;  %v12003_v32 = vpop.f32.mrb[52].mxu1 }
 0x502   :  { %v12161_v7 = vadd.f32 %v12003_v32, %v14782_v23  ;;  %v8843_v45 = vpop.f32.mrb[53].mxu1  ;;  %v9226_v39 = vpack.c.bf16 %v9172_v33, %v9171_v0  ;;  %v14789_v32 = vld [vmem:[#allocation16_spill] sm:$0xff] }
 0x503   :  { %v12162_v21 = vadd.f32 %v8843_v45, %v14783_v58  ;;  %v12004_v35 = vpop.f32.mrb[54].mxu1  ;;  %v9225_v48 = vpack.c.bf16 %v9170_v53, %v9169_v3 }
 0x504   :  { %v9111_v54 = vadd.f32 %v12161_v7, %v14493_v29  ;;  %v12163_v57 = vadd.f32 %v12004_v35, %v14784_v60  ;;  %v8846_v11 = vpop.f32.mrb[55].mxu1 }
 0x505   :  { %v9109_v56 = vadd.f32 %v12162_v21, %v14493_v29  ;;  %v12164_v34 = vadd.f32 %v8846_v11, %v14785_v40  ;;  %12077 = vmatprep.mubr.bf16.mxu0 %v9225_v48  ;;  %v14791_v48 = vld [vmem:[#allocation18_spill] sm:$0xff]  ;;  %v14792_v11 = vld [vmem:[#allocation19_spill] sm:$0xff] }
 0x506   :  { %v9112_v9 = vadd.f32 %v12163_v57, %v14493_v29  ;;  %12078 = vmatmul.mubr.bf16.gmra.mrb[144].mxu0 %v9226_v39  ;;  %v9175_v42 = vmax.f32 %v9111_v54, 0.0  ;;  %v14790_v39 = vld [vmem:[#allocation17_spill] sm:$0xff] }
 0x507   :  { %v9110_v62 = vadd.f32 %v12164_v34, %v14493_v29  ;;  %v9173_v25 = vmax.f32 %v9109_v56, 0.0 }
 0x508   :  { %v9176_v36 = vmax.f32 %v9112_v9, 0.0 }
 0x509   :  { %v9174_v22 = vmax.f32 %v9110_v62, 0.0  ;;  %v12007_v20 = vpop.f32.mrb[56].mxu1 }
 0x50a   :  { %v12165_v13 = vadd.f32 %v12007_v20, %v14390_v26  ;;  %v8859_v14 = vpop.f32.mrb[57].mxu1  ;;  %v9228_v47 = vpack.c.bf16 %v9176_v36, %v9175_v42 }
 0x50b   :  { %v12166_v61 = vadd.f32 %v8859_v14, %v14392_v8  ;;  %v12008_v6 = vpop.f32.mrb[58].mxu1  ;;  %v9227_v19 = vpack.c.bf16 %v9174_v22, %v9173_v25  ;;  %v14793_v22 = vld [vmem:[#allocation20_spill] sm:$0xff] }
 0x50c   :  { %v9115_v5 = vadd.f32 %v12165_v13, %v14493_v29  ;;  %v12167_v63 = vadd.f32 %v12008_v6, %v14786_v15  ;;  %v8862_v24 = vpop.f32.mrb[59].mxu1  ;;  %v14795_v15 = vld [vmem:[#allocation22_spill] sm:$0xff] }
 0x50d   :  { %v9113_v46 = vadd.f32 %v12166_v61, %v14493_v29  ;;  %v12168_v10 = vadd.f32 %v8862_v24, %v14787_v17  ;;  %12081 = vmatprep.mubr.bf16.mxu0 %v9227_v19  ;;  %v14796_v17 = vld [vmem:[#allocation23_spill] sm:$0xff] }
 0x50e   :  { %v9116_v59 = vadd.f32 %v12167_v63, %v14493_v29  ;;  %12082 = vmatmul.mubr.bf16.gmra.mrb[148].mxu0 %v9228_v47  ;;  %v9179_v44 = vmax.f32 %v9115_v5, 0.0  ;;  %v14794_v47 = vld [vmem:[#allocation21_spill] sm:$0xff] }
 0x50f   :  { %v9114_v26 = vadd.f32 %v12168_v10, %v14493_v29  ;;  %v9177_v8 = vmax.f32 %v9113_v46, 0.0 }
 0x510   :  { %v9180_v52 = vmax.f32 %v9116_v59, 0.0 }
 0x511   :  { %v9178_v43 = vmax.f32 %v9114_v26, 0.0  ;;  %v12011_v16 = vpop.f32.mrb[60].mxu1 }
 0x512   :  { %v12169_v50 = vadd.f32 %v12011_v16, %v14405_v51  ;;  %v8875_v30 = vpop.f32.mrb[61].mxu1  ;;  %v9230_v1 = vpack.c.bf16 %v9180_v52, %v9179_v44 }
 0x513   :  { %v12170_v55 = vadd.f32 %v8875_v30, %v14407_v2  ;;  %v12012_v27 = vpop.f32.mrb[62].mxu1  ;;  %v9229_v28 = vpack.c.bf16 %v9178_v43, %v9177_v8 }
 0x514   :  { %v9119_v31 = vadd.f32 %v12169_v50, %v14493_v29  ;;  %v12171_v18 = vadd.f32 %v12012_v27, %v14788_v4  ;;  %v8878_v37 = vpop.f32.mrb[63].mxu1  ;;  %v14797_v50 = vld [vmem:[#allocation24_spill] sm:$0xff]  ;;  %v14798_v27 = vld [vmem:[#allocation25_spill] sm:$0xff] }
 0x515   :  { %v9117_v41 = vadd.f32 %v12170_v55, %v14493_v29  ;;  %v12172_v38 = vadd.f32 %v8878_v37, %v14415_v12  ;;  %12085 = vmatprep.mubr.bf16.mxu0 %v9229_v28  ;;  %v14799_v37 = vld [vmem:[#allocation26_spill] sm:$0xff] }
 0x516   :  { %v9120_v49 = vadd.f32 %v12171_v18, %v14493_v29  ;;  %12086 = vmatmul.mubr.bf16.gmra.mrb[152].mxu0 %v9230_v1  ;;  %v9183_v0 = vmax.f32 %v9119_v31, 0.0 }
 0x517   :  { %v9118_v51 = vadd.f32 %v12172_v38, %v14493_v29  ;;  %v9181_v2 = vmax.f32 %v9117_v41, 0.0 }
 0x518   :  { %v9184_v33 = vmax.f32 %v9120_v49, 0.0 }
 0x519   :  { %v9182_v3 = vmax.f32 %v9118_v51, 0.0  ;;  %v12015_v53 = vpop.f32.mrb[0].mxu1  ;;  %v14800_v51 = vld [vmem:[#allocation27_spill] sm:$0xff] }
 0x51a   :  { %v12173_v23 = vadd.f32 %v12015_v53, %v14789_v32  ;;  %v8891_v7 = vpop.f32.mrb[1].mxu1  ;;  %v9232_v45 = vpack.c.bf16 %v9184_v33, %v9183_v0 }
 0x51b   :  { %v12174_v58 = vadd.f32 %v8891_v7, %v14790_v39  ;;  %v12016_v21 = vpop.f32.mrb[2].mxu1  ;;  %v9231_v35 = vpack.c.bf16 %v9182_v3, %v9181_v2 }
 0x51c   :  { %v9123_v12 = vadd.f32 %v12173_v23, %v14493_v29  ;;  %v12175_v54 = vadd.f32 %v12016_v21, %v14791_v48  ;;  %v8894_v60 = vpop.f32.mrb[3].mxu1 }
 0x51d   :  { %v9121_v57 = vadd.f32 %v12174_v58, %v14493_v29  ;;  %v12176_v56 = vadd.f32 %v8894_v60, %v14792_v11  ;;  %12089 = vmatprep.mubr.bf16.mxu0 %v9231_v35  ;;  %v14802_v35 = vld [vmem:[#allocation29_spill] sm:$0xff] }
 0x51e   :  { %v9124_v40 = vadd.f32 %v12175_v54, %v14493_v29  ;;  %12090 = vmatmul.mubr.bf16.gmra.mrb[156].mxu0 %v9232_v45  ;;  %v9187_v9 = vmax.f32 %v9123_v12, 0.0  ;;  %v14801_v45 = vld [vmem:[#allocation28_spill] sm:$0xff] }
 0x51f   :  { %v9122_v34 = vadd.f32 %v12176_v56, %v14493_v29  ;;  %v9185_v42 = vmax.f32 %v9121_v57, 0.0  ;;  %v14803_v57 = vld [vmem:[#allocation30_spill] sm:$0xff] }
 0x520   :  { %v9188_v62 = vmax.f32 %v9124_v40, 0.0 }
 0x521   :  { %v9186_v36 = vmax.f32 %v9122_v34, 0.0  ;;  %v12019_v25 = vpop.f32.mrb[4].mxu1  ;;  %v14804_v34 = vld [vmem:[#allocation31_spill] sm:$0xff] }
 0x522   :  { %v12177_v20 = vadd.f32 %v12019_v25, %v14793_v22  ;;  %v8907_v13 = vpop.f32.mrb[5].mxu1  ;;  %v9234_v14 = vpack.c.bf16 %v9188_v62, %v9187_v9 }
 0x523   :  { %v12178_v61 = vadd.f32 %v8907_v13, %v14794_v47  ;;  %v12020_v6 = vpop.f32.mrb[6].mxu1  ;;  %v9233_v19 = vpack.c.bf16 %v9186_v36, %v9185_v42 }
 0x524   :  { %v9127_v5 = vadd.f32 %v12177_v20, %v14493_v29  ;;  %v12179_v63 = vadd.f32 %v12020_v6, %v14795_v15  ;;  %v8910_v24 = vpop.f32.mrb[7].mxu1 }
 0x525   :  { %v9125_v46 = vadd.f32 %v12178_v61, %v14493_v29  ;;  %v12180_v10 = vadd.f32 %v8910_v24, %v14796_v17  ;;  %12093 = vmatprep.mubr.bf16.mxu0 %v9233_v19  ;;  %v14806_v19 = vld [vmem:[#allocation33_spill] sm:$0xff] }
 0x526   :  { %v9128_v59 = vadd.f32 %v12179_v63, %v14493_v29  ;;  %12094 = vmatmul.mubr.bf16.gmra.mrb[160].mxu0 %v9234_v14  ;;  %v9191_v44 = vmax.f32 %v9127_v5, 0.0  ;;  %v14805_v14 = vld [vmem:[#allocation32_spill] sm:$0xff] }
 0x527   :  { %v9126_v26 = vadd.f32 %v12180_v10, %v14493_v29  ;;  %v9189_v8 = vmax.f32 %v9125_v46, 0.0  ;;  %v14807_v46 = vld [vmem:[#allocation34_spill] sm:$0xff] }
 0x528   :  { %v9192_v52 = vmax.f32 %v9128_v59, 0.0 }
 0x529   :  { %v9190_v43 = vmax.f32 %v9126_v26, 0.0  ;;  %v12023_v16 = vpop.f32.mrb[8].mxu1  ;;  %v14808_v26 = vld [vmem:[#allocation35_spill] sm:$0xff] }
 0x52a   :  { %v12181_v30 = vadd.f32 %v12023_v16, %v14797_v50  ;;  %v8923_v1 = vpop.f32.mrb[9].mxu1  ;;  %v9236_v55 = vpack.c.bf16 %v9192_v52, %v9191_v44 }
 0x52b   :  { %v12182_v28 = vadd.f32 %v8923_v1, %v14798_v27  ;;  %v12024_v31 = vpop.f32.mrb[10].mxu1  ;;  %v9235_v4 = vpack.c.bf16 %v9190_v43, %v9189_v8 }
 0x52c   :  { %v9131_v18 = vadd.f32 %v12181_v30, %v14493_v29  ;;  %v12183_v41 = vadd.f32 %v12024_v31, %v14799_v37  ;;  %v8926_v38 = vpop.f32.mrb[11].mxu1 }
 0x52d   :  { %v9129_v49 = vadd.f32 %v12182_v28, %v14493_v29  ;;  %v12184_v0 = vadd.f32 %v8926_v38, %v14800_v51  ;;  %12097 = vmatprep.mubr.bf16.mxu0 %v9235_v4  ;;  %v14810_v4 = vld [vmem:[#allocation37_spill] sm:$0xff] }
 0x52e   :  { %v9132_v33 = vadd.f32 %v12183_v41, %v14493_v29  ;;  %12098 = vmatmul.mubr.bf16.gmra.mrb[164].mxu0 %v9236_v55  ;;  %v9195_v3 = vmax.f32 %v9131_v18, 0.0  ;;  %v14809_v55 = vld [vmem:[#allocation36_spill] sm:$0xff] }
 0x52f   :  { %v9130_v2 = vadd.f32 %v12184_v0, %v14493_v29  ;;  %v9193_v32 = vmax.f32 %v9129_v49, 0.0  ;;  %v14811_v49 = vld [vmem:[#allocation38_spill] sm:$0xff] }
 0x530   :  { %v9196_v53 = vmax.f32 %v9132_v33, 0.0 }
 0x531   :  { %v9194_v23 = vmax.f32 %v9130_v2, 0.0  ;;  %v12027_v7 = vpop.f32.mrb[12].mxu1  ;;  %v14812_v2 = vld [vmem:[#allocation39_spill] sm:$0xff] }
 0x532   :  { %v12185_v39 = vadd.f32 %v12027_v7, %v14801_v45  ;;  %v8939_v58 = vpop.f32.mrb[13].mxu1  ;;  %v9238_v21 = vpack.c.bf16 %v9196_v53, %v9195_v3 }
 0x533   :  { %v12186_v12 = vadd.f32 %v8939_v58, %v14802_v35  ;;  %v12028_v48 = vpop.f32.mrb[14].mxu1  ;;  %v9237_v54 = vpack.c.bf16 %v9194_v23, %v9193_v32 }
 0x534   :  { %v9135_v60 = vadd.f32 %v12185_v39, %v14493_v29  ;;  %v12187_v11 = vadd.f32 %v12028_v48, %v14803_v57  ;;  %v8942_v56 = vpop.f32.mrb[15].mxu1 }
 0x535   :  { %v9133_v40 = vadd.f32 %v12186_v12, %v14493_v29  ;;  %v12188_v9 = vadd.f32 %v8942_v56, %v14804_v34  ;;  %12101 = vmatprep.mubr.bf16.mxu0 %v9237_v54  ;;  %v14814_v54 = vld [vmem:[#allocation41_spill] sm:$0xff] }
 0x536   :  { %v9136_v62 = vadd.f32 %v12187_v11, %v14493_v29  ;;  %12102 = vmatmul.mubr.bf16.gmra.mrb[168].mxu0 %v9238_v21  ;;  %v9199_v36 = vmax.f32 %v9135_v60, 0.0  ;;  %v14813_v21 = vld [vmem:[#allocation40_spill] sm:$0xff] }
 0x537   :  { %v9134_v42 = vadd.f32 %v12188_v9, %v14493_v29  ;;  %v9197_v22 = vmax.f32 %v9133_v40, 0.0  ;;  %v14815_v40 = vld [vmem:[#allocation42_spill] sm:$0xff] }
 0x538   :  { %v9200_v25 = vmax.f32 %v9136_v62, 0.0 }
 0x539   :  { %v9198_v20 = vmax.f32 %v9134_v42, 0.0  ;;  %v12031_v13 = vpop.f32.mrb[16].mxu1  ;;  %v14816_v42 = vld [vmem:[#allocation43_spill] sm:$0xff] }
 0x53a   :  { %v12189_v47 = vadd.f32 %v12031_v13, %v14805_v14  ;;  %v8955_v61 = vpop.f32.mrb[17].mxu1  ;;  %v9240_v6 = vpack.c.bf16 %v9200_v25, %v9199_v36 }
 0x53b   :  { %v12190_v5 = vadd.f32 %v8955_v61, %v14806_v19  ;;  %v12032_v15 = vpop.f32.mrb[18].mxu1  ;;  %v9239_v63 = vpack.c.bf16 %v9198_v20, %v9197_v22 }
 0x53c   :  { %v9139_v24 = vadd.f32 %v12189_v47, %v14493_v29  ;;  %v12191_v17 = vadd.f32 %v12032_v15, %v14807_v46  ;;  %v8958_v10 = vpop.f32.mrb[19].mxu1 }
 0x53d   :  { %v9137_v59 = vadd.f32 %v12190_v5, %v14493_v29  ;;  %v12192_v44 = vadd.f32 %v8958_v10, %v14808_v26  ;;  %12105 = vmatprep.mubr.bf16.mxu0 %v9239_v63  ;;  %v14818_v63 = vld [vmem:[#allocation45_spill] sm:$0xff] }
 0x53e   :  { %v9140_v52 = vadd.f32 %v12191_v17, %v14493_v29  ;;  %12106 = vmatmul.mubr.bf16.gmra.mrb[172].mxu0 %v9240_v6  ;;  %v9203_v43 = vmax.f32 %v9139_v24, 0.0  ;;  %v14817_v6 = vld [vmem:[#allocation44_spill] sm:$0xff] }
 0x53f   :  { %v9138_v8 = vadd.f32 %v12192_v44, %v14493_v29  ;;  %v9201_v50 = vmax.f32 %v9137_v59, 0.0  ;;  %v14819_v59 = vld [vmem:[#allocation46_spill] sm:$0xff] }
 0x540   :  { %v9204_v16 = vmax.f32 %v9140_v52, 0.0 }
 0x541   :  { %v9202_v30 = vmax.f32 %v9138_v8, 0.0  ;;  %v12035_v1 = vpop.f32.mrb[20].mxu1  ;;  %v14820_v8 = vld [vmem:[#allocation47_spill] sm:$0xff] }
 0x542   :  { %v12193_v27 = vadd.f32 %v12035_v1, %v14809_v55  ;;  %v8971_v28 = vpop.f32.mrb[21].mxu1  ;;  %v9242_v31 = vpack.c.bf16 %v9204_v16, %v9203_v43 }
 0x543   :  { %v12194_v18 = vadd.f32 %v8971_v28, %v14810_v4  ;;  %v12036_v37 = vpop.f32.mrb[22].mxu1  ;;  %v9241_v41 = vpack.c.bf16 %v9202_v30, %v9201_v50  ;;  %v10743_v4 = vld [vmem:[#allocation3 + $0x8] sm:$0xff]  }
 0x544   :  { %v9143_v38 = vadd.f32 %v12193_v27, %v14493_v29  ;;  %v12195_v51 = vadd.f32 %v12036_v37, %v14811_v49  ;;  %v8974_v0 = vpop.f32.mrb[23].mxu1  ;;  %v14626_v37 = vld [vmem:[%s14713_s6] ss:$0 sm:$0xff]  ;;  %s13048_s6 = smov [#allocation11]  }
 0x545   :  { %v9141_v33 = vadd.f32 %v12194_v18, %v14493_v29  ;;  %v12196_v3 = vadd.f32 %v8974_v0, %v14812_v2  ;;  %12109 = vmatprep.mubr.bf16.mxu0 %v9241_v41  ;;  %v10456_v18 = vld [vmem:[#allocation3] sm:$0xff]   ;;  %v10461_v41 = vunpack.c.l.bf16 %v10743_v4  ;;  %v10462_v0 = vunpack.c.h.bf16 %v10743_v4  ;;  %s10190_s9 = sshll.u32 %s13048_s6, 4  ;;  %s10191_s9 = int_to_ptr.vmem [resolvable:$true] %s10190_s9 }
 0x546   :  { %v9144_v53 = vadd.f32 %v12195_v51, %v14493_v29  ;;  %12110 = vmatmul.mubr.bf16.gmra.mrb[176].mxu0 %v9242_v31  ;;  %v9207_v23 = vmax.f32 %v9143_v38, 0.0  ;;  %v10457_v49 = vunpack.c.l.bf16 %v10456_v18  ;;  %s13011_s10 = scalar_lea.vmem %s10191_s9, 4096  ;;  %p13016_p5 = scmp.lt.s32.totalorder %s10191_s9, %s10191_s9 }
 0x547   :  { %v9142_v32 = vadd.f32 %v12196_v3, %v14493_v29  ;;  %v9205_v45 = vmax.f32 %v9141_v33, 0.0  ;;  %v10458_v3 = vunpack.c.h.bf16 %v10456_v18  ;;  %v10749_v18 = vld [vmem:[#allocation3 + $0x38] sm:$0xff]   ;;  %p13012_p4 = scmp.ne.s32.totalorder %s10191_s9, %s13011_s10  ;;  %p13017_p6 = scmp.lt.s32.totalorder %s13011_s10, %s13011_s10 }
 0x548   :  { %v9208_v7 = vmax.f32 %v9144_v53, 0.0 }
 0x549   :  { %v9206_v39 = vmax.f32 %v9142_v32, 0.0  ;;  %v12039_v58 = vpop.f32.mrb[24].mxu1  ;;  %p13018_p7 = por %p13017_p6, %p13016_p5 }
 0x54a   :  { %v12197_v35 = vadd.f32 %v12039_v58, %v14813_v21  ;;  %v8987_v12 = vpop.f32.mrb[25].mxu1  ;;  %v9244_v48 = vpack.c.bf16 %v9208_v7, %v9207_v23  ;;  %v10744_v21 = vld [vmem:[#allocation3 + $0x10] sm:$0xff]  }
 0x54b   :  { %v12198_v60 = vadd.f32 %v8987_v12, %v14814_v54  ;;  %v12040_v57 = vpop.f32.mrb[26].mxu1  ;;  %v9243_v11 = vpack.c.bf16 %v9206_v39, %v9205_v45  ;;  %v10745_v39 = vld [vmem:[#allocation3 + $0x18] sm:$0xff]   ;;  %p13019_p8 = pnand %p13018_p7, %p13012_p4 }
 0x54c   :  { %v9147_v56 = vadd.f32 %v12197_v35, %v14493_v29  ;;  %v12199_v34 = vadd.f32 %v12040_v57, %v14815_v40  ;;  %v8990_v9 = vpop.f32.mrb[27].mxu1  ;;  %v10469_v54 = vunpack.c.l.bf16 %v10745_v39 }
 0x54d   :  { %v9145_v62 = vadd.f32 %v12198_v60, %v14493_v29  ;;  %v12200_v36 = vadd.f32 %v8990_v9, %v14816_v42  ;;  %12113 = vmatprep.mubr.bf16.mxu0 %v9243_v11 }
 0x54e   :  { %v9148_v25 = vadd.f32 %v12199_v34, %v14493_v29  ;;  %12114 = vmatmul.mubr.bf16.gmra.mrb[180].mxu0 %v9244_v48  ;;  %v9211_v20 = vmax.f32 %v9147_v56, 0.0  ;;  %v10465_v56 = vunpack.c.l.bf16 %v10744_v21 }
 0x54f   :  { %v9146_v22 = vadd.f32 %v12200_v36, %v14493_v29  ;;  %v9209_v14 = vmax.f32 %v9145_v62, 0.0  ;;  %v10470_v62 = vunpack.c.h.bf16 %v10745_v39 }
 0x550   :  { %v9212_v13 = vmax.f32 %v9148_v25, 0.0 }
 0x551   :  { %v9210_v47 = vmax.f32 %v9146_v22, 0.0  ;;  %v12043_v61 = vpop.f32.mrb[28].mxu1  ;;  %v10466_v22 = vunpack.c.h.bf16 %v10744_v21 }
 0x552   :  { %v12201_v19 = vadd.f32 %v12043_v61, %v14817_v6  ;;  %v9003_v5 = vpop.f32.mrb[29].mxu1  ;;  %v9246_v15 = vpack.c.bf16 %v9212_v13, %v9211_v20  ;;  %v10747_v6 = vld [vmem:[#allocation3 + $0x28] sm:$0xff]  }
 0x553   :  { %v12202_v24 = vadd.f32 %v9003_v5, %v14818_v63  ;;  %v12044_v46 = vpop.f32.mrb[30].mxu1  ;;  %v9245_v17 = vpack.c.bf16 %v9210_v47, %v9209_v14  ;;  %v10746_v5 = vld [vmem:[#allocation3 + $0x20] sm:$0xff]  }
 0x554   :  { %v9151_v10 = vadd.f32 %v12201_v19, %v14493_v29  ;;  %v12203_v26 = vadd.f32 %v12044_v46, %v14819_v59  ;;  %v9006_v44 = vpop.f32.mrb[31].mxu1  ;;  %v10477_v46 = vunpack.c.l.bf16 %v10747_v6 }
 0x555   :  { %v9149_v52 = vadd.f32 %v12202_v24, %v14493_v29  ;;  %v12204_v43 = vadd.f32 %v9006_v44, %v14820_v8  ;;  %12117 = vmatprep.mubr.bf16.mxu0 %v9245_v17 }
 0x556   :  { %v9152_v16 = vadd.f32 %v12203_v26, %v14493_v29  ;;  %12118 = vmatmul.mubr.bf16.gmra.mrb[184].mxu0 %v9246_v15  ;;  %v9215_v30 = vmax.f32 %v9151_v10, 0.0  ;;  %v10473_v26 = vunpack.c.l.bf16 %v10746_v5 }
 0x557   :  { %v9150_v50 = vadd.f32 %v12204_v43, %v14493_v29  ;;  %v9213_v55 = vmax.f32 %v9149_v52, 0.0  ;;  %v10478_v43 = vunpack.c.h.bf16 %v10747_v6 }
 0x558   :  { %v9216_v1 = vmax.f32 %v9152_v16, 0.0 }
 0x559   :  { %v9214_v27 = vmax.f32 %v9150_v50, 0.0 }
 0x55a   :  { %v9248_v28 = vpack.c.bf16 %v9216_v1, %v9215_v30  ;;  %v10474_v1 = vunpack.c.h.bf16 %v10746_v5 }
 0x55b   :  { %v9247_v31 = vpack.c.bf16 %v9214_v27, %v9213_v55 }
 0x55d   :  { %12121 = vmatprep.mubr.bf16.mxu0 %v9247_v31 }
 0x55e   :  { %12122 = vmatmul.mubr.bf16.gmra.mrb[188].mxu0 %v9248_v28 }
 0x5b9   :  { %v12063_v38 = vpop.f32.mrb[128].mxu0 }
 0x5ba   :  { %v9491_v29 = vadd.f32 %v12063_v38, %v14626_v37  ;;  %v9482_v51 = vpop.f32.mrb[129].mxu0  ;;  %v10748_v38 = vld [vmem:[#allocation3 + $0x30] sm:$0xff]  }
 0x5bb   :  { %v9483_v33 = vadd.f32 %v14626_v37, %v9482_v51  ;;  %v12064_v2 = vpop.f32.mrb[130].mxu0 }
 0x5bc   :  { %v9739_v53 = vadd.f32 %v10461_v41, %v9491_v29  ;;  %v9494_v32 = vadd.f32 %v12064_v2, %v14626_v37  ;;  %v9485_v23 = vpop.f32.mrb[131].mxu0 }
 0x5bd   :  { %v9737_v7 = vadd.f32 %v10457_v49, %v9483_v33  ;;  %v9486_v45 = vadd.f32 %v14626_v37, %v9485_v23 }
 0x5be   :  { %v9740_v58 = vadd.f32 %v10462_v0, %v9494_v32  ;;  %v9803_v12 = vmax.f32 %v9739_v53, 0.0  ;;  %v10485_v0 = vunpack.c.l.bf16 %v10749_v18  ;;  %v10481_v53 = vunpack.c.l.bf16 %v10748_v38 }
 0x5bf   :  { %v9738_v35 = vadd.f32 %v10458_v3, %v9486_v45  ;;  %v9801_v60 = vmax.f32 %v9737_v7, 0.0  ;;  %v10486_v45 = vunpack.c.h.bf16 %v10749_v18 }
 0x5c0   :  { %v9804_v48 = vmax.f32 %v9740_v58, 0.0 }
 0x5c1   :  { %v9802_v57 = vmax.f32 %v9738_v35, 0.0  ;;  %v12067_v11 = vpop.f32.mrb[132].mxu0  ;;  %v10482_v35 = vunpack.c.h.bf16 %v10748_v38 }
 0x5c2   :  { %v10591_v40 = vpack.c.bf16 %v9804_v48, %v9803_v12  ;;  %v9507_v34 = vadd.f32 %v12067_v11, %v14626_v37  ;;  %v9498_v9 = vpop.f32.mrb[133].mxu0  ;;  %v10751_v11 = vld [vmem:[#allocation3 + $0x48] sm:$0xff]  }
 0x5c3   :  { %v10586_v42 = vpack.c.bf16 %v9802_v57, %v9801_v60  ;;  %v9499_v36 = vadd.f32 %v14626_v37, %v9498_v9  ;;  %v12068_v25 = vpop.f32.mrb[134].mxu0 }
 0x5c4   :  { %10774 = vst [vmem:[#allocation11 + $0x8] sm:$0xff] %v10591_v40   ;;  %v9743_v20 = vadd.f32 %v10469_v54, %v9507_v34  ;;  %v9510_v13 = vadd.f32 %v12068_v25, %v14626_v37  ;;  %v9501_v14 = vpop.f32.mrb[135].mxu0  ;;  %v10750_v40 = vld [vmem:[#allocation3 + $0x40] sm:$0xff]  }
 0x5c5   :  { %10587 = vst [vmem:[#allocation11] sm:$0xff] %v10586_v42   ;;  %v9741_v47 = vadd.f32 %v10465_v56, %v9499_v36  ;;  %v9502_v61 = vadd.f32 %v14626_v37, %v9501_v14  ;;  %v10493_v42 = vunpack.c.l.bf16 %v10751_v11 }
 0x5c6   :  { %v9744_v19 = vadd.f32 %v10470_v62, %v9510_v13  ;;  %v9807_v63 = vmax.f32 %v9743_v20, 0.0  ;;  %v10489_v20 = vunpack.c.l.bf16 %v10750_v40 }
 0x5c7   :  { %v9742_v15 = vadd.f32 %v10466_v22, %v9502_v61  ;;  %v9805_v17 = vmax.f32 %v9741_v47, 0.0  ;;  %v10494_v61 = vunpack.c.h.bf16 %v10751_v11 }
 0x5c8   :  { %v9808_v24 = vmax.f32 %v9744_v19, 0.0 }
 0x5c9   :  { %v9806_v10 = vmax.f32 %v9742_v15, 0.0  ;;  %v12071_v59 = vpop.f32.mrb[136].mxu0  ;;  %v10490_v15 = vunpack.c.h.bf16 %v10750_v40 }
 0x5ca   :  { %v10601_v44 = vpack.c.bf16 %v9808_v24, %v9807_v63  ;;  %v9523_v52 = vadd.f32 %v12071_v59, %v14626_v37  ;;  %v9514_v8 = vpop.f32.mrb[137].mxu0  ;;  %v10753_v59 = vld [vmem:[#allocation3 + $0x58] sm:$0xff]  }
 0x5cb   :  { %v10596_v16 = vpack.c.bf16 %v9806_v10, %v9805_v17  ;;  %v9515_v50 = vadd.f32 %v14626_v37, %v9514_v8  ;;  %v12072_v30 = vpop.f32.mrb[138].mxu0 }
 0x5cc   :  { %10776 = vst [vmem:[#allocation11 + $0x18] sm:$0xff] %v10601_v44   ;;  %v9747_v55 = vadd.f32 %v10477_v46, %v9523_v52  ;;  %v9526_v27 = vadd.f32 %v12072_v30, %v14626_v37  ;;  %v9517_v28 = vpop.f32.mrb[139].mxu0  ;;  %v10752_v44 = vld [vmem:[#allocation3 + $0x50] sm:$0xff]  }
 0x5cd   :  { %10775 = vst [vmem:[#allocation11 + $0x10] sm:$0xff] %v10596_v16   ;;  %v9745_v31 = vadd.f32 %v10473_v26, %v9515_v50  ;;  %v9518_v4 = vadd.f32 %v14626_v37, %v9517_v28  ;;  %v10501_v16 = vunpack.c.l.bf16 %v10753_v59 }
 0x5ce   :  { %v9748_v41 = vadd.f32 %v10478_v43, %v9526_v27  ;;  %v9811_v29 = vmax.f32 %v9747_v55, 0.0  ;;  %v10497_v55 = vunpack.c.l.bf16 %v10752_v44 }
 0x5cf   :  { %v9746_v49 = vadd.f32 %v10474_v1, %v9518_v4  ;;  %v9809_v33 = vmax.f32 %v9745_v31, 0.0  ;;  %v10502_v4 = vunpack.c.h.bf16 %v10753_v59 }
 0x5d0   :  { %v9812_v51 = vmax.f32 %v9748_v41, 0.0 }
 0x5d1   :  { %v9810_v2 = vmax.f32 %v9746_v49, 0.0  ;;  %v12075_v3 = vpop.f32.mrb[140].mxu0  ;;  %v10498_v49 = vunpack.c.h.bf16 %v10752_v44 }
 0x5d2   :  { %v10611_v32 = vpack.c.bf16 %v9812_v51, %v9811_v29  ;;  %v9539_v23 = vadd.f32 %v12075_v3, %v14626_v37  ;;  %v9530_v7 = vpop.f32.mrb[141].mxu0  ;;  %v10755_v3 = vld [vmem:[#allocation3 + $0x68] sm:$0xff]  }
 0x5d3   :  { %v10606_v39 = vpack.c.bf16 %v9810_v2, %v9809_v33  ;;  %v9531_v58 = vadd.f32 %v14626_v37, %v9530_v7  ;;  %v12076_v21 = vpop.f32.mrb[142].mxu0 }
 0x5d4   :  { %10778 = vst [vmem:[#allocation11 + $0x28] sm:$0xff] %v10611_v32   ;;  %v9751_v12 = vadd.f32 %v10485_v0, %v9539_v23  ;;  %v9542_v48 = vadd.f32 %v12076_v21, %v14626_v37  ;;  %v9533_v54 = vpop.f32.mrb[143].mxu0  ;;  %v10754_v32 = vld [vmem:[#allocation3 + $0x60] sm:$0xff]  }
 0x5d5   :  { %10777 = vst [vmem:[#allocation11 + $0x20] sm:$0xff] %v10606_v39   ;;  %v9749_v60 = vadd.f32 %v10481_v53, %v9531_v58  ;;  %v9534_v57 = vadd.f32 %v14626_v37, %v9533_v54  ;;  %v10509_v39 = vunpack.c.l.bf16 %v10755_v3 }
 0x5d6   :  { %v9752_v56 = vadd.f32 %v10486_v45, %v9542_v48  ;;  %v9815_v9 = vmax.f32 %v9751_v12, 0.0  ;;  %v10505_v12 = vunpack.c.l.bf16 %v10754_v32 }
 0x5d7   :  { %v9750_v34 = vadd.f32 %v10482_v35, %v9534_v57  ;;  %v9813_v36 = vmax.f32 %v9749_v60, 0.0  ;;  %v10510_v57 = vunpack.c.h.bf16 %v10755_v3 }
 0x5d8   :  { %v9816_v62 = vmax.f32 %v9752_v56, 0.0 }
 0x5d9   :  { %v9814_v25 = vmax.f32 %v9750_v34, 0.0  ;;  %v12079_v22 = vpop.f32.mrb[144].mxu0  ;;  %v10506_v34 = vunpack.c.h.bf16 %v10754_v32 }
 0x5da   :  { %v10621_v13 = vpack.c.bf16 %v9816_v62, %v9815_v9  ;;  %v9555_v14 = vadd.f32 %v12079_v22, %v14626_v37  ;;  %v9546_v47 = vpop.f32.mrb[145].mxu0  ;;  %v10757_v22 = vld [vmem:[#allocation3 + $0x78] sm:$0xff]  }
 0x5db   :  { %v10616_v6 = vpack.c.bf16 %v9814_v25, %v9813_v36  ;;  %v9547_v19 = vadd.f32 %v14626_v37, %v9546_v47  ;;  %v12080_v5 = vpop.f32.mrb[146].mxu0 }
 0x5dc   :  { %10780 = vst [vmem:[#allocation11 + $0x38] sm:$0xff] %v10621_v13   ;;  %v9755_v63 = vadd.f32 %v10493_v42, %v9555_v14  ;;  %v9558_v24 = vadd.f32 %v12080_v5, %v14626_v37  ;;  %v9549_v46 = vpop.f32.mrb[147].mxu0  ;;  %v10756_v13 = vld [vmem:[#allocation3 + $0x70] sm:$0xff]  }
 0x5dd   :  { %10779 = vst [vmem:[#allocation11 + $0x30] sm:$0xff] %v10616_v6   ;;  %v9753_v17 = vadd.f32 %v10489_v20, %v9547_v19  ;;  %v9550_v10 = vadd.f32 %v14626_v37, %v9549_v46  ;;  %v10517_v6 = vunpack.c.l.bf16 %v10757_v22 }
 0x5de   :  { %v9756_v26 = vadd.f32 %v10494_v61, %v9558_v24  ;;  %v9819_v8 = vmax.f32 %v9755_v63, 0.0  ;;  %v10513_v63 = vunpack.c.l.bf16 %v10756_v13 }
 0x5df   :  { %v9754_v52 = vadd.f32 %v10490_v15, %v9550_v10  ;;  %v9817_v50 = vmax.f32 %v9753_v17, 0.0  ;;  %v10518_v10 = vunpack.c.h.bf16 %v10757_v22 }
 0x5e0   :  { %v9820_v43 = vmax.f32 %v9756_v26, 0.0 }
 0x5e1   :  { %v9818_v30 = vmax.f32 %v9754_v52, 0.0  ;;  %v12083_v1 = vpop.f32.mrb[148].mxu0  ;;  %v10514_v52 = vunpack.c.h.bf16 %v10756_v13 }
 0x5e2   :  { %v10631_v27 = vpack.c.bf16 %v9820_v43, %v9819_v8  ;;  %v9571_v28 = vadd.f32 %v12083_v1, %v14626_v37  ;;  %v9562_v31 = vpop.f32.mrb[149].mxu0  ;;  %v10759_v1 = vld [vmem:[#allocation3 + $0x88] sm:$0xff]  }
 0x5e3   :  { %v10626_v18 = vpack.c.bf16 %v9818_v30, %v9817_v50  ;;  %v9563_v41 = vadd.f32 %v14626_v37, %v9562_v31  ;;  %v12084_v38 = vpop.f32.mrb[150].mxu0 }
 0x5e4   :  { %10782 = vst [vmem:[#allocation11 + $0x48] sm:$0xff] %v10631_v27   ;;  %v9759_v29 = vadd.f32 %v10501_v16, %v9571_v28  ;;  %v9574_v51 = vadd.f32 %v12084_v38, %v14626_v37  ;;  %v9565_v0 = vpop.f32.mrb[151].mxu0  ;;  %v10758_v27 = vld [vmem:[#allocation3 + $0x80] sm:$0xff]  }
 0x5e5   :  { %10781 = vst [vmem:[#allocation11 + $0x40] sm:$0xff] %v10626_v18   ;;  %v9757_v33 = vadd.f32 %v10497_v55, %v9563_v41  ;;  %v9566_v2 = vadd.f32 %v14626_v37, %v9565_v0  ;;  %v10525_v18 = vunpack.c.l.bf16 %v10759_v1 }
 0x5e6   :  { %v9760_v53 = vadd.f32 %v10502_v4, %v9574_v51  ;;  %v9823_v7 = vmax.f32 %v9759_v29, 0.0  ;;  %v10521_v29 = vunpack.c.l.bf16 %v10758_v27 }
 0x5e7   :  { %v9758_v23 = vadd.f32 %v10498_v49, %v9566_v2  ;;  %v9821_v58 = vmax.f32 %v9757_v33, 0.0  ;;  %v10526_v2 = vunpack.c.h.bf16 %v10759_v1 }
 0x5e8   :  { %v9824_v45 = vmax.f32 %v9760_v53, 0.0 }
 0x5e9   :  { %v9822_v21 = vmax.f32 %v9758_v23, 0.0  ;;  %v12087_v35 = vpop.f32.mrb[152].mxu0  ;;  %v10522_v23 = vunpack.c.h.bf16 %v10758_v27 }
 0x5ea   :  { %v10641_v48 = vpack.c.bf16 %v9824_v45, %v9823_v7  ;;  %v9587_v54 = vadd.f32 %v12087_v35, %v14626_v37  ;;  %v9578_v60 = vpop.f32.mrb[153].mxu0  ;;  %v10761_v35 = vld [vmem:[#allocation3 + $0x98] sm:$0xff]  }
 0x5eb   :  { %v10636_v11 = vpack.c.bf16 %v9822_v21, %v9821_v58  ;;  %v9579_v56 = vadd.f32 %v14626_v37, %v9578_v60  ;;  %v12088_v40 = vpop.f32.mrb[154].mxu0 }
 0x5ec   :  { %10784 = vst [vmem:[#allocation11 + $0x58] sm:$0xff] %v10641_v48   ;;  %v9763_v9 = vadd.f32 %v10509_v39, %v9587_v54  ;;  %v9590_v62 = vadd.f32 %v12088_v40, %v14626_v37  ;;  %v9581_v42 = vpop.f32.mrb[155].mxu0  ;;  %v10760_v48 = vld [vmem:[#allocation3 + $0x90] sm:$0xff]  }
 0x5ed   :  { %10783 = vst [vmem:[#allocation11 + $0x50] sm:$0xff] %v10636_v11   ;;  %v9761_v36 = vadd.f32 %v10505_v12, %v9579_v56  ;;  %v9582_v25 = vadd.f32 %v14626_v37, %v9581_v42  ;;  %v10533_v11 = vunpack.c.l.bf16 %v10761_v35 }
 0x5ee   :  { %v9764_v20 = vadd.f32 %v10510_v57, %v9590_v62  ;;  %v9827_v47 = vmax.f32 %v9763_v9, 0.0  ;;  %v10529_v9 = vunpack.c.l.bf16 %v10760_v48 }
 0x5ef   :  { %v9762_v14 = vadd.f32 %v10506_v34, %v9582_v25  ;;  %v9825_v19 = vmax.f32 %v9761_v36, 0.0  ;;  %v10534_v25 = vunpack.c.h.bf16 %v10761_v35 }
 0x5f0   :  { %v9828_v61 = vmax.f32 %v9764_v20, 0.0 }
 0x5f1   :  { %v9826_v5 = vmax.f32 %v9762_v14, 0.0  ;;  %v12091_v15 = vpop.f32.mrb[156].mxu0  ;;  %v10530_v14 = vunpack.c.h.bf16 %v10760_v48 }
 0x5f2   :  { %v10651_v24 = vpack.c.bf16 %v9828_v61, %v9827_v47  ;;  %v9603_v46 = vadd.f32 %v12091_v15, %v14626_v37  ;;  %v9594_v17 = vpop.f32.mrb[157].mxu0  ;;  %v10763_v15 = vld [vmem:[#allocation3 + $0xa8] sm:$0xff]  }
 0x5f3   :  { %v10646_v59 = vpack.c.bf16 %v9826_v5, %v9825_v19  ;;  %v9595_v26 = vadd.f32 %v14626_v37, %v9594_v17  ;;  %v12092_v44 = vpop.f32.mrb[158].mxu0 }
 0x5f4   :  { %10786 = vst [vmem:[#allocation11 + $0x68] sm:$0xff] %v10651_v24   ;;  %v9767_v8 = vadd.f32 %v10517_v6, %v9603_v46  ;;  %v9606_v43 = vadd.f32 %v12092_v44, %v14626_v37  ;;  %v9597_v16 = vpop.f32.mrb[159].mxu0  ;;  %v10762_v24 = vld [vmem:[#allocation3 + $0xa0] sm:$0xff]  }
 0x5f5   :  { %10785 = vst [vmem:[#allocation11 + $0x60] sm:$0xff] %v10646_v59   ;;  %v9765_v50 = vadd.f32 %v10513_v63, %v9595_v26  ;;  %v9598_v30 = vadd.f32 %v14626_v37, %v9597_v16  ;;  %v10541_v59 = vunpack.c.l.bf16 %v10763_v15 }
 0x5f6   :  { %v9768_v55 = vadd.f32 %v10518_v10, %v9606_v43  ;;  %v9831_v31 = vmax.f32 %v9767_v8, 0.0  ;;  %v10537_v8 = vunpack.c.l.bf16 %v10762_v24 }
 0x5f7   :  { %v9766_v28 = vadd.f32 %v10514_v52, %v9598_v30  ;;  %v9829_v41 = vmax.f32 %v9765_v50, 0.0  ;;  %v10542_v30 = vunpack.c.h.bf16 %v10763_v15 }
 0x5f8   :  { %v9832_v4 = vmax.f32 %v9768_v55, 0.0 }
 0x5f9   :  { %v9830_v38 = vmax.f32 %v9766_v28, 0.0  ;;  %v12095_v49 = vpop.f32.mrb[160].mxu0  ;;  %v10538_v28 = vunpack.c.h.bf16 %v10762_v24 }
 0x5fa   :  { %v10661_v51 = vpack.c.bf16 %v9832_v4, %v9831_v31  ;;  %v9619_v0 = vadd.f32 %v12095_v49, %v14626_v37  ;;  %v9610_v33 = vpop.f32.mrb[161].mxu0  ;;  %v10765_v49 = vld [vmem:[#allocation3 + $0xb8] sm:$0xff]  }
 0x5fb   :  { %v10656_v3 = vpack.c.bf16 %v9830_v38, %v9829_v41  ;;  %v9611_v53 = vadd.f32 %v14626_v37, %v9610_v33  ;;  %v12096_v32 = vpop.f32.mrb[162].mxu0 }
 0x5fc   :  { %10788 = vst [vmem:[#allocation11 + $0x78] sm:$0xff] %v10661_v51   ;;  %v9771_v7 = vadd.f32 %v10525_v18, %v9619_v0  ;;  %v9622_v45 = vadd.f32 %v12096_v32, %v14626_v37  ;;  %v9613_v39 = vpop.f32.mrb[163].mxu0  ;;  %v10764_v51 = vld [vmem:[#allocation3 + $0xb0] sm:$0xff]  }
 0x5fd   :  { %10787 = vst [vmem:[#allocation11 + $0x70] sm:$0xff] %v10656_v3   ;;  %v9769_v58 = vadd.f32 %v10521_v29, %v9611_v53  ;;  %v9614_v21 = vadd.f32 %v14626_v37, %v9613_v39  ;;  %v10549_v3 = vunpack.c.l.bf16 %v10765_v49 }
 0x5fe   :  { %v9772_v12 = vadd.f32 %v10526_v2, %v9622_v45  ;;  %v9835_v60 = vmax.f32 %v9771_v7, 0.0  ;;  %v10545_v7 = vunpack.c.l.bf16 %v10764_v51 }
 0x5ff   :  { %v9770_v54 = vadd.f32 %v10522_v23, %v9614_v21  ;;  %v9833_v56 = vmax.f32 %v9769_v58, 0.0  ;;  %v10550_v21 = vunpack.c.h.bf16 %v10765_v49 }
 0x600   :  { %v9836_v57 = vmax.f32 %v9772_v12, 0.0 }
 0x601   :  { %v9834_v40 = vmax.f32 %v9770_v54, 0.0  ;;  %v12099_v34 = vpop.f32.mrb[164].mxu0  ;;  %v10546_v54 = vunpack.c.h.bf16 %v10764_v51 }
 0x602   :  { %v10671_v62 = vpack.c.bf16 %v9836_v57, %v9835_v60  ;;  %v9635_v42 = vadd.f32 %v12099_v34, %v14626_v37  ;;  %v9626_v36 = vpop.f32.mrb[165].mxu0  ;;  %v10767_v34 = vld [vmem:[#allocation3 + $0xc8] sm:$0xff]  }
 0x603   :  { %v10666_v22 = vpack.c.bf16 %v9834_v40, %v9833_v56  ;;  %v9627_v20 = vadd.f32 %v14626_v37, %v9626_v36  ;;  %v12100_v13 = vpop.f32.mrb[166].mxu0 }
 0x604   :  { %10790 = vst [vmem:[#allocation11 + $0x88] sm:$0xff] %v10671_v62   ;;  %v9775_v47 = vadd.f32 %v10533_v11, %v9635_v42  ;;  %v9638_v61 = vadd.f32 %v12100_v13, %v14626_v37  ;;  %v9629_v6 = vpop.f32.mrb[167].mxu0  ;;  %v10766_v62 = vld [vmem:[#allocation3 + $0xc0] sm:$0xff]  }
 0x605   :  { %10789 = vst [vmem:[#allocation11 + $0x80] sm:$0xff] %v10666_v22   ;;  %v9773_v19 = vadd.f32 %v10529_v9, %v9627_v20  ;;  %v9630_v5 = vadd.f32 %v14626_v37, %v9629_v6  ;;  %v10557_v22 = vunpack.c.l.bf16 %v10767_v34 }
 0x606   :  { %v9776_v63 = vadd.f32 %v10534_v25, %v9638_v61  ;;  %v9839_v17 = vmax.f32 %v9775_v47, 0.0  ;;  %v10553_v47 = vunpack.c.l.bf16 %v10766_v62 }
 0x607   :  { %v9774_v46 = vadd.f32 %v10530_v14, %v9630_v5  ;;  %v9837_v26 = vmax.f32 %v9773_v19, 0.0  ;;  %v10558_v5 = vunpack.c.h.bf16 %v10767_v34 }
 0x608   :  { %v9840_v10 = vmax.f32 %v9776_v63, 0.0 }
 0x609   :  { %v9838_v44 = vmax.f32 %v9774_v46, 0.0  ;;  %v12103_v52 = vpop.f32.mrb[168].mxu0  ;;  %v10554_v46 = vunpack.c.h.bf16 %v10766_v62 }
 0x60a   :  { %v10681_v43 = vpack.c.bf16 %v9840_v10, %v9839_v17  ;;  %v9651_v16 = vadd.f32 %v12103_v52, %v14626_v37  ;;  %v9642_v50 = vpop.f32.mrb[169].mxu0  ;;  %v10769_v52 = vld [vmem:[#allocation3 + $0xd8] sm:$0xff]  }
 0x60b   :  { %v10676_v1 = vpack.c.bf16 %v9838_v44, %v9837_v26  ;;  %v9643_v55 = vadd.f32 %v14626_v37, %v9642_v50  ;;  %v12104_v27 = vpop.f32.mrb[170].mxu0 }
 0x60c   :  { %10792 = vst [vmem:[#allocation11 + $0x98] sm:$0xff] %v10681_v43   ;;  %v9779_v31 = vadd.f32 %v10541_v59, %v9651_v16  ;;  %v9654_v4 = vadd.f32 %v12104_v27, %v14626_v37  ;;  %v9645_v18 = vpop.f32.mrb[171].mxu0  ;;  %v10768_v43 = vld [vmem:[#allocation3 + $0xd0] sm:$0xff]  }
 0x60d   :  { %10791 = vst [vmem:[#allocation11 + $0x90] sm:$0xff] %v10676_v1   ;;  %v9777_v41 = vadd.f32 %v10537_v8, %v9643_v55  ;;  %v9646_v38 = vadd.f32 %v14626_v37, %v9645_v18  ;;  %v10565_v1 = vunpack.c.l.bf16 %v10769_v52 }
 0x60e   :  { %v9780_v29 = vadd.f32 %v10542_v30, %v9654_v4  ;;  %v9843_v33 = vmax.f32 %v9779_v31, 0.0  ;;  %v10561_v31 = vunpack.c.l.bf16 %v10768_v43 }
 0x60f   :  { %v9778_v0 = vadd.f32 %v10538_v28, %v9646_v38  ;;  %v9841_v53 = vmax.f32 %v9777_v41, 0.0  ;;  %v10566_v38 = vunpack.c.h.bf16 %v10769_v52 }
 0x610   :  { %v9844_v2 = vmax.f32 %v9780_v29, 0.0 }
 0x611   :  { %v9842_v32 = vmax.f32 %v9778_v0, 0.0  ;;  %v12107_v23 = vpop.f32.mrb[172].mxu0  ;;  %v10562_v0 = vunpack.c.h.bf16 %v10768_v43 }
 0x612   :  { %v10691_v45 = vpack.c.bf16 %v9844_v2, %v9843_v33  ;;  %v9667_v39 = vadd.f32 %v12107_v23, %v14626_v37  ;;  %v9658_v58 = vpop.f32.mrb[173].mxu0  ;;  %v10771_v23 = vld [vmem:[#allocation3 + $0xe8] sm:$0xff]  }
 0x613   :  { %v10686_v35 = vpack.c.bf16 %v9842_v32, %v9841_v53  ;;  %v9659_v12 = vadd.f32 %v14626_v37, %v9658_v58  ;;  %v12108_v48 = vpop.f32.mrb[174].mxu0 }
 0x614   :  { %10794 = vst [vmem:[#allocation11 + $0xa8] sm:$0xff] %v10691_v45   ;;  %v9783_v60 = vadd.f32 %v10549_v3, %v9667_v39  ;;  %v9670_v57 = vadd.f32 %v12108_v48, %v14626_v37  ;;  %v9661_v11 = vpop.f32.mrb[175].mxu0  ;;  %v10770_v45 = vld [vmem:[#allocation3 + $0xe0] sm:$0xff]  }
 0x615   :  { %10793 = vst [vmem:[#allocation11 + $0xa0] sm:$0xff] %v10686_v35   ;;  %v9781_v56 = vadd.f32 %v10545_v7, %v9659_v12  ;;  %v9662_v40 = vadd.f32 %v14626_v37, %v9661_v11  ;;  %v10573_v35 = vunpack.c.l.bf16 %v10771_v23 }
 0x616   :  { %v9784_v9 = vadd.f32 %v10550_v21, %v9670_v57  ;;  %v9847_v36 = vmax.f32 %v9783_v60, 0.0  ;;  %v10569_v60 = vunpack.c.l.bf16 %v10770_v45 }
 0x617   :  { %v9782_v42 = vadd.f32 %v10546_v54, %v9662_v40  ;;  %v9845_v20 = vmax.f32 %v9781_v56, 0.0  ;;  %v10574_v40 = vunpack.c.h.bf16 %v10771_v23 }
 0x618   :  { %v9848_v25 = vmax.f32 %v9784_v9, 0.0 }
 0x619   :  { %v9846_v13 = vmax.f32 %v9782_v42, 0.0  ;;  %v12111_v14 = vpop.f32.mrb[176].mxu0  ;;  %v10570_v42 = vunpack.c.h.bf16 %v10770_v45 }
 0x61a   :  { %v10701_v61 = vpack.c.bf16 %v9848_v25, %v9847_v36  ;;  %v9683_v6 = vadd.f32 %v12111_v14, %v14626_v37  ;;  %v9674_v19 = vpop.f32.mrb[177].mxu0  ;;  %v10773_v14 = vld [vmem:[#allocation3 + $0xf8] sm:$0xff]  }
 0x61b   :  { %v10696_v15 = vpack.c.bf16 %v9846_v13, %v9845_v20  ;;  %v9675_v63 = vadd.f32 %v14626_v37, %v9674_v19  ;;  %v12112_v24 = vpop.f32.mrb[178].mxu0 }
 0x61c   :  { %10796 = vst [vmem:[#allocation11 + $0xb8] sm:$0xff] %v10701_v61   ;;  %v9787_v17 = vadd.f32 %v10557_v22, %v9683_v6  ;;  %v9686_v10 = vadd.f32 %v12112_v24, %v14626_v37  ;;  %v9677_v59 = vpop.f32.mrb[179].mxu0  ;;  %v10772_v61 = vld [vmem:[#allocation3 + $0xf0] sm:$0xff]  }
 0x61d   :  { %10795 = vst [vmem:[#allocation11 + $0xb0] sm:$0xff] %v10696_v15   ;;  %v9785_v26 = vadd.f32 %v10553_v47, %v9675_v63  ;;  %v9678_v44 = vadd.f32 %v14626_v37, %v9677_v59  ;;  %v10581_v15 = vunpack.c.l.bf16 %v10773_v14 }
 0x61e   :  { %v9788_v8 = vadd.f32 %v10558_v5, %v9686_v10  ;;  %v9851_v50 = vmax.f32 %v9787_v17, 0.0  ;;  %v10577_v17 = vunpack.c.l.bf16 %v10772_v61 }
 0x61f   :  { %v9786_v16 = vadd.f32 %v10554_v46, %v9678_v44  ;;  %v9849_v55 = vmax.f32 %v9785_v26, 0.0  ;;  %v10582_v44 = vunpack.c.h.bf16 %v10773_v14 }
 0x620   :  { %v9852_v30 = vmax.f32 %v9788_v8, 0.0 }
 0x621   :  { %v9850_v27 = vmax.f32 %v9786_v16, 0.0  ;;  %v12115_v28 = vpop.f32.mrb[180].mxu0  ;;  %v10578_v16 = vunpack.c.h.bf16 %v10772_v61 }
 0x622   :  { %v10711_v4 = vpack.c.bf16 %v9852_v30, %v9851_v50  ;;  %v9699_v18 = vadd.f32 %v12115_v28, %v14626_v37  ;;  %v9690_v41 = vpop.f32.mrb[181].mxu0 }
 0x623   :  { %v10706_v49 = vpack.c.bf16 %v9850_v27, %v9849_v55  ;;  %v9691_v29 = vadd.f32 %v14626_v37, %v9690_v41  ;;  %v12116_v51 = vpop.f32.mrb[182].mxu0 }
 0x624   :  { %10798 = vst [vmem:[#allocation11 + $0xc8] sm:$0xff] %v10711_v4   ;;  %v9791_v33 = vadd.f32 %v10565_v1, %v9699_v18  ;;  %v9702_v2 = vadd.f32 %v12116_v51, %v14626_v37  ;;  %v9693_v3 = vpop.f32.mrb[183].mxu0 }
 0x625   :  { %10797 = vst [vmem:[#allocation11 + $0xc0] sm:$0xff] %v10706_v49   ;;  %v9789_v53 = vadd.f32 %v10561_v31, %v9691_v29  ;;  %v9694_v32 = vadd.f32 %v14626_v37, %v9693_v3 }
 0x626   :  { %v9792_v7 = vadd.f32 %v10566_v38, %v9702_v2  ;;  %v9855_v58 = vmax.f32 %v9791_v33, 0.0 }
 0x627   :  { %v9790_v39 = vadd.f32 %v10562_v0, %v9694_v32  ;;  %v9853_v12 = vmax.f32 %v9789_v53, 0.0 }
 0x628   :  { %v9856_v21 = vmax.f32 %v9792_v7, 0.0 }
 0x629   :  { %v9854_v48 = vmax.f32 %v9790_v39, 0.0  ;;  %v12119_v54 = vpop.f32.mrb[184].mxu0 }
 0x62a   :  { %v10721_v57 = vpack.c.bf16 %v9856_v21, %v9855_v58  ;;  %v9715_v11 = vadd.f32 %v12119_v54, %v14626_v37  ;;  %v9706_v56 = vpop.f32.mrb[185].mxu0 }
 0x62b   :  { %v10716_v34 = vpack.c.bf16 %v9854_v48, %v9853_v12  ;;  %v9707_v9 = vadd.f32 %v14626_v37, %v9706_v56  ;;  %v12120_v62 = vpop.f32.mrb[186].mxu0 }
 0x62c   :  { %10800 = vst [vmem:[#allocation11 + $0xd8] sm:$0xff] %v10721_v57   ;;  %v9795_v36 = vadd.f32 %v10573_v35, %v9715_v11  ;;  %v9718_v25 = vadd.f32 %v12120_v62, %v14626_v37  ;;  %v9709_v22 = vpop.f32.mrb[187].mxu0 }
 0x62d   :  { %10799 = vst [vmem:[#allocation11 + $0xd0] sm:$0xff] %v10716_v34   ;;  %v9793_v20 = vadd.f32 %v10569_v60, %v9707_v9  ;;  %v9710_v13 = vadd.f32 %v14626_v37, %v9709_v22 }
 0x62e   :  { %v9796_v47 = vadd.f32 %v10574_v40, %v9718_v25  ;;  %v9859_v19 = vmax.f32 %v9795_v36, 0.0 }
 0x62f   :  { %v9794_v6 = vadd.f32 %v10570_v42, %v9710_v13  ;;  %v9857_v63 = vmax.f32 %v9793_v20, 0.0 }
 0x630   :  { %v9860_v5 = vmax.f32 %v9796_v47, 0.0 }
 0x631   :  { %v9858_v24 = vmax.f32 %v9794_v6, 0.0  ;;  %v12123_v46 = vpop.f32.mrb[188].mxu0 }
 0x632   :  { %v10731_v10 = vpack.c.bf16 %v9860_v5, %v9859_v19  ;;  %v9731_v59 = vadd.f32 %v12123_v46, %v14626_v37  ;;  %v9722_v26 = vpop.f32.mrb[189].mxu0 }
 0x633   :  { %v10726_v52 = vpack.c.bf16 %v9858_v24, %v9857_v63  ;;  %v9723_v8 = vadd.f32 %v14626_v37, %v9722_v26  ;;  %v12124_v43 = vpop.f32.mrb[190].mxu0 }
 0x634   :  { %10802 = vst [vmem:[#allocation11 + $0xe8] sm:$0xff] %v10731_v10   ;;  %v9799_v50 = vadd.f32 %v10581_v15, %v9731_v59  ;;  %v9734_v30 = vadd.f32 %v12124_v43, %v14626_v37  ;;  %v9725_v1 = vpop.f32.mrb[191].mxu0 }
 0x635   :  { %10801 = vst [vmem:[#allocation11 + $0xe0] sm:$0xff] %v10726_v52   ;;  %v9797_v55 = vadd.f32 %v10577_v17, %v9723_v8  ;;  %v9726_v27 = vadd.f32 %v14626_v37, %v9725_v1 }
 0x636   :  { %v9800_v28 = vadd.f32 %v10582_v44, %v9734_v30  ;;  %v9863_v4 = vmax.f32 %v9799_v50, 0.0 }
 0x637   :  { %v9798_v31 = vadd.f32 %v10578_v16, %v9726_v27  ;;  %v9861_v41 = vmax.f32 %v9797_v55, 0.0 }
 0x638   :  { %v9864_v18 = vmax.f32 %v9800_v28, 0.0 }
 0x639   :  { %v9862_v38 = vmax.f32 %v9798_v31, 0.0 }
 0x63a   :  { %v10741_v49 = vpack.c.bf16 %v9864_v18, %v9863_v4 }
 0x63b   :  { %v10736_v29 = vpack.c.bf16 %v9862_v38, %v9861_v41 }
 0x63c   :  { %10804 = vst [vmem:[#allocation11 + $0xf8] sm:$0xff] %v10741_v49  }
 0x63d   :  { %10803 = vst [vmem:[#allocation11 + $0xf0] sm:$0xff] %v10736_v29  }
 0x63e   :  { %13022 = shalt.err (!%p13019_p8)
}
 0x63f   :  { %s13023_s15 = scalar_lea.hbm %s14714_s7, 4096 }
 0x640   :  { %p13024_p9 = scmp.ne.s32.totalorder %s14714_s7, %s13023_s15  ;;  %p13027_p10 = scmp.lt.u32.totalorder %s13023_s15, %s14714_s7 }
 0x642   :  { %p13029_p11 = pnand %p13027_p10, %p13024_p9 }
 0x644   :  { %13032 = shalt.err (!%p13029_p11)
}
 0x645   :  { %10196 = dma.vmem_to_hbm [thread:$0]  %s10191_s9, 4096, %s14714_s7, [#allocation5], %s13043_s13, %s13043_s13, %s13044_s14  }
 0x646   :  { %13039 = dma.done.wait [#allocation5], 4096  }
 0x647   :  { %13040 = vsyncadd [#allocation5], 4294963200 }
 0x648   :  { %10200 = vsyncpa [#allocation4], 1 }
 0x649   :  { %10201 = vsyncpa [#allocation7], 1 }
 0x64a   :  { %10202 = vsyncpa [#allocation10], 1 }
 0x64b   :  { %10203 = vsyncpa [#allocation5], 1 }

</bundles_post_ra>
